<compile_context>
chip_gen: v7x
topology: tpu7x:2x2x1
jax: 0.10.0
libtpu: 0.0.40
codegen_flags: <defaults>
</compile_context>

<pallas_src>
import functools

import jax
import jax.numpy as jnp
from jax.experimental import pallas as pl
from jax.experimental.pallas import tpu as pltpu

_C = 512                       # lane-dense column width (multiple of 128 lanes)
_SLAB = 64                     # rows per inner slab (multiple of 8/16/32 packing)
_SMALL_FALLBACK = 64 * 1024    # below this many elements, plain jnp is faster


def _kl_term_sum_jnp(mean, logvar):
    m = mean.astype(jnp.float32)
    lv = logvar.astype(jnp.float32)
    return jnp.sum(1.0 + lv - m * m - jnp.exp(lv))


def _kl_div_kernel(mean_ref, logvar_ref, out_ref, *, rows, tile_rows, steps,
                   needs_mask):
    """Accumulate (8, C) partial sums of (lv - m^2 - exp(lv)) per shard."""
    p = pl.program_id(0)   # TensorCore shard
    k = pl.program_id(1)   # reduction step within this shard

    @pl.when(k == 0)
    def _():
        out_ref[...] = jnp.zeros_like(out_ref)

    # Logical first row of this block.  Any over-covered / clamped block is
    # fully masked below because its logical rows are all >= rows.
    block_row0 = (p * steps + k) * tile_rows
    n_slabs = tile_rows // _SLAB

    def slab_body(s, acc):
        r0 = pl.multiple_of(s * _SLAB, _SLAB)
        m = mean_ref[pl.ds(r0, _SLAB), :].astype(jnp.float32)
        lv = logvar_ref[pl.ds(r0, _SLAB), :].astype(jnp.float32)
        term = lv - m * m - jnp.exp(lv)          # the "+1" is added outside
        if needs_mask:
            rid = jax.lax.broadcasted_iota(jnp.int32, (_SLAB, _C), 0)
            term = jnp.where(block_row0 + r0 + rid < rows, term, 0.0)
        # (SLAB, C) -> (SLAB//8, 8, C): splits only the sublane axis at
        # multiple-of-8 boundaries (no relayout); sum(axis=0) is pure vreg adds.
        return acc + term.reshape(-1, 8, _C).sum(axis=0)

    acc = jax.lax.fori_loop(0, n_slabs, slab_body,
                            jnp.zeros((8, _C), jnp.float32), unroll=True)
    out_ref[...] += acc


def _chip_defaults():
    """Returns (per-input block bytes, vmem_limit_bytes or None, is_v7x)."""
    kind = ""
    try:
        kind = jax.devices()[0].device_kind.lower()
    except Exception:
        pass
    if "v7" in kind:           # 64 MiB VMEM, ~3.2 TB/s HBM: bigger blocks pay off
        return 6 * 1024 * 1024, 48 * 1024 * 1024, True
    if "v6" in kind:           # 32 MiB default scoped VMEM
        return 4 * 1024 * 1024, None, False
    # v5e (16 MiB default scoped VMEM) or unknown: stay conservative.
    return 2 * 1024 * 1024, None, False


def kl_divergence_loss(mean: jax.Array, logvar: jax.Array) -> jax.Array:
    assert mean.shape == logvar.shape
    total = mean.size
    if total == 0:
        return jnp.zeros((), jnp.float32)
    if total < _SMALL_FALLBACK:
        # Kernel launch + grid overhead dominates for tiny VAE latents.
        return -0.5 * _kl_term_sum_jnp(mean, logvar)

    block_bytes, vmem_limit, is_v7x = _chip_defaults()

    flat_mean = mean.reshape(-1)
    flat_logvar = logvar.reshape(-1)

    aligned = (total // _C) * _C
    rows = aligned // _C

    # Tail (< C elements): tiny plain-jnp fold; avoids padding both full inputs.
    if aligned < total:
        tail = _kl_term_sum_jnp(flat_mean[aligned:], flat_logvar[aligned:])
    else:
        tail = jnp.float32(0.0)

    # Lane-dense (rows, C) views.  When aligned == total (the common case)
    # these are free reshapes of contiguous buffers; otherwise only the aligned
    # prefix is sliced (vs. the old jnp.pad of BOTH full inputs).
    mean2d = flat_mean[:aligned].reshape(rows, _C)
    logvar2d = flat_logvar[:aligned].reshape(rows, _C)

    itemsize = max(jnp.dtype(mean.dtype).itemsize,
                   jnp.dtype(logvar.dtype).itemsize)
    cdiv = lambda a, b: -(-a // b)

    # tile_rows is a multiple of _SLAB=64, which also satisfies the 16/32
    # sublane packing multiples required by bf16 / 8-bit inputs.
    max_tile_rows = max(_SLAB, (block_bytes // (_C * itemsize)) // _SLAB * _SLAB)
    # Shard rows across the two TensorCores only on v7x (CORE_PARALLEL below).
    P = 2 if (is_v7x and rows > max_tile_rows) else 1
    tile_rows = min(max_tile_rows, cdiv(cdiv(rows, P), _SLAB) * _SLAB)
    n_blocks = cdiv(rows, tile_rows)
    steps = cdiv(n_blocks, P)
    needs_mask = (P * steps * tile_rows) != rows
    needs_clamp = (P * steps) > n_blocks   # only when P does not divide n_blocks

    if needs_clamp:
        # Keep block indices in range; over-covered steps contribute nothing
        # because their logical rows (derived from program_id) are all >= rows.
        in_idx = lambda p, k: (jnp.minimum(p * steps + k, n_blocks - 1), 0)
    else:
        in_idx = lambda p, k: (p * steps + k, 0)

    in_spec = pl.BlockSpec((tile_rows, _C), in_idx)
    out_spec = pl.BlockSpec((None, 8, _C), lambda p, k: (p, 0, 0))

    if P == 2:
        dim_sems = (pltpu.CORE_PARALLEL, pltpu.ARBITRARY)
    else:
        dim_sems = ("arbitrary", "arbitrary")

    kernel = functools.partial(_kl_div_kernel, rows=rows, tile_rows=tile_rows,
                               steps=steps, needs_mask=needs_mask)

    partials = pl.pallas_call(
        kernel,
        out_shape=jax.ShapeDtypeStruct((P, 8, _C), jnp.float32),
        grid_spec=pltpu.PrefetchScalarGridSpec(
            num_scalar_prefetch=0,
            grid=(P, steps),
            in_specs=[in_spec, in_spec],
            out_specs=out_spec,
        ),
        compiler_params=pltpu.CompilerParams(
            dimension_semantics=dim_sems,
            vmem_limit_bytes=vmem_limit,
        ),
    )(mean2d, logvar2d)

    # Tiny final cross-lane reduce + the hoisted "+1 per element" + tail.
    return -0.5 * (jnp.sum(partials) + jnp.float32(aligned) + tail)


def _reference(mean, logvar):
    m = mean.astype(jnp.float32)
    lv = logvar.astype(jnp.float32)
    return -0.5 * jnp.sum(1.0 + lv - m * m - jnp.exp(lv))


if __name__ == "__main__":
    key = jax.random.PRNGKey(0)
    ks = jax.random.split(key, 8)

    # 1) Tiny VAE latent (batch=2, latent_dim=32): plain-jnp fast path.
    mean1 = jax.random.normal(ks[0], (2, 32), dtype=jnp.float32)
    logvar1 = jax.random.normal(ks[1], (2, 32), dtype=jnp.float32) * 0.1
    out1 = jax.block_until_ready(kl_divergence_loss(mean1, logvar1))
    ref1 = _reference(mean1, logvar1)
    assert jnp.allclose(out1, ref1, rtol=1e-5, atol=1e-5), (out1, ref1)

    # 2) Larger lane-aligned shape: Pallas path, multi-step reduction + mask.
    mean2 = jax.random.normal(ks[2], (2560, 512), dtype=jnp.float32)
    logvar2 = jax.random.normal(ks[3], (2560, 512), dtype=jnp.float32) * 0.1
    out2 = jax.block_until_ready(kl_divergence_loss(mean2, logvar2))
    ref2 = _reference(mean2, logvar2)
    assert jnp.allclose(out2, ref2, rtol=5e-4, atol=1e-2), (out2, ref2)

    # 3) Unaligned shape: exercises the prefix reshape + jnp tail + row mask.
    mean3 = jax.random.normal(ks[4], (150, 513), dtype=jnp.float32)
    logvar3 = jax.random.normal(ks[5], (150, 513), dtype=jnp.float32) * 0.1
    out3 = jax.block_until_ready(kl_divergence_loss(mean3, logvar3))
    ref3 = _reference(mean3, logvar3)
    assert jnp.allclose(out3, ref3, rtol=1e-4, atol=1e-2), (out3, ref3)

    # 4) bf16 inputs: exercises sub-32-bit block alignment / f32 accumulation.
    mean4 = jax.random.normal(ks[6], (256, 512), dtype=jnp.bfloat16)
    logvar4 = (jax.random.normal(ks[7], (256, 512), dtype=jnp.float32)
               * 0.1).astype(jnp.bfloat16)
    out4 = jax.block_until_ready(kl_divergence_loss(mean4, logvar4))
    ref4 = _reference(mean4, logvar4)
    assert jnp.allclose(out4, ref4, rtol=1e-4, atol=1e-2), (out4, ref4)

    print("KERNEL_OK")
</pallas_src>

<mosaic_0001>
module attributes {stable_mosaic.version = 11 : i64} {
  func.func @_kl_div_kernel(%arg0: i32, %arg1: i32, %arg2: memref<1024x512xf32, #tpu.memory_space<vmem>>, %arg3: memref<1024x512xf32, #tpu.memory_space<vmem>>, %arg4: memref<1x8x512xf32, #tpu.memory_space<vmem>>) attributes {dimension_semantics = [#tpu.dimension_semantics<arbitrary>, #tpu.dimension_semantics<arbitrary>], iteration_bounds = array<i64: 1, 3>, scalar_prefetch = 0 : i64, scratch_operands = 0 : i64, tpu.core_type = #tpu.core_type<tc>, window_params = [{transform_indices = @transform_0, window_bounds = array<i64: 1024, 512>}, {transform_indices = @transform_1, window_bounds = array<i64: 1024, 512>}, {transform_indices = @transform_2, window_bounds = array<i64: 1, 8, 512>}]} {
    %c0_i32 = arith.constant 0 : i32
    %0 = arith.cmpi eq, %arg1, %c0_i32 : i32
    %1 = arith.extui %0 : i1 to i32
    %c0_i32_0 = arith.constant 0 : i32
    %2 = arith.cmpi ne, %1, %c0_i32_0 : i32
    scf.if %2 {
      %cst_102 = arith.constant 0.000000e+00 : f32
      %349 = vector.broadcast %cst_102 : f32 to vector<8x512xf32>
      %c0_103 = arith.constant 0 : index
      %c0_104 = arith.constant 0 : index
      %c0_105 = arith.constant 0 : index
      %350 = vector.load %arg4[%c0_103, %c0_104, %c0_105] : memref<1x8x512xf32, #tpu.memory_space<vmem>>, vector<1x8x512xf32>
      %351 = vector.shape_cast %350 : vector<1x8x512xf32> to vector<8x512xf32>
      %352 = vector.shape_cast %349 : vector<8x512xf32> to vector<1x8x512xf32>
      tpu.vector_store %arg4[%c0_103, %c0_104, %c0_105], %352 {strides = array<i32>} : memref<1x8x512xf32, #tpu.memory_space<vmem>>, vector<1x8x512xf32>,
    } else {
    }
    %c3_i32 = arith.constant 3 : i32
    %3 = arith.muli %arg0, %c3_i32 : i32
    %4 = arith.addi %3, %arg1 : i32
    %c1024_i32 = arith.constant 1024 : i32
    %5 = arith.muli %4, %c1024_i32 : i32
    %cst = arith.constant 0.000000e+00 : f32
    %6 = vector.broadcast %cst : f32 to vector<8x512xf32>
    %c0_i32_1 = arith.constant 0 : i32
    %c64_i32 = arith.constant 64 : i32
    %7 = arith.muli %c0_i32_1, %c64_i32 : i32
    %8 = tpu.assume_multiple %7, 64 : i32
    %9 = arith.index_cast %8 : i32 to index
    %c0 = arith.constant 0 : index
    %10 = vector.load %arg2[%9, %c0] : memref<1024x512xf32, #tpu.memory_space<vmem>>, vector<64x512xf32>
    %11 = arith.index_cast %8 : i32 to index
    %c0_2 = arith.constant 0 : index
    %12 = vector.load %arg3[%11, %c0_2] : memref<1024x512xf32, #tpu.memory_space<vmem>>, vector<64x512xf32>
    %13 = arith.mulf %10, %10 : vector<64x512xf32>
    %14 = arith.subf %12, %13 : vector<64x512xf32>
    %15 = math.exp %12 : vector<64x512xf32>
    %16 = arith.subf %14, %15 : vector<64x512xf32>
    %17 = tpu.iota {dimensions = array<i32: 0>} : vector<64x512xi32>
    %18 = arith.addi %5, %8 : i32
    %19 = vector.broadcast %18 : i32 to vector<64x512xi32>
    %20 = arith.addi %19, %17 : vector<64x512xi32>
    %c2560_i32 = arith.constant 2560 : i32
    %21 = vector.broadcast %c2560_i32 : i32 to vector<64x512xi32>
    %22 = arith.cmpi slt, %20, %21 : vector<64x512xi32>
    %cst_3 = arith.constant 0.000000e+00 : f32
    %23 = vector.broadcast %cst_3 : f32 to vector<64x512xf32>
    %24 = arith.select %22, %16, %23 : vector<64x512xi1>, vector<64x512xf32>
    %25 = vector.shape_cast %24 : vector<64x512xf32> to vector<8x8x512xf32>
    %cst_4 = arith.constant dense<0.000000e+00> : vector<8x512xf32>
    %26 = vector.multi_reduction <add>, %25, %cst_4 [0] : vector<8x8x512xf32> to vector<8x512xf32>
    %27 = arith.addf %6, %26 : vector<8x512xf32>
    %c1_i32 = arith.constant 1 : i32
    %c64_i32_5 = arith.constant 64 : i32
    %28 = arith.muli %c1_i32, %c64_i32_5 : i32
    %29 = tpu.assume_multiple %28, 64 : i32
    %30 = arith.index_cast %29 : i32 to index
    %c0_6 = arith.constant 0 : index
    %31 = vector.load %arg2[%30, %c0_6] : memref<1024x512xf32, #tpu.memory_space<vmem>>, vector<64x512xf32>
    %32 = arith.index_cast %29 : i32 to index
    %c0_7 = arith.constant 0 : index
    %33 = vector.load %arg3[%32, %c0_7] : memref<1024x512xf32, #tpu.memory_space<vmem>>, vector<64x512xf32>
    %34 = arith.mulf %31, %31 : vector<64x512xf32>
    %35 = arith.subf %33, %34 : vector<64x512xf32>
    %36 = math.exp %33 : vector<64x512xf32>
    %37 = arith.subf %35, %36 : vector<64x512xf32>
    %38 = tpu.iota {dimensions = array<i32: 0>} : vector<64x512xi32>
    %39 = arith.addi %5, %29 : i32
    %40 = vector.broadcast %39 : i32 to vector<64x512xi32>
    %41 = arith.addi %40, %38 : vector<64x512xi32>
    %c2560_i32_8 = arith.constant 2560 : i32
    %42 = vector.broadcast %c2560_i32_8 : i32 to vector<64x512xi32>
    %43 = arith.cmpi slt, %41, %42 : vector<64x512xi32>
    %cst_9 = arith.constant 0.000000e+00 : f32
    %44 = vector.broadcast %cst_9 : f32 to vector<64x512xf32>
    %45 = arith.select %43, %37, %44 : vector<64x512xi1>, vector<64x512xf32>
    %46 = vector.shape_cast %45 : vector<64x512xf32> to vector<8x8x512xf32>
    %cst_10 = arith.constant dense<0.000000e+00> : vector<8x512xf32>
    %47 = vector.multi_reduction <add>, %46, %cst_10 [0] : vector<8x8x512xf32> to vector<8x512xf32>
    %48 = arith.addf %27, %47 : vector<8x512xf32>
    %c2_i32 = arith.constant 2 : i32
    %c64_i32_11 = arith.constant 64 : i32
    %49 = arith.muli %c2_i32, %c64_i32_11 : i32
    %50 = tpu.assume_multiple %49, 64 : i32
    %51 = arith.index_cast %50 : i32 to index
    %c0_12 = arith.constant 0 : index
    %52 = vector.load %arg2[%51, %c0_12] : memref<1024x512xf32, #tpu.memory_space<vmem>>, vector<64x512xf32>
    %53 = arith.index_cast %50 : i32 to index
    %c0_13 = arith.constant 0 : index
    %54 = vector.load %arg3[%53, %c0_13] : memref<1024x512xf32, #tpu.memory_space<vmem>>, vector<64x512xf32>
    %55 = arith.mulf %52, %52 : vector<64x512xf32>
    %56 = arith.subf %54, %55 : vector<64x512xf32>
    %57 = math.exp %54 : vector<64x512xf32>
    %58 = arith.subf %56, %57 : vector<64x512xf32>
    %59 = tpu.iota {dimensions = array<i32: 0>} : vector<64x512xi32>
    %60 = arith.addi %5, %50 : i32
    %61 = vector.broadcast %60 : i32 to vector<64x512xi32>
    %62 = arith.addi %61, %59 : vector<64x512xi32>
    %c2560_i32_14 = arith.constant 2560 : i32
    %63 = vector.broadcast %c2560_i32_14 : i32 to vector<64x512xi32>
    %64 = arith.cmpi slt, %62, %63 : vector<64x512xi32>
    %cst_15 = arith.constant 0.000000e+00 : f32
    %65 = vector.broadcast %cst_15 : f32 to vector<64x512xf32>
    %66 = arith.select %64, %58, %65 : vector<64x512xi1>, vector<64x512xf32>
    %67 = vector.shape_cast %66 : vector<64x512xf32> to vector<8x8x512xf32>
    %cst_16 = arith.constant dense<0.000000e+00> : vector<8x512xf32>
    %68 = vector.multi_reduction <add>, %67, %cst_16 [0] : vector<8x8x512xf32> to vector<8x512xf32>
    %69 = arith.addf %48, %68 : vector<8x512xf32>
    %c3_i32_17 = arith.constant 3 : i32
    %c64_i32_18 = arith.constant 64 : i32
    %70 = arith.muli %c3_i32_17, %c64_i32_18 : i32
    %71 = tpu.assume_multiple %70, 64 : i32
    %72 = arith.index_cast %71 : i32 to index
    %c0_19 = arith.constant 0 : index
    %73 = vector.load %arg2[%72, %c0_19] : memref<1024x512xf32, #tpu.memory_space<vmem>>, vector<64x512xf32>
    %74 = arith.index_cast %71 : i32 to index
    %c0_20 = arith.constant 0 : index
    %75 = vector.load %arg3[%74, %c0_20] : memref<1024x512xf32, #tpu.memory_space<vmem>>, vector<64x512xf32>
    %76 = arith.mulf %73, %73 : vector<64x512xf32>
    %77 = arith.subf %75, %76 : vector<64x512xf32>
    %78 = math.exp %75 : vector<64x512xf32>
    %79 = arith.subf %77, %78 : vector<64x512xf32>
    %80 = tpu.iota {dimensions = array<i32: 0>} : vector<64x512xi32>
    %81 = arith.addi %5, %71 : i32
    %82 = vector.broadcast %81 : i32 to vector<64x512xi32>
    %83 = arith.addi %82, %80 : vector<64x512xi32>
    %c2560_i32_21 = arith.constant 2560 : i32
    %84 = vector.broadcast %c2560_i32_21 : i32 to vector<64x512xi32>
    %85 = arith.cmpi slt, %83, %84 : vector<64x512xi32>
    %cst_22 = arith.constant 0.000000e+00 : f32
    %86 = vector.broadcast %cst_22 : f32 to vector<64x512xf32>
    %87 = arith.select %85, %79, %86 : vector<64x512xi1>, vector<64x512xf32>
    %88 = vector.shape_cast %87 : vector<64x512xf32> to vector<8x8x512xf32>
    %cst_23 = arith.constant dense<0.000000e+00> : vector<8x512xf32>
    %89 = vector.multi_reduction <add>, %88, %cst_23 [0] : vector<8x8x512xf32> to vector<8x512xf32>
    %90 = arith.addf %69, %89 : vector<8x512xf32>
    %c4_i32 = arith.constant 4 : i32
    %c64_i32_24 = arith.constant 64 : i32
    %91 = arith.muli %c4_i32, %c64_i32_24 : i32
    %92 = tpu.assume_multiple %91, 64 : i32
    %93 = arith.index_cast %92 : i32 to index
    %c0_25 = arith.constant 0 : index
    %94 = vector.load %arg2[%93, %c0_25] : memref<1024x512xf32, #tpu.memory_space<vmem>>, vector<64x512xf32>
    %95 = arith.index_cast %92 : i32 to index
    %c0_26 = arith.constant 0 : index
    %96 = vector.load %arg3[%95, %c0_26] : memref<1024x512xf32, #tpu.memory_space<vmem>>, vector<64x512xf32>
    %97 = arith.mulf %94, %94 : vector<64x512xf32>
    %98 = arith.subf %96, %97 : vector<64x512xf32>
    %99 = math.exp %96 : vector<64x512xf32>
    %100 = arith.subf %98, %99 : vector<64x512xf32>
    %101 = tpu.iota {dimensions = array<i32: 0>} : vector<64x512xi32>
    %102 = arith.addi %5, %92 : i32
    %103 = vector.broadcast %102 : i32 to vector<64x512xi32>
    %104 = arith.addi %103, %101 : vector<64x512xi32>
    %c2560_i32_27 = arith.constant 2560 : i32
    %105 = vector.broadcast %c2560_i32_27 : i32 to vector<64x512xi32>
    %106 = arith.cmpi slt, %104, %105 : vector<64x512xi32>
    %cst_28 = arith.constant 0.000000e+00 : f32
    %107 = vector.broadcast %cst_28 : f32 to vector<64x512xf32>
    %108 = arith.select %106, %100, %107 : vector<64x512xi1>, vector<64x512xf32>
    %109 = vector.shape_cast %108 : vector<64x512xf32> to vector<8x8x512xf32>
    %cst_29 = arith.constant dense<0.000000e+00> : vector<8x512xf32>
    %110 = vector.multi_reduction <add>, %109, %cst_29 [0] : vector<8x8x512xf32> to vector<8x512xf32>
    %111 = arith.addf %90, %110 : vector<8x512xf32>
    %c5_i32 = arith.constant 5 : i32
    %c64_i32_30 = arith.constant 64 : i32
    %112 = arith.muli %c5_i32, %c64_i32_30 : i32
    %113 = tpu.assume_multiple %112, 64 : i32
    %114 = arith.index_cast %113 : i32 to index
    %c0_31 = arith.constant 0 : index
    %115 = vector.load %arg2[%114, %c0_31] : memref<1024x512xf32, #tpu.memory_space<vmem>>, vector<64x512xf32>
    %116 = arith.index_cast %113 : i32 to index
    %c0_32 = arith.constant 0 : index
    %117 = vector.load %arg3[%116, %c0_32] : memref<1024x512xf32, #tpu.memory_space<vmem>>, vector<64x512xf32>
    %118 = arith.mulf %115, %115 : vector<64x512xf32>
    %119 = arith.subf %117, %118 : vector<64x512xf32>
    %120 = math.exp %117 : vector<64x512xf32>
    %121 = arith.subf %119, %120 : vector<64x512xf32>
    %122 = tpu.iota {dimensions = array<i32: 0>} : vector<64x512xi32>
    %123 = arith.addi %5, %113 : i32
    %124 = vector.broadcast %123 : i32 to vector<64x512xi32>
    %125 = arith.addi %124, %122 : vector<64x512xi32>
    %c2560_i32_33 = arith.constant 2560 : i32
    %126 = vector.broadcast %c2560_i32_33 : i32 to vector<64x512xi32>
    %127 = arith.cmpi slt, %125, %126 : vector<64x512xi32>
    %cst_34 = arith.constant 0.000000e+00 : f32
    %128 = vector.broadcast %cst_34 : f32 to vector<64x512xf32>
    %129 = arith.select %127, %121, %128 : vector<64x512xi1>, vector<64x512xf32>
    %130 = vector.shape_cast %129 : vector<64x512xf32> to vector<8x8x512xf32>
    %cst_35 = arith.constant dense<0.000000e+00> : vector<8x512xf32>
    %131 = vector.multi_reduction <add>, %130, %cst_35 [0] : vector<8x8x512xf32> to vector<8x512xf32>
    %132 = arith.addf %111, %131 : vector<8x512xf32>
    %c6_i32 = arith.constant 6 : i32
    %c64_i32_36 = arith.constant 64 : i32
    %133 = arith.muli %c6_i32, %c64_i32_36 : i32
    %134 = tpu.assume_multiple %133, 64 : i32
    %135 = arith.index_cast %134 : i32 to index
    %c0_37 = arith.constant 0 : index
    %136 = vector.load %arg2[%135, %c0_37] : memref<1024x512xf32, #tpu.memory_space<vmem>>, vector<64x512xf32>
    %137 = arith.index_cast %134 : i32 to index
    %c0_38 = arith.constant 0 : index
    %138 = vector.load %arg3[%137, %c0_38] : memref<1024x512xf32, #tpu.memory_space<vmem>>, vector<64x512xf32>
    %139 = arith.mulf %136, %136 : vector<64x512xf32>
    %140 = arith.subf %138, %139 : vector<64x512xf32>
    %141 = math.exp %138 : vector<64x512xf32>
    %142 = arith.subf %140, %141 : vector<64x512xf32>
    %143 = tpu.iota {dimensions = array<i32: 0>} : vector<64x512xi32>
    %144 = arith.addi %5, %134 : i32
    %145 = vector.broadcast %144 : i32 to vector<64x512xi32>
    %146 = arith.addi %145, %143 : vector<64x512xi32>
    %c2560_i32_39 = arith.constant 2560 : i32
    %147 = vector.broadcast %c2560_i32_39 : i32 to vector<64x512xi32>
    %148 = arith.cmpi slt, %146, %147 : vector<64x512xi32>
    %cst_40 = arith.constant 0.000000e+00 : f32
    %149 = vector.broadcast %cst_40 : f32 to vector<64x512xf32>
    %150 = arith.select %148, %142, %149 : vector<64x512xi1>, vector<64x512xf32>
    %151 = vector.shape_cast %150 : vector<64x512xf32> to vector<8x8x512xf32>
    %cst_41 = arith.constant dense<0.000000e+00> : vector<8x512xf32>
    %152 = vector.multi_reduction <add>, %151, %cst_41 [0] : vector<8x8x512xf32> to vector<8x512xf32>
    %153 = arith.addf %132, %152 : vector<8x512xf32>
    %c7_i32 = arith.constant 7 : i32
    %c64_i32_42 = arith.constant 64 : i32
    %154 = arith.muli %c7_i32, %c64_i32_42 : i32
    %155 = tpu.assume_multiple %154, 64 : i32
    %156 = arith.index_cast %155 : i32 to index
    %c0_43 = arith.constant 0 : index
    %157 = vector.load %arg2[%156, %c0_43] : memref<1024x512xf32, #tpu.memory_space<vmem>>, vector<64x512xf32>
    %158 = arith.index_cast %155 : i32 to index
    %c0_44 = arith.constant 0 : index
    %159 = vector.load %arg3[%158, %c0_44] : memref<1024x512xf32, #tpu.memory_space<vmem>>, vector<64x512xf32>
    %160 = arith.mulf %157, %157 : vector<64x512xf32>
    %161 = arith.subf %159, %160 : vector<64x512xf32>
    %162 = math.exp %159 : vector<64x512xf32>
    %163 = arith.subf %161, %162 : vector<64x512xf32>
    %164 = tpu.iota {dimensions = array<i32: 0>} : vector<64x512xi32>
    %165 = arith.addi %5, %155 : i32
    %166 = vector.broadcast %165 : i32 to vector<64x512xi32>
    %167 = arith.addi %166, %164 : vector<64x512xi32>
    %c2560_i32_45 = arith.constant 2560 : i32
    %168 = vector.broadcast %c2560_i32_45 : i32 to vector<64x512xi32>
    %169 = arith.cmpi slt, %167, %168 : vector<64x512xi32>
    %cst_46 = arith.constant 0.000000e+00 : f32
    %170 = vector.broadcast %cst_46 : f32 to vector<64x512xf32>
    %171 = arith.select %169, %163, %170 : vector<64x512xi1>, vector<64x512xf32>
    %172 = vector.shape_cast %171 : vector<64x512xf32> to vector<8x8x512xf32>
    %cst_47 = arith.constant dense<0.000000e+00> : vector<8x512xf32>
    %173 = vector.multi_reduction <add>, %172, %cst_47 [0] : vector<8x8x512xf32> to vector<8x512xf32>
    %174 = arith.addf %153, %173 : vector<8x512xf32>
    %c8_i32 = arith.constant 8 : i32
    %c64_i32_48 = arith.constant 64 : i32
    %175 = arith.muli %c8_i32, %c64_i32_48 : i32
    %176 = tpu.assume_multiple %175, 64 : i32
    %177 = arith.index_cast %176 : i32 to index
    %c0_49 = arith.constant 0 : index
    %178 = vector.load %arg2[%177, %c0_49] : memref<1024x512xf32, #tpu.memory_space<vmem>>, vector<64x512xf32>
    %179 = arith.index_cast %176 : i32 to index
    %c0_50 = arith.constant 0 : index
    %180 = vector.load %arg3[%179, %c0_50] : memref<1024x512xf32, #tpu.memory_space<vmem>>, vector<64x512xf32>
    %181 = arith.mulf %178, %178 : vector<64x512xf32>
    %182 = arith.subf %180, %181 : vector<64x512xf32>
    %183 = math.exp %180 : vector<64x512xf32>
    %184 = arith.subf %182, %183 : vector<64x512xf32>
    %185 = tpu.iota {dimensions = array<i32: 0>} : vector<64x512xi32>
    %186 = arith.addi %5, %176 : i32
    %187 = vector.broadcast %186 : i32 to vector<64x512xi32>
    %188 = arith.addi %187, %185 : vector<64x512xi32>
    %c2560_i32_51 = arith.constant 2560 : i32
    %189 = vector.broadcast %c2560_i32_51 : i32 to vector<64x512xi32>
    %190 = arith.cmpi slt, %188, %189 : vector<64x512xi32>
    %cst_52 = arith.constant 0.000000e+00 : f32
    %191 = vector.broadcast %cst_52 : f32 to vector<64x512xf32>
    %192 = arith.select %190, %184, %191 : vector<64x512xi1>, vector<64x512xf32>
    %193 = vector.shape_cast %192 : vector<64x512xf32> to vector<8x8x512xf32>
    %cst_53 = arith.constant dense<0.000000e+00> : vector<8x512xf32>
    %194 = vector.multi_reduction <add>, %193, %cst_53 [0] : vector<8x8x512xf32> to vector<8x512xf32>
    %195 = arith.addf %174, %194 : vector<8x512xf32>
    %c9_i32 = arith.constant 9 : i32
    %c64_i32_54 = arith.constant 64 : i32
    %196 = arith.muli %c9_i32, %c64_i32_54 : i32
    %197 = tpu.assume_multiple %196, 64 : i32
    %198 = arith.index_cast %197 : i32 to index
    %c0_55 = arith.constant 0 : index
    %199 = vector.load %arg2[%198, %c0_55] : memref<1024x512xf32, #tpu.memory_space<vmem>>, vector<64x512xf32>
    %200 = arith.index_cast %197 : i32 to index
    %c0_56 = arith.constant 0 : index
    %201 = vector.load %arg3[%200, %c0_56] : memref<1024x512xf32, #tpu.memory_space<vmem>>, vector<64x512xf32>
    %202 = arith.mulf %199, %199 : vector<64x512xf32>
    %203 = arith.subf %201, %202 : vector<64x512xf32>
    %204 = math.exp %201 : vector<64x512xf32>
    %205 = arith.subf %203, %204 : vector<64x512xf32>
    %206 = tpu.iota {dimensions = array<i32: 0>} : vector<64x512xi32>
    %207 = arith.addi %5, %197 : i32
    %208 = vector.broadcast %207 : i32 to vector<64x512xi32>
    %209 = arith.addi %208, %206 : vector<64x512xi32>
    %c2560_i32_57 = arith.constant 2560 : i32
    %210 = vector.broadcast %c2560_i32_57 : i32 to vector<64x512xi32>
    %211 = arith.cmpi slt, %209, %210 : vector<64x512xi32>
    %cst_58 = arith.constant 0.000000e+00 : f32
    %212 = vector.broadcast %cst_58 : f32 to vector<64x512xf32>
    %213 = arith.select %211, %205, %212 : vector<64x512xi1>, vector<64x512xf32>
    %214 = vector.shape_cast %213 : vector<64x512xf32> to vector<8x8x512xf32>
    %cst_59 = arith.constant dense<0.000000e+00> : vector<8x512xf32>
    %215 = vector.multi_reduction <add>, %214, %cst_59 [0] : vector<8x8x512xf32> to vector<8x512xf32>
    %216 = arith.addf %195, %215 : vector<8x512xf32>
    %c10_i32 = arith.constant 10 : i32
    %c64_i32_60 = arith.constant 64 : i32
    %217 = arith.muli %c10_i32, %c64_i32_60 : i32
    %218 = tpu.assume_multiple %217, 64 : i32
    %219 = arith.index_cast %218 : i32 to index
    %c0_61 = arith.constant 0 : index
    %220 = vector.load %arg2[%219, %c0_61] : memref<1024x512xf32, #tpu.memory_space<vmem>>, vector<64x512xf32>
    %221 = arith.index_cast %218 : i32 to index
    %c0_62 = arith.constant 0 : index
    %222 = vector.load %arg3[%221, %c0_62] : memref<1024x512xf32, #tpu.memory_space<vmem>>, vector<64x512xf32>
    %223 = arith.mulf %220, %220 : vector<64x512xf32>
    %224 = arith.subf %222, %223 : vector<64x512xf32>
    %225 = math.exp %222 : vector<64x512xf32>
    %226 = arith.subf %224, %225 : vector<64x512xf32>
    %227 = tpu.iota {dimensions = array<i32: 0>} : vector<64x512xi32>
    %228 = arith.addi %5, %218 : i32
    %229 = vector.broadcast %228 : i32 to vector<64x512xi32>
    %230 = arith.addi %229, %227 : vector<64x512xi32>
    %c2560_i32_63 = arith.constant 2560 : i32
    %231 = vector.broadcast %c2560_i32_63 : i32 to vector<64x512xi32>
    %232 = arith.cmpi slt, %230, %231 : vector<64x512xi32>
    %cst_64 = arith.constant 0.000000e+00 : f32
    %233 = vector.broadcast %cst_64 : f32 to vector<64x512xf32>
    %234 = arith.select %232, %226, %233 : vector<64x512xi1>, vector<64x512xf32>
    %235 = vector.shape_cast %234 : vector<64x512xf32> to vector<8x8x512xf32>
    %cst_65 = arith.constant dense<0.000000e+00> : vector<8x512xf32>
    %236 = vector.multi_reduction <add>, %235, %cst_65 [0] : vector<8x8x512xf32> to vector<8x512xf32>
    %237 = arith.addf %216, %236 : vector<8x512xf32>
    %c11_i32 = arith.constant 11 : i32
    %c64_i32_66 = arith.constant 64 : i32
    %238 = arith.muli %c11_i32, %c64_i32_66 : i32
    %239 = tpu.assume_multiple %238, 64 : i32
    %240 = arith.index_cast %239 : i32 to index
    %c0_67 = arith.constant 0 : index
    %241 = vector.load %arg2[%240, %c0_67] : memref<1024x512xf32, #tpu.memory_space<vmem>>, vector<64x512xf32>
    %242 = arith.index_cast %239 : i32 to index
    %c0_68 = arith.constant 0 : index
    %243 = vector.load %arg3[%242, %c0_68] : memref<1024x512xf32, #tpu.memory_space<vmem>>, vector<64x512xf32>
    %244 = arith.mulf %241, %241 : vector<64x512xf32>
    %245 = arith.subf %243, %244 : vector<64x512xf32>
    %246 = math.exp %243 : vector<64x512xf32>
    %247 = arith.subf %245, %246 : vector<64x512xf32>
    %248 = tpu.iota {dimensions = array<i32: 0>} : vector<64x512xi32>
    %249 = arith.addi %5, %239 : i32
    %250 = vector.broadcast %249 : i32 to vector<64x512xi32>
    %251 = arith.addi %250, %248 : vector<64x512xi32>
    %c2560_i32_69 = arith.constant 2560 : i32
    %252 = vector.broadcast %c2560_i32_69 : i32 to vector<64x512xi32>
    %253 = arith.cmpi slt, %251, %252 : vector<64x512xi32>
    %cst_70 = arith.constant 0.000000e+00 : f32
    %254 = vector.broadcast %cst_70 : f32 to vector<64x512xf32>
    %255 = arith.select %253, %247, %254 : vector<64x512xi1>, vector<64x512xf32>
    %256 = vector.shape_cast %255 : vector<64x512xf32> to vector<8x8x512xf32>
    %cst_71 = arith.constant dense<0.000000e+00> : vector<8x512xf32>
    %257 = vector.multi_reduction <add>, %256, %cst_71 [0] : vector<8x8x512xf32> to vector<8x512xf32>
    %258 = arith.addf %237, %257 : vector<8x512xf32>
    %c12_i32 = arith.constant 12 : i32
    %c64_i32_72 = arith.constant 64 : i32
    %259 = arith.muli %c12_i32, %c64_i32_72 : i32
    %260 = tpu.assume_multiple %259, 64 : i32
    %261 = arith.index_cast %260 : i32 to index
    %c0_73 = arith.constant 0 : index
    %262 = vector.load %arg2[%261, %c0_73] : memref<1024x512xf32, #tpu.memory_space<vmem>>, vector<64x512xf32>
    %263 = arith.index_cast %260 : i32 to index
    %c0_74 = arith.constant 0 : index
    %264 = vector.load %arg3[%263, %c0_74] : memref<1024x512xf32, #tpu.memory_space<vmem>>, vector<64x512xf32>
    %265 = arith.mulf %262, %262 : vector<64x512xf32>
    %266 = arith.subf %264, %265 : vector<64x512xf32>
    %267 = math.exp %264 : vector<64x512xf32>
    %268 = arith.subf %266, %267 : vector<64x512xf32>
    %269 = tpu.iota {dimensions = array<i32: 0>} : vector<64x512xi32>
    %270 = arith.addi %5, %260 : i32
    %271 = vector.broadcast %270 : i32 to vector<64x512xi32>
    %272 = arith.addi %271, %269 : vector<64x512xi32>
    %c2560_i32_75 = arith.constant 2560 : i32
    %273 = vector.broadcast %c2560_i32_75 : i32 to vector<64x512xi32>
    %274 = arith.cmpi slt, %272, %273 : vector<64x512xi32>
    %cst_76 = arith.constant 0.000000e+00 : f32
    %275 = vector.broadcast %cst_76 : f32 to vector<64x512xf32>
    %276 = arith.select %274, %268, %275 : vector<64x512xi1>, vector<64x512xf32>
    %277 = vector.shape_cast %276 : vector<64x512xf32> to vector<8x8x512xf32>
    %cst_77 = arith.constant dense<0.000000e+00> : vector<8x512xf32>
    %278 = vector.multi_reduction <add>, %277, %cst_77 [0] : vector<8x8x512xf32> to vector<8x512xf32>
    %279 = arith.addf %258, %278 : vector<8x512xf32>
    %c13_i32 = arith.constant 13 : i32
    %c64_i32_78 = arith.constant 64 : i32
    %280 = arith.muli %c13_i32, %c64_i32_78 : i32
    %281 = tpu.assume_multiple %280, 64 : i32
    %282 = arith.index_cast %281 : i32 to index
    %c0_79 = arith.constant 0 : index
    %283 = vector.load %arg2[%282, %c0_79] : memref<1024x512xf32, #tpu.memory_space<vmem>>, vector<64x512xf32>
    %284 = arith.index_cast %281 : i32 to index
    %c0_80 = arith.constant 0 : index
    %285 = vector.load %arg3[%284, %c0_80] : memref<1024x512xf32, #tpu.memory_space<vmem>>, vector<64x512xf32>
    %286 = arith.mulf %283, %283 : vector<64x512xf32>
    %287 = arith.subf %285, %286 : vector<64x512xf32>
    %288 = math.exp %285 : vector<64x512xf32>
    %289 = arith.subf %287, %288 : vector<64x512xf32>
    %290 = tpu.iota {dimensions = array<i32: 0>} : vector<64x512xi32>
    %291 = arith.addi %5, %281 : i32
    %292 = vector.broadcast %291 : i32 to vector<64x512xi32>
    %293 = arith.addi %292, %290 : vector<64x512xi32>
    %c2560_i32_81 = arith.constant 2560 : i32
    %294 = vector.broadcast %c2560_i32_81 : i32 to vector<64x512xi32>
    %295 = arith.cmpi slt, %293, %294 : vector<64x512xi32>
    %cst_82 = arith.constant 0.000000e+00 : f32
    %296 = vector.broadcast %cst_82 : f32 to vector<64x512xf32>
    %297 = arith.select %295, %289, %296 : vector<64x512xi1>, vector<64x512xf32>
    %298 = vector.shape_cast %297 : vector<64x512xf32> to vector<8x8x512xf32>
    %cst_83 = arith.constant dense<0.000000e+00> : vector<8x512xf32>
    %299 = vector.multi_reduction <add>, %298, %cst_83 [0] : vector<8x8x512xf32> to vector<8x512xf32>
    %300 = arith.addf %279, %299 : vector<8x512xf32>
    %c14_i32 = arith.constant 14 : i32
    %c64_i32_84 = arith.constant 64 : i32
    %301 = arith.muli %c14_i32, %c64_i32_84 : i32
    %302 = tpu.assume_multiple %301, 64 : i32
    %303 = arith.index_cast %302 : i32 to index
    %c0_85 = arith.constant 0 : index
    %304 = vector.load %arg2[%303, %c0_85] : memref<1024x512xf32, #tpu.memory_space<vmem>>, vector<64x512xf32>
    %305 = arith.index_cast %302 : i32 to index
    %c0_86 = arith.constant 0 : index
    %306 = vector.load %arg3[%305, %c0_86] : memref<1024x512xf32, #tpu.memory_space<vmem>>, vector<64x512xf32>
    %307 = arith.mulf %304, %304 : vector<64x512xf32>
    %308 = arith.subf %306, %307 : vector<64x512xf32>
    %309 = math.exp %306 : vector<64x512xf32>
    %310 = arith.subf %308, %309 : vector<64x512xf32>
    %311 = tpu.iota {dimensions = array<i32: 0>} : vector<64x512xi32>
    %312 = arith.addi %5, %302 : i32
    %313 = vector.broadcast %312 : i32 to vector<64x512xi32>
    %314 = arith.addi %313, %311 : vector<64x512xi32>
    %c2560_i32_87 = arith.constant 2560 : i32
    %315 = vector.broadcast %c2560_i32_87 : i32 to vector<64x512xi32>
    %316 = arith.cmpi slt, %314, %315 : vector<64x512xi32>
    %cst_88 = arith.constant 0.000000e+00 : f32
    %317 = vector.broadcast %cst_88 : f32 to vector<64x512xf32>
    %318 = arith.select %316, %310, %317 : vector<64x512xi1>, vector<64x512xf32>
    %319 = vector.shape_cast %318 : vector<64x512xf32> to vector<8x8x512xf32>
    %cst_89 = arith.constant dense<0.000000e+00> : vector<8x512xf32>
    %320 = vector.multi_reduction <add>, %319, %cst_89 [0] : vector<8x8x512xf32> to vector<8x512xf32>
    %321 = arith.addf %300, %320 : vector<8x512xf32>
    %c15_i32 = arith.constant 15 : i32
    %c64_i32_90 = arith.constant 64 : i32
    %322 = arith.muli %c15_i32, %c64_i32_90 : i32
    %323 = tpu.assume_multiple %322, 64 : i32
    %324 = arith.index_cast %323 : i32 to index
    %c0_91 = arith.constant 0 : index
    %325 = vector.load %arg2[%324, %c0_91] : memref<1024x512xf32, #tpu.memory_space<vmem>>, vector<64x512xf32>
    %326 = arith.index_cast %323 : i32 to index
    %c0_92 = arith.constant 0 : index
    %327 = vector.load %arg3[%326, %c0_92] : memref<1024x512xf32, #tpu.memory_space<vmem>>, vector<64x512xf32>
    %328 = arith.mulf %325, %325 : vector<64x512xf32>
    %329 = arith.subf %327, %328 : vector<64x512xf32>
    %330 = math.exp %327 : vector<64x512xf32>
    %331 = arith.subf %329, %330 : vector<64x512xf32>
    %332 = tpu.iota {dimensions = array<i32: 0>} : vector<64x512xi32>
    %333 = arith.addi %5, %323 : i32
    %334 = vector.broadcast %333 : i32 to vector<64x512xi32>
    %335 = arith.addi %334, %332 : vector<64x512xi32>
    %c2560_i32_93 = arith.constant 2560 : i32
    %336 = vector.broadcast %c2560_i32_93 : i32 to vector<64x512xi32>
    %337 = arith.cmpi slt, %335, %336 : vector<64x512xi32>
    %cst_94 = arith.constant 0.000000e+00 : f32
    %338 = vector.broadcast %cst_94 : f32 to vector<64x512xf32>
    %339 = arith.select %337, %331, %338 : vector<64x512xi1>, vector<64x512xf32>
    %340 = vector.shape_cast %339 : vector<64x512xf32> to vector<8x8x512xf32>
    %cst_95 = arith.constant dense<0.000000e+00> : vector<8x512xf32>
    %341 = vector.multi_reduction <add>, %340, %cst_95 [0] : vector<8x8x512xf32> to vector<8x512xf32>
    %342 = arith.addf %321, %341 : vector<8x512xf32>
    %c16_i32 = arith.constant 16 : i32
    %c0_96 = arith.constant 0 : index
    %c0_97 = arith.constant 0 : index
    %c0_98 = arith.constant 0 : index
    %343 = vector.load %arg4[%c0_96, %c0_97, %c0_98] : memref<1x8x512xf32, #tpu.memory_space<vmem>>, vector<1x8x512xf32>
    %344 = vector.shape_cast %343 : vector<1x8x512xf32> to vector<8x512xf32>
    %345 = arith.addf %344, %342 : vector<8x512xf32>
    %c0_99 = arith.constant 0 : index
    %c0_100 = arith.constant 0 : index
    %c0_101 = arith.constant 0 : index
    %346 = vector.load %arg4[%c0_99, %c0_100, %c0_101] : memref<1x8x512xf32, #tpu.memory_space<vmem>>, vector<1x8x512xf32>
    %347 = vector.shape_cast %346 : vector<1x8x512xf32> to vector<8x512xf32>
    %348 = vector.shape_cast %345 : vector<8x512xf32> to vector<1x8x512xf32>
    tpu.vector_store %arg4[%c0_99, %c0_100, %c0_101], %348 {strides = array<i32>} : memref<1x8x512xf32, #tpu.memory_space<vmem>>, vector<1x8x512xf32>,
    return
  }
  func.func @transform_0(%arg0: i32, %arg1: i32) -> (i32, i32) {
    %c3_i32 = arith.constant 3 : i32
    %0 = arith.muli %arg0, %c3_i32 : i32
    %1 = arith.addi %0, %arg1 : i32
    %c0_i32 = arith.constant 0 : i32
    %c0_i32_0 = arith.constant 0 : i32
    return %1, %c0_i32 : i32, i32
  }
  func.func @transform_1(%arg0: i32, %arg1: i32) -> (i32, i32) {
    %c3_i32 = arith.constant 3 : i32
    %0 = arith.muli %arg0, %c3_i32 : i32
    %1 = arith.addi %0, %arg1 : i32
    %c0_i32 = arith.constant 0 : i32
    %c0_i32_0 = arith.constant 0 : i32
    return %1, %c0_i32 : i32, i32
  }
  func.func @transform_2(%arg0: i32, %arg1: i32) -> (i32, i32, i32) {
    %c0_i32 = arith.constant 0 : i32
    %c0_i32_0 = arith.constant 0 : i32
    %c0_i32_1 = arith.constant 0 : i32
    return %arg0, %c0_i32, %c0_i32_0 : i32, i32, i32
  }
}

</mosaic_0001>

<bundles_post_ra>
// kernel: tpu_custom_call.1
= control target key start
LH: loop header
LB: loop body
LE: loop exit
PB: predicated region body
PF: predicated region fallthrough
CT: control target
= control target key end

     0   :  { %7 = vsyncpa [#allocation3], 0  ;;  %s16093_s0 = inlined_call_operand.hbm [shape: f32[2560,512], index: 0, kind: input, shape index: {}]   ;;  %s16094_s1 = inlined_call_operand.hbm [shape: f32[2560,512], index: 1, kind: input, shape index: {}]   ;;  %s16095_s2 = inlined_call_operand.hbm [shape: f32[1,8,512], index: 2, kind: output, shape index: {}]  }
   0x1   :  { %9 = vsyncpa [#allocation3 + $0x1], 0 }
   0x2   :  { %10 = vsyncpa [#allocation6], 0 }
   0x3   :  { %12 = vsyncpa [#allocation6 + $0x1], 0 }
   0x4   :  { %13 = vsyncpa [#allocation4], 0  ;;  %s7634_s9 = smov 0   ;;  %s7636_s10 = smov 0  }
   0x5   :  { %s7638_s11 = smov 0   ;;  %s7640_s12 = smov 0  }
   0x6   :  { %s7642_s13 = smov 0   ;;  %s7644_s14 = smov 0  }
   0x7 LB: > { %s5387_s15 = sadd.s32 4294967295, %s7609_s14   ;;  %s28_s16 = sadd.s32 1, %s7605_s13  ;;  %s7609_s14 = sphi %s7644_s14, %s19_s14   ;;  %s7605_s13 = sphi %s7642_s13, %s18589_s13   ;;  %s7601_s12 = sphi %s7640_s12, %s18588_s12   ;;  %s7597_s11 = sphi %s7638_s11, %s18587_s11   ;;  %s7593_s10 = sphi %s7636_s10, %s18586_s10   ;;  %s7589_s9 = sphi %s7634_s9, %s18585_s9  }
   0x8   : > { %p29_p0 = scmp.ge.s32.totalorder %s28_s16, 3  ;;  %s42_s17 = sadd.s32 1, %s7597_s11 }
   0x9   : > { %p49_p1 = scmp.ne.s32.totalorder %s7597_s11, %s7593_s10  ;;  %p50_p2 = scmp.eq.s32.totalorder %s7609_s14, 0 }
   0xa   : > { %s18591_s16 = smov (%p29_p0, %s28_s16), 0  ;;  %p55_p4 = scmp.ne.s32.totalorder %s7593_s10, %s7589_s9 }
   0xb   : > { %p7670_p3 = por %p50_p2, %p49_p1  ;;  %s39_s19 = ssub.s32 %s7605_s13, %s18591_s16 }
   0xc   : > { %p56_p5 = scmp.eq.s32.totalorder %s5387_s15, 0  ;;  %p40_p6 = scmp.eq.s32.totalorder %s39_s19, 0 }
   0xd   : > { %p5389_p8 = scmp.ge.s32.totalorder %s7609_s14, 3 }
   0xe   : > { %p7679_p7 = por %p56_p5, %p55_p4 }
   0xf   : > { %s7684_s21 = scalar_select %p40_p6, %s7597_s11, %s42_s17  }
  0x10   : > { %131 = sbr.rel (%p5389_p8) target bundleno = 93 (0x5d), region = 16 }
  0x17   : > { %134 = sbr.rel (!%p7670_p3) target bundleno = 58 (0x3a), region = 20  ;;  %s135_s22 = sand.u32 (%p7670_p3), 1, %s7597_s11  }
  0x18   : > { %s5391_s23 = sshll.u32 (%p7670_p3), %s7605_s13, 7  ;;  %s5390_s24 = sshll.u32 (%p7670_p3), %s135_s22, 12 }
  0x19   : > { %s143_s25 = ssub.s32 (%p7670_p3), 320, %s5391_s23  ;;  %s7694_s28 = scalar_lea.sflag (%p7670_p3), [#allocation3], %s135_s22 }
  0x1a   : > { %p144_p9 = scmp.lt.s32.totalorder (%p7670_p3), %s143_s25, 128  ;;  %s139_s29 = scalar_lea.vmem (%p7670_p3), [#allocation2], %s5390_s24 }
  0x1e   : > { %s18593_s25 = smov (!%p144_p9, %s143_s25), 128 }
  0x1f   : > { %s7691_s26 = sshll.u32 %s18593_s25, 9 }
  0x20   : > { %s149_s27 = ssub.s32 65536, %s7691_s26 }
  0x21   : > { %150 = vsyncadd %s7694_s28, %s149_s27  ;;  %p5394_p10 = scmp.ne.s32.totalorder %s7691_s26, 0  ;;  %s6379_s30 = sshll.u32 %s7605_s13, 16 }
  0x22   : > { %s7702_s5 = scalar_lea.hbm %s16093_s0, %s6379_s30  ;;  %s156_s6 = sshll.u32 %s139_s29, 4  ;;  %s7704_s6 = int_to_ptr.vmem [resolvable:$true] %s156_s6 }
  0x23   : > { %s7469_s7 = scalar_lea.hbm %s7702_s5, %s7691_s26  ;;  %s7473_s17 = scalar_lea.hbm %s16093_s0, 163840 }
  0x24   : > { %p7470_p11 = scmp.ne.s32.totalorder %s7702_s5, %s7469_s7  ;;  %p7474_p0 = scmp.lt.u32.totalorder %s7702_s5, %s16093_s0 }
  0x25   : > { %p7475_p1 = scmp.lt.u32.totalorder %s7473_s17, %s7469_s7  ;;  %p7477_p4 = scmp.lt.u32.totalorder %s7469_s7, %s7702_s5 }
  0x26   : > { %p7471_p12 = pnand %p7470_p11, %p5394_p10 }
  0x27   : > { %p7476_p2 = por %p7475_p1, %p7474_p0 }
  0x28   : > { %p7472_p13 = pneg %p7471_p12 }
  0x29   : > { %p7478_p5 = por %p7477_p4, %p7476_p2 }
  0x2b   : > { %p7479_p6 = pnand %p7478_p5, %p7472_p13 }
  0x2d   : > { %7482 = shalt.err (!%p7479_p6)
}
  0x2e   : > { %s7483_s23 = scalar_lea.vmem %s7704_s6, %s7691_s26  ;;  %s7611_s24 = smov [#allocation2]  }
  0x2f   : > { %p7484_p8 = scmp.ne.s32.totalorder %s7704_s6, %s7483_s23  ;;  %s7487_s25 = sshll.u32 %s7611_s24, 4  ;;  %s7488_s25 = int_to_ptr.vmem [resolvable:$false] %s7487_s25 }
  0x30   : > { %s7489_s27 = scalar_lea.vmem %s7488_s25, 131072  ;;  %p7490_p12 = scmp.lt.s32.totalorder %s7704_s6, %s7488_s25 }
  0x31   : > { %p7485_p9 = pnand %p7484_p8, %p5394_p10  ;;  %p7491_p0 = scmp.lt.s32.totalorder %s7489_s27, %s7483_s23 }
  0x33   : > { %p7486_p11 = pneg %p7485_p9  ;;  %p7492_p1 = por %p7491_p0, %p7490_p12 }
  0x35   : > { %p7493_p2 = pnand %p7492_p1, %p7486_p11 }
  0x37   : > { %7496 = shalt.err (!%p7493_p2)
}
  0x38   : > { %s7612_s29 = smov 512   ;;  %s7613_s30 = smov 32  }
  0x39   : > { %162 = dma.hbm_to_vmem [thread:$0]  (%p5394_p10), %s7702_s5, %s7691_s26, %s7704_s6, %s7694_s28, %s7612_s29, %s7612_s29, %s7613_s30  }
  0x3a PF: > { %165 = sbr.rel (!%p7670_p3) target bundleno = 93 (0x5d), region = 24  ;;  %s166_s3 = sand.u32 (%p7670_p3), 1, %s7597_s11  }
  0x3b   : > { %s5400_s4 = sshll.u32 (%p7670_p3), %s7605_s13, 7  ;;  %s5399_s7 = sshll.u32 (%p7670_p3), %s166_s3, 12 }
  0x3c   : > { %s174_s8 = ssub.s32 (%p7670_p3), 320, %s5400_s4  ;;  %s7738_s19 = scalar_lea.sflag (%p7670_p3), [#allocation6], %s166_s3 }
  0x3d   : > { %p175_p13 = scmp.lt.s32.totalorder (%p7670_p3), %s174_s8, 128  ;;  %s170_s26 = scalar_lea.vmem (%p7670_p3), [#allocation5], %s5399_s7 }
  0x41   : > { %s18595_s8 = smov (!%p175_p13, %s174_s8), 128 }
  0x42   : > { %s7735_s9 = sshll.u32 %s18595_s8, 9 }
  0x43   : > { %s180_s17 = ssub.s32 65536, %s7735_s9 }
  0x44   : > { %181 = vsyncadd %s7738_s19, %s180_s17  ;;  %p5403_p3 = scmp.ne.s32.totalorder %s7735_s9, 0  ;;  %s6382_s18 = sshll.u32 %s7605_s13, 16 }
  0x45   : > { %s7746_s6 = scalar_lea.hbm %s16094_s1, %s6382_s18  ;;  %s187_s22 = sshll.u32 %s170_s26, 4  ;;  %s7748_s22 = int_to_ptr.vmem [resolvable:$true] %s187_s22 }
  0x46   : > { %s7497_s23 = scalar_lea.hbm %s7746_s6, %s7735_s9  ;;  %s7501_s27 = scalar_lea.hbm %s16094_s1, 163840 }
  0x47   : > { %p7498_p10 = scmp.ne.s32.totalorder %s7746_s6, %s7497_s23  ;;  %p7502_p6 = scmp.lt.u32.totalorder %s7746_s6, %s16094_s1 }
  0x48   : > { %p7503_p8 = scmp.lt.u32.totalorder %s7501_s27, %s7497_s23  ;;  %p7505_p11 = scmp.lt.u32.totalorder %s7497_s23, %s7746_s6 }
  0x49   : > { %p7499_p4 = pnand %p7498_p10, %p5403_p3 }
  0x4a   : > { %p7504_p9 = por %p7503_p8, %p7502_p6 }
  0x4b   : > { %p7500_p5 = pneg %p7499_p4 }
  0x4c   : > { %p7506_p12 = por %p7505_p11, %p7504_p9 }
  0x4e   : > { %p7507_p0 = pnand %p7506_p12, %p7500_p5 }
  0x50   : > { %7510 = shalt.err (!%p7507_p0)
}
  0x51   : > { %s7511_s3 = scalar_lea.vmem %s7748_s22, %s7735_s9  ;;  %s7614_s4 = smov [#allocation5]  }
  0x52   : > { %p7512_p1 = scmp.ne.s32.totalorder %s7748_s22, %s7511_s3  ;;  %s7515_s7 = sshll.u32 %s7614_s4, 4  ;;  %s7516_s7 = int_to_ptr.vmem [resolvable:$false] %s7515_s7 }
  0x53   : > { %s7517_s8 = scalar_lea.vmem %s7516_s7, 131072  ;;  %p7518_p10 = scmp.lt.s32.totalorder %s7748_s22, %s7516_s7 }
  0x54   : > { %p7513_p2 = pnand %p7512_p1, %p5403_p3  ;;  %p7519_p4 = scmp.lt.s32.totalorder %s7517_s8, %s7511_s3 }
  0x56   : > { %p7514_p13 = pneg %p7513_p2  ;;  %p7520_p6 = por %p7519_p4, %p7518_p10 }
  0x58   : > { %p7521_p8 = pnand %p7520_p6, %p7514_p13 }
  0x5a   : > { %7524 = shalt.err (!%p7521_p8)
}
  0x5b   : > { %s7615_s17 = smov 512   ;;  %s7616_s26 = smov 32  }
  0x5c   : > { %193 = dma.hbm_to_vmem [thread:$0]  (%p5403_p3), %s7746_s6, %s7735_s9, %s7748_s22, %s7738_s19, %s7615_s17, %s7615_s17, %s7616_s26  }
  0x5d PF: > { %p5408_p5 = scmp.ge.s32.totalorder %s7609_s14, 1  ;;  %p195_p9 = scmp.lt.s32.totalorder %s7609_s14, 4 }
  0x5f   : > { %p196_p11 = pnand %p5408_p5, %p195_p9 }
  0x61   : > { %199 = sbr.rel (%p196_p11) target bundleno = 1200 (0x4b0), region = 28 }
  0x68   : > { %s201_s18 = sand.u32 1, %s7593_s10  }
  0x69   : > { %s5409_s28 = sshll.u32 %s201_s18, 12  ;;  %s202_s5 = scalar_lea.sflag [#allocation3], %s201_s18 }
  0x6a   : > { %s7778_s23 = scalar_lea.vmem [#allocation2], %s5409_s28 }
  0x6b   : > { %7576 = dma.done.wait (%p7679_p7), %s202_s5, 65536  }
  0x6c   : > { %7578 = vsyncadd (%p7679_p7), %s202_s5, 4294901760  ;;  %s211_s9 = scalar_lea.sflag [#allocation6], %s201_s18  ;;  %s7784_s19 = scalar_lea.vmem [#allocation5], %s5409_s28 }
  0x6d   : > { %7580 = dma.done.wait (%p7679_p7), %s211_s9, 65536  }
  0x6e   : > { %7582 = vsyncadd (%p7679_p7), %s211_s9, 4294901760  ;;  %p5411_p3 = scmp.ne.s32.totalorder %s7601_s12, 0 }
  0x6f   : > { %v7617_v0 = vmov (!%p5411_p3), 0.0  }
  0x70   : > { %254 = sbr.rel (%p5411_p3) target bundleno = 119 (0x77), region = 40  ;;  %255 = vst [vmem:[#allocation7] sm:$0xff] (!%p5411_p3), %v7617_v0  ;;  %256 = vst [vmem:[#allocation7 + $0x8] sm:$0xff] (!%p5411_p3), %v7617_v0 }
  0x71   : > { %257 = vst [vmem:[#allocation7 + $0x10] sm:$0xff] (!%p5411_p3), %v7617_v0  ;;  %258 = vst [vmem:[#allocation7 + $0x18] sm:$0xff] (!%p5411_p3), %v7617_v0 }
  0x77 PF: > { %v265_v1 = vld [vmem:[%s7778_s23] sm:$0xff]  ;;  %v266_v2 = vld [vmem:[%s7778_s23 + $0x8] sm:$0xff]  ;;  %v267_v3 = vld [vmem:[%s7778_s23 + $0x10] sm:$0xff]  ;;  %v491_v4 = vlaneseq  ;;  %s7795_s20 = sshll.u32 %s7601_s12, 10  ;;  %s7618_s28 = smov [#allocation7]  }
  0x78   : > { %v268_v5 = vld [vmem:[%s7778_s23 + $0x18] sm:$0xff]  ;;  %v269_v6 = vld [vmem:[%s7778_s23 + $0x20] sm:$0xff]  ;;  %v270_v7 = vld [vmem:[%s7778_s23 + $0x28] sm:$0xff]  ;;  %v7806_v14 = vmul.f32 %v265_v1, %v265_v1  ;;  %v7813_v19 = vmul.f32 %v266_v2, %v266_v2  ;;  %v7815_v20 = vmul.f32 %v267_v3, %v267_v3  ;;  %v7820_v22 = vstv %s7795_s20  ;;  %s811_s12 = sadd.s32 64, %s7795_s20  ;;  %s1122_s6 = sadd.s32 128, %s7795_s20 }
  0x79   : > { %v271_v8 = vld [vmem:[%s7778_s23 + $0x30] sm:$0xff]  ;;  %v272_v9 = vld [vmem:[%s7778_s23 + $0x38] sm:$0xff]  ;;  %v273_v10 = vld [vmem:[%s7778_s23 + $0x40] sm:$0xff]  ;;  %v7808_v15 = vshrl.u32 %v491_v4, 7  ;;  %v7817_v21 = vmul.f32 %v268_v5, %v268_v5  ;;  %v7825_v26 = vmul.f32 %v269_v6, %v269_v6  ;;  %v7827_v27 = vmul.f32 %v270_v7, %v270_v7  ;;  %s1433_s22 = sadd.s32 192, %s7795_s20  ;;  %s1744_s24 = sadd.s32 256, %s7795_s20 }
  0x7a   : > { %v274_v11 = vld [vmem:[%s7778_s23 + $0x48] sm:$0xff]  ;;  %v275_v12 = vld [vmem:[%s7778_s23 + $0x50] sm:$0xff]  ;;  %v276_v13 = vld [vmem:[%s7778_s23 + $0x58] sm:$0xff]  ;;  %v7829_v28 = vmul.f32 %v271_v8, %v271_v8  ;;  %v7831_v29 = vmul.f32 %v272_v9, %v272_v9  ;;  %v7836_v33 = vmul.f32 %v273_v10, %v273_v10  ;;  %s2055_s25 = sadd.s32 320, %s7795_s20  ;;  %s2366_s27 = sadd.s32 384, %s7795_s20 }
  0x7b   : > { %16646 = vst [vmem:[#allocation11_spill] sm:$0xff] %v7808_v15  ;;  %v277_v16 = vld [vmem:[%s7778_s23 + $0x60] sm:$0xff]  ;;  %v278_v17 = vld [vmem:[%s7778_s23 + $0x68] sm:$0xff]  ;;  %v279_v18 = vld [vmem:[%s7778_s23 + $0x70] sm:$0xff]  ;;  %v7838_v34 = vmul.f32 %v274_v11, %v274_v11  ;;  %v7840_v35 = vmul.f32 %v275_v12, %v275_v12  ;;  %v7842_v36 = vmul.f32 %v276_v13, %v276_v13  ;;  %v7854_v43 = vadd.s32 8, %v7808_v15  ;;  %s2677_s29 = sadd.s32 448, %s7795_s20 }
  0x7c   : > { %v280_v23 = vld [vmem:[%s7778_s23 + $0x78] sm:$0xff]  ;;  %v281_v24 = vld [vmem:[%s7778_s23 + $0x80] sm:$0xff]  ;;  %v282_v25 = vld [vmem:[%s7778_s23 + $0x88] sm:$0xff]  ;;  %v7847_v40 = vmul.f32 %v277_v16, %v277_v16  ;;  %v7849_v41 = vmul.f32 %v278_v17, %v278_v17  ;;  %v7851_v42 = vmul.f32 %v279_v18, %v279_v18  ;;  %v7866_v50 = vadd.s32 16, %v7808_v15  ;;  %s2988_s30 = sadd.s32 512, %s7795_s20  ;;  %s3299_s3 = sadd.s32 576, %s7795_s20 }
  0x7d   : > { %v283_v30 = vld [vmem:[%s7778_s23 + $0x90] sm:$0xff]  ;;  %v284_v31 = vld [vmem:[%s7778_s23 + $0x98] sm:$0xff]  ;;  %v285_v32 = vld [vmem:[%s7778_s23 + $0xa0] sm:$0xff]  ;;  %16647 = vst [vmem:[#allocation12_spill] sm:$0xff] %v7838_v34  ;;  %v7859_v47 = vmul.f32 %v280_v23, %v280_v23  ;;  %v7861_v48 = vmul.f32 %v281_v24, %v281_v24  ;;  %v7863_v49 = vmul.f32 %v282_v25, %v282_v25  ;;  %v7877_v56 = vadd.s32 24, %v7808_v15  ;;  %s3610_s4 = sadd.s32 640, %s7795_s20 }
  0x7e   : > { %16648 = vst [vmem:[#allocation13_spill] sm:$0xff] %v7840_v35  ;;  %16649 = vst [vmem:[#allocation14_spill] sm:$0xff] %v7842_v36  ;;  %v286_v37 = vld [vmem:[%s7778_s23 + $0xa8] sm:$0xff]  ;;  %v287_v38 = vld [vmem:[%s7778_s23 + $0xb0] sm:$0xff]  ;;  %v7870_v53 = vmul.f32 %v283_v30, %v283_v30  ;;  %v7872_v54 = vmul.f32 %v284_v31, %v284_v31  ;;  %v7874_v55 = vmul.f32 %v285_v32, %v285_v32  ;;  %v7891_v63 = vadd.s32 32, %v7808_v15  ;;  %s3921_s7 = sadd.s32 704, %s7795_s20 }
  0x7f   : > { %v288_v39 = vld [vmem:[%s7778_s23 + $0xb8] sm:$0xff]  ;;  %16650 = vst [vmem:[#allocation15_spill] sm:$0xff] %v7847_v40  ;;  %16651 = vst [vmem:[#allocation16_spill] sm:$0xff] %v7849_v41  ;;  %v289_v44 = vld [vmem:[%s7778_s23 + $0xc0] sm:$0xff]  ;;  %v7884_v60 = vmul.f32 %v286_v37, %v286_v37  ;;  %v7886_v61 = vmul.f32 %v287_v38, %v287_v38  ;;  %v7904_v5 = vadd.s32 40, %v7808_v15  ;;  %v7912_v9 = vadd.s32 48, %v7808_v15 }
  0x80   : > { %16652 = vst [vmem:[#allocation17_spill] sm:$0xff] %v7851_v42  ;;  %16653 = vst [vmem:[#allocation18_spill] sm:$0xff] %v7854_v43  ;;  %v290_v45 = vld [vmem:[%s7778_s23 + $0xc8] sm:$0xff]  ;;  %v291_v46 = vld [vmem:[%s7778_s23 + $0xd0] sm:$0xff]  ;;  %v7888_v62 = vmul.f32 %v288_v39, %v288_v39  ;;  %v7897_v2 = vmul.f32 %v289_v44, %v289_v44  ;;  %v7926_v17 = vadd.s32 56, %v7808_v15  ;;  %s4232_s8 = sadd.s32 768, %s7795_s20 }
  0x81   : > { %16654 = vst [vmem:[#allocation19_spill] sm:$0xff] %v7859_v47  ;;  %16655 = vst [vmem:[#allocation20_spill] sm:$0xff] %v7861_v48  ;;  %v292_v51 = vld [vmem:[%s7778_s23 + $0xd8] sm:$0xff]  ;;  %v293_v52 = vld [vmem:[%s7778_s23 + $0xe0] sm:$0xff]  ;;  %v7899_v3 = vmul.f32 %v290_v45, %v290_v45  ;;  %v7901_v4 = vmul.f32 %v291_v46, %v291_v46  ;;  %s4543_s17 = sadd.s32 832, %s7795_s20  ;;  %s4854_s26 = sadd.s32 896, %s7795_s20 }
  0x82   : > { %16656 = vst [vmem:[#allocation21_spill] sm:$0xff] %v7863_v49  ;;  %16657 = vst [vmem:[#allocation22_spill] sm:$0xff] %v7866_v50  ;;  %v294_v57 = vld [vmem:[%s7778_s23 + $0xe8] sm:$0xff]  ;;  %v295_v58 = vld [vmem:[%s7778_s23 + $0xf0] sm:$0xff]  ;;  %v7906_v6 = vmul.f32 %v292_v51, %v292_v51  ;;  %v7908_v7 = vmul.f32 %v293_v52, %v293_v52  ;;  %s5165_s18 = sadd.s32 960, %s7795_s20  ;;  %s5269_s5 = sshll.u32 %s7618_s28, 4  ;;  %s5270_s5 = int_to_ptr.vmem [resolvable:$true] %s5269_s5 }
  0x83   : > { %16658 = vst [vmem:[#allocation23_spill] sm:$0xff] %v7870_v53  ;;  %16659 = vst [vmem:[#allocation24_spill] sm:$0xff] %v7872_v54  ;;  %v7882_v59 = vld [vmem:[%s7784_s19] sm:$0xff]  ;;  %v296_v0 = vld [vmem:[%s7778_s23 + $0xf8] sm:$0xff]  ;;  %v7920_v12 = vmul.f32 %v294_v57, %v294_v57  ;;  %v7922_v13 = vmul.f32 %v295_v58, %v295_v58  ;;  %p16049_p7 = scmp.eq.s32.totalorder %s5387_s15, 2  ;;  %s7525_s9 = scalar_lea.vmem %s5270_s5, 512 }
  0x84   : > { %16660 = vst [vmem:[#allocation25_spill] sm:$0xff] %v7874_v55  ;;  %16661 = vst [vmem:[#allocation26_spill] sm:$0xff] %v7877_v56  ;;  %v7895_v1 = vld [vmem:[%s7784_s19 + $0x8] sm:$0xff]  ;;  %v395_v8 = vmul.f32 1.442695, %v7882_v59  ;;  %v7915_v10 = vld [vmem:[%s7784_s19 + $0x10] sm:$0xff]  ;;  %v7937_v25 = vmul.f32 %v296_v0, %v296_v0  ;;  %p7526_p12 = scmp.ne.s32.totalorder %s5270_s5, %s7525_s9  ;;  %p7532_p2 = scmp.lt.s32.totalorder %s5270_s5, %s5270_s5 }
  0x85   : > { %16662 = vst [vmem:[#allocation27_spill] sm:$0xff] %v7884_v60  ;;  %16663 = vst [vmem:[#allocation28_spill] sm:$0xff] %v7886_v61  ;;  %v7918_v11 = vld [vmem:[%s7784_s19 + $0x18] sm:$0xff]  ;;  %v397_v16 = vmul.f32 1.442695, %v7895_v1  ;;  %v7929_v18 = vld [vmem:[%s7784_s19 + $0x20] sm:$0xff]  ;;  %p7533_p13 = scmp.lt.s32.totalorder %s7525_s9, %s7525_s9 }
  0x86   : > { %16664 = vst [vmem:[#allocation29_spill] sm:$0xff] %v7888_v62  ;;  %16665 = vst [vmem:[#allocation30_spill] sm:$0xff] %v7891_v63  ;;  %v7932_v23 = vld [vmem:[%s7784_s19 + $0x28] sm:$0xff]  ;;  %v7935_v24 = vld [vmem:[%s7784_s19 + $0x30] sm:$0xff]  ;;  %6445 = vpow2.f32 %v395_v8  ;;  %v399_v45 = vmul.f32 1.442695, %v7915_v10  ;;  %v8081_v62 = vadd.s32 %v7820_v22, %v7808_v15  ;;  %p7527_p0 = pnand %p7526_p12, %p16049_p7 }
  0x87   : > { %16666 = vst [vmem:[#allocation31_spill] sm:$0xff] %v7897_v2  ;;  %16667 = vst [vmem:[#allocation32_spill] sm:$0xff] %v7899_v3  ;;  %v7946_v37 = vld [vmem:[%s7784_s19 + $0x38] sm:$0xff]  ;;  %v7949_v38 = vld [vmem:[%s7784_s19 + $0x40] sm:$0xff]  ;;  %6447 = vpow2.f32 %v397_v16  ;;  %v401_v8 = vmul.f32 1.442695, %v7918_v11  ;;  %p7534_p10 = por %p7533_p13, %p7532_p2 }
  0x88   : > { %16668 = vst [vmem:[#allocation33_spill] sm:$0xff] %v7901_v4  ;;  %16669 = vst [vmem:[#allocation34_spill] sm:$0xff] %v7904_v5  ;;  %v7960_v51 = vld [vmem:[%s7784_s19 + $0x48] sm:$0xff]  ;;  %v7963_v52 = vld [vmem:[%s7784_s19 + $0x50] sm:$0xff]  ;;  %v403_v40 = vmul.f32 1.442695, %v7929_v18  ;;  %6449 = vpow2.f32 %v399_v45  ;;  %p7528_p1 = pneg %p7527_p0 }
  0x89   : > { %16670 = vst [vmem:[#allocation35_spill] sm:$0xff] %v7906_v6  ;;  %16671 = vst [vmem:[#allocation36_spill] sm:$0xff] %v7908_v7  ;;  %v7966_v57 = vld [vmem:[%s7784_s19 + $0x58] sm:$0xff]  ;;  %v7974_v46 = vld [vmem:[%s7784_s19 + $0x60] sm:$0xff]  ;;  %6451 = vpow2.f32 %v401_v8  ;;  %v407_v47 = vmul.f32 1.442695, %v7935_v24 }
  0x8a   : > { %16672 = vst [vmem:[#allocation37_spill] sm:$0xff] %v7912_v9  ;;  %16673 = vst [vmem:[#allocation38_spill] sm:$0xff] %v7920_v12  ;;  %v7977_v44 = vld [vmem:[%s7784_s19 + $0x68] sm:$0xff]  ;;  %v7980_v39 = vld [vmem:[%s7784_s19 + $0x70] sm:$0xff]  ;;  %6453 = vpow2.f32 %v403_v40  ;;  %v409_v54 = vmul.f32 1.442695, %v7946_v37  ;;  %p7535_p4 = pnand %p7534_p10, %p7528_p1 }
  0x8b   : > { %16674 = vst [vmem:[#allocation39_spill] sm:$0xff] %v7922_v13  ;;  %16675 = vst [vmem:[#allocation40_spill] sm:$0xff] %v7926_v17  ;;  %v7988_v0 = vld [vmem:[%s7784_s19 + $0x78] sm:$0xff]  ;;  %v7991_v31 = vld [vmem:[%s7784_s19 + $0x80] sm:$0xff]  ;;  %v411_v8 = vmul.f32 1.442695, %v7949_v38 }
  0x8c   : > { %16676 = vst [vmem:[#allocation41_spill] sm:$0xff] %v7937_v25  ;;  %16677 = vst [vmem:[#allocation42_spill] sm:$0xff] %v7977_v44  ;;  %v7994_v30 = vld [vmem:[%s7784_s19 + $0x88] sm:$0xff]  ;;  %v8005_v13 = vld [vmem:[%s7784_s19 + $0x90] sm:$0xff]  ;;  %v405_v25 = vmul.f32 1.442695, %v7932_v23 }
  0x8d   : > { %16678 = vst [vmem:[#allocation43_spill] sm:$0xff] %v7980_v39  ;;  %16679 = vst [vmem:[#allocation44_spill] sm:$0xff] %v7988_v0  ;;  %v8008_v35 = vld [vmem:[%s7784_s19 + $0x98] sm:$0xff]  ;;  %v8018_v16 = vld [vmem:[%s7784_s19 + $0xa0] sm:$0xff]  ;;  %v413_v42 = vmul.f32 1.442695, %v7960_v51 }
  0x8e   : > { %16680 = vst [vmem:[#allocation45_spill] sm:$0xff] %v7991_v31  ;;  %16681 = vst [vmem:[#allocation46_spill] sm:$0xff] %v7994_v30  ;;  %v8021_v41 = vld [vmem:[%s7784_s19 + $0xa8] sm:$0xff]  ;;  %v8024_v58 = vld [vmem:[%s7784_s19 + $0xb0] sm:$0xff]  ;;  %6455 = vpow2.f32 %v405_v25  ;;  %v415_v60 = vmul.f32 1.442695, %v7963_v52 }
  0x8f   : > { %16682 = vst [vmem:[#allocation47_spill] sm:$0xff] %v8008_v35  ;;  %16683 = vst [vmem:[#allocation48_spill] sm:$0xff] %v8018_v16  ;;  %v8032_v32 = vld [vmem:[%s7784_s19 + $0xb8] sm:$0xff]  ;;  %v8041_v34 = vld [vmem:[%s7784_s19 + $0xc0] sm:$0xff]  ;;  %6457 = vpow2.f32 %v407_v47  ;;  %v417_v53 = vmul.f32 1.442695, %v7966_v57 }
  0x90   : > { %16684 = vst [vmem:[#allocation49_spill] sm:$0xff] %v8021_v41  ;;  %16685 = vst [vmem:[#allocation50_spill] sm:$0xff] %v8024_v58  ;;  %v8048_v49 = vld [vmem:[%s7784_s19 + $0xc8] sm:$0xff]  ;;  %v8051_v55 = vld [vmem:[%s7784_s19 + $0xd0] sm:$0xff]  ;;  %6459 = vpow2.f32 %v409_v54  ;;  %v6446_v36 = vpop.eup %6445  ;;  %v419_v47 = vmul.f32 1.442695, %v7974_v46 }
  0x91   : > { %16686 = vst [vmem:[#allocation51_spill] sm:$0xff] %v8032_v32  ;;  %16687 = vst [vmem:[#allocation52_spill] sm:$0xff] %v8041_v34  ;;  %v8058_v61 = vld [vmem:[%s7784_s19 + $0xd8] sm:$0xff]  ;;  %v8061_v45 = vld [vmem:[%s7784_s19 + $0xe0] sm:$0xff]  ;;  %6461 = vpow2.f32 %v411_v8  ;;  %v6448_v4 = vpop.eup %6447  ;;  %v421_v25 = vmul.f32 1.442695, %v7977_v44 }
  0x92   : > { %16688 = vst [vmem:[#allocation53_spill] sm:$0xff] %v8048_v49  ;;  %16689 = vst [vmem:[#allocation54_spill] sm:$0xff] %v8051_v55  ;;  %v8069_v48 = vld [vmem:[%s7784_s19 + $0xe8] sm:$0xff]  ;;  %v8084_v3 = vld [vmem:[%s7784_s19 + $0xf0] sm:$0xff]  ;;  %6463 = vpow2.f32 %v413_v42  ;;  %v423_v54 = vmul.f32 1.442695, %v7980_v39  ;;  %v6450_v44 = vpop.eup %6449 }
  0x93   : > { %16690 = vst [vmem:[#allocation55_spill] sm:$0xff] %v8058_v61  ;;  %16691 = vst [vmem:[#allocation56_spill] sm:$0xff] %v8061_v45  ;;  %v425_v2 = vmul.f32 1.442695, %v7988_v0  ;;  %v8090_v6 = vld [vmem:[%s7784_s19 + $0xf8] sm:$0xff]  ;;  %6465 = vpow2.f32 %v415_v60  ;;  %vm510_vm0 = vcmp.lt.s32.totalorder %v8081_v62, 2560 }
  0x94   : > { %16692 = vst [vmem:[#allocation57_spill] sm:$0xff] %v8069_v48  ;;  %16693 = vst [vmem:[#allocation58_spill] sm:$0xff] %v8084_v3  ;;  %v427_v8 = vmul.f32 1.442695, %v7991_v31  ;;  %v429_v40 = vmul.f32 1.442695, %v7994_v30  ;;  %6467 = vpow2.f32 %v417_v53  ;;  %v6452_v31 = vpop.eup %6451 }
  0x95   : > { %16694 = vst [vmem:[#allocation59_spill] sm:$0xff] %v8090_v6  ;;  %v431_v15 = vmul.f32 1.442695, %v8005_v13  ;;  %v433_v12 = vmul.f32 1.442695, %v8008_v35  ;;  %6469 = vpow2.f32 %v419_v47 }
  0x96   : > { %v435_v42 = vmul.f32 1.442695, %v8018_v16  ;;  %v437_v7 = vmul.f32 1.442695, %v8021_v41  ;;  %v439_v0 = vmul.f32 1.442695, %v8024_v58  ;;  %6471 = vpow2.f32 %v421_v25  ;;  %v6454_v16 = vpop.eup %6453 }
  0x97   : > { %v441_v39 = vmul.f32 1.442695, %v8032_v32  ;;  %v443_v60 = vmul.f32 1.442695, %v8041_v34  ;;  %v445_v30 = vmul.f32 1.442695, %v8048_v49  ;;  %6473 = vpow2.f32 %v423_v54 }
  0x98   : > { %v8103_v53 = vmul.f32 1.442695, %v8051_v55  ;;  %v8106_v35 = vmul.f32 1.442695, %v8058_v61  ;;  %v8109_v47 = vmul.f32 1.442695, %v8061_v45  ;;  %v6456_v25 = vpop.eup %6455  ;;  %6475 = vpow2.f32 %v425_v2 }
  0x99   : > { %v8112_v58 = vmul.f32 1.442695, %v8069_v48  ;;  %v8115_v32 = vmul.f32 1.442695, %v8084_v3  ;;  %v8118_v49 = vmul.f32 1.442695, %v8090_v6  ;;  %v16696_v61 = vsub.f32 %v7882_v59, %v7806_v14  ;;  %v6458_v34 = vpop.eup %6457 }
  0x9a   : > { %v16697_v54 = vsub.f32 %v7895_v1, %v7813_v19  ;;  %6477 = vpow2.f32 %v427_v8  ;;  %v16698_v48 = vsub.f32 %v7915_v10, %v7815_v20  ;;  %v16699_v2 = vsub.f32 %v7918_v11, %v7817_v21  ;;  %v16712_v8 = vld [vmem:[#allocation15_spill] sm:$0xff] }
  0x9b   : > { %16695 = vst [vmem:[#allocation60_spill] sm:$0xff] %v8118_v49  ;;  %v459_v55 = vsub.f32 %v16696_v61, %v6446_v36  ;;  %v503_v6 = vadd.s32 %v7820_v22, %v7854_v43  ;;  %v6460_v49 = vpop.eup %6459  ;;  %6479 = vpow2.f32 %v429_v40  ;;  %v16700_v14 = vsub.f32 %v7929_v18, %v7825_v26 }
  0x9c   : > { %v460_v45 = vsub.f32 %v16697_v54, %v6448_v4  ;;  %v461_v3 = vsub.f32 %v16698_v48, %v6450_v44  ;;  %v462_v41 = vsub.f32 %v16699_v2, %v6452_v31  ;;  %v504_v36 = vadd.s32 %v7820_v22, %v7866_v50  ;;  %v6462_v48 = vpop.eup %6461  ;;  %v16715_v54 = vld [vmem:[#allocation16_spill] sm:$0xff] }
  0x9d   : > { %v463_v19 = vsub.f32 %v16700_v14, %v6454_v16  ;;  %v8141_v20 = vadd.s32 %v7820_v22, %v7877_v56  ;;  %6481 = vpow2.f32 %v431_v15  ;;  %v16701_v21 = vsub.f32 %v7932_v23, %v7827_v27  ;;  %v6464_v1 = vpop.eup %6463 }
  0x9e   : > { %v8148_v61 = vadd.s32 %v7820_v22, %v7891_v63  ;;  %v8152_v26 = vadd.s32 %v7820_v22, %v7904_v5  ;;  %6483 = vpow2.f32 %v433_v12  ;;  %v16702_v4 = vsub.f32 %v7935_v24, %v7829_v28  ;;  %v6466_v11 = vpop.eup %6465  ;;  %v16706_v24 = vld [vmem:[#allocation12_spill] sm:$0xff] }
  0x9f   : > { %v464_v59 = vsub.f32 %v16701_v21, %v6456_v25  ;;  %v8159_v15 = vadd.s32 %v7820_v22, %v7912_v9  ;;  %v8163_v27 = vadd.s32 %v7820_v22, %v7926_v17  ;;  %6485 = vpow2.f32 %v435_v42  ;;  %v6468_v12 = vpop.eup %6467  ;;  %v16718_v21 = vld [vmem:[#allocation17_spill] sm:$0xff] }
  0xa0   : > { %v465_v10 = vsub.f32 %v16702_v4, %v6458_v34  ;;  %v16704_v18 = vsub.f32 %v7946_v37, %v7831_v29  ;;  %vm511_vm1 = vcmp.lt.s32.totalorder %v503_v6, 2560  ;;  %6487 = vpow2.f32 %v437_v7  ;;  %v6470_v22 = vpop.eup %6469  ;;  %v16708_v29 = vld [vmem:[#allocation13_spill] sm:$0xff]  ;;  %v16720_v4 = vld [vmem:[#allocation44_spill] sm:$0xff] }
  0xa1   : > { %16703 = vst [vmem:[#allocation61_spill] sm:$0xff] %v8163_v27  ;;  %v16705_v28 = vsub.f32 %v7949_v38, %v7836_v33  ;;  %vm512_vm2 = vcmp.lt.s32.totalorder %v504_v36, 2560  ;;  %vm513_vm3 = vcmp.lt.s32.totalorder %v8141_v20, 2560  ;;  %6489 = vpow2.f32 %v439_v0  ;;  %v6472_v7 = vpop.eup %6471  ;;  %v16710_v33 = vld [vmem:[#allocation14_spill] sm:$0xff]  ;;  %v8526_v17 = vld [vmem:[%s7784_s19 + $0x1b0] sm:$0xff] }
  0xa2   : > { %v466_v23 = vsub.f32 %v16704_v18, %v6460_v49  ;;  %v16707_v31 = vsub.f32 %v7960_v51, %v16706_v24  ;;  %v16709_v49 = vsub.f32 %v7963_v52, %v16708_v29  ;;  %vm514_vm4 = vcmp.lt.s32.totalorder %v8148_v61, 2560  ;;  %v6474_v51 = vpop.eup %6473  ;;  %v16727_v29 = vld [vmem:[#allocation21_spill] sm:$0xff] }
  0xa3   : > { %v467_v34 = vsub.f32 %v16705_v28, %v6462_v48  ;;  %6491 = vpow2.f32 %v441_v39  ;;  %v16711_v38 = vsub.f32 %v7966_v57, %v16710_v33  ;;  %v518_v40 = vsel %vm510_vm0, %v459_v55, 0.0  ;;  %v6476_v25 = vpop.eup %6475  ;;  %v16714_v55 = vld [vmem:[#allocation42_spill] sm:$0xff]  ;;  %v16717_v48 = vld [vmem:[#allocation43_spill] sm:$0xff] }
  0xa4   : > { %v468_v44 = vsub.f32 %v16707_v31, %v6464_v1  ;;  %v469_v37 = vsub.f32 %v16709_v49, %v6466_v11  ;;  %v519_v0 = vsel %vm510_vm0, %v460_v45, 0.0  ;;  %6493 = vpow2.f32 %v443_v60  ;;  %v16721_v11 = vld [vmem:[#allocation19_spill] sm:$0xff]  ;;  %v16726_v31 = vld [vmem:[#allocation46_spill] sm:$0xff] }
  0xa5   : > { %v470_v16 = vsub.f32 %v16711_v38, %v6468_v12  ;;  %v16713_v52 = vsub.f32 %v7974_v46, %v16712_v8  ;;  %vm515_vm5 = vcmp.lt.s32.totalorder %v8152_v26, 2560  ;;  %v520_v39 = vsel %vm510_vm0, %v461_v3, 0.0  ;;  %v6478_v46 = vpop.eup %6477  ;;  %v16723_v12 = vld [vmem:[#allocation45_spill] sm:$0xff]  ;;  %v16729_v33 = vld [vmem:[#allocation23_spill] sm:$0xff] }
  0xa6   : > { %v521_v57 = vsel %vm510_vm0, %v462_v41, 0.0  ;;  %6495 = vpow2.f32 %v445_v30  ;;  %v16716_v2 = vsub.f32 %v16714_v55, %v16715_v54  ;;  %v522_v60 = vsel %vm511_vm1, %v463_v19, 0.0  ;;  %v6480_v30 = vpop.eup %6479  ;;  %v16732_v8 = vld [vmem:[#allocation25_spill] sm:$0xff]  ;;  %v16734_v54 = vld [vmem:[#allocation60_spill] sm:$0xff] }
  0xa7   : > { %v471_v42 = vsub.f32 %v16713_v52, %v6470_v22  ;;  %v523_v14 = vsel %vm511_vm1, %v464_v59, 0.0  ;;  %6497 = vpow2.f32 %v8103_v53  ;;  %v16719_v1 = vsub.f32 %v16717_v48, %v16718_v21  ;;  %v16724_v59 = vld [vmem:[#allocation20_spill] sm:$0xff]  ;;  %v6482_v24 = vpop.eup %6481 }
  0xa8   : > { %v472_v45 = vsub.f32 %v16716_v2, %v6472_v7  ;;  %v524_v62 = vsel %vm511_vm1, %v465_v10, 0.0  ;;  %v525_v41 = vsel %vm511_vm1, %v466_v23, 0.0  ;;  %6499 = vpow2.f32 %v8106_v35  ;;  %v6484_v35 = vpop.eup %6483  ;;  %v16735_v2 = vld [vmem:[#allocation47_spill] sm:$0xff] }
  0xa9   : > { %v473_v3 = vsub.f32 %v16719_v1, %v6474_v51  ;;  %v16722_v18 = vsub.f32 %v16720_v4, %v16721_v11  ;;  %v16725_v28 = vsub.f32 %v16723_v12, %v16724_v59  ;;  %v526_v53 = vsel %vm512_vm2, %v467_v34, 0.0  ;;  %v6486_v51 = vpop.eup %6485  ;;  %v16742_v12 = vld [vmem:[#allocation28_spill] sm:$0xff] }
  0xaa   : > { %6501 = vpow2.f32 %v8109_v47  ;;  %v527_v10 = vsel %vm512_vm2, %v468_v44, 0.0  ;;  %v528_v6 = vsel %vm512_vm2, %v469_v37, 0.0  ;;  %v529_v23 = vsel %vm512_vm2, %v470_v16, 0.0  ;;  %v6488_v37 = vpop.eup %6487  ;;  %v16731_v16 = vld [vmem:[#allocation48_spill] sm:$0xff] }
  0xab   : > { %v474_v19 = vsub.f32 %v16722_v18, %v6476_v25  ;;  %v475_v22 = vsub.f32 %v16725_v28, %v6478_v46  ;;  %6503 = vpow2.f32 %v8112_v58  ;;  %v16728_v49 = vsub.f32 %v16726_v31, %v16727_v29 }
  0xac   : > { %v16730_v38 = vsub.f32 %v8005_v13, %v16729_v33  ;;  %v530_v47 = vsel %vm513_vm3, %v471_v42, 0.0  ;;  %6505 = vpow2.f32 %v8115_v32  ;;  %v531_v36 = vsel %vm513_vm3, %v472_v45, 0.0  ;;  %v6490_v32 = vpop.eup %6489  ;;  %v16736_v45 = vld [vmem:[#allocation24_spill] sm:$0xff] }
  0xad   : > { %v476_v7 = vsub.f32 %v16728_v49, %v6480_v30  ;;  %v532_v58 = vsel %vm513_vm3, %v473_v3, 0.0  ;;  %v550_v44 = vadd.f32 %v522_v60, %v518_v40  ;;  %v16733_v52 = vsub.f32 %v16731_v16, %v16732_v8  ;;  %v6492_v21 = vpop.eup %6491  ;;  %v16747_v49 = vld [vmem:[#allocation51_spill] sm:$0xff]  ;;  %v16752_v16 = vld [vmem:[#allocation53_spill] sm:$0xff]  ;;  %v16753_v8 = vld [vmem:[#allocation32_spill] sm:$0xff] }
  0xae   : > { %v477_v34 = vsub.f32 %v16730_v38, %v6482_v24  ;;  %v533_v13 = vsel %vm513_vm3, %v474_v19, 0.0  ;;  %v534_v42 = vsel %vm514_vm4, %v475_v22, 0.0  ;;  %v557_v55 = vadd.f32 %v523_v14, %v519_v0  ;;  %v6494_v4 = vpop.eup %6493  ;;  %v16738_v0 = vld [vmem:[#allocation49_spill] sm:$0xff]  ;;  %v16739_v14 = vld [vmem:[#allocation27_spill] sm:$0xff]  ;;  %v16741_v19 = vld [vmem:[#allocation50_spill] sm:$0xff] }
  0xaf   : > { %v479_v25 = vsub.f32 %v16733_v52, %v6486_v51  ;;  %6507 = vpow2.f32 %v16734_v54  ;;  %v16737_v46 = vsub.f32 %v16735_v2, %v16736_v45  ;;  %v551_v40 = vadd.f32 %v550_v44, %v526_v53  ;;  %v16744_v53 = vld [vmem:[#allocation52_spill] sm:$0xff]  ;;  %v16745_v24 = vld [vmem:[#allocation31_spill] sm:$0xff]  ;;  %v16751_v44 = vld [vmem:[#allocation58_spill] sm:$0xff] }
  0xb0   : > { %v564_v60 = vadd.f32 %v524_v62, %v520_v39  ;;  %v535_v1 = vsel %vm514_vm4, %v476_v7, 0.0  ;;  %v536_v20 = vsel %vm514_vm4, %v477_v34, 0.0  ;;  %v558_v3 = vadd.f32 %v557_v55, %v527_v10  ;;  %v6496_v62 = vpop.eup %6495  ;;  %v16748_v7 = vld [vmem:[#allocation29_spill] sm:$0xff]  ;;  %v16750_v51 = vld [vmem:[#allocation39_spill] sm:$0xff]  ;;  %v16755_v45 = vld [vmem:[#allocation54_spill] sm:$0xff] }
  0xb1   : > { %v478_v48 = vsub.f32 %v16737_v46, %v6484_v35  ;;  %v571_v30 = vadd.f32 %v525_v41, %v521_v57  ;;  %v16740_v11 = vsub.f32 %v16738_v0, %v16739_v14  ;;  %v16743_v59 = vsub.f32 %v16741_v19, %v16742_v12  ;;  %v6498_v29 = vpop.eup %6497  ;;  %v16756_v46 = vld [vmem:[#allocation33_spill] sm:$0xff] }
  0xb2   : > { %v552_v22 = vadd.f32 %v551_v40, %v530_v47  ;;  %v565_v39 = vadd.f32 %v564_v60, %v528_v6  ;;  %v16746_v35 = vsub.f32 %v16744_v53, %v16745_v24  ;;  %v538_v10 = vsel %vm515_vm5, %v479_v25, 0.0  ;;  %v6500_v6 = vpop.eup %6499  ;;  %v16767_v53 = vld [vmem:[#allocation38_spill] sm:$0xff] }
  0xb3   : > { %v480_v18 = vsub.f32 %v16740_v11, %v6488_v37  ;;  %v481_v28 = vsub.f32 %v16743_v59, %v6490_v32  ;;  %v559_v57 = vadd.f32 %v558_v3, %v531_v36  ;;  %v572_v41 = vadd.f32 %v571_v30, %v529_v23  ;;  %v16759_v3 = vld [vmem:[#allocation36_spill] sm:$0xff]  ;;  %v16763_v11 = vld [vmem:[#allocation55_spill] sm:$0xff] }
  0xb4   : > { %v483_v31 = vsub.f32 %v16746_v35, %v6494_v4  ;;  %v16749_v33 = vsub.f32 %v16747_v49, %v16748_v7  ;;  %vm516_vm6 = vcmp.lt.s32.totalorder %v8159_v15, 2560  ;;  %v553_v34 = vadd.f32 %v552_v22, %v534_v42  ;;  %v6502_v23 = vpop.eup %6501  ;;  %v16761_v4 = vld [vmem:[#allocation41_spill] sm:$0xff]  ;;  %v5416_v49 = vld [vmem:[%s7778_s23 + $0x118] sm:$0xff] }
  0xb5   : > { %v566_v47 = vadd.f32 %v565_v39, %v532_v58  ;;  %v393_v37 = vsub.f32 %v16751_v44, %v16750_v51  ;;  %v16754_v52 = vsub.f32 %v16752_v16, %v16753_v8  ;;  %v560_v25 = vadd.f32 %v559_v57, %v535_v1  ;;  %v6504_v2 = vpop.eup %6503  ;;  %v5413_v57 = vld [vmem:[%s7778_s23 + $0x100] sm:$0xff]  ;;  %v5422_v44 = vld [vmem:[%s7778_s23 + $0x148] sm:$0xff] }
  0xb6   : > { %v482_v38 = vsub.f32 %v16749_v33, %v6492_v21  ;;  %v573_v36 = vadd.f32 %v572_v41, %v533_v13  ;;  %v537_v32 = vsel %vm514_vm4, %v478_v48, 0.0  ;;  %v539_v54 = vsel %vm515_vm5, %v480_v18, 0.0  ;;  %v16758_v21 = vld [vmem:[#allocation56_spill] sm:$0xff]  ;;  %v6506_v48 = vpop.eup %6505  ;;  %v16764_v18 = vld [vmem:[#allocation35_spill] sm:$0xff] }
  0xb7   : > { %v484_v55 = vsub.f32 %v16754_v52, %v6496_v62  ;;  %v554_v42 = vadd.f32 %v553_v34, %v538_v10  ;;  %v567_v58 = vadd.f32 %v566_v47, %v536_v20  ;;  %v16757_v40 = vsub.f32 %v16755_v45, %v16756_v46  ;;  %v16762_v20 = vld [vmem:[#allocation59_spill] sm:$0xff]  ;;  %v16766_v62 = vld [vmem:[#allocation57_spill] sm:$0xff]  ;;  %v5414_v41 = vld [vmem:[%s7778_s23 + $0x108] sm:$0xff] }
  0xb8   : > { %v16760_v30 = vsub.f32 %v16758_v21, %v16759_v3  ;;  %v540_v13 = vsel %vm515_vm5, %v481_v28, 0.0  ;;  %v542_v61 = vsel %vm516_vm6, %v483_v31, 0.0  ;;  %v394_v0 = vsub.f32 %v16762_v20, %v16761_v4  ;;  %v5418_v34 = vld [vmem:[%s7778_s23 + $0x128] sm:$0xff]  ;;  %v5419_v47 = vld [vmem:[%s7778_s23 + $0x130] sm:$0xff]  ;;  %v5421_v51 = vld [vmem:[%s7778_s23 + $0x140] sm:$0xff]  ;;  %16806 = vst [vmem:[#allocation59_spill] sm:$0xff] %v8526_v17 }
  0xb9   : > { %v485_v60 = vsub.f32 %v16757_v40, %v6498_v29  ;;  %vm517_vm7 = vcmp.lt.s32.totalorder %v8163_v27, 2560  ;;  %v541_v14 = vsel %vm515_vm5, %v482_v38, 0.0  ;;  %v16765_v19 = vsub.f32 %v16763_v11, %v16764_v18  ;;  %v6508_v39 = vpop.eup %6507  ;;  %v5415_v29 = vld [vmem:[%s7778_s23 + $0x110] sm:$0xff]  ;;  %v5417_v38 = vld [vmem:[%s7778_s23 + $0x120] sm:$0xff]  ;;  %v5428_v45 = vld [vmem:[%s7778_s23 + $0x178] sm:$0xff] }
  0xba   : > { %v487_v1 = vsub.f32 %v16760_v30, %v6502_v23  ;;  %v543_v59 = vsel %vm516_vm6, %v484_v55, 0.0  ;;  %v561_v28 = vadd.f32 %v560_v25, %v539_v54  ;;  %v574_v22 = vadd.f32 %v573_v36, %v537_v32  ;;  %v5424_v36 = vld [vmem:[%s7778_s23 + $0x158] sm:$0xff]  ;;  %v5425_v23 = vld [vmem:[%s7778_s23 + $0x160] sm:$0xff]  ;;  %v5426_v32 = vld [vmem:[%s7778_s23 + $0x168] sm:$0xff] }
  0xbb   : > { %v486_v12 = vsub.f32 %v16765_v19, %v6500_v6  ;;  %v16768_v26 = vsub.f32 %v16766_v62, %v16767_v53  ;;  %v489_v35 = vsub.f32 %v393_v37, %v6506_v48  ;;  %v555_v31 = vadd.f32 %v554_v42, %v542_v61  ;;  %v5420_v6 = vld [vmem:[%s7778_s23 + $0x138] sm:$0xff]  ;;  %v5423_v37 = vld [vmem:[%s7778_s23 + $0x150] sm:$0xff]  ;;  %v5429_v46 = vld [vmem:[%s7778_s23 + $0x180] sm:$0xff] }
  0xbc   : > { %v568_v10 = vadd.f32 %v567_v58, %v540_v13  ;;  %v544_v7 = vsel %vm516_vm6, %v485_v60, 0.0  ;;  %v546_v33 = vsel %vm517_vm7, %v487_v1, 0.0  ;;  %v8310_v16 = vstv %s811_s12  ;;  %v5430_v40 = vld [vmem:[%s7778_s23 + $0x188] sm:$0xff]  ;;  %v5431_v60 = vld [vmem:[%s7778_s23 + $0x190] sm:$0xff]  ;;  %v5432_v21 = vld [vmem:[%s7778_s23 + $0x198] sm:$0xff] }
  0xbd   : > { %v488_v24 = vsub.f32 %v16768_v26, %v6504_v2  ;;  %v8312_v8 = vsub.f32 %v394_v0, %v6508_v39  ;;  %v8316_v52 = vsel %vm516_vm6, %v486_v12, 0.0  ;;  %v8318_v55 = vadd.f32 %v561_v28, %v543_v59  ;;  %v5427_v2 = vld [vmem:[%s7778_s23 + $0x170] sm:$0xff]  ;;  %v5433_v61 = vld [vmem:[%s7778_s23 + $0x1a0] sm:$0xff]  ;;  %v5434_v48 = vld [vmem:[%s7778_s23 + $0x1a8] sm:$0xff] }
  0xbe   : > { %16770 = vst [vmem:[#allocation13_spill] sm:$0xff] %v8316_v52  ;;  %v8320_v25 = vadd.f32 %v574_v22, %v541_v14  ;;  %v8331_v15 = vsel %vm517_vm7, %v489_v35, 0.0  ;;  %v8333_v42 = vadd.f32 %v555_v31, %v546_v33  ;;  %v8335_v58 = vadd.f32 %v568_v10, %v544_v7  ;;  %v5435_v4 = vld [vmem:[%s7778_s23 + $0x1b0] sm:$0xff]  ;;  %v5436_v18 = vld [vmem:[%s7778_s23 + $0x1b8] sm:$0xff]  ;;  %v5437_v19 = vld [vmem:[%s7778_s23 + $0x1c0] sm:$0xff] }
  0xbf   : > { %16769 = vst [vmem:[#allocation12_spill] sm:$0xff] %v8312_v8  ;;  %16771 = vst [vmem:[#allocation14_spill] sm:$0xff] %v8318_v55  ;;  %v8327_v54 = vsel %vm517_vm7, %v488_v24, 0.0  ;;  %v8343_v3 = vmul.f32 %v5413_v57, %v5413_v57  ;;  %v8345_v30 = vmul.f32 %v5414_v41, %v5414_v41  ;;  %v8347_v1 = vmul.f32 %v5415_v29, %v5415_v29  ;;  %v5438_v12 = vld [vmem:[%s7778_s23 + $0x1c8] sm:$0xff]  ;;  %v5439_v62 = vld [vmem:[%s7778_s23 + $0x1d0] sm:$0xff] }
  0xc0   : > { %16772 = vst [vmem:[#allocation15_spill] sm:$0xff] %v8320_v25  ;;  %16773 = vst [vmem:[#allocation42_spill] sm:$0xff] %v8327_v54  ;;  %v8349_v13 = vmul.f32 %v5416_v49, %v5416_v49  ;;  %v8354_v20 = vmul.f32 %v5417_v38, %v5417_v38  ;;  %v8356_v0 = vmul.f32 %v5418_v34, %v5418_v34  ;;  %v5440_v53 = vld [vmem:[%s7778_s23 + $0x1d8] sm:$0xff]  ;;  %v5441_v26 = vld [vmem:[%s7778_s23 + $0x1e0] sm:$0xff] }
  0xc1   : > { %16774 = vst [vmem:[#allocation16_spill] sm:$0xff] %v8331_v15  ;;  %16775 = vst [vmem:[#allocation43_spill] sm:$0xff] %v8333_v42  ;;  %v8358_v14 = vmul.f32 %v5419_v47, %v5419_v47  ;;  %v8360_v11 = vmul.f32 %v5420_v6, %v5420_v6  ;;  %v8365_v59 = vmul.f32 %v5421_v51, %v5421_v51  ;;  %v5442_v57 = vld [vmem:[%s7778_s23 + $0x1e8] sm:$0xff]  ;;  %v5443_v41 = vld [vmem:[%s7778_s23 + $0x1f0] sm:$0xff] }
  0xc2   : > { %16776 = vst [vmem:[#allocation17_spill] sm:$0xff] %v8335_v58  ;;  %v8367_v28 = vmul.f32 %v5422_v44, %v5422_v44  ;;  %v8369_v22 = vmul.f32 %v5423_v37, %v5423_v37  ;;  %v8371_v39 = vmul.f32 %v5424_v36, %v5424_v36  ;;  %v8376_v24 = vmul.f32 %v5425_v23, %v5425_v23  ;;  %v5444_v29 = vld [vmem:[%s7778_s23 + $0x1f8] sm:$0xff]  ;;  %v8396_v34 = vld [vmem:[%s7784_s19 + $0x100] sm:$0xff]  ;;  %v8399_v47 = vld [vmem:[%s7784_s19 + $0x108] sm:$0xff] }
  0xc3   : > { %v8378_v35 = vmul.f32 %v5426_v32, %v5426_v32  ;;  %v8380_v31 = vmul.f32 %v5427_v2, %v5427_v2  ;;  %v8382_v10 = vmul.f32 %v5428_v45, %v5428_v45  ;;  %v8387_v49 = vmul.f32 %v5429_v46, %v5429_v46  ;;  %v8410_v36 = vld [vmem:[%s7784_s19 + $0x110] sm:$0xff]  ;;  %v8413_v23 = vld [vmem:[%s7784_s19 + $0x118] sm:$0xff]  ;;  %v8416_v32 = vld [vmem:[%s7784_s19 + $0x120] sm:$0xff] }
  0xc4   : > { %16777 = vst [vmem:[#allocation44_spill] sm:$0xff] %v8371_v39  ;;  %16778 = vst [vmem:[#allocation19_spill] sm:$0xff] %v8376_v24  ;;  %v8389_v7 = vmul.f32 %v5430_v40, %v5430_v40  ;;  %v8391_v33 = vmul.f32 %v5431_v60, %v5431_v60  ;;  %v8393_v38 = vmul.f32 %v5432_v21, %v5432_v21  ;;  %v8427_v60 = vld [vmem:[%s7784_s19 + $0x128] sm:$0xff]  ;;  %v8430_v21 = vld [vmem:[%s7784_s19 + $0x130] sm:$0xff]  ;;  %v717_v42 = vmul.f32 1.442695, %v8399_v47 }
  0xc5   : > { %16779 = vst [vmem:[#allocation45_spill] sm:$0xff] %v8378_v35  ;;  %16780 = vst [vmem:[#allocation20_spill] sm:$0xff] %v8380_v31  ;;  %v8401_v6 = vmul.f32 %v5433_v61, %v5433_v61  ;;  %v8403_v51 = vmul.f32 %v5434_v48, %v5434_v48  ;;  %v8405_v44 = vmul.f32 %v5435_v4, %v5435_v4  ;;  %v8433_v61 = vld [vmem:[%s7784_s19 + $0x138] sm:$0xff]  ;;  %v8464_v58 = vld [vmem:[%s7784_s19 + $0x160] sm:$0xff] }
  0xc6   : > { %16781 = vst [vmem:[#allocation46_spill] sm:$0xff] %v8382_v10  ;;  %16782 = vst [vmem:[#allocation21_spill] sm:$0xff] %v8387_v49  ;;  %v8407_v37 = vmul.f32 %v5436_v18, %v5436_v18  ;;  %v8418_v2 = vmul.f32 %v5437_v19, %v5437_v19  ;;  %v8420_v45 = vmul.f32 %v5438_v12, %v5438_v12  ;;  %v8444_v12 = vld [vmem:[%s7784_s19 + $0x140] sm:$0xff]  ;;  %v8467_v15 = vld [vmem:[%s7784_s19 + $0x168] sm:$0xff]  ;;  %v715_v49 = vmul.f32 1.442695, %v8396_v34 }
  0xc7   : > { %16783 = vst [vmem:[#allocation23_spill] sm:$0xff] %v8389_v7  ;;  %16784 = vst [vmem:[#allocation48_spill] sm:$0xff] %v8391_v33  ;;  %v8422_v46 = vmul.f32 %v5439_v62, %v5439_v62  ;;  %v8424_v40 = vmul.f32 %v5440_v53, %v5440_v53  ;;  %v8435_v48 = vmul.f32 %v5441_v26, %v5441_v26  ;;  %v8447_v62 = vld [vmem:[%s7784_s19 + $0x148] sm:$0xff]  ;;  %v8450_v53 = vld [vmem:[%s7784_s19 + $0x150] sm:$0xff]  ;;  %v719_v33 = vmul.f32 1.442695, %v8410_v36 }
  0xc8   : > { %16785 = vst [vmem:[#allocation25_spill] sm:$0xff] %v8393_v38  ;;  %16786 = vst [vmem:[#allocation60_spill] sm:$0xff] %v8401_v6  ;;  %v8437_v4 = vmul.f32 %v5442_v57, %v5442_v57  ;;  %v8439_v18 = vmul.f32 %v5443_v41, %v5443_v41  ;;  %v8441_v19 = vmul.f32 %v5444_v29, %v5444_v29  ;;  %v8461_v29 = vld [vmem:[%s7784_s19 + $0x158] sm:$0xff]  ;;  %v8478_v55 = vld [vmem:[%s7784_s19 + $0x170] sm:$0xff]  ;;  %6509 = vpow2.f32 %v715_v49 }
  0xc9   : > { %16787 = vst [vmem:[#allocation47_spill] sm:$0xff] %v8403_v51  ;;  %16788 = vst [vmem:[#allocation24_spill] sm:$0xff] %v8405_v44  ;;  %v8481_v54 = vld [vmem:[%s7784_s19 + $0x178] sm:$0xff]  ;;  %v8484_v25 = vld [vmem:[%s7784_s19 + $0x180] sm:$0xff]  ;;  %v723_v57 = vmul.f32 1.442695, %v8416_v32  ;;  %6511 = vpow2.f32 %v717_v42 }
  0xca   : > { %16789 = vst [vmem:[#allocation49_spill] sm:$0xff] %v8407_v37  ;;  %16790 = vst [vmem:[#allocation27_spill] sm:$0xff] %v8418_v2  ;;  %v8495_v52 = vld [vmem:[%s7784_s19 + $0x188] sm:$0xff]  ;;  %v8498_v27 = vld [vmem:[%s7784_s19 + $0x190] sm:$0xff]  ;;  %v725_v44 = vmul.f32 1.442695, %v8427_v60  ;;  %6513 = vpow2.f32 %v719_v33 }
  0xcb   : > { %16791 = vst [vmem:[#allocation50_spill] sm:$0xff] %v8420_v45  ;;  %16792 = vst [vmem:[#allocation28_spill] sm:$0xff] %v8422_v46  ;;  %v8501_v8 = vld [vmem:[%s7784_s19 + $0x198] sm:$0xff]  ;;  %v8538_v7 = vld [vmem:[%s7784_s19 + $0x1c0] sm:$0xff]  ;;  %v727_v51 = vmul.f32 1.442695, %v8430_v21 }
  0xcc   : > { %16793 = vst [vmem:[#allocation52_spill] sm:$0xff] %v8424_v40  ;;  %16794 = vst [vmem:[#allocation31_spill] sm:$0xff] %v8435_v48  ;;  %v8529_v41 = vld [vmem:[%s7784_s19 + $0x1b8] sm:$0xff]  ;;  %v8541_v26 = vld [vmem:[%s7784_s19 + $0x1c8] sm:$0xff]  ;;  %v721_v48 = vmul.f32 1.442695, %v8413_v23 }
  0xcd   : > { %16795 = vst [vmem:[#allocation51_spill] sm:$0xff] %v8437_v4  ;;  %16796 = vst [vmem:[#allocation29_spill] sm:$0xff] %v8439_v18  ;;  %v8515_v18 = vld [vmem:[%s7784_s19 + $0x1a8] sm:$0xff]  ;;  %v8550_v6 = vld [vmem:[%s7784_s19 + $0x1d0] sm:$0xff]  ;;  %v729_v2 = vmul.f32 1.442695, %v8433_v61 }
  0xce   : > { %16797 = vst [vmem:[#allocation39_spill] sm:$0xff] %v8441_v19  ;;  %16798 = vst [vmem:[#allocation58_spill] sm:$0xff] %v8461_v29  ;;  %v8512_v19 = vld [vmem:[%s7784_s19 + $0x1a0] sm:$0xff]  ;;  %v8553_v4 = vld [vmem:[%s7784_s19 + $0x1d8] sm:$0xff]  ;;  %6515 = vpow2.f32 %v721_v48  ;;  %v731_v38 = vmul.f32 1.442695, %v8444_v12 }
  0xcf   : > { %16799 = vst [vmem:[#allocation53_spill] sm:$0xff] %v8464_v58  ;;  %16800 = vst [vmem:[#allocation32_spill] sm:$0xff] %v8467_v15  ;;  %v16812_v10 = vld [vmem:[#allocation11_spill] sm:$0xff]  ;;  %v733_v37 = vmul.f32 1.442695, %v8447_v62  ;;  %6517 = vpow2.f32 %v723_v57  ;;  %v8581_v31 = vld [vmem:[%s7784_s19 + $0x1e8] sm:$0xff] }
  0xd0   : > { %16801 = vst [vmem:[#allocation54_spill] sm:$0xff] %v8478_v55  ;;  %16802 = vst [vmem:[#allocation33_spill] sm:$0xff] %v8484_v25  ;;  %v8569_v49 = vadd.s32 %v8310_v16, %v16812_v10  ;;  %v735_v42 = vmul.f32 1.442695, %v8450_v53  ;;  %v8575_v40 = vld [vmem:[%s7784_s19 + $0x1e0] sm:$0xff]  ;;  %v8584_v10 = vld [vmem:[%s7784_s19 + $0x1f0] sm:$0xff]  ;;  %6519 = vpow2.f32 %v725_v44 }
  0xd1   : > { %16803 = vst [vmem:[#allocation56_spill] sm:$0xff] %v8498_v27  ;;  %16804 = vst [vmem:[#allocation36_spill] sm:$0xff] %v8512_v19  ;;  %v737_v33 = vmul.f32 1.442695, %v8461_v29  ;;  %v739_v46 = vmul.f32 1.442695, %v8464_v58  ;;  %6521 = vpow2.f32 %v727_v51 }
  0xd2   : > { %16805 = vst [vmem:[#allocation41_spill] sm:$0xff] %v8515_v18  ;;  %16807 = vst [vmem:[#allocation55_spill] sm:$0xff] %v8529_v41  ;;  %v741_v45 = vmul.f32 1.442695, %v8467_v15  ;;  %v743_v48 = vmul.f32 1.442695, %v8478_v55  ;;  %6523 = vpow2.f32 %v729_v2 }
  0xd3   : > { %16808 = vst [vmem:[#allocation35_spill] sm:$0xff] %v8538_v7  ;;  %16809 = vst [vmem:[#allocation57_spill] sm:$0xff] %v8541_v26  ;;  %v745_v35 = vmul.f32 1.442695, %v8481_v54  ;;  %v747_v24 = vmul.f32 1.442695, %v8484_v25  ;;  %6525 = vpow2.f32 %v731_v38  ;;  %v6510_v38 = vpop.eup %6509 }
  0xd4   : > { %16810 = vst [vmem:[#allocation38_spill] sm:$0xff] %v8550_v6  ;;  %16811 = vst [vmem:[#allocation62_spill] sm:$0xff] %v8553_v4  ;;  %v8590_v39 = vld [vmem:[%s7784_s19 + $0x1f8] sm:$0xff]  ;;  %v749_v57 = vmul.f32 1.442695, %v8495_v52  ;;  %6527 = vpow2.f32 %v733_v37  ;;  %v814_v37 = vadd.s32 %v8310_v16, %v7854_v43  ;;  %vm821_vm8 = vcmp.lt.s32.totalorder %v8569_v49, 2560 }
  0xd5   : > { %16813 = vst [vmem:[#allocation63_spill] sm:$0xff] %v8581_v31  ;;  %16814 = vst [vmem:[#allocation64_spill] sm:$0xff] %v8584_v10  ;;  %v751_v58 = vmul.f32 1.442695, %v8498_v27  ;;  %v753_v15 = vmul.f32 1.442695, %v8501_v8  ;;  %6529 = vpow2.f32 %v735_v42  ;;  %v8637_v42 = vadd.s32 %v8310_v16, %v7877_v56 }
  0xd6   : > { %16815 = vst [vmem:[#allocation65_spill] sm:$0xff] %v8590_v39  ;;  %v755_v29 = vmul.f32 1.442695, %v8512_v19  ;;  %v8597_v44 = vmul.f32 1.442695, %v8515_v18  ;;  %6531 = vpow2.f32 %v737_v33  ;;  %v16818_v33 = vsub.f32 %v8399_v47, %v8345_v30 }
  0xd7   : > { %v8600_v55 = vmul.f32 1.442695, %v8526_v17  ;;  %v8603_v25 = vmul.f32 1.442695, %v8529_v41  ;;  %v8606_v51 = vmul.f32 1.442695, %v8538_v7  ;;  %6533 = vpow2.f32 %v739_v46 }
  0xd8   : > { %v8609_v27 = vmul.f32 1.442695, %v8541_v26  ;;  %v8612_v2 = vmul.f32 1.442695, %v8550_v6  ;;  %v8615_v18 = vmul.f32 1.442695, %v8553_v4  ;;  %v6512_v26 = vpop.eup %6511  ;;  %v8633_v4 = vadd.s32 %v8310_v16, %v7866_v50 }
  0xd9   : > { %v8618_v17 = vmul.f32 1.442695, %v8575_v40  ;;  %v8621_v41 = vmul.f32 1.442695, %v8581_v31  ;;  %v8624_v7 = vmul.f32 1.442695, %v8584_v10  ;;  %v6514_v31 = vpop.eup %6513  ;;  %v16817_v10 = vsub.f32 %v8396_v34, %v8343_v3 }
  0xda   : > { %v8629_v6 = vmul.f32 1.442695, %v8590_v39  ;;  %v780_v43 = vsub.f32 %v16818_v33, %v6512_v26  ;;  %v8647_v39 = vadd.s32 %v8310_v16, %v7891_v63  ;;  %v6516_v50 = vpop.eup %6515  ;;  %6535 = vpow2.f32 %v741_v45 }
  0xdb   : > { %v779_v19 = vsub.f32 %v16817_v10, %v6510_v38  ;;  %v16819_v56 = vsub.f32 %v8410_v36, %v8347_v1  ;;  %v8654_v46 = vadd.s32 %v8310_v16, %v7904_v5  ;;  %v6518_v3 = vpop.eup %6517  ;;  %6537 = vpow2.f32 %v743_v48 }
  0xdc   : > { %16816 = vst [vmem:[#allocation66_spill] sm:$0xff] %v8629_v6  ;;  %v16820_v30 = vsub.f32 %v8413_v23, %v8349_v13  ;;  %v8662_v34 = vadd.s32 %v8310_v16, %v7912_v9  ;;  %vm822_vm9 = vcmp.lt.s32.totalorder %v814_v37, 2560  ;;  %v6520_v47 = vpop.eup %6519  ;;  %6539 = vpow2.f32 %v745_v35  ;;  %v9074_v9 = vld [vmem:[%s7784_s19 + $0x2d0] sm:$0xff] }
  0xdd   : > { %v781_v6 = vsub.f32 %v16819_v56, %v6514_v31  ;;  %v16821_v56 = vsub.f32 %v8416_v32, %v8354_v20  ;;  %vm823_vm10 = vcmp.lt.s32.totalorder %v8633_v4, 2560  ;;  %vm824_vm11 = vcmp.lt.s32.totalorder %v8637_v42, 2560  ;;  %v6522_v31 = vpop.eup %6521 }
  0xde   : > { %v782_v10 = vsub.f32 %v16820_v30, %v6516_v50  ;;  %6541 = vpow2.f32 %v747_v24  ;;  %v16822_v50 = vsub.f32 %v8427_v60, %v8356_v0  ;;  %v829_v36 = vsel %vm821_vm8, %v779_v19, 0.0  ;;  %v6524_v23 = vpop.eup %6523 }
  0xdf   : > { %v783_v1 = vsub.f32 %v16821_v56, %v6518_v3  ;;  %v830_v35 = vsel %vm821_vm8, %v780_v43, 0.0  ;;  %6543 = vpow2.f32 %v749_v57  ;;  %v16823_v20 = vsub.f32 %v8430_v21, %v8358_v14  ;;  %v6526_v26 = vpop.eup %6525 }
  0xe0   : > { %v784_v13 = vsub.f32 %v16822_v50, %v6520_v47  ;;  %v831_v45 = vsel %vm821_vm8, %v781_v6, 0.0  ;;  %6545 = vpow2.f32 %v751_v58  ;;  %v16824_v0 = vsub.f32 %v8433_v61, %v8360_v11  ;;  %v6528_v48 = vpop.eup %6527 }
  0xe1   : > { %v785_v32 = vsub.f32 %v16823_v20, %v6522_v31  ;;  %v833_v24 = vsel %vm822_vm9, %v783_v1, 0.0  ;;  %v832_v43 = vsel %vm821_vm8, %v782_v10, 0.0  ;;  %6547 = vpow2.f32 %v753_v15  ;;  %v6530_v38 = vpop.eup %6529 }
  0xe2   : > { %v786_v60 = vsub.f32 %v16824_v0, %v6524_v23  ;;  %v834_v19 = vsel %vm822_vm9, %v784_v13, 0.0  ;;  %v16825_v14 = vsub.f32 %v8444_v12, %v8365_v59  ;;  %v861_v57 = vadd.f32 %v833_v24, %v829_v36  ;;  %v6532_v33 = vpop.eup %6531  ;;  %v16834_v13 = vld [vmem:[#allocation32_spill] sm:$0xff]  ;;  %v16835_v36 = vld [vmem:[#allocation45_spill] sm:$0xff] }
  0xe3   : > { %v835_v6 = vsel %vm822_vm9, %v785_v32, 0.0  ;;  %6549 = vpow2.f32 %v755_v29  ;;  %v16826_v58 = vsub.f32 %v8447_v62, %v8367_v28  ;;  %v868_v49 = vadd.f32 %v834_v19, %v830_v35  ;;  %v6534_v30 = vpop.eup %6533  ;;  %v16828_v29 = vld [vmem:[#allocation58_spill] sm:$0xff]  ;;  %v16829_v28 = vld [vmem:[#allocation44_spill] sm:$0xff] }
  0xe4   : > { %v787_v21 = vsub.f32 %v16825_v14, %v6526_v26  ;;  %v836_v61 = vsel %vm822_vm9, %v786_v60, 0.0  ;;  %6551 = vpow2.f32 %v8597_v44  ;;  %v16827_v15 = vsub.f32 %v8450_v53, %v8369_v22  ;;  %v6536_v44 = vpop.eup %6535  ;;  %v16831_v22 = vld [vmem:[#allocation53_spill] sm:$0xff]  ;;  %v16832_v53 = vld [vmem:[#allocation19_spill] sm:$0xff]  ;;  %v16838_v24 = vld [vmem:[#allocation20_spill] sm:$0xff] }
  0xe5   : > { %v788_v11 = vsub.f32 %v16826_v58, %v6528_v48  ;;  %v875_v3 = vadd.f32 %v835_v6, %v831_v45  ;;  %6553 = vpow2.f32 %v8600_v55  ;;  %v16830_v62 = vsub.f32 %v16828_v29, %v16829_v28  ;;  %v6538_v55 = vpop.eup %6537  ;;  %v16837_v45 = vld [vmem:[#allocation54_spill] sm:$0xff]  ;;  %v16843_v6 = vld [vmem:[#allocation21_spill] sm:$0xff] }
  0xe6   : > { %v789_v59 = vsub.f32 %v16827_v15, %v6530_v38  ;;  %v837_v12 = vsel %vm823_vm10, %v787_v21, 0.0  ;;  %v882_v47 = vadd.f32 %v836_v61, %v832_v43  ;;  %6555 = vpow2.f32 %v8603_v25  ;;  %v6540_v25 = vpop.eup %6539  ;;  %v16840_v43 = vld [vmem:[#allocation46_spill] sm:$0xff]  ;;  %v16842_v21 = vld [vmem:[#allocation33_spill] sm:$0xff] }
  0xe7   : > { %v790_v37 = vsub.f32 %v16830_v62, %v6532_v33  ;;  %v838_v10 = vsel %vm823_vm10, %v788_v11, 0.0  ;;  %v16833_v56 = vsub.f32 %v16831_v22, %v16832_v53  ;;  %v862_v50 = vadd.f32 %v861_v57, %v837_v12  ;;  %v16848_v12 = vld [vmem:[#allocation48_spill] sm:$0xff] }
  0xe8   : > { %v839_v31 = vsel %vm823_vm10, %v789_v59, 0.0  ;;  %6557 = vpow2.f32 %v8606_v51  ;;  %v16836_v35 = vsub.f32 %v16834_v13, %v16835_v36  ;;  %v869_v32 = vadd.f32 %v868_v49, %v838_v10  ;;  %v6542_v60 = vpop.eup %6541  ;;  %v16854_v22 = vld [vmem:[#allocation36_spill] sm:$0xff] }
  0xe9   : > { %v791_v1 = vsub.f32 %v16833_v56, %v6534_v30  ;;  %v840_v20 = vsel %vm823_vm10, %v790_v37, 0.0  ;;  %6559 = vpow2.f32 %v8609_v27  ;;  %v16839_v26 = vsub.f32 %v16837_v45, %v16838_v24  ;;  %v6544_v14 = vpop.eup %6543  ;;  %v16855_v53 = vld [vmem:[#allocation60_spill] sm:$0xff] }
  0xea   : > { %v792_v23 = vsub.f32 %v16836_v35, %v6536_v44  ;;  %vm825_vm12 = vcmp.lt.s32.totalorder %v8647_v39, 2560  ;;  %6561 = vpow2.f32 %v8612_v2  ;;  %v16841_v4 = vsub.f32 %v8481_v54, %v16840_v43  ;;  %v6546_v61 = vpop.eup %6545  ;;  %v16845_v2 = vld [vmem:[#allocation23_spill] sm:$0xff]  ;;  %v16853_v44 = vld [vmem:[#allocation66_spill] sm:$0xff]  ;;  %v16864_v43 = vld [vmem:[#allocation49_spill] sm:$0xff] }
  0xeb   : > { %v793_v0 = vsub.f32 %v16839_v26, %v6538_v55  ;;  %v841_v51 = vsel %vm824_vm11, %v791_v1, 0.0  ;;  %v876_v27 = vadd.f32 %v875_v3, %v839_v31  ;;  %6563 = vpow2.f32 %v8615_v18  ;;  %v6548_v59 = vpop.eup %6547  ;;  %v16847_v18 = vld [vmem:[#allocation56_spill] sm:$0xff] }
  0xec   : > { %v794_v19 = vsub.f32 %v16841_v4, %v6540_v25  ;;  %v842_v48 = vsel %vm824_vm11, %v792_v23, 0.0  ;;  %v16844_v57 = vsub.f32 %v16842_v21, %v16843_v6  ;;  %v863_v58 = vadd.f32 %v862_v50, %v841_v51  ;;  %v16857_v50 = vld [vmem:[#allocation41_spill] sm:$0xff]  ;;  %v16867_v21 = vld [vmem:[#allocation51_spill] sm:$0xff] }
  0xed   : > { %v883_v11 = vadd.f32 %v882_v47, %v840_v20  ;;  %6565 = vpow2.f32 %v8618_v17  ;;  %v16846_v54 = vsub.f32 %v8495_v52, %v16845_v2  ;;  %v843_v33 = vsel %vm824_vm11, %v793_v0, 0.0  ;;  %v6550_v28 = vpop.eup %6549  ;;  %v16850_v52 = vld [vmem:[#allocation25_spill] sm:$0xff]  ;;  %v16852_v47 = vld [vmem:[#allocation31_spill] sm:$0xff] }
  0xee   : > { %v795_v38 = vsub.f32 %v16844_v57, %v6542_v60  ;;  %v870_v15 = vadd.f32 %v869_v32, %v842_v48  ;;  %6567 = vpow2.f32 %v8621_v41  ;;  %v16849_v3 = vsub.f32 %v16847_v18, %v16848_v12  ;;  %v6552_v10 = vpop.eup %6551  ;;  %v16860_v32 = vld [vmem:[#allocation59_spill] sm:$0xff]  ;;  %v16866_v48 = vld [vmem:[#allocation40_spill] sm:$0xff] }
  0xef   : > { %v796_v49 = vsub.f32 %v16846_v54, %v6544_v14  ;;  %v844_v29 = vsel %vm824_vm11, %v794_v19, 0.0  ;;  %6569 = vpow2.f32 %v8624_v7  ;;  %v16851_v62 = vsub.f32 %v8501_v8, %v16850_v52  ;;  %v6554_v31 = vpop.eup %6553  ;;  %v16858_v8 = vld [vmem:[#allocation47_spill] sm:$0xff]  ;;  %v16878_v52 = vld [vmem:[#allocation28_spill] sm:$0xff] }
  0xf0   : > { %v797_v30 = vsub.f32 %v16849_v3, %v6546_v61  ;;  %v845_v17 = vsel %vm825_vm12, %v795_v38, 0.0  ;;  %vm826_vm13 = vcmp.lt.s32.totalorder %v8654_v46, 2560  ;;  %v711_v42 = vsub.f32 %v8575_v40, %v16852_v47  ;;  %v6556_v20 = vpop.eup %6555  ;;  %v16861_v40 = vld [vmem:[#allocation24_spill] sm:$0xff]  ;;  %v16863_v60 = vld [vmem:[#allocation55_spill] sm:$0xff]  ;;  %v16869_v38 = vld [vmem:[#allocation29_spill] sm:$0xff] }
  0xf1   : > { %v798_v37 = vsub.f32 %v16851_v62, %v6548_v59  ;;  %v846_v41 = vsel %vm825_vm12, %v796_v49, 0.0  ;;  %6571 = vpow2.f32 %v16853_v44  ;;  %v16856_v56 = vsub.f32 %v16854_v22, %v16855_v53  ;;  %v16868_v6 = vld [vmem:[#allocation63_spill] sm:$0xff]  ;;  %v16875_v59 = vld [vmem:[#allocation50_spill] sm:$0xff]  ;;  %v16881_v53 = vld [vmem:[#allocation65_spill] sm:$0xff] }
  0xf2   : > { %v877_v7 = vadd.f32 %v876_v27, %v843_v33  ;;  %v16859_v55 = vsub.f32 %v16857_v50, %v16858_v8  ;;  %v847_v36 = vsel %vm825_vm12, %v797_v30, 0.0  ;;  %v864_v35 = vadd.f32 %v863_v58, %v845_v17  ;;  %v6558_v51 = vpop.eup %6557  ;;  %v16870_v58 = vld [vmem:[#allocation64_spill] sm:$0xff]  ;;  %v16871_v61 = vld [vmem:[#allocation35_spill] sm:$0xff] }
  0xf3   : > { %v799_v1 = vsub.f32 %v16856_v56, %v6550_v28  ;;  %v884_v23 = vadd.f32 %v883_v11, %v844_v29  ;;  %v16862_v25 = vsub.f32 %v16860_v32, %v16861_v40  ;;  %v848_v24 = vsel %vm825_vm12, %v798_v37, 0.0  ;;  %v6560_v39 = vpop.eup %6559  ;;  %v16872_v2 = vld [vmem:[#allocation27_spill] sm:$0xff]  ;;  %v16877_v28 = vld [vmem:[#allocation38_spill] sm:$0xff] }
  0xf4   : > { %v800_v13 = vsub.f32 %v16859_v55, %v6552_v10  ;;  %v871_v0 = vadd.f32 %v870_v15, %v846_v41  ;;  %v16865_v4 = vsub.f32 %v16863_v60, %v16864_v43  ;;  %v8781_v27 = vadd.s32 %v8310_v16, %v16866_v48  ;;  %v6562_v15 = vpop.eup %6561  ;;  %v16874_v16 = vld [vmem:[#allocation57_spill] sm:$0xff]  ;;  %v16880_v22 = vld [vmem:[#allocation39_spill] sm:$0xff]  ;;  %v16885_v55 = vld [vmem:[#allocation12_spill] sm:$0xff] }
  0xf5   : > { %v801_v45 = vsub.f32 %v16862_v25, %v6554_v31  ;;  %v849_v26 = vsel %vm826_vm13, %v799_v1, 0.0  ;;  %vm827_vm14 = vcmp.lt.s32.totalorder %v8662_v34, 2560  ;;  %v712_v57 = vsub.f32 %v16868_v6, %v16867_v21  ;;  %v6564_v17 = vpop.eup %6563  ;;  %v16882_v1 = vld [vmem:[#allocation62_spill] sm:$0xff]  ;;  %v5478_v60 = vld [vmem:[%s7778_s23 + $0x208] sm:$0xff]  ;;  %v5479_v43 = vld [vmem:[%s7778_s23 + $0x210] sm:$0xff]  ;;  %16929 = vst [vmem:[#allocation39_spill] sm:$0xff] %v9074_v9 }
  0xf6   : > { %v802_v19 = vsub.f32 %v16865_v4, %v6556_v20  ;;  %v850_v14 = vsel %vm826_vm13, %v800_v13, 0.0  ;;  %v713_v11 = vsub.f32 %v16870_v58, %v16869_v38  ;;  %v16873_v54 = vsub.f32 %v16871_v61, %v16872_v2  ;;  %v5480_v21 = vld [vmem:[%s7778_s23 + $0x218] sm:$0xff]  ;;  %v5481_v6 = vld [vmem:[%s7778_s23 + $0x220] sm:$0xff]  ;;  %v16891_v61 = vld [vmem:[#allocation16_spill] sm:$0xff] }
  0xf7   : > { %v878_v33 = vadd.f32 %v877_v7, %v847_v36  ;;  %v16876_v18 = vsub.f32 %v16874_v16, %v16875_v59  ;;  %v851_v3 = vsel %vm826_vm13, %v801_v45, 0.0  ;;  %v865_v30 = vadd.f32 %v864_v35, %v849_v26  ;;  %v6566_v44 = vpop.eup %6565  ;;  %v16883_v7 = vld [vmem:[#allocation52_spill] sm:$0xff]  ;;  %v16887_v35 = vld [vmem:[#allocation13_spill] sm:$0xff]  ;;  %v16890_v38 = vld [vmem:[#allocation14_spill] sm:$0xff] }
  0xf8   : > { %v803_v49 = vsub.f32 %v16873_v54, %v6558_v51  ;;  %v885_v29 = vadd.f32 %v884_v23, %v848_v24  ;;  %v16879_v62 = vsub.f32 %v16877_v28, %v16878_v52  ;;  %v852_v41 = vsel %vm826_vm13, %v802_v19, 0.0  ;;  %v6568_v8 = vpop.eup %6567  ;;  %v16888_v23 = vld [vmem:[#allocation15_spill] sm:$0xff]  ;;  %v16892_v2 = vld [vmem:[#allocation17_spill] sm:$0xff]  ;;  %v9059_v48 = vld [vmem:[%s7784_s19 + $0x2b8] sm:$0xff] }
  0xf9   : > { %v804_v12 = vsub.f32 %v16876_v18, %v6560_v39  ;;  %v872_v47 = vadd.f32 %v871_v0, %v850_v14  ;;  %v714_v56 = vsub.f32 %v16881_v53, %v16880_v22  ;;  %v16884_v31 = vsub.f32 %v16882_v1, %v16883_v7  ;;  %v6570_v25 = vpop.eup %6569  ;;  %v5477_v51 = vld [vmem:[%s7778_s23 + $0x200] sm:$0xff]  ;;  %v5486_v18 = vld [vmem:[%s7778_s23 + $0x248] sm:$0xff]  ;;  %v5491_v53 = vld [vmem:[%s7778_s23 + $0x270] sm:$0xff]  ;;  %16926 = vst [vmem:[#allocation50_spill] sm:$0xff] %v9059_v48 }
  0xfa   : > { %v805_v37 = vsub.f32 %v16879_v62, %v6562_v15  ;;  %v853_v10 = vsel %vm827_vm14, %v803_v49, 0.0  ;;  %vm828_vm15 = vcmp.lt.s32.totalorder %v8781_v27, 2560  ;;  %v549_v36 = vsel %vm517_vm7, %v16885_v55, 0.0  ;;  %v5484_v15 = vld [vmem:[%s7778_s23 + $0x238] sm:$0xff]  ;;  %v5485_v59 = vld [vmem:[%s7778_s23 + $0x240] sm:$0xff] }
  0xfb   : > { %v806_v50 = vsub.f32 %v16884_v31, %v6564_v17  ;;  %v854_v46 = vsel %vm827_vm14, %v804_v12, 0.0  ;;  %v576_v20 = vadd.f32 %v16888_v23, %v16887_v35  ;;  %v807_v32 = vsub.f32 %v711_v42, %v6566_v44  ;;  %v6572_v4 = vpop.eup %6571  ;;  %v5487_v12 = vld [vmem:[%s7778_s23 + $0x250] sm:$0xff]  ;;  %v5488_v62 = vld [vmem:[%s7778_s23 + $0x258] sm:$0xff]  ;;  %v5493_v1 = vld [vmem:[%s7778_s23 + $0x280] sm:$0xff] }
  0xfc   : > { %v879_v40 = vadd.f32 %v878_v33, %v851_v3  ;;  %v808_v45 = vsub.f32 %v712_v57, %v6568_v8  ;;  %v855_v24 = vsel %vm827_vm14, %v805_v37, 0.0  ;;  %v866_v26 = vadd.f32 %v865_v30, %v853_v10  ;;  %v16889_v57 = vld [vmem:[#allocation42_spill] sm:$0xff]  ;;  %v5483_v33 = vld [vmem:[%s7778_s23 + $0x230] sm:$0xff]  ;;  %v5489_v37 = vld [vmem:[%s7778_s23 + $0x260] sm:$0xff] }
  0xfd   : > { %v886_v0 = vadd.f32 %v885_v29, %v852_v41  ;;  %v809_v19 = vsub.f32 %v713_v11, %v6570_v25  ;;  %v856_v42 = vsel %vm827_vm14, %v806_v50, 0.0  ;;  %v857_v14 = vsel %vm828_vm15, %v807_v32, 0.0  ;;  %v5482_v11 = vld [vmem:[%s7778_s23 + $0x228] sm:$0xff]  ;;  %v5495_v50 = vld [vmem:[%s7778_s23 + $0x290] sm:$0xff] }
  0xfe   : > { %v873_v39 = vadd.f32 %v872_v47, %v854_v46  ;;  %v563_v58 = vadd.f32 %v16890_v38, %v16889_v57  ;;  %v8833_v54 = vadd.f32 %v16892_v2, %v16891_v61  ;;  %v810_v49 = vsub.f32 %v714_v56, %v6572_v4  ;;  %v5490_v41 = vld [vmem:[%s7778_s23 + $0x268] sm:$0xff]  ;;  %v5492_v56 = vld [vmem:[%s7778_s23 + $0x278] sm:$0xff]  ;;  %v5499_v23 = vld [vmem:[%s7778_s23 + $0x2b0] sm:$0xff] }
  0xff   : > { %v858_v34 = vsel %vm828_vm15, %v808_v45, 0.0  ;;  %v8840_v16 = vadd.f32 %v576_v20, %v549_v36  ;;  %v8845_v3 = vmul.f32 %v5477_v51, %v5477_v51  ;;  %v8847_v30 = vmul.f32 %v5478_v60, %v5478_v60  ;;  %v5494_v31 = vld [vmem:[%s7778_s23 + $0x288] sm:$0xff]  ;;  %v5496_v46 = vld [vmem:[%s7778_s23 + $0x298] sm:$0xff]  ;;  %v5497_v36 = vld [vmem:[%s7778_s23 + $0x2a0] sm:$0xff] }
 0x100   : > { %16893 = vst [vmem:[#allocation58_spill] sm:$0xff] %v8833_v54  ;;  %v8849_v29 = vmul.f32 %v5479_v43, %v5479_v43  ;;  %v867_v17 = vadd.f32 %v866_v26, %v857_v14  ;;  %v880_v28 = vadd.f32 %v879_v40, %v855_v24  ;;  %v887_v52 = vadd.f32 %v886_v0, %v856_v42  ;;  %v5498_v35 = vld [vmem:[%s7778_s23 + $0x2a8] sm:$0xff]  ;;  %v16897_v26 = vld [vmem:[#allocation43_spill] sm:$0xff]  ;;  %v5500_v51 = vld [vmem:[%s7778_s23 + $0x2b8] sm:$0xff] }
 0x101   : > { %16894 = vst [vmem:[#allocation44_spill] sm:$0xff] %v8840_v16  ;;  %v8854_v10 = vmul.f32 %v5480_v21, %v5480_v21  ;;  %v859_v47 = vsel %vm828_vm15, %v809_v19, 0.0  ;;  %v860_v44 = vsel %vm828_vm15, %v810_v49, 0.0  ;;  %v874_v22 = vadd.f32 %v873_v39, %v858_v34  ;;  %v5501_v60 = vld [vmem:[%s7778_s23 + $0x2c0] sm:$0xff]  ;;  %v5502_v43 = vld [vmem:[%s7778_s23 + $0x2c8] sm:$0xff]  ;;  %v5503_v42 = vld [vmem:[%s7778_s23 + $0x2d0] sm:$0xff] }
 0x102   : > { %v8863_v7 = vmul.f32 %v5481_v6, %v5481_v6  ;;  %v8868_v8 = vmul.f32 %v5482_v11, %v5482_v11  ;;  %v8870_v55 = vmul.f32 %v5483_v33, %v5483_v33  ;;  %v8872_v13 = vmul.f32 %v5484_v15, %v5484_v15  ;;  %v5504_v14 = vld [vmem:[%s7778_s23 + $0x2d8] sm:$0xff]  ;;  %v5505_v39 = vld [vmem:[%s7778_s23 + $0x2e0] sm:$0xff]  ;;  %v5506_v38 = vld [vmem:[%s7778_s23 + $0x2e8] sm:$0xff] }
 0x103   : > { %v8874_v27 = vmul.f32 %v5485_v59, %v5485_v59  ;;  %v8879_v20 = vmul.f32 %v5486_v18, %v5486_v18  ;;  %v8881_v32 = vmul.f32 %v5487_v12, %v5487_v12  ;;  %v8883_v40 = vmul.f32 %v5488_v62, %v5488_v62  ;;  %v5507_v61 = vld [vmem:[%s7778_s23 + $0x2f0] sm:$0xff]  ;;  %v5508_v2 = vld [vmem:[%s7778_s23 + $0x2f8] sm:$0xff]  ;;  %v8922_v33 = vld [vmem:[%s7784_s19 + $0x200] sm:$0xff] }
 0x104   : > { %v8885_v25 = vmul.f32 %v5489_v37, %v5489_v37  ;;  %v8887_v45 = vadd.f32 %v880_v28, %v859_v47  ;;  %v8889_v24 = vadd.f32 %v887_v52, %v860_v44  ;;  %v8892_v0 = vadd.f32 %v867_v17, %v16897_v26  ;;  %v8925_v15 = vld [vmem:[%s7784_s19 + $0x208] sm:$0xff]  ;;  %v8936_v28 = vld [vmem:[%s7784_s19 + $0x210] sm:$0xff]  ;;  %v8939_v52 = vld [vmem:[%s7784_s19 + $0x218] sm:$0xff] }
 0x105   : > { %v8897_v4 = vmul.f32 %v5490_v41, %v5490_v41  ;;  %v8899_v19 = vadd.f32 %v874_v22, %v563_v58  ;;  %v8904_v21 = vmul.f32 %v5491_v53, %v5491_v53  ;;  %v8906_v6 = vmul.f32 %v5492_v56, %v5492_v56  ;;  %v8942_v62 = vld [vmem:[%s7784_s19 + $0x220] sm:$0xff]  ;;  %v8953_v22 = vld [vmem:[%s7784_s19 + $0x228] sm:$0xff]  ;;  %v8956_v53 = vld [vmem:[%s7784_s19 + $0x230] sm:$0xff] }
 0x106   : > { %16895 = vst [vmem:[#allocation53_spill] sm:$0xff] %v8887_v45  ;;  %16896 = vst [vmem:[#allocation19_spill] sm:$0xff] %v8889_v24  ;;  %v8908_v57 = vmul.f32 %v5493_v1, %v5493_v1  ;;  %v8913_v49 = vmul.f32 %v5494_v31, %v5494_v31  ;;  %v8915_v34 = vmul.f32 %v5495_v50, %v5495_v50  ;;  %v8959_v56 = vld [vmem:[%s7784_s19 + $0x238] sm:$0xff]  ;;  %v9010_v26 = vld [vmem:[%s7784_s19 + $0x280] sm:$0xff]  ;;  %v1030_v54 = vmul.f32 1.442695, %v8936_v28 }
 0x107   : > { %16898 = vst [vmem:[#allocation32_spill] sm:$0xff] %v8892_v0  ;;  %16899 = vst [vmem:[#allocation45_spill] sm:$0xff] %v8899_v19  ;;  %v8917_v58 = vmul.f32 %v5496_v46, %v5496_v46  ;;  %v8919_v11 = vmul.f32 %v5497_v36, %v5497_v36  ;;  %v8927_v59 = vmul.f32 %v5498_v35, %v5498_v35  ;;  %v8970_v36 = vld [vmem:[%s7784_s19 + $0x240] sm:$0xff]  ;;  %v8973_v35 = vld [vmem:[%s7784_s19 + $0x248] sm:$0xff]  ;;  %v1032_v0 = vmul.f32 1.442695, %v8939_v52 }
 0x108   : > { %16900 = vst [vmem:[#allocation54_spill] sm:$0xff] %v8904_v21  ;;  %16901 = vst [vmem:[#allocation20_spill] sm:$0xff] %v8906_v6  ;;  %v8929_v18 = vmul.f32 %v5499_v23, %v5499_v23  ;;  %v8931_v12 = vmul.f32 %v5500_v51, %v5500_v51  ;;  %v8933_v17 = vmul.f32 %v5501_v60, %v5501_v60  ;;  %v8976_v23 = vld [vmem:[%s7784_s19 + $0x250] sm:$0xff]  ;;  %v9007_v51 = vld [vmem:[%s7784_s19 + $0x278] sm:$0xff]  ;;  %v1034_v45 = vmul.f32 1.442695, %v8942_v62 }
 0x109   : > { %16902 = vst [vmem:[#allocation46_spill] sm:$0xff] %v8908_v57  ;;  %16903 = vst [vmem:[#allocation33_spill] sm:$0xff] %v8913_v49  ;;  %v8944_v37 = vmul.f32 %v5502_v43, %v5502_v43  ;;  %v8946_v41 = vmul.f32 %v5503_v42, %v5503_v42  ;;  %v8948_v47 = vmul.f32 %v5504_v14, %v5504_v14  ;;  %v8987_v42 = vld [vmem:[%s7784_s19 + $0x258] sm:$0xff]  ;;  %v8990_v14 = vld [vmem:[%s7784_s19 + $0x260] sm:$0xff] }
 0x10a   : > { %16904 = vst [vmem:[#allocation21_spill] sm:$0xff] %v8915_v34  ;;  %16905 = vst [vmem:[#allocation23_spill] sm:$0xff] %v8917_v58  ;;  %v8950_v44 = vmul.f32 %v5505_v39, %v5505_v39  ;;  %v8961_v1 = vmul.f32 %v5506_v38, %v5506_v38  ;;  %v8963_v31 = vmul.f32 %v5507_v61, %v5507_v61  ;;  %v8993_v39 = vld [vmem:[%s7784_s19 + $0x268] sm:$0xff]  ;;  %v9004_v43 = vld [vmem:[%s7784_s19 + $0x270] sm:$0xff]  ;;  %v1026_v38 = vmul.f32 1.442695, %v8922_v33 }
 0x10b   : > { %16906 = vst [vmem:[#allocation56_spill] sm:$0xff] %v8919_v11  ;;  %16907 = vst [vmem:[#allocation48_spill] sm:$0xff] %v8927_v59  ;;  %v8965_v50 = vmul.f32 %v5508_v2, %v5508_v2  ;;  %v9021_v46 = vld [vmem:[%s7784_s19 + $0x288] sm:$0xff]  ;;  %v9024_v19 = vld [vmem:[%s7784_s19 + $0x290] sm:$0xff]  ;;  %v1028_v61 = vmul.f32 1.442695, %v8925_v15  ;;  %v9092_v58 = vstv %s1122_s6 }
 0x10c   : > { %16908 = vst [vmem:[#allocation25_spill] sm:$0xff] %v8929_v18  ;;  %16909 = vst [vmem:[#allocation31_spill] sm:$0xff] %v8931_v12  ;;  %v9038_v60 = vld [vmem:[%s7784_s19 + $0x2a0] sm:$0xff]  ;;  %v9047_v16 = vld [vmem:[%s7784_s19 + $0x2a8] sm:$0xff]  ;;  %6573 = vpow2.f32 %v1026_v38  ;;  %v1038_v18 = vmul.f32 1.442695, %v8956_v53 }
 0x10d   : > { %16910 = vst [vmem:[#allocation66_spill] sm:$0xff] %v8933_v17  ;;  %16911 = vst [vmem:[#allocation36_spill] sm:$0xff] %v8944_v37  ;;  %v9050_v2 = vld [vmem:[%s7784_s19 + $0x2b0] sm:$0xff]  ;;  %v9071_v24 = vld [vmem:[%s7784_s19 + $0x2c8] sm:$0xff]  ;;  %6575 = vpow2.f32 %v1028_v61  ;;  %v1040_v61 = vmul.f32 1.442695, %v8959_v56 }
 0x10e   : > { %16912 = vst [vmem:[#allocation60_spill] sm:$0xff] %v8946_v41  ;;  %16913 = vst [vmem:[#allocation41_spill] sm:$0xff] %v8948_v47  ;;  %v9082_v59 = vld [vmem:[%s7784_s19 + $0x2d8] sm:$0xff]  ;;  %6577 = vpow2.f32 %v1030_v54  ;;  %v1042_v38 = vmul.f32 1.442695, %v8970_v36  ;;  %v9104_v47 = vld [vmem:[%s7784_s19 + $0x2e8] sm:$0xff] }
 0x10f   : > { %16914 = vst [vmem:[#allocation47_spill] sm:$0xff] %v8950_v44  ;;  %16915 = vst [vmem:[#allocation59_spill] sm:$0xff] %v8961_v1  ;;  %v1036_v1 = vmul.f32 1.442695, %v8953_v22  ;;  %6579 = vpow2.f32 %v1032_v0  ;;  %v1044_v37 = vmul.f32 1.442695, %v8973_v35 }
 0x110   : > { %16916 = vst [vmem:[#allocation24_spill] sm:$0xff] %v8963_v31  ;;  %16917 = vst [vmem:[#allocation55_spill] sm:$0xff] %v8965_v50  ;;  %v9035_v50 = vld [vmem:[%s7784_s19 + $0x298] sm:$0xff]  ;;  %v9062_v31 = vld [vmem:[%s7784_s19 + $0x2c0] sm:$0xff]  ;;  %6581 = vpow2.f32 %v1034_v45  ;;  %v1046_v44 = vmul.f32 1.442695, %v8976_v23 }
 0x111   : > { %16918 = vst [vmem:[#allocation49_spill] sm:$0xff] %v9007_v51  ;;  %16919 = vst [vmem:[#allocation51_spill] sm:$0xff] %v9010_v26  ;;  %6583 = vpow2.f32 %v1036_v1  ;;  %v1048_v54 = vmul.f32 1.442695, %v8987_v42  ;;  %v1050_v41 = vmul.f32 1.442695, %v8990_v14 }
 0x112   : > { %16920 = vst [vmem:[#allocation63_spill] sm:$0xff] %v9021_v46  ;;  %16921 = vst [vmem:[#allocation29_spill] sm:$0xff] %v9024_v19  ;;  %v1052_v11 = vmul.f32 1.442695, %v8993_v39  ;;  %v9101_v0 = vld [vmem:[%s7784_s19 + $0x2e0] sm:$0xff]  ;;  %6585 = vpow2.f32 %v1038_v18  ;;  %v9110_v34 = vld [vmem:[%s7784_s19 + $0x2f0] sm:$0xff] }
 0x113   : > { %16922 = vst [vmem:[#allocation64_spill] sm:$0xff] %v9035_v50  ;;  %16923 = vst [vmem:[#allocation35_spill] sm:$0xff] %v9038_v60  ;;  %v1054_v45 = vmul.f32 1.442695, %v9004_v43  ;;  %v1056_v17 = vmul.f32 1.442695, %v9007_v51  ;;  %6587 = vpow2.f32 %v1040_v61 }
 0x114   : > { %16924 = vst [vmem:[#allocation27_spill] sm:$0xff] %v9047_v16  ;;  %16925 = vst [vmem:[#allocation57_spill] sm:$0xff] %v9050_v2  ;;  %v1058_v12 = vmul.f32 1.442695, %v9010_v26  ;;  %v1060_v1 = vmul.f32 1.442695, %v9021_v46  ;;  %6589 = vpow2.f32 %v1042_v38 }
 0x115   : > { %16927 = vst [vmem:[#allocation38_spill] sm:$0xff] %v9062_v31  ;;  %16928 = vst [vmem:[#allocation28_spill] sm:$0xff] %v9071_v24  ;;  %v1062_v49 = vmul.f32 1.442695, %v9024_v19  ;;  %v1064_v57 = vmul.f32 1.442695, %v9035_v50  ;;  %6591 = vpow2.f32 %v1044_v37 }
 0x116   : > { %16930 = vst [vmem:[#allocation65_spill] sm:$0xff] %v9082_v59  ;;  %16931 = vst [vmem:[#allocation62_spill] sm:$0xff] %v9101_v0  ;;  %v1066_v6 = vmul.f32 1.442695, %v9038_v60  ;;  %v1068_v18 = vmul.f32 1.442695, %v9047_v16  ;;  %v6574_v19 = vpop.eup %6573  ;;  %6593 = vpow2.f32 %v1046_v44 }
 0x117   : > { %16932 = vst [vmem:[#allocation52_spill] sm:$0xff] %v9104_v47  ;;  %16933 = vst [vmem:[#allocation12_spill] sm:$0xff] %v9110_v34  ;;  %v9118_v21 = vmul.f32 1.442695, %v9050_v2  ;;  %v9121_v26 = vmul.f32 1.442695, %v9059_v48  ;;  %v6576_v16 = vpop.eup %6575  ;;  %6595 = vpow2.f32 %v1048_v54 }
 0x118   : > { %v9124_v61 = vmul.f32 1.442695, %v9062_v31  ;;  %v9127_v46 = vmul.f32 1.442695, %v9071_v24  ;;  %v9130_v50 = vld [vmem:[%s7784_s19 + $0x2f8] sm:$0xff]  ;;  %v16936_v37 = vld [vmem:[#allocation11_spill] sm:$0xff]  ;;  %v6578_v51 = vpop.eup %6577  ;;  %6597 = vpow2.f32 %v1050_v41 }
 0x119   : > { %16934 = vst [vmem:[#allocation61_spill] sm:$0xff] %v9130_v50  ;;  %v9133_v38 = vmul.f32 1.442695, %v9074_v9  ;;  %v9136_v2 = vmul.f32 1.442695, %v9082_v59  ;;  %v1124_v48 = vadd.s32 %v9092_v58, %v16936_v37  ;;  %v16937_v60 = vld [vmem:[#allocation18_spill] sm:$0xff]  ;;  %6599 = vpow2.f32 %v1052_v11 }
 0x11a   : > { %v9141_v31 = vmul.f32 1.442695, %v9101_v0  ;;  %v9144_v24 = vmul.f32 1.442695, %v9104_v47  ;;  %v1125_v44 = vadd.s32 %v9092_v58, %v16937_v60  ;;  %v9149_v9 = vmul.f32 1.442695, %v9110_v34  ;;  %v6580_v0 = vpop.eup %6579 }
 0x11b   : > { %16935 = vst [vmem:[#allocation13_spill] sm:$0xff] %v9136_v2  ;;  %v16939_v59 = vld [vmem:[#allocation22_spill] sm:$0xff]  ;;  %v9160_v47 = vmul.f32 1.442695, %v9130_v50  ;;  %v16941_v60 = vsub.f32 %v8922_v33, %v8845_v3  ;;  %v9167_v34 = vadd.s32 %v9092_v58, %v7891_v63  ;;  %6601 = vpow2.f32 %v1054_v45 }
 0x11c   : > { %16938 = vst [vmem:[#allocation15_spill] sm:$0xff] %v9149_v9  ;;  %v9153_v2 = vadd.s32 %v9092_v58, %v16939_v59  ;;  %v16940_v37 = vld [vmem:[#allocation26_spill] sm:$0xff]  ;;  %v6582_v9 = vpop.eup %6581  ;;  %v16942_v59 = vsub.f32 %v8925_v15, %v8847_v30  ;;  %v9174_v11 = vadd.s32 %v9092_v58, %v7904_v5  ;;  %vm1132_vm0 = vcmp.lt.s32.totalorder %v1124_v48, 2560 }
 0x11d   : > { %v9157_v54 = vadd.s32 %v9092_v58, %v16940_v37  ;;  %v1090_v41 = vsub.f32 %v16941_v60, %v6574_v19  ;;  %v6584_v50 = vpop.eup %6583  ;;  %6603 = vpow2.f32 %v1056_v17  ;;  %v16943_v3 = vsub.f32 %v8936_v28, %v8849_v29 }
 0x11e   : > { %v1091_v37 = vsub.f32 %v16942_v59, %v6576_v16  ;;  %v16944_v33 = vsub.f32 %v8942_v62, %v8863_v7  ;;  %vm1133_vm1 = vcmp.lt.s32.totalorder %v1125_v44, 2560  ;;  %v6586_v45 = vpop.eup %6585  ;;  %6605 = vpow2.f32 %v1058_v12 }
 0x11f   : > { %v1092_v19 = vsub.f32 %v16943_v3, %v6578_v51  ;;  %v16945_v16 = vsub.f32 %v8953_v22, %v8868_v8  ;;  %vm1134_vm2 = vcmp.lt.s32.totalorder %v9153_v2, 2560  ;;  %vm1135_vm3 = vcmp.lt.s32.totalorder %v9157_v54, 2560  ;;  %v6588_v15 = vpop.eup %6587  ;;  %v16979_v54 = vld [vmem:[#allocation48_spill] sm:$0xff] }
 0x120   : > { %v1094_v60 = vsub.f32 %v16944_v33, %v6582_v9  ;;  %6607 = vpow2.f32 %v1060_v1  ;;  %v16946_v29 = vsub.f32 %v8939_v52, %v8854_v10  ;;  %v16947_v9 = vsub.f32 %v8956_v53, %v8870_v55  ;;  %v6590_v17 = vpop.eup %6589 }
 0x121   : > { %v1095_v30 = vsub.f32 %v16945_v16, %v6584_v50  ;;  %v1140_v12 = vsel %vm1132_vm0, %v1090_v41, 0.0  ;;  %6609 = vpow2.f32 %v1062_v49  ;;  %v16948_v8 = vsub.f32 %v8959_v56, %v8872_v13  ;;  %v6592_v50 = vpop.eup %6591 }
 0x122   : > { %v1093_v59 = vsub.f32 %v16946_v29, %v6580_v0  ;;  %v1096_v7 = vsub.f32 %v16947_v9, %v6586_v45  ;;  %v1141_v62 = vsel %vm1132_vm0, %v1091_v37, 0.0  ;;  %v1144_v22 = vsel %vm1133_vm1, %v1094_v60, 0.0  ;;  %v6594_v51 = vpop.eup %6593  ;;  %v16962_v9 = vld [vmem:[#allocation46_spill] sm:$0xff] }
 0x123   : > { %v1097_v28 = vsub.f32 %v16948_v8, %v6588_v15  ;;  %6611 = vpow2.f32 %v1064_v57  ;;  %v16949_v10 = vsub.f32 %v8970_v36, %v8874_v27  ;;  %v1142_v55 = vsel %vm1132_vm0, %v1092_v19, 0.0  ;;  %v6596_v1 = vpop.eup %6595 }
 0x124   : > { %v1145_v53 = vsel %vm1133_vm1, %v1095_v30, 0.0  ;;  %6613 = vpow2.f32 %v1066_v6  ;;  %v16950_v13 = vsub.f32 %v8973_v35, %v8879_v20  ;;  %v1146_v56 = vsel %vm1133_vm1, %v1096_v7, 0.0  ;;  %v6598_v41 = vpop.eup %6597 }
 0x125   : > { %v1098_v52 = vsub.f32 %v16949_v10, %v6590_v17  ;;  %v1172_v0 = vadd.f32 %v1144_v22, %v1140_v12  ;;  %6615 = vpow2.f32 %v1068_v18  ;;  %v16951_v57 = vsub.f32 %v8976_v23, %v8881_v32  ;;  %v6600_v18 = vpop.eup %6599 }
 0x126   : > { %v1099_v49 = vsub.f32 %v16950_v13, %v6592_v50  ;;  %v1143_v36 = vsel %vm1132_vm0, %v1093_v59, 0.0  ;;  %6617 = vpow2.f32 %v9118_v21  ;;  %v16952_v20 = vsub.f32 %v8987_v42, %v8883_v40  ;;  %v6602_v33 = vpop.eup %6601  ;;  %v16960_v59 = vld [vmem:[#allocation13_spill] sm:$0xff] }
 0x127   : > { %v1100_v27 = vsub.f32 %v16951_v57, %v6594_v51  ;;  %v1148_v37 = vsel %vm1134_vm2, %v1098_v52, 0.0  ;;  %v1147_v35 = vsel %vm1133_vm1, %v1097_v28, 0.0  ;;  %v1179_v3 = vadd.f32 %v1145_v53, %v1141_v62  ;;  %v16965_v62 = vld [vmem:[#allocation33_spill] sm:$0xff]  ;;  %v16972_v57 = vld [vmem:[#allocation23_spill] sm:$0xff] }
 0x128   : > { %v1101_v6 = vsub.f32 %v16952_v20, %v6596_v1  ;;  %6619 = vpow2.f32 %v9121_v26  ;;  %v16953_v48 = vsub.f32 %v8990_v14, %v8885_v25  ;;  %v1149_v23 = vsel %vm1134_vm2, %v1099_v49, 0.0  ;;  %v6604_v26 = vpop.eup %6603  ;;  %v16955_v25 = vld [vmem:[#allocation54_spill] sm:$0xff]  ;;  %v16968_v53 = vld [vmem:[#allocation21_spill] sm:$0xff]  ;;  %v16971_v1 = vld [vmem:[#allocation64_spill] sm:$0xff] }
 0x129   : > { %v1186_v19 = vadd.f32 %v1146_v56, %v1142_v55  ;;  %6621 = vpow2.f32 %v9124_v61  ;;  %v16954_v40 = vsub.f32 %v8993_v39, %v8897_v4  ;;  %v1150_v42 = vsel %vm1134_vm2, %v1100_v27, 0.0  ;;  %v6606_v61 = vpop.eup %6605  ;;  %v16957_v4 = vld [vmem:[#allocation49_spill] sm:$0xff]  ;;  %v16958_v39 = vld [vmem:[#allocation20_spill] sm:$0xff]  ;;  %v16974_v20 = vld [vmem:[#allocation35_spill] sm:$0xff] }
 0x12a   : > { %v1102_v32 = vsub.f32 %v16953_v48, %v6598_v41  ;;  %v1173_v44 = vadd.f32 %v1172_v0, %v1148_v37  ;;  %6623 = vpow2.f32 %v9127_v46  ;;  %v16956_v14 = vsub.f32 %v9004_v43, %v16955_v25  ;;  %v6608_v29 = vpop.eup %6607  ;;  %v16961_v43 = vld [vmem:[#allocation51_spill] sm:$0xff]  ;;  %v16967_v55 = vld [vmem:[#allocation29_spill] sm:$0xff] }
 0x12b   : > { %v1103_v21 = vsub.f32 %v16954_v40, %v6600_v18  ;;  %v1193_v16 = vadd.f32 %v1147_v35, %v1143_v36  ;;  %6625 = vpow2.f32 %v9133_v38  ;;  %v16959_v30 = vsub.f32 %v16957_v4, %v16958_v39  ;;  %v6610_v28 = vpop.eup %6609  ;;  %v16964_v38 = vld [vmem:[#allocation63_spill] sm:$0xff]  ;;  %v16977_v18 = vld [vmem:[#allocation37_spill] sm:$0xff]  ;;  %v16985_v39 = vld [vmem:[#allocation62_spill] sm:$0xff] }
 0x12c   : > { %v1104_v60 = vsub.f32 %v16956_v14, %v6602_v33  ;;  %v1152_v45 = vsel %vm1135_vm3, %v1102_v32, 0.0  ;;  %vm1136_vm4 = vcmp.lt.s32.totalorder %v9167_v34, 2560  ;;  %v1151_v46 = vsel %vm1134_vm2, %v1101_v6, 0.0  ;;  %v16970_v0 = vld [vmem:[#allocation15_spill] sm:$0xff]  ;;  %v16975_v6 = vld [vmem:[#allocation56_spill] sm:$0xff] }
 0x12d   : > { %v1105_v15 = vsub.f32 %v16959_v30, %v6604_v26  ;;  %6627 = vpow2.f32 %v16960_v59  ;;  %v16963_v7 = vsub.f32 %v16961_v43, %v16962_v9  ;;  %v1180_v17 = vadd.f32 %v1179_v3, %v1149_v23  ;;  %v6612_v52 = vpop.eup %6611  ;;  %v16978_v23 = vld [vmem:[#allocation27_spill] sm:$0xff]  ;;  %v16982_v26 = vld [vmem:[#allocation25_spill] sm:$0xff] }
 0x12e   : > { %v1187_v8 = vadd.f32 %v1186_v19, %v1150_v42  ;;  %6629 = vpow2.f32 %v9141_v31  ;;  %v16966_v22 = vsub.f32 %v16964_v38, %v16965_v62  ;;  %v1153_v2 = vsel %vm1135_vm3, %v1103_v21, 0.0  ;;  %v6614_v31 = vpop.eup %6613  ;;  %v16984_v4 = vld [vmem:[#allocation47_spill] sm:$0xff]  ;;  %v16992_v38 = vld [vmem:[#allocation12_spill] sm:$0xff] }
 0x12f   : > { %v1106_v12 = vsub.f32 %v16963_v7, %v6606_v61  ;;  %v1174_v10 = vadd.f32 %v1173_v44, %v1152_v45  ;;  %6631 = vpow2.f32 %v9144_v24  ;;  %v16969_v51 = vsub.f32 %v16967_v55, %v16968_v53  ;;  %v6616_v41 = vpop.eup %6615  ;;  %v16981_v44 = vld [vmem:[#allocation57_spill] sm:$0xff] }
 0x130   : > { %v1107_v50 = vsub.f32 %v16966_v22, %v6608_v29  ;;  %v1154_v49 = vsel %vm1135_vm3, %v1104_v60, 0.0  ;;  %v1194_v56 = vadd.f32 %v1193_v16, %v1151_v46  ;;  %6633 = vpow2.f32 %v16970_v0  ;;  %v6618_v32 = vpop.eup %6617  ;;  %v16987_v46 = vld [vmem:[#allocation31_spill] sm:$0xff]  ;;  %v16993_v22 = vld [vmem:[#allocation38_spill] sm:$0xff] }
 0x131   : > { %v1108_v13 = vsub.f32 %v16969_v51, %v6610_v28  ;;  %v16973_v27 = vsub.f32 %v16971_v1, %v16972_v57  ;;  %v1155_v37 = vsel %vm1135_vm3, %v1105_v15, 0.0  ;;  %v1156_v24 = vsel %vm1136_vm4, %v1106_v12, 0.0  ;;  %v16986_v15 = vld [vmem:[#allocation50_spill] sm:$0xff]  ;;  %v16989_v12 = vld [vmem:[#allocation59_spill] sm:$0xff]  ;;  %v16991_v28 = vld [vmem:[#allocation24_spill] sm:$0xff] }
 0x132   : > { %6635 = vpow2.f32 %v9160_v47  ;;  %v16976_v35 = vsub.f32 %v16974_v20, %v16975_v6  ;;  %v9274_v48 = vadd.s32 %v9092_v58, %v16977_v18  ;;  %vm1137_vm5 = vcmp.lt.s32.totalorder %v9174_v11, 2560  ;;  %v6620_v42 = vpop.eup %6619  ;;  %v17001_v20 = vld [vmem:[#allocation60_spill] sm:$0xff] }
 0x133   : > { %v1109_v36 = vsub.f32 %v16973_v27, %v6612_v52  ;;  %v16980_v19 = vsub.f32 %v16978_v23, %v16979_v54  ;;  %v1157_v40 = vsel %vm1136_vm4, %v1107_v50, 0.0  ;;  %v1181_v21 = vadd.f32 %v1180_v17, %v1153_v2  ;;  %v6622_v61 = vpop.eup %6621  ;;  %v16990_v17 = vld [vmem:[#allocation52_spill] sm:$0xff]  ;;  %v16994_v50 = vld [vmem:[#allocation66_spill] sm:$0xff] }
 0x134   : > { %v1110_v3 = vsub.f32 %v16976_v35, %v6614_v31  ;;  %v1188_v47 = vadd.f32 %v1187_v8, %v1154_v49  ;;  %v16983_v25 = vsub.f32 %v16981_v44, %v16982_v26  ;;  %v1158_v60 = vsel %vm1136_vm4, %v1108_v13, 0.0  ;;  %v6624_v7 = vpop.eup %6623  ;;  %v16996_v52 = vld [vmem:[#allocation40_spill] sm:$0xff]  ;;  %v17010_v26 = vld [vmem:[#allocation19_spill] sm:$0xff] }
 0x135   : > { %v1111_v33 = vsub.f32 %v16980_v19, %v6616_v41  ;;  %v1175_v45 = vadd.f32 %v1174_v10, %v1156_v24  ;;  %v1195_v16 = vadd.f32 %v1194_v56, %v1155_v37  ;;  %v1022_v30 = vsub.f32 %v16985_v39, %v16984_v4  ;;  %v6626_v34 = vpop.eup %6625  ;;  %v16997_v56 = vld [vmem:[#allocation28_spill] sm:$0xff]  ;;  %v5541_v37 = vld [vmem:[%s7778_s23 + $0x300] sm:$0xff]  ;;  %v5543_v4 = vld [vmem:[%s7778_s23 + $0x310] sm:$0xff] }
 0x136   : > { %v1112_v14 = vsub.f32 %v16983_v25, %v6618_v32  ;;  %v16988_v29 = vsub.f32 %v16986_v15, %v16987_v46  ;;  %v1159_v43 = vsel %vm1136_vm4, %v1109_v36, 0.0  ;;  %v1160_v9 = vsel %vm1137_vm5, %v1110_v3, 0.0  ;;  %v16998_v31 = vld [vmem:[#allocation36_spill] sm:$0xff]  ;;  %v17000_v41 = vld [vmem:[#allocation39_spill] sm:$0xff]  ;;  %v17003_v3 = vld [vmem:[#allocation65_spill] sm:$0xff] }
 0x137   : > { %v1023_v8 = vsub.f32 %v16990_v17, %v16989_v12  ;;  %v1024_v62 = vsub.f32 %v16992_v38, %v16991_v28  ;;  %v16995_v2 = vsub.f32 %v16993_v22, %v16994_v50  ;;  %vm1138_vm6 = vcmp.lt.s32.totalorder %v9274_v48, 2560  ;;  %v6628_v49 = vpop.eup %6627  ;;  %v17004_v32 = vld [vmem:[#allocation41_spill] sm:$0xff]  ;;  %v17009_v44 = vld [vmem:[#allocation44_spill] sm:$0xff]  ;;  %v5544_v39 = vld [vmem:[%s7778_s23 + $0x318] sm:$0xff] }
 0x138   : > { %v1113_v59 = vsub.f32 %v16988_v29, %v6620_v42  ;;  %v9306_v55 = vadd.s32 %v9092_v58, %v16996_v52  ;;  %v1161_v53 = vsel %vm1137_vm5, %v1111_v33, 0.0  ;;  %v1182_v51 = vadd.f32 %v1181_v21, %v1157_v40  ;;  %v5542_v58 = vld [vmem:[%s7778_s23 + $0x308] sm:$0xff]  ;;  %v6630_v24 = vpop.eup %6629  ;;  %v17006_v21 = vld [vmem:[#allocation58_spill] sm:$0xff]  ;;  %v5545_v15 = vld [vmem:[%s7778_s23 + $0x320] sm:$0xff] }
 0x139   : > { %v1114_v10 = vsub.f32 %v16995_v2, %v6622_v61  ;;  %v1189_v13 = vadd.f32 %v1188_v47, %v1158_v60  ;;  %v16999_v0 = vsub.f32 %v16997_v56, %v16998_v31  ;;  %v1162_v57 = vsel %vm1137_vm5, %v1112_v14, 0.0  ;;  %v6632_v40 = vpop.eup %6631  ;;  %v17007_v47 = vld [vmem:[#allocation53_spill] sm:$0xff]  ;;  %v17012_v14 = vld [vmem:[#allocation55_spill] sm:$0xff]  ;;  %v5546_v12 = vld [vmem:[%s7778_s23 + $0x328] sm:$0xff] }
 0x13a   : > { %v1176_v27 = vadd.f32 %v1175_v45, %v1160_v9  ;;  %v1196_v36 = vadd.f32 %v1195_v16, %v1159_v43  ;;  %v17002_v6 = vsub.f32 %v17000_v41, %v17001_v20  ;;  %v17005_v23 = vsub.f32 %v17003_v3, %v17004_v32  ;;  %v17013_v60 = vld [vmem:[#allocation61_spill] sm:$0xff]  ;;  %v6634_v11 = vpop.eup %6633  ;;  %v5548_v28 = vld [vmem:[%s7778_s23 + $0x338] sm:$0xff]  ;;  %v5558_v41 = vld [vmem:[%s7778_s23 + $0x388] sm:$0xff] }
 0x13b   : > { %v1115_v1 = vsub.f32 %v16999_v0, %v6624_v7  ;;  %v1163_v19 = vsel %vm1137_vm5, %v1113_v59, 0.0  ;;  %v1164_v33 = vsel %vm1138_vm6, %v1114_v10, 0.0  ;;  %v9329_v42 = vadd.f32 %v17007_v47, %v17006_v21  ;;  %v5547_v17 = vld [vmem:[%s7778_s23 + $0x330] sm:$0xff]  ;;  %v5549_v10 = vld [vmem:[%s7778_s23 + $0x340] sm:$0xff] }
 0x13c   : > { %v1116_v35 = vsub.f32 %v17002_v6, %v6626_v34  ;;  %v1117_v54 = vsub.f32 %v17005_v23, %v6628_v49  ;;  %v9333_v25 = vadd.f32 %v17010_v26, %v17009_v44  ;;  %v1025_v45 = vsub.f32 %v17013_v60, %v17012_v14  ;;  %v6636_v59 = vpop.eup %6635  ;;  %v5550_v34 = vld [vmem:[%s7778_s23 + $0x348] sm:$0xff]  ;;  %v5552_v49 = vld [vmem:[%s7778_s23 + $0x358] sm:$0xff]  ;;  %v5555_v48 = vld [vmem:[%s7778_s23 + $0x370] sm:$0xff] }
 0x13d   : > { %17008 = vst [vmem:[#allocation42_spill] sm:$0xff] %v9329_v42  ;;  %v1118_v16 = vsub.f32 %v1022_v30, %v6630_v24  ;;  %vm1139_vm7 = vcmp.lt.s32.totalorder %v9306_v55, 2560  ;;  %v1183_v61 = vadd.f32 %v1182_v51, %v1161_v53  ;;  %v9341_v46 = vmul.f32 %v5541_v37, %v5541_v37  ;;  %v5551_v53 = vld [vmem:[%s7778_s23 + $0x350] sm:$0xff]  ;;  %v5560_v6 = vld [vmem:[%s7778_s23 + $0x398] sm:$0xff]  ;;  %v5565_v26 = vld [vmem:[%s7778_s23 + $0x3c0] sm:$0xff] }
 0x13e   : > { %17011 = vst [vmem:[#allocation14_spill] sm:$0xff] %v9333_v25  ;;  %v9343_v29 = vmul.f32 %v5542_v58, %v5542_v58  ;;  %v1165_v43 = vsel %vm1138_vm6, %v1115_v1, 0.0  ;;  %v1177_v30 = vadd.f32 %v1176_v27, %v1164_v33  ;;  %v1190_v9 = vadd.f32 %v1189_v13, %v1162_v57  ;;  %v5556_v1 = vld [vmem:[%s7778_s23 + $0x378] sm:$0xff]  ;;  %v5557_v57 = vld [vmem:[%s7778_s23 + $0x380] sm:$0xff]  ;;  %v5559_v20 = vld [vmem:[%s7778_s23 + $0x390] sm:$0xff] }
 0x13f   : > { %v1197_v7 = vadd.f32 %v1196_v36, %v1163_v19  ;;  %v1119_v38 = vsub.f32 %v1023_v8, %v6632_v40  ;;  %v1120_v22 = vsub.f32 %v1024_v62, %v6634_v11  ;;  %v1166_v50 = vsel %vm1138_vm6, %v1116_v35, 0.0  ;;  %v5553_v8 = vld [vmem:[%s7778_s23 + $0x360] sm:$0xff]  ;;  %v5554_v62 = vld [vmem:[%s7778_s23 + $0x368] sm:$0xff]  ;;  %v5563_v40 = vld [vmem:[%s7778_s23 + $0x3b0] sm:$0xff] }
 0x140   : > { %v1167_v2 = vsel %vm1138_vm6, %v1117_v54, 0.0  ;;  %v1121_v51 = vsub.f32 %v1025_v45, %v6636_v59  ;;  %v1168_v13 = vsel %vm1139_vm7, %v1118_v16, 0.0  ;;  %v9362_v56 = vmul.f32 %v5543_v4, %v5543_v4  ;;  %v5561_v19 = vld [vmem:[%s7778_s23 + $0x3a0] sm:$0xff]  ;;  %v5562_v33 = vld [vmem:[%s7778_s23 + $0x3a8] sm:$0xff]  ;;  %v5564_v44 = vld [vmem:[%s7778_s23 + $0x3b8] sm:$0xff] }
 0x141   : > { %v9364_v31 = vmul.f32 %v5544_v39, %v5544_v39  ;;  %v9366_v0 = vadd.f32 %v1183_v61, %v1165_v43  ;;  %v9371_v27 = vmul.f32 %v5545_v15, %v5545_v15  ;;  %v9373_v36 = vmul.f32 %v5546_v12, %v5546_v12  ;;  %v5566_v14 = vld [vmem:[%s7778_s23 + $0x3c8] sm:$0xff]  ;;  %v5567_v11 = vld [vmem:[%s7778_s23 + $0x3d0] sm:$0xff]  ;;  %v5568_v61 = vld [vmem:[%s7778_s23 + $0x3d8] sm:$0xff] }
 0x142   : > { %v9375_v37 = vmul.f32 %v5547_v17, %v5547_v17  ;;  %v9377_v58 = vadd.f32 %v1190_v9, %v1166_v50  ;;  %v9379_v24 = vadd.f32 %v1197_v7, %v1167_v2  ;;  %v9384_v35 = vmul.f32 %v5548_v28, %v5548_v28  ;;  %v5569_v4 = vld [vmem:[%s7778_s23 + $0x3e0] sm:$0xff]  ;;  %v5570_v43 = vld [vmem:[%s7778_s23 + $0x3e8] sm:$0xff]  ;;  %v5572_v9 = vld [vmem:[%s7778_s23 + $0x3f8] sm:$0xff] }
 0x143   : > { %17014 = vst [vmem:[#allocation16_spill] sm:$0xff] %v9366_v0  ;;  %v9386_v3 = vmul.f32 %v5549_v10, %v5549_v10  ;;  %v9390_v32 = vsel %vm1139_vm7, %v1119_v38, 0.0  ;;  %v9394_v23 = vsel %vm1139_vm7, %v1120_v22, 0.0  ;;  %v9396_v54 = vadd.f32 %v1177_v30, %v1168_v13  ;;  %v5571_v30 = vld [vmem:[%s7778_s23 + $0x3f0] sm:$0xff]  ;;  %v9439_v38 = vld [vmem:[%s7784_s19 + $0x300] sm:$0xff]  ;;  %v9442_v22 = vld [vmem:[%s7784_s19 + $0x308] sm:$0xff] }
 0x144   : > { %17015 = vst [vmem:[#allocation17_spill] sm:$0xff] %v9377_v58  ;;  %17016 = vst [vmem:[#allocation43_spill] sm:$0xff] %v9379_v24  ;;  %v9401_v21 = vmul.f32 %v5550_v34, %v5550_v34  ;;  %v9405_v47 = vsel %vm1139_vm7, %v1121_v51, 0.0  ;;  %v9410_v60 = vmul.f32 %v5551_v53, %v5551_v53  ;;  %v9412_v45 = vmul.f32 %v5552_v49, %v5552_v49  ;;  %v9445_v50 = vld [vmem:[%s7784_s19 + $0x310] sm:$0xff]  ;;  %v9456_v51 = vld [vmem:[%s7784_s19 + $0x318] sm:$0xff] }
 0x145   : > { %17017 = vst [vmem:[#allocation54_spill] sm:$0xff] %v9390_v32  ;;  %17018 = vst [vmem:[#allocation49_spill] sm:$0xff] %v9394_v23  ;;  %v9414_v16 = vmul.f32 %v5553_v8, %v5553_v8  ;;  %v9419_v55 = vmul.f32 %v5554_v62, %v5554_v62  ;;  %v9421_v39 = vmul.f32 %v5555_v48, %v5555_v48  ;;  %v9459_v13 = vld [vmem:[%s7784_s19 + $0x320] sm:$0xff]  ;;  %v9462_v49 = vld [vmem:[%s7784_s19 + $0x328] sm:$0xff] }
 0x146   : > { %17019 = vst [vmem:[#allocation20_spill] sm:$0xff] %v9396_v54  ;;  %17020 = vst [vmem:[#allocation13_spill] sm:$0xff] %v9405_v47  ;;  %v9423_v15 = vmul.f32 %v5556_v1, %v5556_v1  ;;  %v9425_v59 = vmul.f32 %v5557_v57, %v5557_v57  ;;  %v9430_v7 = vmul.f32 %v5558_v41, %v5558_v41  ;;  %v9473_v57 = vld [vmem:[%s7784_s19 + $0x330] sm:$0xff]  ;;  %v9476_v41 = vld [vmem:[%s7784_s19 + $0x338] sm:$0xff] }
 0x147   : > { %17021 = vst [vmem:[#allocation51_spill] sm:$0xff] %v9419_v55  ;;  %17022 = vst [vmem:[#allocation46_spill] sm:$0xff] %v9421_v39  ;;  %v9432_v12 = vmul.f32 %v5559_v20, %v5559_v20  ;;  %v9434_v17 = vmul.f32 %v5560_v6, %v5560_v6  ;;  %v9436_v28 = vmul.f32 %v5561_v19, %v5561_v19  ;;  %v9479_v20 = vld [vmem:[%s7784_s19 + $0x340] sm:$0xff]  ;;  %v9524_v25 = vld [vmem:[%s7784_s19 + $0x378] sm:$0xff]  ;;  %v1349_v52 = vmul.f32 1.442695, %v9473_v57 }
 0x148   : > { %17023 = vst [vmem:[#allocation63_spill] sm:$0xff] %v9423_v15  ;;  %17024 = vst [vmem:[#allocation33_spill] sm:$0xff] %v9425_v59  ;;  %v9447_v2 = vmul.f32 %v5562_v33, %v5562_v33  ;;  %v9449_v10 = vmul.f32 %v5563_v40, %v5563_v40  ;;  %v9451_v34 = vmul.f32 %v5564_v44, %v5564_v44  ;;  %v9490_v44 = vld [vmem:[%s7784_s19 + $0x348] sm:$0xff]  ;;  %v9513_v40 = vld [vmem:[%s7784_s19 + $0x370] sm:$0xff] }
 0x149   : > { %17025 = vst [vmem:[#allocation29_spill] sm:$0xff] %v9430_v7  ;;  %17026 = vst [vmem:[#allocation21_spill] sm:$0xff] %v9432_v12  ;;  %v9453_v53 = vmul.f32 %v5565_v26, %v5565_v26  ;;  %v9464_v8 = vmul.f32 %v5566_v14, %v5566_v14  ;;  %v9466_v62 = vmul.f32 %v5567_v11, %v5567_v11  ;;  %v9493_v26 = vld [vmem:[%s7784_s19 + $0x350] sm:$0xff]  ;;  %v9496_v14 = vld [vmem:[%s7784_s19 + $0x358] sm:$0xff]  ;;  %v1343_v12 = vmul.f32 1.442695, %v9456_v51 }
 0x14a   : > { %17027 = vst [vmem:[#allocation15_spill] sm:$0xff] %v9434_v17  ;;  %17028 = vst [vmem:[#allocation64_spill] sm:$0xff] %v9436_v28  ;;  %v9468_v48 = vmul.f32 %v5568_v61, %v5568_v61  ;;  %v9470_v1 = vmul.f32 %v5569_v4, %v5569_v4  ;;  %v9481_v6 = vmul.f32 %v5570_v43, %v5570_v43  ;;  %v9527_v42 = vld [vmem:[%s7784_s19 + $0x380] sm:$0xff]  ;;  %v9530_v54 = vld [vmem:[%s7784_s19 + $0x388] sm:$0xff]  ;;  %v1337_v4 = vmul.f32 1.442695, %v9439_v38 }
 0x14b   : > { %17029 = vst [vmem:[#allocation23_spill] sm:$0xff] %v9447_v2  ;;  %17030 = vst [vmem:[#allocation35_spill] sm:$0xff] %v9449_v10  ;;  %v9483_v19 = vmul.f32 %v5571_v30, %v5571_v30  ;;  %v9485_v33 = vmul.f32 %v5572_v9, %v5572_v9  ;;  %v9507_v30 = vld [vmem:[%s7784_s19 + $0x360] sm:$0xff]  ;;  %v9510_v9 = vld [vmem:[%s7784_s19 + $0x368] sm:$0xff]  ;;  %v1339_v28 = vmul.f32 1.442695, %v9442_v22 }
 0x14c   : > { %17031 = vst [vmem:[#allocation56_spill] sm:$0xff] %v9451_v34  ;;  %17032 = vst [vmem:[#allocation27_spill] sm:$0xff] %v9453_v53  ;;  %v9541_v24 = vld [vmem:[%s7784_s19 + $0x390] sm:$0xff]  ;;  %v9544_v47 = vld [vmem:[%s7784_s19 + $0x398] sm:$0xff]  ;;  %v1341_v17 = vmul.f32 1.442695, %v9445_v50  ;;  %6637 = vpow2.f32 %v1337_v4  ;;  %v9614_v4 = vstv %s1433_s22 }
 0x14d   : > { %17033 = vst [vmem:[#allocation48_spill] sm:$0xff] %v9464_v8  ;;  %17034 = vst [vmem:[#allocation57_spill] sm:$0xff] %v9466_v62  ;;  %v9547_v58 = vld [vmem:[%s7784_s19 + $0x3a0] sm:$0xff]  ;;  %v9558_v23 = vld [vmem:[%s7784_s19 + $0x3a8] sm:$0xff]  ;;  %v1345_v34 = vmul.f32 1.442695, %v9459_v13  ;;  %6639 = vpow2.f32 %v1339_v28 }
 0x14e   : > { %17035 = vst [vmem:[#allocation25_spill] sm:$0xff] %v9468_v48  ;;  %17036 = vst [vmem:[#allocation47_spill] sm:$0xff] %v9470_v1  ;;  %v9561_v0 = vld [vmem:[%s7784_s19 + $0x3b0] sm:$0xff]  ;;  %v9564_v32 = vld [vmem:[%s7784_s19 + $0x3b8] sm:$0xff]  ;;  %v1347_v10 = vmul.f32 1.442695, %v9462_v49  ;;  %6641 = vpow2.f32 %v1341_v17 }
 0x14f   : > { %17037 = vst [vmem:[#allocation62_spill] sm:$0xff] %v9481_v6  ;;  %17038 = vst [vmem:[#allocation50_spill] sm:$0xff] %v9483_v19  ;;  %v9575_v11 = vld [vmem:[%s7784_s19 + $0x3c0] sm:$0xff]  ;;  %v9578_v19 = vld [vmem:[%s7784_s19 + $0x3c8] sm:$0xff]  ;;  %v1351_v8 = vmul.f32 1.442695, %v9476_v41  ;;  %6643 = vpow2.f32 %v1343_v12 }
 0x150   : > { %17039 = vst [vmem:[#allocation31_spill] sm:$0xff] %v9485_v33  ;;  %17040 = vst [vmem:[#allocation59_spill] sm:$0xff] %v9510_v9  ;;  %v9581_v6 = vld [vmem:[%s7784_s19 + $0x3d0] sm:$0xff]  ;;  %v9597_v7 = vld [vmem:[%s7784_s19 + $0x3d8] sm:$0xff]  ;;  %v1353_v61 = vmul.f32 1.442695, %v9479_v20  ;;  %6645 = vpow2.f32 %v1345_v34 }
 0x151   : > { %17041 = vst [vmem:[#allocation52_spill] sm:$0xff] %v9513_v40  ;;  %17042 = vst [vmem:[#allocation24_spill] sm:$0xff] %v9527_v42  ;;  %v9600_v33 = vld [vmem:[%s7784_s19 + $0x3e0] sm:$0xff]  ;;  %v1355_v43 = vmul.f32 1.442695, %v9490_v44  ;;  %v9623_v1 = vld [vmem:[%s7784_s19 + $0x3e8] sm:$0xff]  ;;  %6647 = vpow2.f32 %v1347_v10 }
 0x152   : > { %17043 = vst [vmem:[#allocation12_spill] sm:$0xff] %v9541_v24  ;;  %17044 = vst [vmem:[#allocation38_spill] sm:$0xff] %v9544_v47  ;;  %v1357_v48 = vmul.f32 1.442695, %v9493_v26  ;;  %v1359_v28 = vmul.f32 1.442695, %v9496_v14  ;;  %6649 = vpow2.f32 %v1349_v52 }
 0x153   : > { %17045 = vst [vmem:[#allocation66_spill] sm:$0xff] %v9547_v58  ;;  %17046 = vst [vmem:[#allocation28_spill] sm:$0xff] %v9558_v23  ;;  %v1361_v53 = vmul.f32 1.442695, %v9507_v30  ;;  %v1363_v17 = vmul.f32 1.442695, %v9510_v9  ;;  %6651 = vpow2.f32 %v1351_v8 }
 0x154   : > { %17047 = vst [vmem:[#allocation36_spill] sm:$0xff] %v9561_v0  ;;  %17048 = vst [vmem:[#allocation39_spill] sm:$0xff] %v9564_v32  ;;  %v9626_v62 = vld [vmem:[%s7784_s19 + $0x3f0] sm:$0xff]  ;;  %v1365_v12 = vmul.f32 1.442695, %v9513_v40  ;;  %v9632_v15 = vld [vmem:[%s7784_s19 + $0x3f8] sm:$0xff]  ;;  %6653 = vpow2.f32 %v1353_v61 }
 0x155   : > { %17049 = vst [vmem:[#allocation60_spill] sm:$0xff] %v9575_v11  ;;  %17050 = vst [vmem:[#allocation65_spill] sm:$0xff] %v9578_v19  ;;  %v1367_v2 = vmul.f32 1.442695, %v9524_v25  ;;  %v1369_v59 = vmul.f32 1.442695, %v9527_v42  ;;  %6655 = vpow2.f32 %v1355_v43 }
 0x156   : > { %17051 = vst [vmem:[#allocation41_spill] sm:$0xff] %v9581_v6  ;;  %17052 = vst [vmem:[#allocation58_spill] sm:$0xff] %v9597_v7  ;;  %v1371_v34 = vmul.f32 1.442695, %v9530_v54  ;;  %v1373_v39 = vmul.f32 1.442695, %v9541_v24  ;;  %v6638_v61 = vpop.eup %6637  ;;  %6657 = vpow2.f32 %v1357_v48 }
 0x157   : > { %17053 = vst [vmem:[#allocation53_spill] sm:$0xff] %v9600_v33  ;;  %17054 = vst [vmem:[#allocation44_spill] sm:$0xff] %v9623_v1  ;;  %v1375_v55 = vmul.f32 1.442695, %v9544_v47  ;;  %v1377_v9 = vmul.f32 1.442695, %v9547_v58  ;;  %v6640_v43 = vpop.eup %6639  ;;  %6659 = vpow2.f32 %v1359_v28  ;;  %v9688_v28 = vadd.s32 %v9614_v4, %v7891_v63 }
 0x158   : > { %17055 = vst [vmem:[#allocation19_spill] sm:$0xff] %v9626_v62  ;;  %17056 = vst [vmem:[#allocation55_spill] sm:$0xff] %v9632_v15  ;;  %v9639_v10 = vmul.f32 1.442695, %v9558_v23  ;;  %v9642_v40 = vmul.f32 1.442695, %v9561_v0  ;;  %6661 = vpow2.f32 %v1361_v53  ;;  %v17066_v53 = vsub.f32 %v9445_v50, %v9362_v56 }
 0x159   : > { %v9645_v42 = vmul.f32 1.442695, %v9564_v32  ;;  %v9648_v52 = vmul.f32 1.442695, %v9575_v11  ;;  %v9651_v24 = vmul.f32 1.442695, %v9578_v19  ;;  %6663 = vpow2.f32 %v1363_v17 }
 0x15a   : > { %v9654_v8 = vmul.f32 1.442695, %v9581_v6  ;;  %v9657_v23 = vmul.f32 1.442695, %v9597_v7  ;;  %v17057_v58 = vld [vmem:[#allocation11_spill] sm:$0xff]  ;;  %v17061_v7 = vld [vmem:[#allocation18_spill] sm:$0xff]  ;;  %6665 = vpow2.f32 %v1365_v12  ;;  %v9705_v17 = vadd.s32 %v9614_v4, %v16977_v18 }
 0x15b   : > { %v1435_v0 = vadd.s32 %v9614_v4, %v17057_v58  ;;  %v9662_v32 = vmul.f32 1.442695, %v9600_v33  ;;  %v9665_v11 = vmul.f32 1.442695, %v9623_v1  ;;  %v9668_v19 = vmul.f32 1.442695, %v9626_v62  ;;  %v6642_v33 = vpop.eup %6641 }
 0x15c   : > { %v9671_v6 = vmul.f32 1.442695, %v9632_v15  ;;  %v1436_v47 = vadd.s32 %v9614_v4, %v17061_v7  ;;  %v17062_v58 = vld [vmem:[#allocation22_spill] sm:$0xff]  ;;  %v17063_v1 = vsub.f32 %v9439_v38, %v9341_v46  ;;  %v6644_v15 = vpop.eup %6643  ;;  %v17067_v38 = vsub.f32 %v9456_v51, %v9364_v31 }
 0x15d   : > { %17058 = vst [vmem:[#allocation61_spill] sm:$0xff] %v9665_v11  ;;  %17059 = vst [vmem:[#allocation67_spill] sm:$0xff] %v9668_v19  ;;  %v9677_v48 = vadd.s32 %v9614_v4, %v17062_v58  ;;  %v17064_v62 = vld [vmem:[#allocation26_spill] sm:$0xff]  ;;  %v17065_v58 = vsub.f32 %v9442_v22, %v9343_v29  ;;  %vm1443_vm8 = vcmp.lt.s32.totalorder %v1435_v0, 2560  ;;  %v6646_v46 = vpop.eup %6645  ;;  %6667 = vpow2.f32 %v1367_v2 }
 0x15e   : > { %17060 = vst [vmem:[#allocation68_spill] sm:$0xff] %v9671_v6  ;;  %v1401_v11 = vsub.f32 %v17063_v1, %v6638_v61  ;;  %v9684_v19 = vadd.s32 %v9614_v4, %v17064_v62  ;;  %v1403_v6 = vsub.f32 %v17066_v53, %v6642_v33  ;;  %v1404_v1 = vsub.f32 %v17067_v38, %v6644_v15  ;;  %v6648_v29 = vpop.eup %6647  ;;  %v10093_v18 = vld [vmem:[%s7784_s19 + $0x4b8] sm:$0xff] }
 0x15f   : > { %v1402_v7 = vsub.f32 %v17065_v58, %v6640_v43  ;;  %v9701_v61 = vadd.s32 %v9614_v4, %v7904_v5  ;;  %v17068_v56 = vsub.f32 %v9459_v13, %v9371_v27  ;;  %vm1444_vm9 = vcmp.lt.s32.totalorder %v1436_v47, 2560  ;;  %v6650_v22 = vpop.eup %6649 }
 0x160   : > { %vm1445_vm10 = vcmp.lt.s32.totalorder %v9677_v48, 2560  ;;  %6669 = vpow2.f32 %v1369_v59  ;;  %v17069_v31 = vsub.f32 %v9462_v49, %v9373_v36  ;;  %vm1446_vm11 = vcmp.lt.s32.totalorder %v9684_v19, 2560  ;;  %v6652_v51 = vpop.eup %6651 }
 0x161   : > { %v1405_v58 = vsub.f32 %v17068_v56, %v6646_v46  ;;  %v1451_v50 = vsel %vm1443_vm8, %v1401_v11, 0.0  ;;  %6671 = vpow2.f32 %v1371_v34  ;;  %v17070_v2 = vsub.f32 %v9473_v57, %v9375_v37  ;;  %v6654_v12 = vpop.eup %6653 }
 0x162   : > { %v1406_v15 = vsub.f32 %v17069_v31, %v6648_v29  ;;  %v1452_v13 = vsel %vm1443_vm8, %v1402_v7, 0.0  ;;  %v1453_v33 = vsel %vm1443_vm8, %v1403_v6, 0.0  ;;  %6673 = vpow2.f32 %v1373_v39  ;;  %v6656_v34 = vpop.eup %6655 }
 0x163   : > { %v1407_v27 = vsub.f32 %v17070_v2, %v6650_v22  ;;  %v17071_v36 = vsub.f32 %v9476_v41, %v9384_v35  ;;  %vm1447_vm12 = vcmp.lt.s32.totalorder %v9688_v28, 2560  ;;  %v1454_v49 = vsel %vm1443_vm8, %v1404_v1, 0.0  ;;  %v6658_v6 = vpop.eup %6657 }
 0x164   : > { %v1455_v11 = vsel %vm1444_vm9, %v1405_v58, 0.0  ;;  %6675 = vpow2.f32 %v1375_v55  ;;  %v17072_v37 = vsub.f32 %v9479_v20, %v9386_v3  ;;  %v1456_v57 = vsel %vm1444_vm9, %v1406_v15, 0.0  ;;  %v6660_v53 = vpop.eup %6659 }
 0x165   : > { %v1408_v59 = vsub.f32 %v17071_v36, %v6652_v51  ;;  %v1457_v39 = vsel %vm1444_vm9, %v1407_v27, 0.0  ;;  %6677 = vpow2.f32 %v1377_v9  ;;  %v17073_v35 = vsub.f32 %v9490_v44, %v9401_v21  ;;  %v6662_v38 = vpop.eup %6661  ;;  %v17083_v27 = vld [vmem:[#allocation63_spill] sm:$0xff]  ;;  %v17085_v36 = vld [vmem:[#allocation24_spill] sm:$0xff] }
 0x166   : > { %v1409_v7 = vsub.f32 %v17072_v37, %v6654_v12  ;;  %v1483_v43 = vadd.f32 %v1455_v11, %v1451_v50  ;;  %6679 = vpow2.f32 %v9639_v10  ;;  %v17074_v3 = vsub.f32 %v9493_v26, %v9410_v60  ;;  %v6664_v10 = vpop.eup %6663 }
 0x167   : > { %v1410_v41 = vsub.f32 %v17073_v35, %v6656_v34  ;;  %v1458_v0 = vsel %vm1444_vm9, %v1408_v59, 0.0  ;;  %v1490_v46 = vadd.f32 %v1456_v57, %v1452_v13  ;;  %6681 = vpow2.f32 %v9642_v40  ;;  %v6666_v40 = vpop.eup %6665  ;;  %v17086_v59 = vld [vmem:[#allocation33_spill] sm:$0xff] }
 0x168   : > { %v1411_v55 = vsub.f32 %v17074_v3, %v6658_v6  ;;  %v1459_v20 = vsel %vm1445_vm10, %v1409_v7, 0.0  ;;  %v17075_v21 = vsub.f32 %v9496_v14, %v9412_v45  ;;  %6683 = vpow2.f32 %v9645_v42  ;;  %v17077_v45 = vld [vmem:[#allocation59_spill] sm:$0xff]  ;;  %v6668_v42 = vpop.eup %6667  ;;  %v17090_v35 = vld [vmem:[#allocation61_spill] sm:$0xff] }
 0x169   : > { %v1460_v44 = vsel %vm1445_vm10, %v1410_v41, 0.0  ;;  %v1484_v9 = vadd.f32 %v1483_v43, %v1459_v20  ;;  %v17076_v60 = vsub.f32 %v9507_v30, %v9414_v16  ;;  %6685 = vpow2.f32 %v9648_v52  ;;  %v17078_v14 = vld [vmem:[#allocation51_spill] sm:$0xff]  ;;  %v17080_v16 = vld [vmem:[#allocation52_spill] sm:$0xff]  ;;  %v17081_v30 = vld [vmem:[#allocation46_spill] sm:$0xff] }
 0x16a   : > { %v1412_v47 = vsub.f32 %v17075_v21, %v6660_v53  ;;  %v1461_v1 = vsel %vm1445_vm10, %v1411_v55, 0.0  ;;  %v1491_v29 = vadd.f32 %v1490_v46, %v1460_v44  ;;  %v17079_v56 = vsub.f32 %v17077_v45, %v17078_v14  ;;  %v6670_v52 = vpop.eup %6669  ;;  %v17091_v41 = vld [vmem:[#allocation12_spill] sm:$0xff]  ;;  %v17094_v20 = vld [vmem:[#allocation67_spill] sm:$0xff] }
 0x16b   : > { %v1413_v26 = vsub.f32 %v17076_v60, %v6662_v38  ;;  %v1497_v31 = vadd.f32 %v1457_v39, %v1453_v33  ;;  %6687 = vpow2.f32 %v9651_v24  ;;  %v17082_v15 = vsub.f32 %v17080_v16, %v17081_v30  ;;  %v6672_v24 = vpop.eup %6671  ;;  %v17096_v46 = vld [vmem:[#allocation15_spill] sm:$0xff]  ;;  %v17098_v44 = vld [vmem:[#allocation68_spill] sm:$0xff] }
 0x16c   : > { %v1414_v58 = vsub.f32 %v17079_v56, %v6664_v10  ;;  %v1462_v22 = vsel %vm1445_vm10, %v1412_v47, 0.0  ;;  %v1504_v2 = vadd.f32 %v1458_v0, %v1454_v49  ;;  %6689 = vpow2.f32 %v9654_v8  ;;  %v6674_v8 = vpop.eup %6673  ;;  %v17092_v0 = vld [vmem:[#allocation21_spill] sm:$0xff]  ;;  %v17100_v10 = vld [vmem:[#allocation64_spill] sm:$0xff]  ;;  %v17103_v14 = vld [vmem:[#allocation23_spill] sm:$0xff] }
 0x16d   : > { %v1415_v50 = vsub.f32 %v17082_v15, %v6666_v40  ;;  %v1463_v51 = vsel %vm1446_vm11, %v1413_v26, 0.0  ;;  %v17084_v13 = vsub.f32 %v9524_v25, %v17083_v27  ;;  %6691 = vpow2.f32 %v9657_v23  ;;  %v17088_v25 = vld [vmem:[#allocation29_spill] sm:$0xff]  ;;  %v17102_v45 = vld [vmem:[#allocation28_spill] sm:$0xff]  ;;  %v17106_v15 = vld [vmem:[#allocation35_spill] sm:$0xff] }
 0x16e   : > { %v1464_v33 = vsel %vm1446_vm11, %v1414_v58, 0.0  ;;  %v1485_v12 = vadd.f32 %v1484_v9, %v1463_v51  ;;  %v17087_v11 = vsub.f32 %v17085_v36, %v17086_v59  ;;  %6693 = vpow2.f32 %v9662_v32  ;;  %v6676_v23 = vpop.eup %6675  ;;  %v17099_v9 = vld [vmem:[#allocation66_spill] sm:$0xff]  ;;  %v17105_v30 = vld [vmem:[#allocation36_spill] sm:$0xff] }
 0x16f   : > { %v1416_v48 = vsub.f32 %v17084_v13, %v6668_v42  ;;  %v1465_v49 = vsel %vm1446_vm11, %v1415_v50, 0.0  ;;  %v1492_v37 = vadd.f32 %v1491_v29, %v1464_v33  ;;  %v17089_v7 = vsub.f32 %v9530_v54, %v17088_v25  ;;  %v6678_v32 = vpop.eup %6677  ;;  %v17095_v54 = vld [vmem:[#allocation38_spill] sm:$0xff]  ;;  %v17109_v33 = vld [vmem:[#allocation39_spill] sm:$0xff] }
 0x170   : > { %v1417_v34 = vsub.f32 %v17087_v11, %v6670_v52  ;;  %v1498_v6 = vadd.f32 %v1497_v31, %v1461_v1  ;;  %6695 = vpow2.f32 %v17090_v35  ;;  %v17093_v43 = vsub.f32 %v17091_v41, %v17092_v0  ;;  %v6680_v47 = vpop.eup %6679  ;;  %v17115_v25 = vld [vmem:[#allocation27_spill] sm:$0xff]  ;;  %v17119_v0 = vld [vmem:[#allocation65_spill] sm:$0xff] }
 0x171   : > { %v1418_v57 = vsub.f32 %v17089_v7, %v6672_v24  ;;  %v1466_v39 = vsel %vm1446_vm11, %v1416_v48, 0.0  ;;  %v1505_v55 = vadd.f32 %v1504_v2, %v1462_v22  ;;  %6697 = vpow2.f32 %v17094_v20  ;;  %v6682_v40 = vpop.eup %6681  ;;  %v17108_v2 = vld [vmem:[#allocation40_spill] sm:$0xff]  ;;  %v17118_v35 = vld [vmem:[#allocation19_spill] sm:$0xff] }
 0x172   : > { %v1419_v53 = vsub.f32 %v17093_v43, %v6674_v8  ;;  %v1467_v3 = vsel %vm1447_vm12, %v1417_v34, 0.0  ;;  %v17097_v38 = vsub.f32 %v17095_v54, %v17096_v46  ;;  %vm1448_vm13 = vcmp.lt.s32.totalorder %v9701_v61, 2560  ;;  %v6684_v16 = vpop.eup %6683  ;;  %v17112_v34 = vld [vmem:[#allocation62_spill] sm:$0xff]  ;;  %v17120_v43 = vld [vmem:[#allocation48_spill] sm:$0xff]  ;;  %v17122_v54 = vld [vmem:[#allocation31_spill] sm:$0xff] }
 0x173   : > { %v1468_v21 = vsel %vm1447_vm12, %v1418_v57, 0.0  ;;  %6699 = vpow2.f32 %v17098_v44  ;;  %v17101_v60 = vsub.f32 %v17099_v9, %v17100_v10  ;;  %v1486_v29 = vadd.f32 %v1485_v12, %v1467_v3  ;;  %v6686_v48 = vpop.eup %6685  ;;  %v17110_v12 = vld [vmem:[#allocation56_spill] sm:$0xff]  ;;  %v17123_v46 = vld [vmem:[#allocation55_spill] sm:$0xff]  ;;  %17174 = vst [vmem:[#allocation48_spill] sm:$0xff] %v10093_v18 }
 0x174   : > { %v1420_v19 = vsub.f32 %v17097_v38, %v6676_v23  ;;  %v1469_v1 = vsel %vm1447_vm12, %v1419_v53, 0.0  ;;  %v17104_v56 = vsub.f32 %v17102_v45, %v17103_v14  ;;  %v1499_v31 = vadd.f32 %v1498_v6, %v1465_v49  ;;  %v17113_v49 = vld [vmem:[#allocation44_spill] sm:$0xff]  ;;  %v17117_v23 = vld [vmem:[#allocation50_spill] sm:$0xff] }
 0x175   : > { %v1421_v26 = vsub.f32 %v17101_v60, %v6678_v32  ;;  %v1506_v42 = vadd.f32 %v1505_v55, %v1466_v39  ;;  %v17107_v50 = vsub.f32 %v17105_v30, %v17106_v15  ;;  %v1442_v52 = vadd.s32 %v9614_v4, %v17108_v2  ;;  %v6688_v11 = vpop.eup %6687  ;;  %v17114_v4 = vld [vmem:[#allocation60_spill] sm:$0xff]  ;;  %v10085_v2 = vld [vmem:[%s7784_s19 + $0x4b0] sm:$0xff] }
 0x176   : > { %v1422_v58 = vsub.f32 %v17104_v56, %v6680_v47  ;;  %v1470_v22 = vsel %vm1447_vm12, %v1420_v19, 0.0  ;;  %v1493_v13 = vadd.f32 %v1492_v37, %v1468_v21  ;;  %v17111_v24 = vsub.f32 %v17109_v33, %v17110_v12  ;;  %v6690_v6 = vpop.eup %6689  ;;  %v17124_v19 = vld [vmem:[#allocation41_spill] sm:$0xff]  ;;  %v17130_v56 = vld [vmem:[#allocation54_spill] sm:$0xff]  ;;  %17173 = vst [vmem:[#allocation65_spill] sm:$0xff] %v10085_v2 }
 0x177   : > { %v1423_v51 = vsub.f32 %v17107_v50, %v6682_v40  ;;  %v1471_v27 = vsel %vm1448_vm13, %v1421_v26, 0.0  ;;  %vm1449_vm14 = vcmp.lt.s32.totalorder %v9705_v17, 2560  ;;  %v1500_v59 = vadd.f32 %v1499_v31, %v1469_v1  ;;  %v6692_v20 = vpop.eup %6691  ;;  %v17125_v21 = vld [vmem:[#allocation57_spill] sm:$0xff]  ;;  %v17127_v26 = vld [vmem:[#allocation58_spill] sm:$0xff] }
 0x178   : > { %v1424_v28 = vsub.f32 %v17111_v24, %v6684_v16  ;;  %v1472_v36 = vsel %vm1448_vm13, %v1422_v58, 0.0  ;;  %v1334_v8 = vsub.f32 %v17113_v49, %v17112_v34  ;;  %v17116_v7 = vsub.f32 %v17114_v4, %v17115_v25  ;;  %v6694_v60 = vpop.eup %6693  ;;  %v17128_v1 = vld [vmem:[#allocation25_spill] sm:$0xff]  ;;  %v17131_v58 = vld [vmem:[#allocation16_spill] sm:$0xff]  ;;  %v5605_v25 = vld [vmem:[%s7778_s23 + $0x400] sm:$0xff] }
 0x179   : > { %v1473_v37 = vsel %vm1448_vm13, %v1423_v51, 0.0  ;;  %v1507_v39 = vadd.f32 %v1506_v42, %v1470_v22  ;;  %v1335_v41 = vsub.f32 %v17118_v35, %v17117_v23  ;;  %v17121_v53 = vsub.f32 %v17119_v0, %v17120_v43  ;;  %v17132_v31 = vld [vmem:[#allocation53_spill] sm:$0xff]  ;;  %v17133_v42 = vld [vmem:[#allocation47_spill] sm:$0xff]  ;;  %v17139_v23 = vld [vmem:[#allocation32_spill] sm:$0xff] }
 0x17a   : > { %v1425_v57 = vsub.f32 %v17116_v7, %v6686_v48  ;;  %v1474_v55 = vsel %vm1448_vm13, %v1424_v28, 0.0  ;;  %v1487_v32 = vadd.f32 %v1486_v29, %v1471_v27  ;;  %v1336_v38 = vsub.f32 %v17123_v46, %v17122_v54  ;;  %v6696_v14 = vpop.eup %6695  ;;  %v17135_v27 = vld [vmem:[#allocation49_spill] sm:$0xff]  ;;  %v5606_v7 = vld [vmem:[%s7778_s23 + $0x408] sm:$0xff]  ;;  %v17142_v54 = vld [vmem:[#allocation42_spill] sm:$0xff] }
 0x17b   : > { %v1426_v3 = vsub.f32 %v17121_v53, %v6688_v11  ;;  %v17126_v47 = vsub.f32 %v17124_v19, %v17125_v21  ;;  %v1494_v10 = vadd.f32 %v1493_v13, %v1472_v36  ;;  %v17129_v40 = vsub.f32 %v17127_v26, %v17128_v1  ;;  %v6698_v51 = vpop.eup %6697  ;;  %v17136_v13 = vld [vmem:[#allocation17_spill] sm:$0xff]  ;;  %v17140_v35 = vld [vmem:[#allocation20_spill] sm:$0xff]  ;;  %v5613_v21 = vld [vmem:[%s7778_s23 + $0x440] sm:$0xff] }
 0x17c   : > { %v1475_v9 = vsel %vm1449_vm14, %v1425_v57, 0.0  ;;  %vm1450_vm15 = vcmp.lt.s32.totalorder %v1442_v52, 2560  ;;  %v1501_v29 = vadd.f32 %v1500_v59, %v1473_v37  ;;  %v1185_v22 = vadd.f32 %v17131_v58, %v17130_v56  ;;  %v17137_v36 = vld [vmem:[#allocation13_spill] sm:$0xff]  ;;  %v17138_v59 = vld [vmem:[#allocation43_spill] sm:$0xff]  ;;  %v5610_v53 = vld [vmem:[%s7778_s23 + $0x428] sm:$0xff] }
 0x17d   : > { %v1427_v44 = vsub.f32 %v17126_v47, %v6690_v6  ;;  %v1428_v45 = vsub.f32 %v17129_v40, %v6692_v20  ;;  %v1476_v61 = vsel %vm1449_vm14, %v1426_v3, 0.0  ;;  %v17134_v16 = vsub.f32 %v17132_v31, %v17133_v42  ;;  %v6700_v28 = vpop.eup %6699  ;;  %v5607_v37 = vld [vmem:[%s7778_s23 + $0x410] sm:$0xff]  ;;  %v5609_v6 = vld [vmem:[%s7778_s23 + $0x420] sm:$0xff]  ;;  %v5614_v47 = vld [vmem:[%s7778_s23 + $0x448] sm:$0xff] }
 0x17e   : > { %v1508_v50 = vadd.f32 %v1507_v39, %v1474_v55  ;;  %v1192_v48 = vadd.f32 %v17136_v13, %v17135_v27  ;;  %v1430_v33 = vsub.f32 %v1334_v8, %v6696_v14  ;;  %v1488_v24 = vadd.f32 %v1487_v32, %v1475_v9  ;;  %v5608_v39 = vld [vmem:[%s7778_s23 + $0x418] sm:$0xff]  ;;  %v5611_v3 = vld [vmem:[%s7778_s23 + $0x430] sm:$0xff]  ;;  %v5617_v1 = vld [vmem:[%s7778_s23 + $0x460] sm:$0xff] }
 0x17f   : > { %v1429_v30 = vsub.f32 %v17134_v16, %v6694_v60  ;;  %v1477_v15 = vsel %vm1449_vm14, %v1427_v44, 0.0  ;;  %v1478_v12 = vsel %vm1449_vm14, %v1428_v45, 0.0  ;;  %v1199_v11 = vadd.f32 %v17138_v59, %v17137_v36  ;;  %v5612_v55 = vld [vmem:[%s7778_s23 + $0x438] sm:$0xff]  ;;  %v17141_v32 = vld [vmem:[#allocation45_spill] sm:$0xff]  ;;  %v5618_v40 = vld [vmem:[%s7778_s23 + $0x468] sm:$0xff] }
 0x180   : > { %v1431_v34 = vsub.f32 %v1335_v41, %v6698_v51  ;;  %v1495_v4 = vadd.f32 %v1494_v10, %v1476_v61  ;;  %v1432_v57 = vsub.f32 %v1336_v38, %v6700_v28  ;;  %v1480_v8 = vsel %vm1450_vm15, %v1430_v33, 0.0  ;;  %v5615_v44 = vld [vmem:[%s7778_s23 + $0x450] sm:$0xff]  ;;  %v17143_v9 = vld [vmem:[#allocation14_spill] sm:$0xff]  ;;  %v5621_v56 = vld [vmem:[%s7778_s23 + $0x480] sm:$0xff] }
 0x181   : > { %v1479_v49 = vsel %vm1450_vm15, %v1429_v30, 0.0  ;;  %v1502_v17 = vadd.f32 %v1501_v29, %v1477_v15  ;;  %v1200_v41 = vadd.f32 %v17140_v35, %v17139_v23  ;;  %v1509_v43 = vadd.f32 %v1508_v50, %v1478_v12  ;;  %v5616_v26 = vld [vmem:[%s7778_s23 + $0x458] sm:$0xff]  ;;  %v5619_v29 = vld [vmem:[%s7778_s23 + $0x470] sm:$0xff]  ;;  %v5622_v16 = vld [vmem:[%s7778_s23 + $0x488] sm:$0xff] }
 0x182   : > { %v1481_v0 = vsel %vm1450_vm15, %v1431_v34, 0.0  ;;  %v1201_v20 = vadd.f32 %v1185_v22, %v17141_v32  ;;  %v1202_v46 = vadd.f32 %v1192_v48, %v17142_v54  ;;  %v1482_v38 = vsel %vm1450_vm15, %v1432_v57, 0.0  ;;  %v5620_v14 = vld [vmem:[%s7778_s23 + $0x478] sm:$0xff]  ;;  %v5623_v30 = vld [vmem:[%s7778_s23 + $0x490] sm:$0xff]  ;;  %v5625_v48 = vld [vmem:[%s7778_s23 + $0x4a0] sm:$0xff] }
 0x183   : > { %v1489_v19 = vadd.f32 %v1488_v24, %v1479_v49  ;;  %v1203_v10 = vadd.f32 %v1199_v11, %v17143_v9  ;;  %v1496_v60 = vadd.f32 %v1495_v4, %v1480_v8  ;;  %v9883_v45 = vmul.f32 %v5605_v25, %v5605_v25  ;;  %v5624_v15 = vld [vmem:[%s7778_s23 + $0x498] sm:$0xff]  ;;  %v5626_v33 = vld [vmem:[%s7778_s23 + $0x4a8] sm:$0xff]  ;;  %v5627_v12 = vld [vmem:[%s7778_s23 + $0x4b0] sm:$0xff] }
 0x184   : > { %v9885_v61 = vmul.f32 %v5606_v7, %v5606_v7  ;;  %v1503_v52 = vadd.f32 %v1502_v17, %v1481_v0  ;;  %v9890_v58 = vmul.f32 %v5607_v37, %v5607_v37  ;;  %v9892_v22 = vmul.f32 %v5608_v39, %v5608_v39  ;;  %v5628_v11 = vld [vmem:[%s7778_s23 + $0x4b8] sm:$0xff]  ;;  %v5629_v34 = vld [vmem:[%s7778_s23 + $0x4c0] sm:$0xff]  ;;  %v5630_v49 = vld [vmem:[%s7778_s23 + $0x4c8] sm:$0xff] }
 0x185   : > { %v9894_v31 = vmul.f32 %v5609_v6, %v5609_v6  ;;  %v1510_v42 = vadd.f32 %v1509_v43, %v1482_v38  ;;  %v9899_v50 = vmul.f32 %v5610_v53, %v5610_v53  ;;  %v9901_v51 = vmul.f32 %v5611_v3, %v5611_v3  ;;  %v5631_v8 = vld [vmem:[%s7778_s23 + $0x4d0] sm:$0xff]  ;;  %v5632_v17 = vld [vmem:[%s7778_s23 + $0x4d8] sm:$0xff]  ;;  %v5633_v37 = vld [vmem:[%s7778_s23 + $0x4e0] sm:$0xff] }
 0x186   : > { %v9903_v27 = vmul.f32 %v5612_v55, %v5612_v55  ;;  %v9905_v13 = vadd.f32 %v1489_v19, %v1200_v41  ;;  %v9910_v24 = vmul.f32 %v5613_v21, %v5613_v21  ;;  %v9912_v28 = vmul.f32 %v5614_v47, %v5614_v47  ;;  %v5634_v41 = vld [vmem:[%s7778_s23 + $0x4e8] sm:$0xff]  ;;  %v5635_v0 = vld [vmem:[%s7778_s23 + $0x4f0] sm:$0xff]  ;;  %v5636_v43 = vld [vmem:[%s7778_s23 + $0x4f8] sm:$0xff] }
 0x187   : > { %v9914_v36 = vmul.f32 %v5615_v44, %v5615_v44  ;;  %v9916_v59 = vadd.f32 %v1496_v60, %v1201_v20  ;;  %v9921_v4 = vmul.f32 %v5616_v26, %v5616_v26  ;;  %v9923_v25 = vmul.f32 %v5617_v1, %v5617_v1  ;;  %v9950_v32 = vld [vmem:[%s7784_s19 + $0x400] sm:$0xff]  ;;  %v9953_v20 = vld [vmem:[%s7784_s19 + $0x408] sm:$0xff]  ;;  %v9964_v21 = vld [vmem:[%s7784_s19 + $0x410] sm:$0xff] }
 0x188   : > { %17144 = vst [vmem:[#allocation59_spill] sm:$0xff] %v9905_v13  ;;  %v9925_v7 = vmul.f32 %v5618_v40, %v5618_v40  ;;  %v9927_v57 = vadd.f32 %v1503_v52, %v1202_v46  ;;  %v9932_v39 = vmul.f32 %v5619_v29, %v5619_v29  ;;  %v9934_v6 = vmul.f32 %v5620_v14, %v5620_v14  ;;  %v9967_v47 = vld [vmem:[%s7784_s19 + $0x418] sm:$0xff]  ;;  %v9970_v44 = vld [vmem:[%s7784_s19 + $0x420] sm:$0xff]  ;;  %v9981_v1 = vld [vmem:[%s7784_s19 + $0x428] sm:$0xff] }
 0x189   : > { %17145 = vst [vmem:[#allocation51_spill] sm:$0xff] %v9916_v59  ;;  %v9936_v23 = vmul.f32 %v5621_v56, %v5621_v56  ;;  %v9938_v35 = vadd.f32 %v1510_v42, %v1203_v10  ;;  %v9943_v53 = vmul.f32 %v5622_v16, %v5622_v16  ;;  %v9945_v3 = vmul.f32 %v5623_v30, %v5623_v30  ;;  %v9984_v40 = vld [vmem:[%s7784_s19 + $0x430] sm:$0xff]  ;;  %v9987_v52 = vld [vmem:[%s7784_s19 + $0x438] sm:$0xff]  ;;  %v9998_v16 = vld [vmem:[%s7784_s19 + $0x440] sm:$0xff] }
 0x18a   : > { %17146 = vst [vmem:[#allocation52_spill] sm:$0xff] %v9927_v57  ;;  %17147 = vst [vmem:[#allocation46_spill] sm:$0xff] %v9932_v39  ;;  %v9947_v55 = vmul.f32 %v5624_v15, %v5624_v15  ;;  %v9955_v54 = vmul.f32 %v5625_v48, %v5625_v48  ;;  %v9957_v46 = vmul.f32 %v5626_v33, %v5626_v33  ;;  %v10001_v30 = vld [vmem:[%s7784_s19 + $0x448] sm:$0xff]  ;;  %v10004_v15 = vld [vmem:[%s7784_s19 + $0x450] sm:$0xff]  ;;  %v1648_v59 = vmul.f32 1.442695, %v9950_v32 }
 0x18b   : > { %17148 = vst [vmem:[#allocation63_spill] sm:$0xff] %v9934_v6  ;;  %17149 = vst [vmem:[#allocation24_spill] sm:$0xff] %v9936_v23  ;;  %v9959_v38 = vmul.f32 %v5627_v12, %v5627_v12  ;;  %v9961_v19 = vmul.f32 %v5628_v11, %v5628_v11  ;;  %v9972_v9 = vmul.f32 %v5629_v34, %v5629_v34  ;;  %v10015_v34 = vld [vmem:[%s7784_s19 + $0x458] sm:$0xff]  ;;  %v10038_v12 = vld [vmem:[%s7784_s19 + $0x480] sm:$0xff]  ;;  %v1650_v13 = vmul.f32 1.442695, %v9953_v20 }
 0x18c   : > { %17150 = vst [vmem:[#allocation33_spill] sm:$0xff] %v9938_v35  ;;  %17151 = vst [vmem:[#allocation29_spill] sm:$0xff] %v9943_v53  ;;  %v9974_v10 = vmul.f32 %v5630_v49, %v5630_v49  ;;  %v9976_v60 = vmul.f32 %v5631_v8, %v5631_v8  ;;  %v9978_v26 = vmul.f32 %v5632_v17, %v5632_v17  ;;  %v10018_v49 = vld [vmem:[%s7784_s19 + $0x460] sm:$0xff]  ;;  %v10021_v8 = vld [vmem:[%s7784_s19 + $0x468] sm:$0xff]  ;;  %v1652_v33 = vmul.f32 1.442695, %v9964_v21 }
 0x18d   : > { %17152 = vst [vmem:[#allocation61_spill] sm:$0xff] %v9945_v3  ;;  %17153 = vst [vmem:[#allocation12_spill] sm:$0xff] %v9947_v55  ;;  %v9989_v29 = vmul.f32 %v5633_v37, %v5633_v37  ;;  %v9991_v14 = vmul.f32 %v5634_v41, %v5634_v41  ;;  %v9993_v56 = vmul.f32 %v5635_v0, %v5635_v0  ;;  %v10035_v11 = vld [vmem:[%s7784_s19 + $0x478] sm:$0xff]  ;;  %v10049_v0 = vld [vmem:[%s7784_s19 + $0x488] sm:$0xff]  ;;  %v1654_v57 = vmul.f32 1.442695, %v9967_v47 }
 0x18e   : > { %17154 = vst [vmem:[#allocation21_spill] sm:$0xff] %v9955_v54  ;;  %17155 = vst [vmem:[#allocation67_spill] sm:$0xff] %v9957_v46  ;;  %v9995_v42 = vmul.f32 %v5636_v43, %v5636_v43  ;;  %v10032_v43 = vld [vmem:[%s7784_s19 + $0x470] sm:$0xff]  ;;  %v10055_v35 = vld [vmem:[%s7784_s19 + $0x498] sm:$0xff]  ;;  %6701 = vpow2.f32 %v1648_v59  ;;  %v10090_v41 = vstv %s1744_s24  ;;  %v1660_v37 = vmul.f32 1.442695, %v9984_v40 }
 0x18f   : > { %17156 = vst [vmem:[#allocation38_spill] sm:$0xff] %v9959_v38  ;;  %17157 = vst [vmem:[#allocation15_spill] sm:$0xff] %v9961_v19  ;;  %v10052_v48 = vld [vmem:[%s7784_s19 + $0x490] sm:$0xff]  ;;  %v10096_v17 = vld [vmem:[%s7784_s19 + $0x4c0] sm:$0xff]  ;;  %6703 = vpow2.f32 %v1650_v13  ;;  %v1662_v13 = vmul.f32 1.442695, %v9987_v52 }
 0x190   : > { %17158 = vst [vmem:[#allocation68_spill] sm:$0xff] %v9972_v9  ;;  %17159 = vst [vmem:[#allocation66_spill] sm:$0xff] %v9974_v10  ;;  %v10104_v59 = vld [vmem:[%s7784_s19 + $0x4c8] sm:$0xff]  ;;  %6705 = vpow2.f32 %v1652_v33  ;;  %v17177_v38 = vld [vmem:[#allocation11_spill] sm:$0xff]  ;;  %v1664_v54 = vmul.f32 1.442695, %v9998_v16 }
 0x191   : > { %17160 = vst [vmem:[#allocation64_spill] sm:$0xff] %v9976_v60  ;;  %17161 = vst [vmem:[#allocation28_spill] sm:$0xff] %v9978_v26  ;;  %6707 = vpow2.f32 %v1654_v57  ;;  %v10116_v46 = vadd.s32 %v10090_v41, %v17177_v38  ;;  %v1666_v33 = vmul.f32 1.442695, %v10001_v30  ;;  %v1668_v60 = vmul.f32 1.442695, %v10004_v15 }
 0x192   : > { %17162 = vst [vmem:[#allocation23_spill] sm:$0xff] %v9989_v29  ;;  %17163 = vst [vmem:[#allocation36_spill] sm:$0xff] %v9991_v14  ;;  %v1656_v29 = vmul.f32 1.442695, %v9970_v44  ;;  %v1658_v14 = vmul.f32 1.442695, %v9981_v1 }
 0x193   : > { %17164 = vst [vmem:[#allocation35_spill] sm:$0xff] %v9993_v56  ;;  %17165 = vst [vmem:[#allocation39_spill] sm:$0xff] %v9995_v42  ;;  %v10072_v42 = vld [vmem:[%s7784_s19 + $0x4a0] sm:$0xff]  ;;  %v10082_v56 = vld [vmem:[%s7784_s19 + $0x4a8] sm:$0xff]  ;;  %v1670_v57 = vmul.f32 1.442695, %v10015_v34 }
 0x194   : > { %17166 = vst [vmem:[#allocation56_spill] sm:$0xff] %v10032_v43  ;;  %17167 = vst [vmem:[#allocation62_spill] sm:$0xff] %v10038_v12  ;;  %6709 = vpow2.f32 %v1656_v29  ;;  %v10122_v9 = vld [vmem:[%s7784_s19 + $0x4d0] sm:$0xff]  ;;  %v10125_v19 = vld [vmem:[%s7784_s19 + $0x4d8] sm:$0xff]  ;;  %v1672_v26 = vmul.f32 1.442695, %v10018_v49 }
 0x195   : > { %17168 = vst [vmem:[#allocation44_spill] sm:$0xff] %v10049_v0  ;;  %17169 = vst [vmem:[#allocation60_spill] sm:$0xff] %v10052_v48  ;;  %6711 = vpow2.f32 %v1658_v14  ;;  %v1674_v38 = vmul.f32 1.442695, %v10021_v8  ;;  %v10131_v10 = vld [vmem:[%s7784_s19 + $0x4e0] sm:$0xff]  ;;  %v10134_v29 = vld [vmem:[%s7784_s19 + $0x4e8] sm:$0xff] }
 0x196   : > { %17170 = vst [vmem:[#allocation27_spill] sm:$0xff] %v10055_v35  ;;  %17171 = vst [vmem:[#allocation50_spill] sm:$0xff] %v10072_v42  ;;  %6713 = vpow2.f32 %v1660_v37  ;;  %v1676_v55 = vmul.f32 1.442695, %v10032_v43  ;;  %v1678_v3 = vmul.f32 1.442695, %v10035_v11 }
 0x197   : > { %17172 = vst [vmem:[#allocation19_spill] sm:$0xff] %v10082_v56  ;;  %17175 = vst [vmem:[#allocation31_spill] sm:$0xff] %v10096_v17  ;;  %v1680_v53 = vmul.f32 1.442695, %v10038_v12  ;;  %v10140_v23 = vld [vmem:[%s7784_s19 + $0x4f0] sm:$0xff]  ;;  %6715 = vpow2.f32 %v1662_v13  ;;  %vm1754_vm0 = vcmp.lt.s32.totalorder %v10116_v46, 2560 }
 0x198   : > { %17176 = vst [vmem:[#allocation55_spill] sm:$0xff] %v10104_v59  ;;  %17178 = vst [vmem:[#allocation41_spill] sm:$0xff] %v10122_v9  ;;  %v1682_v14 = vmul.f32 1.442695, %v10049_v0  ;;  %v1684_v5 = vmul.f32 1.442695, %v10052_v48  ;;  %6717 = vpow2.f32 %v1664_v54  ;;  %v6702_v48 = vpop.eup %6701 }
 0x199   : > { %17179 = vst [vmem:[#allocation57_spill] sm:$0xff] %v10125_v19  ;;  %17180 = vst [vmem:[#allocation58_spill] sm:$0xff] %v10131_v10  ;;  %v1686_v6 = vmul.f32 1.442695, %v10055_v35  ;;  %v1688_v39 = vmul.f32 1.442695, %v10072_v42  ;;  %6719 = vpow2.f32 %v1666_v33 }
 0x19a   : > { %17181 = vst [vmem:[#allocation25_spill] sm:$0xff] %v10134_v29  ;;  %17182 = vst [vmem:[#allocation54_spill] sm:$0xff] %v10140_v23  ;;  %v1690_v37 = vmul.f32 1.442695, %v10082_v56  ;;  %v10148_v43 = vmul.f32 1.442695, %v10085_v2  ;;  %6721 = vpow2.f32 %v1668_v60  ;;  %v6704_v56 = vpop.eup %6703 }
 0x19b   : > { %v10151_v12 = vmul.f32 1.442695, %v10093_v18  ;;  %v10154_v13 = vmul.f32 1.442695, %v10096_v17  ;;  %v10157_v0 = vmul.f32 1.442695, %v10104_v59  ;;  %6723 = vpow2.f32 %v1670_v57 }
 0x19c   : > { %v10160_v35 = vld [vmem:[%s7784_s19 + $0x4f8] sm:$0xff]  ;;  %v10163_v54 = vmul.f32 1.442695, %v10122_v9  ;;  %v10166_v2 = vmul.f32 1.442695, %v10125_v19  ;;  %v6706_v9 = vpop.eup %6705  ;;  %6725 = vpow2.f32 %v1672_v26  ;;  %v17188_v57 = vsub.f32 %v9953_v20, %v9885_v61 }
 0x19d   : > { %v17184_v33 = vld [vmem:[#allocation18_spill] sm:$0xff]  ;;  %v10171_v17 = vmul.f32 1.442695, %v10131_v10  ;;  %v10174_v59 = vmul.f32 1.442695, %v10134_v29  ;;  %6727 = vpow2.f32 %v1674_v38  ;;  %v10201_v61 = vadd.s32 %v10090_v41, %v17064_v62 }
 0x19e   : > { %17183 = vst [vmem:[#allocation16_spill] sm:$0xff] %v10166_v2  ;;  %v1747_v18 = vadd.s32 %v10090_v41, %v17184_v33  ;;  %v17186_v42 = vld [vmem:[#allocation22_spill] sm:$0xff]  ;;  %v10181_v19 = vmul.f32 1.442695, %v10140_v23  ;;  %v17187_v33 = vsub.f32 %v9950_v32, %v9883_v45  ;;  %v1713_v10 = vsub.f32 %v17188_v57, %v6704_v56 }
 0x19f   : > { %17185 = vst [vmem:[#allocation53_spill] sm:$0xff] %v10171_v17  ;;  %v10178_v60 = vadd.s32 %v10090_v41, %v17186_v42  ;;  %v6708_v17 = vpop.eup %6707  ;;  %v10190_v29 = vmul.f32 1.442695, %v10160_v35  ;;  %v17189_v42 = vsub.f32 %v9964_v21, %v9890_v58  ;;  %6729 = vpow2.f32 %v1676_v55 }
 0x1a0   : > { %v1712_v2 = vsub.f32 %v17187_v33, %v6702_v48  ;;  %v6710_v23 = vpop.eup %6709  ;;  %v17190_v45 = vsub.f32 %v9967_v47, %v9892_v22  ;;  %vm1755_vm1 = vcmp.lt.s32.totalorder %v1747_v18, 2560  ;;  %6731 = vpow2.f32 %v1678_v3 }
 0x1a1   : > { %v1714_v26 = vsub.f32 %v17189_v42, %v6706_v9  ;;  %v6712_v20 = vpop.eup %6711  ;;  %v17191_v38 = vsub.f32 %v9970_v44, %v9894_v31  ;;  %v10208_v21 = vadd.s32 %v10090_v41, %v7891_v63  ;;  %vm1756_vm2 = vcmp.lt.s32.totalorder %v10178_v60, 2560 }
 0x1a2   : > { %v1715_v32 = vsub.f32 %v17190_v45, %v6708_v17  ;;  %v6714_v55 = vpop.eup %6713  ;;  %6733 = vpow2.f32 %v1680_v53  ;;  %v17192_v22 = vsub.f32 %v9981_v1, %v9899_v50  ;;  %v1762_v9 = vsel %vm1754_vm0, %v1712_v2, 0.0 }
 0x1a3   : > { %v1716_v58 = vsub.f32 %v17191_v38, %v6710_v23  ;;  %v1763_v3 = vsel %vm1754_vm0, %v1713_v10, 0.0  ;;  %v6716_v31 = vpop.eup %6715  ;;  %6735 = vpow2.f32 %v1682_v14  ;;  %v17193_v23 = vsub.f32 %v9984_v40, %v9901_v51 }
 0x1a4   : > { %v1717_v47 = vsub.f32 %v17192_v22, %v6712_v20  ;;  %v1764_v56 = vsel %vm1754_vm0, %v1714_v26, 0.0  ;;  %v6718_v42 = vpop.eup %6717  ;;  %6737 = vpow2.f32 %v1684_v5  ;;  %v17194_v50 = vsub.f32 %v9987_v52, %v9903_v27 }
 0x1a5   : > { %v1718_v44 = vsub.f32 %v17193_v23, %v6714_v55  ;;  %v1766_v53 = vsel %vm1755_vm1, %v1716_v58, 0.0  ;;  %v1765_v10 = vsel %vm1754_vm0, %v1715_v32, 0.0  ;;  %v6720_v48 = vpop.eup %6719  ;;  %6739 = vpow2.f32 %v1686_v6  ;;  %v17202_v55 = vld [vmem:[#allocation46_spill] sm:$0xff]  ;;  %v17207_v60 = vld [vmem:[#allocation16_spill] sm:$0xff] }
 0x1a6   : > { %v1719_v2 = vsub.f32 %v17194_v50, %v6716_v31  ;;  %v1767_v1 = vsel %vm1755_vm1, %v1717_v47, 0.0  ;;  %v17195_v51 = vsub.f32 %v9998_v16, %v9910_v24  ;;  %v1794_v14 = vadd.f32 %v1766_v53, %v1762_v9  ;;  %v6722_v33 = vpop.eup %6721 }
 0x1a7   : > { %v1768_v17 = vsel %vm1755_vm1, %v1718_v44, 0.0  ;;  %6741 = vpow2.f32 %v1688_v39  ;;  %v17196_v5 = vsub.f32 %v10001_v30, %v9912_v28  ;;  %v1801_v52 = vadd.f32 %v1767_v1, %v1763_v3  ;;  %v6724_v57 = vpop.eup %6723  ;;  %v17206_v3 = vld [vmem:[#allocation34_spill] sm:$0xff] }
 0x1a8   : > { %v1720_v40 = vsub.f32 %v17195_v51, %v6718_v42  ;;  %v1769_v46 = vsel %vm1755_vm1, %v1719_v2, 0.0  ;;  %6743 = vpow2.f32 %v1690_v37  ;;  %v17197_v6 = vsub.f32 %v10004_v15, %v9914_v36  ;;  %v6726_v16 = vpop.eup %6725  ;;  %v17208_v44 = vld [vmem:[#allocation62_spill] sm:$0xff]  ;;  %v17212_v2 = vld [vmem:[#allocation44_spill] sm:$0xff] }
 0x1a9   : > { %v1721_v27 = vsub.f32 %v17196_v5, %v6720_v48  ;;  %vm1757_vm3 = vcmp.lt.s32.totalorder %v10201_v61, 2560  ;;  %6745 = vpow2.f32 %v10148_v43  ;;  %v17198_v28 = vsub.f32 %v10015_v34, %v9921_v4  ;;  %v6728_v37 = vpop.eup %6727 }
 0x1aa   : > { %v1722_v26 = vsub.f32 %v17197_v6, %v6722_v33  ;;  %v1770_v24 = vsel %vm1756_vm2, %v1720_v40, 0.0  ;;  %v1808_v30 = vadd.f32 %v1768_v17, %v1764_v56  ;;  %6747 = vpow2.f32 %v10151_v12  ;;  %v6730_v20 = vpop.eup %6729  ;;  %v17201_v12 = vld [vmem:[#allocation56_spill] sm:$0xff] }
 0x1ab   : > { %v1723_v18 = vsub.f32 %v17198_v28, %v6724_v57  ;;  %v1771_v39 = vsel %vm1756_vm2, %v1721_v27, 0.0  ;;  %v17199_v36 = vsub.f32 %v10018_v49, %v9923_v25  ;;  %v1795_v45 = vadd.f32 %v1794_v14, %v1770_v24  ;;  %v6732_v58 = vpop.eup %6731  ;;  %v17209_v56 = vld [vmem:[#allocation24_spill] sm:$0xff] }
 0x1ac   : > { %v1815_v32 = vadd.f32 %v1769_v46, %v1765_v10  ;;  %6749 = vpow2.f32 %v10154_v13  ;;  %v17200_v4 = vsub.f32 %v10021_v8, %v9925_v7  ;;  %v1772_v43 = vsel %vm1756_vm2, %v1722_v26, 0.0  ;;  %v6734_v47 = vpop.eup %6733  ;;  %v17204_v7 = vld [vmem:[#allocation63_spill] sm:$0xff]  ;;  %v17213_v10 = vld [vmem:[#allocation29_spill] sm:$0xff]  ;;  %v17215_v46 = vld [vmem:[#allocation60_spill] sm:$0xff] }
 0x1ad   : > { %v1724_v15 = vsub.f32 %v17199_v36, %v6726_v16  ;;  %v1802_v38 = vadd.f32 %v1801_v52, %v1771_v39  ;;  %6751 = vpow2.f32 %v10157_v0  ;;  %v17203_v25 = vsub.f32 %v17201_v12, %v17202_v55  ;;  %v6736_v23 = vpop.eup %6735  ;;  %v17216_v52 = vld [vmem:[#allocation61_spill] sm:$0xff]  ;;  %v17218_v26 = vld [vmem:[#allocation27_spill] sm:$0xff]  ;;  %v17219_v24 = vld [vmem:[#allocation12_spill] sm:$0xff] }
 0x1ae   : > { %v1725_v34 = vsub.f32 %v17200_v4, %v6728_v37  ;;  %v1773_v22 = vsel %vm1756_vm2, %v1723_v18, 0.0  ;;  %6753 = vpow2.f32 %v10163_v54  ;;  %v17205_v8 = vsub.f32 %v10035_v11, %v17204_v7  ;;  %v6738_v50 = vpop.eup %6737  ;;  %v17211_v11 = vld [vmem:[#allocation53_spill] sm:$0xff]  ;;  %v17221_v39 = vld [vmem:[#allocation64_spill] sm:$0xff]  ;;  %v17223_v37 = vld [vmem:[#allocation50_spill] sm:$0xff] }
 0x1af   : > { %v1726_v49 = vsub.f32 %v17203_v25, %v6730_v20  ;;  %v1774_v13 = vsel %vm1757_vm3, %v1724_v15, 0.0  ;;  %v10274_v0 = vadd.s32 %v10090_v41, %v17206_v3  ;;  %6755 = vpow2.f32 %v17207_v60  ;;  %v6740_v17 = vpop.eup %6739  ;;  %v17224_v36 = vld [vmem:[#allocation21_spill] sm:$0xff]  ;;  %v17226_v20 = vld [vmem:[#allocation28_spill] sm:$0xff] }
 0x1b0   : > { %v1727_v9 = vsub.f32 %v17205_v8, %v6732_v58  ;;  %v1775_v31 = vsel %vm1757_vm3, %v1725_v34, 0.0  ;;  %v17210_v53 = vsub.f32 %v17208_v44, %v17209_v56  ;;  %vm1758_vm4 = vcmp.lt.s32.totalorder %v10208_v21, 2560  ;;  %v17227_v4 = vld [vmem:[#allocation57_spill] sm:$0xff]  ;;  %v17243_v21 = vld [vmem:[#allocation36_spill] sm:$0xff] }
 0x1b1   : > { %v1809_v54 = vadd.f32 %v1808_v30, %v1772_v43  ;;  %6757 = vpow2.f32 %v17211_v11  ;;  %v17214_v1 = vsub.f32 %v17212_v2, %v17213_v10  ;;  %v1796_v51 = vadd.f32 %v1795_v45, %v1774_v13  ;;  %v6742_v27 = vpop.eup %6741  ;;  %v17222_v30 = vld [vmem:[#allocation41_spill] sm:$0xff]  ;;  %v17228_v43 = vld [vmem:[#allocation19_spill] sm:$0xff]  ;;  %v17237_v11 = vld [vmem:[#allocation48_spill] sm:$0xff] }
 0x1b2   : > { %v1728_v42 = vsub.f32 %v17210_v53, %v6734_v47  ;;  %v1816_v40 = vadd.f32 %v1815_v32, %v1773_v22  ;;  %6759 = vpow2.f32 %v10174_v59  ;;  %v1776_v14 = vsel %vm1757_vm3, %v1726_v49, 0.0  ;;  %v6744_v18 = vpop.eup %6743  ;;  %v17231_v55 = vld [vmem:[#allocation37_spill] sm:$0xff]  ;;  %v17232_v49 = vld [vmem:[#allocation23_spill] sm:$0xff]  ;;  %v17233_v22 = vld [vmem:[#allocation58_spill] sm:$0xff] }
 0x1b3   : > { %v1729_v48 = vsub.f32 %v17214_v1, %v6736_v23  ;;  %v1777_v33 = vsel %vm1757_vm3, %v1727_v9, 0.0  ;;  %v1803_v5 = vadd.f32 %v1802_v38, %v1775_v31  ;;  %6761 = vpow2.f32 %v10181_v19  ;;  %v6746_v32 = vpop.eup %6745  ;;  %v17229_v38 = vld [vmem:[#allocation67_spill] sm:$0xff]  ;;  %v17234_v31 = vld [vmem:[#allocation65_spill] sm:$0xff]  ;;  %v17235_v23 = vld [vmem:[#allocation38_spill] sm:$0xff] }
 0x1b4   : > { %v17217_v57 = vsub.f32 %v17215_v46, %v17216_v52  ;;  %v17220_v16 = vsub.f32 %v17218_v26, %v17219_v24  ;;  %v1778_v59 = vsel %vm1758_vm4, %v1728_v42, 0.0  ;;  %v1642_v61 = vsub.f32 %v17222_v30, %v17221_v39  ;;  %v17238_v2 = vld [vmem:[#allocation15_spill] sm:$0xff]  ;;  %v17246_v52 = vld [vmem:[#allocation66_spill] sm:$0xff]  ;;  %v17248_v26 = vld [vmem:[#allocation40_spill] sm:$0xff] }
 0x1b5   : > { %6763 = vpow2.f32 %v10190_v29  ;;  %v17225_v19 = vsub.f32 %v17223_v37, %v17224_v36  ;;  %v1779_v45 = vsel %vm1758_vm4, %v1729_v48, 0.0  ;;  %v1643_v34 = vsub.f32 %v17227_v4, %v17226_v20  ;;  %v6748_v29 = vpop.eup %6747  ;;  %v17241_v48 = vld [vmem:[#allocation68_spill] sm:$0xff]  ;;  %v17245_v46 = vld [vmem:[#allocation55_spill] sm:$0xff] }
 0x1b6   : > { %v1730_v6 = vsub.f32 %v17217_v57, %v6738_v50  ;;  %v1731_v28 = vsub.f32 %v17220_v16, %v6740_v17  ;;  %v17230_v58 = vsub.f32 %v17228_v43, %v17229_v38  ;;  %v10316_v25 = vadd.s32 %v10090_v41, %v17231_v55  ;;  %v6750_v9 = vpop.eup %6749  ;;  %v17251_v39 = vld [vmem:[#allocation39_spill] sm:$0xff]  ;;  %v5670_v4 = vld [vmem:[%s7778_s23 + $0x508] sm:$0xff]  ;;  %v5671_v43 = vld [vmem:[%s7778_s23 + $0x510] sm:$0xff] }
 0x1b7   : > { %v1732_v15 = vsub.f32 %v17225_v19, %v6742_v27  ;;  %vm1759_vm5 = vcmp.lt.s32.totalorder %v10274_v0, 2560  ;;  %v1644_v13 = vsub.f32 %v17233_v22, %v17232_v49  ;;  %v1797_v47 = vadd.f32 %v1796_v51, %v1778_v59  ;;  %v6752_v50 = vpop.eup %6751  ;;  %v17244_v27 = vld [vmem:[#allocation25_spill] sm:$0xff]  ;;  %v17250_v59 = vld [vmem:[#allocation54_spill] sm:$0xff]  ;;  %v5669_v19 = vld [vmem:[%s7778_s23 + $0x500] sm:$0xff] }
 0x1b8   : > { %v1733_v12 = vsub.f32 %v17230_v58, %v6744_v18  ;;  %v1810_v7 = vadd.f32 %v1809_v54, %v1776_v14  ;;  %v1817_v8 = vadd.f32 %v1816_v40, %v1777_v33  ;;  %v17236_v60 = vsub.f32 %v17234_v31, %v17235_v23  ;;  %v17240_v54 = vld [vmem:[#allocation31_spill] sm:$0xff]  ;;  %v6754_v33 = vpop.eup %6753  ;;  %v5672_v38 = vld [vmem:[%s7778_s23 + $0x518] sm:$0xff]  ;;  %v5674_v0 = vld [vmem:[%s7778_s23 + $0x528] sm:$0xff] }
 0x1b9   : > { %v1780_v56 = vsel %vm1758_vm4, %v1730_v6, 0.0  ;;  %v1781_v53 = vsel %vm1758_vm4, %v1731_v28, 0.0  ;;  %v1804_v42 = vadd.f32 %v1803_v5, %v1779_v45  ;;  %v17239_v10 = vsub.f32 %v17237_v11, %v17238_v2  ;;  %v6756_v16 = vpop.eup %6755  ;;  %v17249_v28 = vld [vmem:[#allocation35_spill] sm:$0xff]  ;;  %v5676_v31 = vld [vmem:[%s7778_s23 + $0x538] sm:$0xff]  ;;  %v5678_v11 = vld [vmem:[%s7778_s23 + $0x548] sm:$0xff] }
 0x1ba   : > { %v1734_v44 = vsub.f32 %v17236_v60, %v6746_v32  ;;  %v17242_v51 = vsub.f32 %v17240_v54, %v17241_v48  ;;  %v1782_v17 = vsel %vm1759_vm5, %v1732_v15, 0.0  ;;  %v1783_v14 = vsel %vm1759_vm5, %v1733_v12, 0.0  ;;  %v5673_v49 = vld [vmem:[%s7778_s23 + $0x520] sm:$0xff]  ;;  %v5679_v2 = vld [vmem:[%s7778_s23 + $0x550] sm:$0xff] }
 0x1bb   : > { %v1735_v1 = vsub.f32 %v17239_v10, %v6748_v29  ;;  %v1645_v5 = vsub.f32 %v17244_v27, %v17243_v21  ;;  %v17247_v57 = vsub.f32 %v17245_v46, %v17246_v52  ;;  %v10345_v24 = vadd.s32 %v10090_v41, %v17248_v26  ;;  %v6758_v15 = vpop.eup %6757  ;;  %v5683_v27 = vld [vmem:[%s7778_s23 + $0x570] sm:$0xff] }
 0x1bc   : > { %v1736_v40 = vsub.f32 %v17242_v51, %v6750_v9  ;;  %vm1760_vm6 = vcmp.lt.s32.totalorder %v10316_v25, 2560  ;;  %v1646_v18 = vsub.f32 %v17250_v59, %v17249_v28  ;;  %v1647_v30 = vsub.f32 %v10160_v35, %v17251_v39  ;;  %v6760_v58 = vpop.eup %6759  ;;  %v5675_v9 = vld [vmem:[%s7778_s23 + $0x530] sm:$0xff]  ;;  %v5685_v25 = vld [vmem:[%s7778_s23 + $0x580] sm:$0xff]  ;;  %v5688_v28 = vld [vmem:[%s7778_s23 + $0x598] sm:$0xff] }
 0x1bd   : > { %v1737_v6 = vsub.f32 %v17247_v57, %v6752_v50  ;;  %v1811_v37 = vadd.f32 %v1810_v7, %v1780_v56  ;;  %v1818_v36 = vadd.f32 %v1817_v8, %v1781_v53  ;;  %v1738_v45 = vsub.f32 %v1642_v61, %v6754_v33  ;;  %v6762_v22 = vpop.eup %6761  ;;  %v5677_v50 = vld [vmem:[%s7778_s23 + $0x540] sm:$0xff] }
 0x1be   : > { %v1784_v32 = vsel %vm1759_vm5, %v1734_v44, 0.0  ;;  %v1798_v41 = vadd.f32 %v1797_v47, %v1782_v17  ;;  %v1805_v20 = vadd.f32 %v1804_v42, %v1783_v14  ;;  %v1739_v12 = vsub.f32 %v1643_v34, %v6756_v16  ;;  %v5681_v17 = vld [vmem:[%s7778_s23 + $0x560] sm:$0xff]  ;;  %v5682_v14 = vld [vmem:[%s7778_s23 + $0x568] sm:$0xff]  ;;  %v5687_v16 = vld [vmem:[%s7778_s23 + $0x590] sm:$0xff] }
 0x1bf   : > { %v1740_v35 = vsub.f32 %v1644_v13, %v6758_v15  ;;  %v1785_v29 = vsel %vm1759_vm5, %v1735_v1, 0.0  ;;  %v1786_v61 = vsel %vm1760_vm6, %v1736_v40, 0.0  ;;  %v1741_v47 = vsub.f32 %v1645_v5, %v6760_v58  ;;  %v6764_v34 = vpop.eup %6763  ;;  %v5680_v40 = vld [vmem:[%s7778_s23 + $0x558] sm:$0xff]  ;;  %v5691_v15 = vld [vmem:[%s7778_s23 + $0x5b0] sm:$0xff] }
 0x1c0   : > { %vm1761_vm7 = vcmp.lt.s32.totalorder %v10345_v24, 2560  ;;  %v1787_v7 = vsel %vm1760_vm6, %v1737_v6, 0.0  ;;  %v10366_v8 = vmul.f32 %v5669_v19, %v5669_v19  ;;  %v1812_v13 = vadd.f32 %v1811_v37, %v1784_v32  ;;  %v5684_v5 = vld [vmem:[%s7778_s23 + $0x578] sm:$0xff]  ;;  %v5686_v6 = vld [vmem:[%s7778_s23 + $0x588] sm:$0xff] }
 0x1c1   : > { %v10371_v23 = vmul.f32 %v5670_v4, %v5670_v4  ;;  %v10373_v60 = vmul.f32 %v5671_v43, %v5671_v43  ;;  %v10375_v44 = vmul.f32 %v5672_v38, %v5672_v38  ;;  %v1788_v56 = vsel %vm1760_vm6, %v1738_v45, 0.0  ;;  %v5690_v19 = vld [vmem:[%s7778_s23 + $0x5a8] sm:$0xff]  ;;  %v5692_v4 = vld [vmem:[%s7778_s23 + $0x5b8] sm:$0xff]  ;;  %v5693_v43 = vld [vmem:[%s7778_s23 + $0x5c0] sm:$0xff] }
 0x1c2   : > { %v1799_v53 = vadd.f32 %v1798_v41, %v1786_v61  ;;  %v1819_v42 = vadd.f32 %v1818_v36, %v1785_v29  ;;  %v10382_v10 = vmul.f32 %v5673_v49, %v5673_v49  ;;  %v1742_v1 = vsub.f32 %v1646_v18, %v6762_v22  ;;  %v5689_v36 = vld [vmem:[%s7778_s23 + $0x5a0] sm:$0xff]  ;;  %v5694_v38 = vld [vmem:[%s7778_s23 + $0x5c8] sm:$0xff]  ;;  %v5695_v29 = vld [vmem:[%s7778_s23 + $0x5d0] sm:$0xff] }
 0x1c3   : > { %v1789_v54 = vsel %vm1760_vm6, %v1739_v12, 0.0  ;;  %v1790_v48 = vsel %vm1761_vm7, %v1740_v35, 0.0  ;;  %v1806_v51 = vadd.f32 %v1805_v20, %v1787_v7  ;;  %v1743_v33 = vsub.f32 %v1647_v30, %v6764_v34  ;;  %v5696_v61 = vld [vmem:[%s7778_s23 + $0x5d8] sm:$0xff]  ;;  %v5697_v49 = vld [vmem:[%s7778_s23 + $0x5e0] sm:$0xff]  ;;  %v5698_v34 = vld [vmem:[%s7778_s23 + $0x5e8] sm:$0xff] }
 0x1c4   : > { %v1791_v21 = vsel %vm1761_vm7, %v1741_v47, 0.0  ;;  %v10396_v46 = vmul.f32 %v5674_v0, %v5674_v0  ;;  %v10398_v52 = vmul.f32 %v5675_v9, %v5675_v9  ;;  %v10400_v57 = vadd.f32 %v1812_v13, %v1788_v56  ;;  %v5699_v13 = vld [vmem:[%s7778_s23 + $0x5f0] sm:$0xff]  ;;  %v5700_v24 = vld [vmem:[%s7778_s23 + $0x5f8] sm:$0xff]  ;;  %v10452_v0 = vld [vmem:[%s7784_s19 + $0x500] sm:$0xff] }
 0x1c5   : > { %v10405_v59 = vmul.f32 %v5676_v31, %v5676_v31  ;;  %v10407_v18 = vmul.f32 %v5677_v50, %v5677_v50  ;;  %v10409_v39 = vmul.f32 %v5678_v11, %v5678_v11  ;;  %v10411_v30 = vadd.f32 %v1799_v53, %v1790_v48  ;;  %v10466_v50 = vld [vmem:[%s7784_s19 + $0x510] sm:$0xff]  ;;  %v10469_v11 = vld [vmem:[%s7784_s19 + $0x518] sm:$0xff] }
 0x1c6   : > { %17252 = vst [vmem:[#allocation47_spill] sm:$0xff] %v10400_v57  ;;  %v10413_v37 = vadd.f32 %v1819_v42, %v1789_v54  ;;  %v10418_v45 = vmul.f32 %v5679_v2, %v5679_v2  ;;  %v10420_v32 = vmul.f32 %v5680_v40, %v5680_v40  ;;  %v10424_v41 = vsel %vm1761_vm7, %v1742_v1, 0.0  ;;  %v10463_v42 = vld [vmem:[%s7784_s19 + $0x508] sm:$0xff] }
 0x1c7   : > { %17253 = vst [vmem:[#allocation49_spill] sm:$0xff] %v10411_v30  ;;  %17255 = vst [vmem:[#allocation13_spill] sm:$0xff] %v10424_v41  ;;  %v10426_v20 = vadd.f32 %v1806_v51, %v1791_v21  ;;  %v10431_v58 = vmul.f32 %v5681_v17, %v5681_v17  ;;  %v10433_v12 = vmul.f32 %v5682_v14, %v5682_v14  ;;  %v10437_v35 = vsel %vm1761_vm7, %v1743_v33, 0.0  ;;  %v10480_v51 = vld [vmem:[%s7784_s19 + $0x520] sm:$0xff]  ;;  %v10483_v40 = vld [vmem:[%s7784_s19 + $0x528] sm:$0xff] }
 0x1c8   : > { %17254 = vst [vmem:[#allocation17_spill] sm:$0xff] %v10413_v37  ;;  %17259 = vst [vmem:[#allocation45_spill] sm:$0xff] %v10437_v35  ;;  %v10442_v22 = vmul.f32 %v5683_v27, %v5683_v27  ;;  %v10444_v47 = vmul.f32 %v5684_v5, %v5684_v5  ;;  %v10446_v7 = vmul.f32 %v5685_v25, %v5685_v25  ;;  %v10486_v17 = vld [vmem:[%s7784_s19 + $0x530] sm:$0xff]  ;;  %v10497_v5 = vld [vmem:[%s7784_s19 + $0x538] sm:$0xff]  ;;  %v1959_v26 = vmul.f32 1.442695, %v10452_v0 }
 0x1c9   : > { %17256 = vst [vmem:[#allocation43_spill] sm:$0xff] %v10426_v20  ;;  %17257 = vst [vmem:[#allocation32_spill] sm:$0xff] %v10431_v58  ;;  %v10454_v9 = vmul.f32 %v5686_v6, %v5686_v6  ;;  %v10456_v31 = vmul.f32 %v5687_v16, %v5687_v16  ;;  %v10458_v56 = vmul.f32 %v5688_v28, %v5688_v28  ;;  %v10500_v25 = vld [vmem:[%s7784_s19 + $0x540] sm:$0xff]  ;;  %v10503_v6 = vld [vmem:[%s7784_s19 + $0x548] sm:$0xff] }
 0x1ca   : > { %17258 = vst [vmem:[#allocation20_spill] sm:$0xff] %v10433_v12  ;;  %17260 = vst [vmem:[#allocation42_spill] sm:$0xff] %v10442_v22  ;;  %v10460_v53 = vmul.f32 %v5689_v36, %v5689_v36  ;;  %v10471_v2 = vmul.f32 %v5690_v19, %v5690_v19  ;;  %v10473_v1 = vmul.f32 %v5691_v15, %v5691_v15  ;;  %v10514_v15 = vld [vmem:[%s7784_s19 + $0x550] sm:$0xff]  ;;  %v10548_v19 = vld [vmem:[%s7784_s19 + $0x580] sm:$0xff]  ;;  %6765 = vpow2.f32 %v1959_v26 }
 0x1cb   : > { %17261 = vst [vmem:[#allocation14_spill] sm:$0xff] %v10444_v47  ;;  %17262 = vst [vmem:[#allocation56_spill] sm:$0xff] %v10446_v7  ;;  %v10475_v54 = vmul.f32 %v5692_v4, %v5692_v4  ;;  %v10477_v48 = vmul.f32 %v5693_v43, %v5693_v43  ;;  %v10488_v14 = vmul.f32 %v5694_v38, %v5694_v38  ;;  %v10517_v4 = vld [vmem:[%s7784_s19 + $0x558] sm:$0xff]  ;;  %v10520_v43 = vld [vmem:[%s7784_s19 + $0x560] sm:$0xff]  ;;  %v1963_v7 = vmul.f32 1.442695, %v10466_v50 }
 0x1cc   : > { %17263 = vst [vmem:[#allocation46_spill] sm:$0xff] %v10454_v9  ;;  %17264 = vst [vmem:[#allocation63_spill] sm:$0xff] %v10456_v31  ;;  %v10490_v33 = vmul.f32 %v5695_v29, %v5695_v29  ;;  %v10492_v21 = vmul.f32 %v5696_v61, %v5696_v61  ;;  %v10494_v27 = vmul.f32 %v5697_v49, %v5697_v49  ;;  %v10551_v20 = vld [vmem:[%s7784_s19 + $0x588] sm:$0xff]  ;;  %v10554_v30 = vld [vmem:[%s7784_s19 + $0x590] sm:$0xff]  ;;  %v1965_v49 = vmul.f32 1.442695, %v10469_v11 }
 0x1cd   : > { %17265 = vst [vmem:[#allocation16_spill] sm:$0xff] %v10458_v56  ;;  %17266 = vst [vmem:[#allocation62_spill] sm:$0xff] %v10460_v53  ;;  %v10505_v16 = vmul.f32 %v5698_v34, %v5698_v34  ;;  %v10507_v28 = vmul.f32 %v5699_v13, %v5699_v13  ;;  %v10509_v36 = vmul.f32 %v5700_v24, %v5700_v24  ;;  %v10531_v34 = vld [vmem:[%s7784_s19 + $0x568] sm:$0xff]  ;;  %v10534_v13 = vld [vmem:[%s7784_s19 + $0x570] sm:$0xff]  ;;  %v1969_v29 = vmul.f32 1.442695, %v10483_v40 }
 0x1ce   : > { %17267 = vst [vmem:[#allocation24_spill] sm:$0xff] %v10471_v2  ;;  %17268 = vst [vmem:[#allocation53_spill] sm:$0xff] %v10473_v1  ;;  %v10537_v24 = vld [vmem:[%s7784_s19 + $0x578] sm:$0xff]  ;;  %v10568_v35 = vld [vmem:[%s7784_s19 + $0x5a0] sm:$0xff]  ;;  %v1971_v53 = vmul.f32 1.442695, %v10486_v17 }
 0x1cf   : > { %17269 = vst [vmem:[#allocation44_spill] sm:$0xff] %v10475_v54  ;;  %17270 = vst [vmem:[#allocation29_spill] sm:$0xff] %v10477_v48  ;;  %v10565_v37 = vld [vmem:[%s7784_s19 + $0x598] sm:$0xff]  ;;  %v10571_v57 = vld [vmem:[%s7784_s19 + $0x5a8] sm:$0xff]  ;;  %v10628_v48 = vstv %s2055_s25  ;;  %v1975_v56 = vmul.f32 1.442695, %v10500_v25 }
 0x1d0   : > { %17271 = vst [vmem:[#allocation60_spill] sm:$0xff] %v10488_v14  ;;  %17272 = vst [vmem:[#allocation61_spill] sm:$0xff] %v10490_v33  ;;  %v10582_v38 = vld [vmem:[%s7784_s19 + $0x5b0] sm:$0xff]  ;;  %v10605_v41 = vld [vmem:[%s7784_s19 + $0x5c8] sm:$0xff]  ;;  %v1973_v14 = vmul.f32 1.442695, %v10497_v5 }
 0x1d1   : > { %17273 = vst [vmem:[#allocation27_spill] sm:$0xff] %v10492_v21  ;;  %17274 = vst [vmem:[#allocation12_spill] sm:$0xff] %v10494_v27  ;;  %v1961_v27 = vmul.f32 1.442695, %v10463_v42  ;;  %v10608_v9 = vld [vmem:[%s7784_s19 + $0x5d0] sm:$0xff]  ;;  %v10618_v2 = vld [vmem:[%s7784_s19 + $0x5d8] sm:$0xff] }
 0x1d2   : > { %17275 = vst [vmem:[#allocation64_spill] sm:$0xff] %v10505_v16  ;;  %17276 = vst [vmem:[#allocation41_spill] sm:$0xff] %v10507_v28  ;;  %v10588_v28 = vld [vmem:[%s7784_s19 + $0x5c0] sm:$0xff]  ;;  %v1967_v16 = vmul.f32 1.442695, %v10480_v51  ;;  %v10643_v1 = vld [vmem:[%s7784_s19 + $0x5e8] sm:$0xff] }
 0x1d3   : > { %17277 = vst [vmem:[#allocation50_spill] sm:$0xff] %v10509_v36  ;;  %17278 = vst [vmem:[#allocation21_spill] sm:$0xff] %v10531_v34  ;;  %v10585_v36 = vld [vmem:[%s7784_s19 + $0x5b8] sm:$0xff]  ;;  %6767 = vpow2.f32 %v1961_v27  ;;  %v1977_v26 = vmul.f32 1.442695, %v10503_v6  ;;  %v10637_v21 = vld [vmem:[%s7784_s19 + $0x5e0] sm:$0xff] }
 0x1d4   : > { %17279 = vst [vmem:[#allocation28_spill] sm:$0xff] %v10534_v13  ;;  %17280 = vst [vmem:[#allocation57_spill] sm:$0xff] %v10548_v19  ;;  %6769 = vpow2.f32 %v1963_v7  ;;  %v1979_v61 = vmul.f32 1.442695, %v10514_v15  ;;  %v1981_v27 = vmul.f32 1.442695, %v10517_v4 }
 0x1d5   : > { %17281 = vst [vmem:[#allocation19_spill] sm:$0xff] %v10551_v20  ;;  %17282 = vst [vmem:[#allocation67_spill] sm:$0xff] %v10554_v30  ;;  %6771 = vpow2.f32 %v1965_v49  ;;  %v1983_v33 = vmul.f32 1.442695, %v10520_v43  ;;  %v1985_v7 = vmul.f32 1.442695, %v10531_v34 }
 0x1d6   : > { %17283 = vst [vmem:[#allocation23_spill] sm:$0xff] %v10565_v37  ;;  %17284 = vst [vmem:[#allocation58_spill] sm:$0xff] %v10568_v35  ;;  %6773 = vpow2.f32 %v1967_v16  ;;  %v1987_v54 = vmul.f32 1.442695, %v10534_v13  ;;  %v10646_v31 = vld [vmem:[%s7784_s19 + $0x5f0] sm:$0xff]  ;;  %v10652_v12 = vld [vmem:[%s7784_s19 + $0x5f8] sm:$0xff] }
 0x1d7   : > { %17285 = vst [vmem:[#allocation65_spill] sm:$0xff] %v10571_v57  ;;  %17286 = vst [vmem:[#allocation38_spill] sm:$0xff] %v10582_v38  ;;  %6775 = vpow2.f32 %v1969_v29  ;;  %v1989_v49 = vmul.f32 1.442695, %v10537_v24  ;;  %v1991_v47 = vmul.f32 1.442695, %v10548_v19 }
 0x1d8   : > { %17287 = vst [vmem:[#allocation48_spill] sm:$0xff] %v10585_v36  ;;  %17288 = vst [vmem:[#allocation15_spill] sm:$0xff] %v10588_v28  ;;  %v1993_v22 = vmul.f32 1.442695, %v10551_v20  ;;  %6777 = vpow2.f32 %v1971_v53  ;;  %v1995_v16 = vmul.f32 1.442695, %v10554_v30 }
 0x1d9   : > { %17289 = vst [vmem:[#allocation31_spill] sm:$0xff] %v10605_v41  ;;  %17290 = vst [vmem:[#allocation68_spill] sm:$0xff] %v10608_v9  ;;  %v1997_v34 = vmul.f32 1.442695, %v10565_v37  ;;  %v10657_v13 = vmul.f32 1.442695, %v10568_v35  ;;  %6779 = vpow2.f32 %v1973_v14 }
 0x1da   : > { %17291 = vst [vmem:[#allocation36_spill] sm:$0xff] %v10618_v2  ;;  %17292 = vst [vmem:[#allocation25_spill] sm:$0xff] %v10637_v21  ;;  %v10660_v58 = vmul.f32 1.442695, %v10571_v57  ;;  %v10663_v29 = vmul.f32 1.442695, %v10582_v38  ;;  %6781 = vpow2.f32 %v1975_v56  ;;  %v6766_v56 = vpop.eup %6765 }
 0x1db   : > { %17293 = vst [vmem:[#allocation55_spill] sm:$0xff] %v10643_v1  ;;  %17294 = vst [vmem:[#allocation66_spill] sm:$0xff] %v10646_v31  ;;  %v10666_v19 = vmul.f32 1.442695, %v10585_v36  ;;  %v10669_v53 = vmul.f32 1.442695, %v10588_v28  ;;  %6783 = vpow2.f32 %v1977_v26 }
 0x1dc   : > { %17295 = vst [vmem:[#allocation35_spill] sm:$0xff] %v10652_v12  ;;  %v10672_v30 = vmul.f32 1.442695, %v10605_v41  ;;  %v10675_v35 = vmul.f32 1.442695, %v10608_v9  ;;  %v17296_v57 = vld [vmem:[#allocation11_spill] sm:$0xff]  ;;  %6785 = vpow2.f32 %v1979_v61  ;;  %v10702_v61 = vadd.s32 %v10628_v48, %v17064_v62 }
 0x1dd   : > { %v10678_v14 = vmul.f32 1.442695, %v10618_v2  ;;  %v10681_v38 = vmul.f32 1.442695, %v10637_v21  ;;  %v2057_v36 = vadd.s32 %v10628_v48, %v17296_v57  ;;  %v10686_v28 = vmul.f32 1.442695, %v10643_v1  ;;  %v6768_v37 = vpop.eup %6767 }
 0x1de   : > { %v10689_v41 = vmul.f32 1.442695, %v10646_v31  ;;  %v17297_v9 = vld [vmem:[#allocation18_spill] sm:$0xff]  ;;  %6787 = vpow2.f32 %v1981_v27  ;;  %v10694_v2 = vmul.f32 1.442695, %v10652_v12  ;;  %v6770_v57 = vpop.eup %6769  ;;  %v17300_v31 = vsub.f32 %v10452_v0, %v10366_v8 }
 0x1df   : > { %v2058_v26 = vadd.s32 %v10628_v48, %v17297_v9  ;;  %v17299_v21 = vld [vmem:[#allocation22_spill] sm:$0xff]  ;;  %6789 = vpow2.f32 %v1983_v33  ;;  %v17301_v27 = vsub.f32 %v10463_v42, %v10371_v23  ;;  %v10712_v12 = vadd.s32 %v10628_v48, %v7891_v63 }
 0x1e0   : > { %17298 = vst [vmem:[#allocation54_spill] sm:$0xff] %v10694_v2  ;;  %v10698_v20 = vadd.s32 %v10628_v48, %v17299_v21  ;;  %v2023_v1 = vsub.f32 %v17300_v31, %v6766_v56  ;;  %v6772_v21 = vpop.eup %6771  ;;  %6791 = vpow2.f32 %v1985_v7  ;;  %v17302_v62 = vsub.f32 %v10466_v50, %v10373_v60 }
 0x1e1   : > { %v2024_v9 = vsub.f32 %v17301_v27, %v6768_v37  ;;  %v10719_v33 = vadd.s32 %v10628_v48, %v17206_v3  ;;  %vm2065_vm8 = vcmp.lt.s32.totalorder %v2057_v36, 2560  ;;  %v6774_v8 = vpop.eup %6773  ;;  %6793 = vpow2.f32 %v1987_v54 }
 0x1e2   : > { %v2025_v2 = vsub.f32 %v17302_v62, %v6770_v57  ;;  %v17303_v23 = vsub.f32 %v10469_v11, %v10375_v44  ;;  %v10726_v0 = vadd.s32 %v10628_v48, %v17231_v55  ;;  %vm2066_vm9 = vcmp.lt.s32.totalorder %v2058_v26, 2560  ;;  %v6776_v31 = vpop.eup %6775 }
 0x1e3   : > { %6795 = vpow2.f32 %v1989_v49  ;;  %v17304_v62 = vsub.f32 %v10480_v51, %v10382_v10  ;;  %vm2067_vm10 = vcmp.lt.s32.totalorder %v10698_v20, 2560  ;;  %vm2068_vm11 = vcmp.lt.s32.totalorder %v10702_v61, 2560  ;;  %v6778_v57 = vpop.eup %6777 }
 0x1e4   : > { %v2026_v37 = vsub.f32 %v17303_v23, %v6772_v21  ;;  %6797 = vpow2.f32 %v1991_v47  ;;  %v17305_v44 = vsub.f32 %v10483_v40, %v10396_v46  ;;  %v2073_v50 = vsel %vm2065_vm8, %v2023_v1, 0.0  ;;  %v6780_v54 = vpop.eup %6779 }
 0x1e5   : > { %v2027_v60 = vsub.f32 %v17304_v62, %v6774_v8  ;;  %v2074_v11 = vsel %vm2065_vm8, %v2024_v9, 0.0  ;;  %6799 = vpow2.f32 %v1993_v22  ;;  %v17306_v10 = vsub.f32 %v10486_v17, %v10398_v52  ;;  %v6782_v49 = vpop.eup %6781 }
 0x1e6   : > { %v2028_v42 = vsub.f32 %v17305_v44, %v6776_v31  ;;  %v2075_v21 = vsel %vm2065_vm8, %v2025_v2, 0.0  ;;  %6801 = vpow2.f32 %v1995_v16  ;;  %v17307_v46 = vsub.f32 %v10497_v5, %v10405_v59  ;;  %v6784_v1 = vpop.eup %6783 }
 0x1e7   : > { %v2029_v51 = vsub.f32 %v17306_v10, %v6778_v57  ;;  %v2077_v7 = vsel %vm2066_vm9, %v2027_v60, 0.0  ;;  %vm2069_vm12 = vcmp.lt.s32.totalorder %v10712_v12, 2560  ;;  %v2076_v9 = vsel %vm2065_vm8, %v2026_v37, 0.0  ;;  %v6786_v16 = vpop.eup %6785 }
 0x1e8   : > { %v2030_v47 = vsub.f32 %v17307_v46, %v6780_v54  ;;  %v2078_v22 = vsel %vm2066_vm9, %v2028_v42, 0.0  ;;  %6803 = vpow2.f32 %v1997_v34  ;;  %v17308_v52 = vsub.f32 %v10500_v25, %v10407_v18  ;;  %v6788_v27 = vpop.eup %6787 }
 0x1e9   : > { %v2079_v40 = vsel %vm2066_vm9, %v2029_v51, 0.0  ;;  %v2105_v17 = vadd.f32 %v2077_v7, %v2073_v50  ;;  %6805 = vpow2.f32 %v10657_v13  ;;  %v17309_v59 = vsub.f32 %v10503_v6, %v10409_v39  ;;  %v6790_v23 = vpop.eup %6789  ;;  %v17318_v50 = vld [vmem:[#allocation42_spill] sm:$0xff] }
 0x1ea   : > { %v2031_v2 = vsub.f32 %v17308_v52, %v6782_v49  ;;  %v2080_v36 = vsel %vm2066_vm9, %v2030_v47, 0.0  ;;  %v2112_v56 = vadd.f32 %v2078_v22, %v2074_v11  ;;  %6807 = vpow2.f32 %v10660_v58  ;;  %v6792_v26 = vpop.eup %6791  ;;  %v17322_v47 = vld [vmem:[#allocation57_spill] sm:$0xff] }
 0x1eb   : > { %v2032_v5 = vsub.f32 %v17309_v59, %v6784_v1  ;;  %v17310_v18 = vsub.f32 %v10514_v15, %v10418_v45  ;;  %v2119_v8 = vadd.f32 %v2079_v40, %v2075_v21  ;;  %6809 = vpow2.f32 %v10663_v29  ;;  %v17312_v45 = vld [vmem:[#allocation32_spill] sm:$0xff]  ;;  %v6794_v62 = vpop.eup %6793  ;;  %v17320_v21 = vld [vmem:[#allocation14_spill] sm:$0xff] }
 0x1ec   : > { %v2081_v34 = vsel %vm2067_vm10, %v2031_v2, 0.0  ;;  %v17311_v39 = vsub.f32 %v10517_v4, %v10420_v32  ;;  %vm2070_vm13 = vcmp.lt.s32.totalorder %v10719_v33, 2560  ;;  %v2126_v13 = vadd.f32 %v2080_v36, %v2076_v9  ;;  %v17314_v32 = vld [vmem:[#allocation21_spill] sm:$0xff]  ;;  %v17315_v4 = vld [vmem:[#allocation20_spill] sm:$0xff]  ;;  %v17326_v40 = vld [vmem:[#allocation46_spill] sm:$0xff] }
 0x1ed   : > { %v2033_v25 = vsub.f32 %v17310_v18, %v6786_v16  ;;  %v2082_v58 = vsel %vm2067_vm10, %v2032_v5, 0.0  ;;  %6811 = vpow2.f32 %v10666_v19  ;;  %v17313_v15 = vsub.f32 %v10520_v43, %v17312_v45  ;;  %v6796_v19 = vpop.eup %6795  ;;  %v17317_v43 = vld [vmem:[#allocation28_spill] sm:$0xff]  ;;  %v17328_v36 = vld [vmem:[#allocation67_spill] sm:$0xff] }
 0x1ee   : > { %v2034_v6 = vsub.f32 %v17311_v39, %v6788_v27  ;;  %v2106_v31 = vadd.f32 %v2105_v17, %v2081_v34  ;;  %6813 = vpow2.f32 %v10669_v53  ;;  %v17316_v60 = vsub.f32 %v17314_v32, %v17315_v4  ;;  %v6798_v53 = vpop.eup %6797  ;;  %v17323_v9 = vld [vmem:[#allocation56_spill] sm:$0xff]  ;;  %v17340_v4 = vld [vmem:[#allocation65_spill] sm:$0xff] }
 0x1ef   : > { %v2035_v37 = vsub.f32 %v17313_v15, %v6790_v23  ;;  %v2083_v29 = vsel %vm2067_vm10, %v2033_v25, 0.0  ;;  %v2113_v42 = vadd.f32 %v2112_v56, %v2082_v58  ;;  %6815 = vpow2.f32 %v10672_v30  ;;  %v6800_v30 = vpop.eup %6799  ;;  %v17329_v56 = vld [vmem:[#allocation63_spill] sm:$0xff]  ;;  %v17332_v23 = vld [vmem:[#allocation16_spill] sm:$0xff]  ;;  %v17336_v15 = vld [vmem:[#allocation54_spill] sm:$0xff] }
 0x1f0   : > { %v2036_v57 = vsub.f32 %v17316_v60, %v6792_v26  ;;  %v2084_v44 = vsel %vm2067_vm10, %v2034_v6, 0.0  ;;  %v17319_v11 = vsub.f32 %v17317_v43, %v17318_v50  ;;  %v2120_v51 = vadd.f32 %v2119_v8, %v2083_v29  ;;  %v17331_v8 = vld [vmem:[#allocation23_spill] sm:$0xff]  ;;  %v17335_v26 = vld [vmem:[#allocation25_spill] sm:$0xff]  ;;  %v17338_v29 = vld [vmem:[#allocation62_spill] sm:$0xff] }
 0x1f1   : > { %v2085_v10 = vsel %vm2068_vm11, %v2035_v37, 0.0  ;;  %6817 = vpow2.f32 %v10675_v35  ;;  %v17321_v7 = vsub.f32 %v10537_v24, %v17320_v21  ;;  %v2127_v46 = vadd.f32 %v2126_v13, %v2084_v44  ;;  %v6802_v35 = vpop.eup %6801  ;;  %v17325_v24 = vld [vmem:[#allocation19_spill] sm:$0xff]  ;;  %v17334_v13 = vld [vmem:[#allocation12_spill] sm:$0xff]  ;;  %v17337_v37 = vld [vmem:[#allocation58_spill] sm:$0xff] }
 0x1f2   : > { %v2037_v54 = vsub.f32 %v17319_v11, %v6794_v62  ;;  %v2086_v49 = vsel %vm2068_vm11, %v2036_v57, 0.0  ;;  %6819 = vpow2.f32 %v10678_v14  ;;  %v17324_v22 = vsub.f32 %v17322_v47, %v17323_v9  ;;  %v6804_v14 = vpop.eup %6803  ;;  %v17341_v60 = vld [vmem:[#allocation24_spill] sm:$0xff] }
 0x1f3   : > { %v2038_v20 = vsub.f32 %v17321_v7, %v6796_v19  ;;  %v2107_v2 = vadd.f32 %v2106_v31, %v2085_v10  ;;  %6821 = vpow2.f32 %v10681_v38  ;;  %v17327_v17 = vsub.f32 %v17325_v24, %v17326_v40  ;;  %v6806_v38 = vpop.eup %6805  ;;  %v17345_v10 = vld [vmem:[#allocation53_spill] sm:$0xff]  ;;  %v17353_v24 = vld [vmem:[#allocation66_spill] sm:$0xff] }
 0x1f4   : > { %v2039_v1 = vsub.f32 %v17324_v22, %v6798_v53  ;;  %v2087_v52 = vsel %vm2068_vm11, %v2037_v54, 0.0  ;;  %v2114_v5 = vadd.f32 %v2113_v42, %v2086_v49  ;;  %6823 = vpow2.f32 %v10686_v28  ;;  %v6808_v28 = vpop.eup %6807  ;;  %v17343_v42 = vld [vmem:[#allocation40_spill] sm:$0xff]  ;;  %v17344_v54 = vld [vmem:[#allocation38_spill] sm:$0xff] }
 0x1f5   : > { %v2040_v16 = vsub.f32 %v17327_v17, %v6800_v30  ;;  %v2088_v59 = vsel %vm2068_vm11, %v2038_v20, 0.0  ;;  %v17330_v27 = vsub.f32 %v17328_v36, %v17329_v56  ;;  %v2121_v34 = vadd.f32 %v2120_v51, %v2087_v52  ;;  %v6810_v32 = vpop.eup %6809  ;;  %v17348_v30 = vld [vmem:[#allocation44_spill] sm:$0xff]  ;;  %v17351_v52 = vld [vmem:[#allocation55_spill] sm:$0xff]  ;;  %v17357_v56 = vld [vmem:[#allocation50_spill] sm:$0xff] }
 0x1f6   : > { %v2089_v25 = vsel %vm2069_vm12, %v2039_v1, 0.0  ;;  %6825 = vpow2.f32 %v10689_v41  ;;  %v17333_v39 = vsub.f32 %v17331_v8, %v17332_v23  ;;  %v2128_v58 = vadd.f32 %v2127_v46, %v2088_v59  ;;  %v17347_v46 = vld [vmem:[#allocation48_spill] sm:$0xff]  ;;  %v17354_v17 = vld [vmem:[#allocation15_spill] sm:$0xff] }
 0x1f7   : > { %v2041_v18 = vsub.f32 %v17330_v27, %v6802_v35  ;;  %v2090_v6 = vsel %vm2069_vm12, %v2040_v16, 0.0  ;;  %v1955_v45 = vsub.f32 %v17335_v26, %v17334_v13  ;;  %6827 = vpow2.f32 %v17336_v15  ;;  %v6812_v11 = vpop.eup %6811  ;;  %v17350_v1 = vld [vmem:[#allocation64_spill] sm:$0xff]  ;;  %v17352_v35 = vld [vmem:[#allocation41_spill] sm:$0xff]  ;;  %v17358_v27 = vld [vmem:[#allocation35_spill] sm:$0xff] }
 0x1f8   : > { %v2042_v61 = vsub.f32 %v17333_v39, %v6804_v14  ;;  %v17339_v31 = vsub.f32 %v17337_v37, %v17338_v29  ;;  %v17342_v57 = vsub.f32 %v17340_v4, %v17341_v60  ;;  %v10832_v19 = vadd.s32 %v10628_v48, %v17343_v42  ;;  %v6814_v49 = vpop.eup %6813  ;;  %v17355_v16 = vld [vmem:[#allocation29_spill] sm:$0xff]  ;;  %v11117_v42 = vld [vmem:[%s7784_s19 + $0x6b8] sm:$0xff] }
 0x1f9   : > { %v2091_v41 = vsel %vm2069_vm12, %v2041_v18, 0.0  ;;  %v2108_v50 = vadd.f32 %v2107_v2, %v2089_v25  ;;  %v17346_v51 = vsub.f32 %v17344_v54, %v17345_v10  ;;  %v2115_v7 = vadd.f32 %v2114_v5, %v2090_v6  ;;  %v6816_v22 = vpop.eup %6815  ;;  %v17359_v25 = vld [vmem:[#allocation31_spill] sm:$0xff]  ;;  %v17362_v6 = vld [vmem:[#allocation68_spill] sm:$0xff]  ;;  %17408 = vst [vmem:[#allocation15_spill] sm:$0xff] %v11117_v42 }
 0x1fa   : > { %v2043_v62 = vsub.f32 %v17339_v31, %v6806_v38  ;;  %v2044_v44 = vsub.f32 %v17342_v57, %v6808_v28  ;;  %v2092_v43 = vsel %vm2069_vm12, %v2042_v61, 0.0  ;;  %v2122_v20 = vadd.f32 %v2121_v34, %v2091_v41  ;;  %v17360_v34 = vld [vmem:[#allocation60_spill] sm:$0xff]  ;;  %v17368_v57 = vld [vmem:[#allocation13_spill] sm:$0xff] }
 0x1fb   : > { %v2045_v53 = vsub.f32 %v17346_v51, %v6810_v32  ;;  %v17349_v47 = vsub.f32 %v17347_v46, %v17348_v30  ;;  %vm2071_vm14 = vcmp.lt.s32.totalorder %v10726_v0, 2560  ;;  %v2129_v9 = vadd.f32 %v2128_v58, %v2092_v43  ;;  %v6818_v36 = vpop.eup %6817  ;;  %v17363_v58 = vld [vmem:[#allocation61_spill] sm:$0xff]  ;;  %v17365_v31 = vld [vmem:[#allocation36_spill] sm:$0xff]  ;;  %v17372_v0 = vld [vmem:[#allocation59_spill] sm:$0xff] }
 0x1fc   : > { %v2093_v21 = vsel %vm2070_vm13, %v2043_v62, 0.0  ;;  %v2094_v12 = vsel %vm2070_vm13, %v2044_v44, 0.0  ;;  %v1956_v2 = vsub.f32 %v17351_v52, %v17350_v1  ;;  %v1957_v40 = vsub.f32 %v17353_v24, %v17352_v35  ;;  %v6820_v61 = vpop.eup %6819  ;;  %v17366_v62 = vld [vmem:[#allocation27_spill] sm:$0xff]  ;;  %v17373_v1 = vld [vmem:[#allocation49_spill] sm:$0xff] }
 0x1fd   : > { %v2046_v48 = vsub.f32 %v17349_v47, %v6812_v11  ;;  %v17356_v59 = vsub.f32 %v17354_v17, %v17355_v16  ;;  %v2095_v14 = vsel %vm2070_vm13, %v2045_v53, 0.0  ;;  %v1958_v18 = vsub.f32 %v17358_v27, %v17357_v56  ;;  %v6822_v29 = vpop.eup %6821  ;;  %v17369_v44 = vld [vmem:[#allocation47_spill] sm:$0xff]  ;;  %v17371_v11 = vld [vmem:[#allocation17_spill] sm:$0xff]  ;;  %v5738_v17 = vld [vmem:[%s7778_s23 + $0x628] sm:$0xff] }
 0x1fe   : > { %v17361_v38 = vsub.f32 %v17359_v25, %v17360_v34  ;;  %v2109_v39 = vadd.f32 %v2108_v50, %v2093_v21  ;;  %v17364_v28 = vsub.f32 %v17362_v6, %v17363_v58  ;;  %v2116_v15 = vadd.f32 %v2115_v7, %v2094_v12  ;;  %v6824_v60 = vpop.eup %6823  ;;  %v17370_v50 = vld [vmem:[#allocation45_spill] sm:$0xff]  ;;  %v5734_v12 = vld [vmem:[%s7778_s23 + $0x608] sm:$0xff]  ;;  %v5740_v34 = vld [vmem:[%s7778_s23 + $0x638] sm:$0xff] }
 0x1ff   : > { %v2047_v5 = vsub.f32 %v17356_v59, %v6814_v49  ;;  %v2096_v23 = vsel %vm2070_vm13, %v2046_v48, 0.0  ;;  %v2123_v37 = vadd.f32 %v2122_v20, %v2095_v14  ;;  %v17367_v41 = vsub.f32 %v17365_v31, %v17366_v62  ;;  %v5733_v49 = vld [vmem:[%s7778_s23 + $0x600] sm:$0xff]  ;;  %v5739_v16 = vld [vmem:[%s7778_s23 + $0x630] sm:$0xff]  ;;  %v5744_v6 = vld [vmem:[%s7778_s23 + $0x658] sm:$0xff] }
 0x200   : > { %v2048_v8 = vsub.f32 %v17361_v38, %v6816_v22  ;;  %v2049_v13 = vsub.f32 %v17364_v28, %v6818_v36  ;;  %vm2072_vm15 = vcmp.lt.s32.totalorder %v10832_v19, 2560  ;;  %v2130_v4 = vadd.f32 %v2129_v9, %v2096_v23  ;;  %v6826_v53 = vpop.eup %6825  ;;  %v5735_v9 = vld [vmem:[%s7778_s23 + $0x610] sm:$0xff]  ;;  %v5736_v22 = vld [vmem:[%s7778_s23 + $0x618] sm:$0xff]  ;;  %v17374_v59 = vld [vmem:[#allocation51_spill] sm:$0xff] }
 0x201   : > { %v2097_v26 = vsel %vm2071_vm14, %v2047_v5, 0.0  ;;  %v2050_v32 = vsub.f32 %v17367_v41, %v6820_v61  ;;  %v1814_v43 = vadd.f32 %v17369_v44, %v17368_v57  ;;  %v1821_v54 = vadd.f32 %v17371_v11, %v17370_v50  ;;  %v6828_v46 = vpop.eup %6827  ;;  %v17375_v5 = vld [vmem:[#allocation43_spill] sm:$0xff]  ;;  %v17376_v36 = vld [vmem:[#allocation52_spill] sm:$0xff]  ;;  %v17377_v27 = vld [vmem:[#allocation33_spill] sm:$0xff] }
 0x202   : > { %v2098_v33 = vsel %vm2071_vm14, %v2048_v8, 0.0  ;;  %v2051_v10 = vsub.f32 %v1955_v45, %v6822_v29  ;;  %v2099_v51 = vsel %vm2071_vm14, %v2049_v13, 0.0  ;;  %v2052_v21 = vsub.f32 %v1956_v2, %v6824_v60  ;;  %v5741_v38 = vld [vmem:[%s7778_s23 + $0x640] sm:$0xff]  ;;  %v5742_v8 = vld [vmem:[%s7778_s23 + $0x648] sm:$0xff]  ;;  %v5743_v61 = vld [vmem:[%s7778_s23 + $0x650] sm:$0xff] }
 0x203   : > { %v2100_v7 = vsel %vm2071_vm14, %v2050_v32, 0.0  ;;  %v2110_v20 = vadd.f32 %v2109_v39, %v2097_v26  ;;  %v2053_v30 = vsub.f32 %v1957_v40, %v6826_v53  ;;  %v2117_v48 = vadd.f32 %v2116_v15, %v2098_v33  ;;  %v5737_v40 = vld [vmem:[%s7778_s23 + $0x620] sm:$0xff]  ;;  %v5747_v29 = vld [vmem:[%s7778_s23 + $0x670] sm:$0xff]  ;;  %v5748_v19 = vld [vmem:[%s7778_s23 + $0x678] sm:$0xff] }
 0x204   : > { %v2101_v47 = vsel %vm2072_vm15, %v2051_v10, 0.0  ;;  %v2124_v45 = vadd.f32 %v2123_v37, %v2099_v51  ;;  %v1822_v52 = vadd.f32 %v17373_v1, %v17372_v0  ;;  %v2054_v2 = vsub.f32 %v1958_v18, %v6828_v46  ;;  %v5745_v58 = vld [vmem:[%s7778_s23 + $0x660] sm:$0xff]  ;;  %v5746_v37 = vld [vmem:[%s7778_s23 + $0x668] sm:$0xff] }
 0x205   : > { %v2102_v35 = vsel %vm2072_vm15, %v2052_v21, 0.0  ;;  %v2131_v24 = vadd.f32 %v2130_v4, %v2100_v7  ;;  %v1823_v14 = vadd.f32 %v17375_v5, %v17374_v59  ;;  %v1824_v56 = vadd.f32 %v1814_v43, %v17376_v36  ;;  %v5749_v32 = vld [vmem:[%s7778_s23 + $0x680] sm:$0xff]  ;;  %v5750_v33 = vld [vmem:[%s7778_s23 + $0x688] sm:$0xff]  ;;  %v5751_v4 = vld [vmem:[%s7778_s23 + $0x690] sm:$0xff] }
 0x206   : > { %v1825_v25 = vadd.f32 %v1821_v54, %v17377_v27  ;;  %v2103_v18 = vsel %vm2072_vm15, %v2053_v30, 0.0  ;;  %v2104_v23 = vsel %vm2072_vm15, %v2054_v2, 0.0  ;;  %v2111_v39 = vadd.f32 %v2110_v20, %v2101_v47  ;;  %v5752_v43 = vld [vmem:[%s7778_s23 + $0x698] sm:$0xff]  ;;  %v5753_v50 = vld [vmem:[%s7778_s23 + $0x6a0] sm:$0xff]  ;;  %v5754_v11 = vld [vmem:[%s7778_s23 + $0x6a8] sm:$0xff] }
 0x207   : > { %v10909_v28 = vmul.f32 %v5733_v49, %v5733_v49  ;;  %v10911_v13 = vmul.f32 %v5734_v12, %v5734_v12  ;;  %v2118_v26 = vadd.f32 %v2117_v48, %v2102_v35  ;;  %v2125_v15 = vadd.f32 %v2124_v45, %v2103_v18  ;;  %v5755_v7 = vld [vmem:[%s7778_s23 + $0x6b0] sm:$0xff]  ;;  %v5756_v20 = vld [vmem:[%s7778_s23 + $0x6b8] sm:$0xff]  ;;  %v5757_v49 = vld [vmem:[%s7778_s23 + $0x6c0] sm:$0xff] }
 0x208   : > { %v10916_v31 = vmul.f32 %v5735_v9, %v5735_v9  ;;  %v10918_v62 = vmul.f32 %v5736_v22, %v5736_v22  ;;  %v2132_v41 = vadd.f32 %v2131_v24, %v2104_v23  ;;  %v10923_v60 = vmul.f32 %v5737_v40, %v5737_v40  ;;  %v5758_v12 = vld [vmem:[%s7778_s23 + $0x6c8] sm:$0xff]  ;;  %v5759_v9 = vld [vmem:[%s7778_s23 + $0x6d0] sm:$0xff]  ;;  %v5760_v22 = vld [vmem:[%s7778_s23 + $0x6d8] sm:$0xff] }
 0x209   : > { %v10925_v57 = vmul.f32 %v5738_v17, %v5738_v17  ;;  %v10927_v44 = vmul.f32 %v5739_v16, %v5739_v16  ;;  %v10932_v54 = vmul.f32 %v5740_v34, %v5740_v34  ;;  %v10934_v10 = vmul.f32 %v5741_v38, %v5741_v38  ;;  %v5761_v2 = vld [vmem:[%s7778_s23 + $0x6e0] sm:$0xff]  ;;  %v5762_v35 = vld [vmem:[%s7778_s23 + $0x6e8] sm:$0xff]  ;;  %v5763_v24 = vld [vmem:[%s7778_s23 + $0x6f0] sm:$0xff] }
 0x20a   : > { %v10936_v51 = vmul.f32 %v5742_v8, %v5742_v8  ;;  %v10938_v53 = vmul.f32 %v5743_v61, %v5743_v61  ;;  %v10940_v21 = vadd.f32 %v2111_v39, %v1822_v52  ;;  %v10945_v46 = vmul.f32 %v5744_v6, %v5744_v6  ;;  %v5764_v59 = vld [vmem:[%s7778_s23 + $0x6f8] sm:$0xff]  ;;  %v10983_v27 = vld [vmem:[%s7784_s19 + $0x600] sm:$0xff]  ;;  %v10989_v18 = vld [vmem:[%s7784_s19 + $0x610] sm:$0xff] }
 0x20b   : > { %v10947_v30 = vmul.f32 %v5745_v58, %v5745_v58  ;;  %v10949_v47 = vmul.f32 %v5746_v37, %v5746_v37  ;;  %v10951_v48 = vadd.f32 %v2118_v26, %v1823_v14  ;;  %v10953_v45 = vadd.f32 %v2125_v15, %v1824_v56  ;;  %v11000_v39 = vld [vmem:[%s7784_s19 + $0x618] sm:$0xff]  ;;  %v11003_v61 = vld [vmem:[%s7784_s19 + $0x620] sm:$0xff]  ;;  %v11006_v6 = vld [vmem:[%s7784_s19 + $0x628] sm:$0xff] }
 0x20c   : > { %17378 = vst [vmem:[#allocation39_spill] sm:$0xff] %v10940_v21  ;;  %v10958_v0 = vmul.f32 %v5747_v29, %v5747_v29  ;;  %v10960_v1 = vmul.f32 %v5748_v19, %v5748_v19  ;;  %v10962_v52 = vadd.f32 %v2132_v41, %v1825_v25  ;;  %v10967_v40 = vmul.f32 %v5749_v32, %v5749_v32  ;;  %v10986_v25 = vld [vmem:[%s7784_s19 + $0x608] sm:$0xff]  ;;  %v11017_v29 = vld [vmem:[%s7784_s19 + $0x630] sm:$0xff]  ;;  %v11020_v19 = vld [vmem:[%s7784_s19 + $0x638] sm:$0xff] }
 0x20d   : > { %17379 = vst [vmem:[#allocation32_spill] sm:$0xff] %v10951_v48  ;;  %17380 = vst [vmem:[#allocation21_spill] sm:$0xff] %v10953_v45  ;;  %v10969_v17 = vmul.f32 %v5750_v33, %v5750_v33  ;;  %v10971_v16 = vmul.f32 %v5751_v4, %v5751_v4  ;;  %v10974_v5 = vmul.f32 %v5752_v43, %v5752_v43  ;;  %v11023_v41 = vld [vmem:[%s7784_s19 + $0x640] sm:$0xff]  ;;  %v11082_v4 = vld [vmem:[%s7784_s19 + $0x688] sm:$0xff]  ;;  %v2274_v48 = vmul.f32 1.442695, %v10989_v18 }
 0x20e   : > { %17381 = vst [vmem:[#allocation20_spill] sm:$0xff] %v10958_v0  ;;  %17382 = vst [vmem:[#allocation28_spill] sm:$0xff] %v10960_v1  ;;  %v10976_v14 = vmul.f32 %v5753_v50, %v5753_v50  ;;  %v10978_v36 = vmul.f32 %v5754_v11, %v5754_v11  ;;  %v10980_v56 = vmul.f32 %v5755_v7, %v5755_v7  ;;  %v11034_v50 = vld [vmem:[%s7784_s19 + $0x648] sm:$0xff]  ;;  %v11037_v11 = vld [vmem:[%s7784_s19 + $0x650] sm:$0xff]  ;;  %v2278_v33 = vmul.f32 1.442695, %v11003_v61 }
 0x20f   : > { %17383 = vst [vmem:[#allocation42_spill] sm:$0xff] %v10962_v52  ;;  %17384 = vst [vmem:[#allocation14_spill] sm:$0xff] %v10967_v40  ;;  %v10991_v34 = vmul.f32 %v5756_v20, %v5756_v20  ;;  %v10993_v38 = vmul.f32 %v5757_v49, %v5757_v49  ;;  %v10995_v8 = vmul.f32 %v5758_v12, %v5758_v12  ;;  %v11040_v7 = vld [vmem:[%s7784_s19 + $0x658] sm:$0xff]  ;;  %v11071_v43 = vld [vmem:[%s7784_s19 + $0x680] sm:$0xff]  ;;  %v2272_v52 = vmul.f32 1.442695, %v10986_v25 }
 0x210   : > { %17385 = vst [vmem:[#allocation57_spill] sm:$0xff] %v10969_v17  ;;  %17386 = vst [vmem:[#allocation56_spill] sm:$0xff] %v10971_v16  ;;  %v10997_v23 = vmul.f32 %v5759_v9, %v5759_v9  ;;  %v11008_v58 = vmul.f32 %v5760_v22, %v5760_v22  ;;  %v11010_v26 = vmul.f32 %v5761_v2, %v5761_v2  ;;  %v11051_v22 = vld [vmem:[%s7784_s19 + $0x660] sm:$0xff]  ;;  %v11054_v2 = vld [vmem:[%s7784_s19 + $0x668] sm:$0xff]  ;;  %v2276_v49 = vmul.f32 1.442695, %v11000_v39 }
 0x211   : > { %17387 = vst [vmem:[#allocation19_spill] sm:$0xff] %v10974_v5  ;;  %17388 = vst [vmem:[#allocation46_spill] sm:$0xff] %v10976_v14  ;;  %v11012_v15 = vmul.f32 %v5762_v35, %v5762_v35  ;;  %v11014_v37 = vmul.f32 %v5763_v24, %v5763_v24  ;;  %v11025_v32 = vmul.f32 %v5764_v59, %v5764_v59  ;;  %v11057_v35 = vld [vmem:[%s7784_s19 + $0x670] sm:$0xff]  ;;  %v11068_v12 = vld [vmem:[%s7784_s19 + $0x678] sm:$0xff]  ;;  %v2270_v24 = vmul.f32 1.442695, %v10983_v27 }
 0x212   : > { %17389 = vst [vmem:[#allocation67_spill] sm:$0xff] %v10978_v36  ;;  %17390 = vst [vmem:[#allocation63_spill] sm:$0xff] %v10980_v56  ;;  %v11085_v9 = vld [vmem:[%s7784_s19 + $0x690] sm:$0xff]  ;;  %v11094_v59 = vld [vmem:[%s7784_s19 + $0x698] sm:$0xff]  ;;  %v2292_v55 = vmul.f32 1.442695, %v11040_v7 }
 0x213   : > { %17391 = vst [vmem:[#allocation23_spill] sm:$0xff] %v10991_v34  ;;  %17392 = vst [vmem:[#allocation16_spill] sm:$0xff] %v10993_v38  ;;  %v11097_v45 = vld [vmem:[%s7784_s19 + $0x6a0] sm:$0xff]  ;;  %v11106_v21 = vld [vmem:[%s7784_s19 + $0x6a8] sm:$0xff]  ;;  %6829 = vpow2.f32 %v2270_v24  ;;  %v2284_v24 = vmul.f32 1.442695, %v11020_v19  ;;  %v11150_v38 = vstv %s2366_s27 }
 0x214   : > { %17393 = vst [vmem:[#allocation12_spill] sm:$0xff] %v10995_v8  ;;  %17394 = vst [vmem:[#allocation25_spill] sm:$0xff] %v10997_v23  ;;  %6831 = vpow2.f32 %v2272_v52  ;;  %v11129_v5 = vld [vmem:[%s7784_s19 + $0x6c8] sm:$0xff]  ;;  %v11132_v20 = vld [vmem:[%s7784_s19 + $0x6d0] sm:$0xff]  ;;  %v2288_v52 = vmul.f32 1.442695, %v11034_v50 }
 0x215   : > { %17395 = vst [vmem:[#allocation54_spill] sm:$0xff] %v11008_v58  ;;  %17396 = vst [vmem:[#allocation58_spill] sm:$0xff] %v11010_v26  ;;  %6833 = vpow2.f32 %v2274_v48  ;;  %v2282_v26 = vmul.f32 1.442695, %v11017_v29  ;;  %v11140_v36 = vld [vmem:[%s7784_s19 + $0x6d8] sm:$0xff]  ;;  %v11162_v58 = vld [vmem:[%s7784_s19 + $0x6e8] sm:$0xff] }
 0x216   : > { %17397 = vst [vmem:[#allocation62_spill] sm:$0xff] %v11012_v15  ;;  %17398 = vst [vmem:[#allocation65_spill] sm:$0xff] %v11014_v37  ;;  %v11120_v15 = vld [vmem:[%s7784_s19 + $0x6c0] sm:$0xff]  ;;  %v2280_v37 = vmul.f32 1.442695, %v11006_v6  ;;  %6835 = vpow2.f32 %v2276_v49  ;;  %v11165_v34 = vld [vmem:[%s7784_s19 + $0x6f0] sm:$0xff] }
 0x217   : > { %17399 = vst [vmem:[#allocation24_spill] sm:$0xff] %v11025_v32  ;;  %17400 = vst [vmem:[#allocation38_spill] sm:$0xff] %v11068_v12  ;;  %v11109_v32 = vld [vmem:[%s7784_s19 + $0x6b0] sm:$0xff]  ;;  %6837 = vpow2.f32 %v2278_v33  ;;  %v2286_v48 = vmul.f32 1.442695, %v11023_v41  ;;  %v11156_v49 = vld [vmem:[%s7784_s19 + $0x6e0] sm:$0xff] }
 0x218   : > { %17401 = vst [vmem:[#allocation53_spill] sm:$0xff] %v11071_v43  ;;  %17402 = vst [vmem:[#allocation48_spill] sm:$0xff] %v11082_v4  ;;  %6839 = vpow2.f32 %v2280_v37  ;;  %v2290_v8 = vmul.f32 1.442695, %v11037_v11  ;;  %v2294_v23 = vmul.f32 1.442695, %v11051_v22 }
 0x219   : > { %17403 = vst [vmem:[#allocation44_spill] sm:$0xff] %v11085_v9  ;;  %17404 = vst [vmem:[#allocation64_spill] sm:$0xff] %v11094_v59  ;;  %6841 = vpow2.f32 %v2282_v26  ;;  %v2296_v14 = vmul.f32 1.442695, %v11054_v2  ;;  %v2298_v33 = vmul.f32 1.442695, %v11057_v35 }
 0x21a   : > { %17405 = vst [vmem:[#allocation55_spill] sm:$0xff] %v11097_v45  ;;  %17406 = vst [vmem:[#allocation41_spill] sm:$0xff] %v11106_v21  ;;  %6843 = vpow2.f32 %v2284_v24  ;;  %v2300_v37 = vmul.f32 1.442695, %v11068_v12  ;;  %v2302_v56 = vmul.f32 1.442695, %v11071_v43 }
 0x21b   : > { %17407 = vst [vmem:[#allocation66_spill] sm:$0xff] %v11109_v32  ;;  %17409 = vst [vmem:[#allocation29_spill] sm:$0xff] %v11120_v15  ;;  %v2304_v16 = vmul.f32 1.442695, %v11082_v4  ;;  %v11171_v17 = vld [vmem:[%s7784_s19 + $0x6f8] sm:$0xff]  ;;  %6845 = vpow2.f32 %v2286_v48 }
 0x21c   : > { %17410 = vst [vmem:[#allocation50_spill] sm:$0xff] %v11129_v5  ;;  %17411 = vst [vmem:[#allocation35_spill] sm:$0xff] %v11132_v20  ;;  %v2306_v26 = vmul.f32 1.442695, %v11085_v9  ;;  %v2308_v40 = vmul.f32 1.442695, %v11094_v59  ;;  %6847 = vpow2.f32 %v2288_v52 }
 0x21d   : > { %17412 = vst [vmem:[#allocation31_spill] sm:$0xff] %v11140_v36  ;;  %17413 = vst [vmem:[#allocation60_spill] sm:$0xff] %v11156_v49  ;;  %v2310_v1 = vmul.f32 1.442695, %v11097_v45  ;;  %v2312_v0 = vmul.f32 1.442695, %v11106_v21  ;;  %v6830_v43 = vpop.eup %6829  ;;  %6849 = vpow2.f32 %v2290_v8 }
 0x21e   : > { %17414 = vst [vmem:[#allocation68_spill] sm:$0xff] %v11162_v58  ;;  %17415 = vst [vmem:[#allocation61_spill] sm:$0xff] %v11165_v34  ;;  %v11178_v24 = vmul.f32 1.442695, %v11109_v32  ;;  %v11181_v12 = vmul.f32 1.442695, %v11117_v42  ;;  %v6832_v52 = vpop.eup %6831  ;;  %6851 = vpow2.f32 %v2292_v55 }
 0x21f   : > { %17416 = vst [vmem:[#allocation36_spill] sm:$0xff] %v11171_v17  ;;  %v11184_v4 = vmul.f32 1.442695, %v11120_v15  ;;  %v11187_v48 = vmul.f32 1.442695, %v11129_v5  ;;  %v17418_v42 = vld [vmem:[#allocation11_spill] sm:$0xff]  ;;  %v6834_v45 = vpop.eup %6833  ;;  %6853 = vpow2.f32 %v2294_v23 }
 0x220   : > { %v11190_v59 = vmul.f32 1.442695, %v11132_v20  ;;  %v11193_v21 = vmul.f32 1.442695, %v11140_v36  ;;  %v11196_v32 = vmul.f32 1.442695, %v11156_v49  ;;  %v2368_v8 = vadd.s32 %v11150_v38, %v17418_v42  ;;  %v6836_v9 = vpop.eup %6835 }
 0x221   : > { %v11201_v15 = vmul.f32 1.442695, %v11162_v58  ;;  %v11204_v5 = vmul.f32 1.442695, %v11165_v34  ;;  %v17420_v20 = vld [vmem:[#allocation18_spill] sm:$0xff]  ;;  %6855 = vpow2.f32 %v2296_v14  ;;  %v6838_v58 = vpop.eup %6837  ;;  %v17424_v34 = vsub.f32 %v10983_v27, %v10909_v28 }
 0x222   : > { %17417 = vst [vmem:[#allocation27_spill] sm:$0xff] %v11196_v32  ;;  %v2369_v55 = vadd.s32 %v11150_v38, %v17420_v20  ;;  %v11209_v36 = vmul.f32 1.442695, %v11171_v17  ;;  %v17422_v49 = vld [vmem:[#allocation22_spill] sm:$0xff]  ;;  %6857 = vpow2.f32 %v2298_v33  ;;  %v11224_v14 = vadd.s32 %v11150_v38, %v7891_v63 }
 0x223   : > { %17419 = vst [vmem:[#allocation13_spill] sm:$0xff] %v11204_v5  ;;  %v11213_v32 = vadd.s32 %v11150_v38, %v17422_v49  ;;  %v17423_v42 = vld [vmem:[#allocation26_spill] sm:$0xff]  ;;  %v2334_v5 = vsub.f32 %v17424_v34, %v6830_v43  ;;  %v11228_v20 = vadd.s32 %v11150_v38, %v17206_v3  ;;  %v6840_v49 = vpop.eup %6839  ;;  %6859 = vpow2.f32 %v2300_v37 }
 0x224   : > { %17421 = vst [vmem:[#allocation47_spill] sm:$0xff] %v11209_v36  ;;  %v11217_v23 = vadd.s32 %v11150_v38, %v17423_v42  ;;  %v17425_v42 = vsub.f32 %v10986_v25, %v10911_v13  ;;  %v17426_v33 = vsub.f32 %v11003_v61, %v10923_v60  ;;  %vm2376_vm0 = vcmp.lt.s32.totalorder %v2368_v8, 2560  ;;  %v6842_v28 = vpop.eup %6841 }
 0x225   : > { %6861 = vpow2.f32 %v2302_v56  ;;  %v17427_v27 = vsub.f32 %v10989_v18, %v10916_v31  ;;  %v17428_v43 = vsub.f32 %v11006_v6, %v10925_v57  ;;  %vm2377_vm1 = vcmp.lt.s32.totalorder %v2369_v55, 2560  ;;  %v6844_v37 = vpop.eup %6843 }
 0x226   : > { %v2335_v17 = vsub.f32 %v17425_v42, %v6832_v52  ;;  %v2338_v36 = vsub.f32 %v17426_v33, %v6838_v58  ;;  %6863 = vpow2.f32 %v2304_v16  ;;  %v17429_v42 = vsub.f32 %v11000_v39, %v10918_v62  ;;  %v6846_v56 = vpop.eup %6845 }
 0x227   : > { %v2336_v34 = vsub.f32 %v17427_v27, %v6834_v45  ;;  %v2339_v3 = vsub.f32 %v17428_v43, %v6840_v49  ;;  %v17430_v60 = vsub.f32 %v11017_v29, %v10927_v44  ;;  %vm2378_vm2 = vcmp.lt.s32.totalorder %v11213_v32, 2560  ;;  %v6848_v16 = vpop.eup %6847  ;;  %v17444_v43 = vld [vmem:[#allocation14_spill] sm:$0xff] }
 0x228   : > { %v2337_v13 = vsub.f32 %v17429_v42, %v6836_v9  ;;  %6865 = vpow2.f32 %v2306_v26  ;;  %v17431_v31 = vsub.f32 %v11020_v19, %v10932_v54  ;;  %vm2379_vm3 = vcmp.lt.s32.totalorder %v11217_v23, 2560  ;;  %v6850_v61 = vpop.eup %6849 }
 0x229   : > { %v2340_v25 = vsub.f32 %v17430_v60, %v6842_v28  ;;  %v2384_v45 = vsel %vm2376_vm0, %v2334_v5, 0.0  ;;  %6867 = vpow2.f32 %v2308_v40  ;;  %v17432_v62 = vsub.f32 %v11023_v41, %v10934_v10  ;;  %v6852_v58 = vpop.eup %6851 }
 0x22a   : > { %v2341_v57 = vsub.f32 %v17431_v31, %v6844_v37  ;;  %v2385_v44 = vsel %vm2376_vm0, %v2335_v17, 0.0  ;;  %v2388_v39 = vsel %vm2377_vm1, %v2338_v36, 0.0  ;;  %6869 = vpow2.f32 %v2310_v1  ;;  %v6854_v29 = vpop.eup %6853 }
 0x22b   : > { %v2342_v18 = vsub.f32 %v17432_v62, %v6846_v56  ;;  %v17433_v54 = vsub.f32 %v11034_v50, %v10936_v51  ;;  %vm2380_vm4 = vcmp.lt.s32.totalorder %v11224_v14, 2560  ;;  %v2386_v5 = vsel %vm2376_vm0, %v2336_v34, 0.0  ;;  %v6856_v50 = vpop.eup %6855 }
 0x22c   : > { %v2389_v40 = vsel %vm2377_vm1, %v2339_v3, 0.0  ;;  %6871 = vpow2.f32 %v2312_v0  ;;  %v17434_v10 = vsub.f32 %v11037_v11, %v10938_v53  ;;  %v2387_v36 = vsel %vm2376_vm0, %v2337_v13, 0.0  ;;  %v6858_v49 = vpop.eup %6857 }
 0x22d   : > { %v2343_v6 = vsub.f32 %v17433_v54, %v6848_v16  ;;  %v2390_v1 = vsel %vm2377_vm1, %v2340_v25, 0.0  ;;  %6873 = vpow2.f32 %v11178_v24  ;;  %v17435_v51 = vsub.f32 %v11040_v7, %v10945_v46  ;;  %v17446_v25 = vld [vmem:[#allocation27_spill] sm:$0xff] }
 0x22e   : > { %v2344_v17 = vsub.f32 %v17434_v10, %v6850_v61  ;;  %v2391_v41 = vsel %vm2377_vm1, %v2341_v57, 0.0  ;;  %v2416_v3 = vadd.f32 %v2388_v39, %v2384_v45  ;;  %6875 = vpow2.f32 %v11181_v12  ;;  %v6860_v12 = vpop.eup %6859  ;;  %v17448_v45 = vld [vmem:[#allocation57_spill] sm:$0xff] }
 0x22f   : > { %v2345_v19 = vsub.f32 %v17435_v51, %v6852_v58  ;;  %v17436_v53 = vsub.f32 %v11051_v22, %v10947_v30  ;;  %v2392_v11 = vsel %vm2378_vm2, %v2342_v18, 0.0  ;;  %v2423_v9 = vadd.f32 %v2389_v40, %v2385_v44  ;;  %v17438_v30 = vld [vmem:[#allocation20_spill] sm:$0xff]  ;;  %v17455_v58 = vld [vmem:[#allocation19_spill] sm:$0xff] }
 0x230   : > { %6877 = vpow2.f32 %v11184_v4  ;;  %v17437_v46 = vsub.f32 %v11054_v2, %v10949_v47  ;;  %v2393_v26 = vsel %vm2378_vm2, %v2343_v6, 0.0  ;;  %v2430_v24 = vadd.f32 %v2390_v1, %v2386_v5  ;;  %v6862_v4 = vpop.eup %6861  ;;  %v17440_v47 = vld [vmem:[#allocation38_spill] sm:$0xff]  ;;  %v17441_v2 = vld [vmem:[#allocation28_spill] sm:$0xff]  ;;  %v17453_v5 = vld [vmem:[#allocation13_spill] sm:$0xff] }
 0x231   : > { %v2346_v0 = vsub.f32 %v17436_v53, %v6854_v29  ;;  %6879 = vpow2.f32 %v11187_v48  ;;  %v17439_v22 = vsub.f32 %v11057_v35, %v17438_v30  ;;  %v2394_v8 = vsel %vm2378_vm2, %v2344_v17, 0.0  ;;  %v6864_v48 = vpop.eup %6863  ;;  %v17443_v35 = vld [vmem:[#allocation53_spill] sm:$0xff]  ;;  %v17450_v18 = vld [vmem:[#allocation44_spill] sm:$0xff]  ;;  %v17457_v29 = vld [vmem:[#allocation47_spill] sm:$0xff] }
 0x232   : > { %v2347_v7 = vsub.f32 %v17437_v46, %v6856_v50  ;;  %v2437_v55 = vadd.f32 %v2391_v41, %v2387_v36  ;;  %6881 = vpow2.f32 %v11190_v59  ;;  %v17442_v33 = vsub.f32 %v17440_v47, %v17441_v2  ;;  %v6866_v59 = vpop.eup %6865  ;;  %v17451_v44 = vld [vmem:[#allocation56_spill] sm:$0xff]  ;;  %v17458_v51 = vld [vmem:[#allocation55_spill] sm:$0xff]  ;;  %v17461_v50 = vld [vmem:[#allocation37_spill] sm:$0xff] }
 0x233   : > { %v2348_v52 = vsub.f32 %v17439_v22, %v6858_v49  ;;  %v2395_v27 = vsel %vm2378_vm2, %v2345_v19, 0.0  ;;  %v2417_v34 = vadd.f32 %v2416_v3, %v2392_v11  ;;  %6883 = vpow2.f32 %v11193_v21  ;;  %v6868_v57 = vpop.eup %6867  ;;  %v17447_v21 = vld [vmem:[#allocation48_spill] sm:$0xff]  ;;  %v17459_v19 = vld [vmem:[#allocation46_spill] sm:$0xff]  ;;  %v17463_v49 = vld [vmem:[#allocation67_spill] sm:$0xff] }
 0x234   : > { %v2349_v28 = vsub.f32 %v17442_v33, %v6860_v12  ;;  %v17445_v37 = vsub.f32 %v17443_v35, %v17444_v43  ;;  %v2396_v13 = vsel %vm2379_vm3, %v2346_v0, 0.0  ;;  %v2424_v60 = vadd.f32 %v2423_v9, %v2393_v26  ;;  %v6870_v6 = vpop.eup %6869  ;;  %v17454_v40 = vld [vmem:[#allocation64_spill] sm:$0xff]  ;;  %v17462_v9 = vld [vmem:[#allocation41_spill] sm:$0xff]  ;;  %v17465_v12 = vld [vmem:[#allocation66_spill] sm:$0xff] }
 0x235   : > { %6885 = vpow2.f32 %v17446_v25  ;;  %v2397_v56 = vsel %vm2379_vm3, %v2347_v7, 0.0  ;;  %v2398_v32 = vsel %vm2379_vm3, %v2348_v52, 0.0  ;;  %v2431_v31 = vadd.f32 %v2430_v24, %v2394_v8  ;;  %v17466_v30 = vld [vmem:[#allocation63_spill] sm:$0xff]  ;;  %v17468_v2 = vld [vmem:[#allocation58_spill] sm:$0xff]  ;;  %v17469_v33 = vld [vmem:[#allocation60_spill] sm:$0xff] }
 0x236   : > { %v2350_v42 = vsub.f32 %v17445_v37, %v6862_v4  ;;  %6887 = vpow2.f32 %v11201_v15  ;;  %v17449_v16 = vsub.f32 %v17447_v21, %v17448_v45  ;;  %v17452_v39 = vsub.f32 %v17450_v18, %v17451_v44  ;;  %v6872_v1 = vpop.eup %6871  ;;  %v17475_v25 = vld [vmem:[#allocation29_spill] sm:$0xff] }
 0x237   : > { %v2438_v54 = vadd.f32 %v2437_v55, %v2395_v27  ;;  %6889 = vpow2.f32 %v17453_v5  ;;  %v17456_v10 = vsub.f32 %v17454_v40, %v17455_v58  ;;  %v2399_v36 = vsel %vm2379_vm3, %v2349_v28, 0.0  ;;  %v6874_v11 = vpop.eup %6873  ;;  %v17470_v27 = vld [vmem:[#allocation15_spill] sm:$0xff]  ;;  %v17483_v40 = vld [vmem:[#allocation25_spill] sm:$0xff] }
 0x238   : > { %v2351_v62 = vsub.f32 %v17449_v16, %v6864_v48  ;;  %v2352_v61 = vsub.f32 %v17452_v39, %v6866_v59  ;;  %v2418_v15 = vadd.f32 %v2417_v34, %v2396_v13  ;;  %6891 = vpow2.f32 %v17457_v29  ;;  %v6876_v24 = vpop.eup %6875  ;;  %v17471_v34 = vld [vmem:[#allocation23_spill] sm:$0xff]  ;;  %v17473_v13 = vld [vmem:[#allocation62_spill] sm:$0xff]  ;;  %v17485_v29 = vld [vmem:[#allocation65_spill] sm:$0xff] }
 0x239   : > { %v2353_v17 = vsub.f32 %v17456_v10, %v6868_v57  ;;  %v17460_v41 = vsub.f32 %v17458_v51, %v17459_v19  ;;  %v11329_v53 = vadd.s32 %v11150_v38, %v17461_v50  ;;  %v2400_v0 = vsel %vm2380_vm4, %v2350_v42, 0.0  ;;  %v17478_v57 = vld [vmem:[#allocation40_spill] sm:$0xff]  ;;  %v17479_v39 = vld [vmem:[#allocation50_spill] sm:$0xff]  ;;  %v17482_v5 = vld [vmem:[#allocation35_spill] sm:$0xff] }
 0x23a   : > { %v17464_v23 = vsub.f32 %v17462_v9, %v17463_v49  ;;  %vm2381_vm5 = vcmp.lt.s32.totalorder %v11228_v20, 2560  ;;  %v2425_v7 = vadd.f32 %v2424_v60, %v2397_v56  ;;  %v2432_v26 = vadd.f32 %v2431_v31, %v2398_v32  ;;  %v6878_v47 = vpop.eup %6877  ;;  %v17474_v60 = vld [vmem:[#allocation68_spill] sm:$0xff]  ;;  %v17486_v51 = vld [vmem:[#allocation61_spill] sm:$0xff]  ;;  %v5800_v20 = vld [vmem:[%s7778_s23 + $0x718] sm:$0xff] }
 0x23b   : > { %v2354_v3 = vsub.f32 %v17460_v41, %v6870_v6  ;;  %v17467_v22 = vsub.f32 %v17465_v12, %v17466_v30  ;;  %v2401_v8 = vsel %vm2380_vm4, %v2351_v62, 0.0  ;;  %v2402_v55 = vsel %vm2380_vm4, %v2352_v61, 0.0  ;;  %v6880_v42 = vpop.eup %6879  ;;  %v17476_v56 = vld [vmem:[#allocation16_spill] sm:$0xff]  ;;  %v17487_v41 = vld [vmem:[#allocation31_spill] sm:$0xff]  ;;  %v5799_v30 = vld [vmem:[%s7778_s23 + $0x710] sm:$0xff] }
 0x23c   : > { %v2355_v46 = vsub.f32 %v17464_v23, %v6872_v1  ;;  %v2439_v4 = vadd.f32 %v2438_v54, %v2399_v36  ;;  %v2266_v28 = vsub.f32 %v17469_v33, %v17468_v2  ;;  %v17472_v48 = vsub.f32 %v17470_v27, %v17471_v34  ;;  %v6882_v14 = vpop.eup %6881  ;;  %v17480_v61 = vld [vmem:[#allocation12_spill] sm:$0xff]  ;;  %v5797_v36 = vld [vmem:[%s7778_s23 + $0x700] sm:$0xff] }
 0x23d   : > { %v2356_v52 = vsub.f32 %v17467_v22, %v6874_v11  ;;  %v2403_v43 = vsel %vm2380_vm4, %v2353_v17, 0.0  ;;  %v2419_v37 = vadd.f32 %v2418_v15, %v2400_v0  ;;  %v2267_v59 = vsub.f32 %v17474_v60, %v17473_v13  ;;  %v6884_v44 = vpop.eup %6883  ;;  %v5798_v15 = vld [vmem:[%s7778_s23 + $0x708] sm:$0xff] }
 0x23e   : > { %v2357_v35 = vsub.f32 %v17472_v48, %v6876_v24  ;;  %v17477_v32 = vsub.f32 %v17475_v25, %v17476_v56  ;;  %v11358_v21 = vadd.s32 %v11150_v38, %v17478_v57  ;;  %v2404_v45 = vsel %vm2381_vm5, %v2354_v3, 0.0  ;;  %v17488_v3 = vld [vmem:[#allocation54_spill] sm:$0xff]  ;;  %v5807_v25 = vld [vmem:[%s7778_s23 + $0x750] sm:$0xff] }
 0x23f   : > { %vm2382_vm6 = vcmp.lt.s32.totalorder %v11329_v53, 2560  ;;  %v2405_v16 = vsel %vm2381_vm5, %v2355_v46, 0.0  ;;  %v2426_v62 = vadd.f32 %v2425_v7, %v2401_v8  ;;  %v2433_v18 = vadd.f32 %v2432_v26, %v2402_v55  ;;  %v6886_v1 = vpop.eup %6885  ;;  %v17490_v46 = vld [vmem:[#allocation24_spill] sm:$0xff]  ;;  %v5801_v55 = vld [vmem:[%s7778_s23 + $0x720] sm:$0xff]  ;;  %v5808_v56 = vld [vmem:[%s7778_s23 + $0x758] sm:$0xff] }
 0x240   : > { %v2358_v31 = vsub.f32 %v17477_v32, %v6878_v47  ;;  %v17481_v54 = vsub.f32 %v17479_v39, %v17480_v61  ;;  %v17484_v38 = vsub.f32 %v17482_v5, %v17483_v40  ;;  %v2406_v10 = vsel %vm2381_vm5, %v2356_v52, 0.0  ;;  %v6888_v23 = vpop.eup %6887  ;;  %v17491_v7 = vld [vmem:[#allocation36_spill] sm:$0xff]  ;;  %v5811_v53 = vld [vmem:[%s7778_s23 + $0x770] sm:$0xff]  ;;  %v5812_v61 = vld [vmem:[%s7778_s23 + $0x778] sm:$0xff] }
 0x241   : > { %v2440_v17 = vadd.f32 %v2439_v4, %v2403_v43  ;;  %v2268_v19 = vsub.f32 %v17486_v51, %v17485_v29  ;;  %v17489_v0 = vsub.f32 %v17487_v41, %v17488_v3  ;;  %v2407_v9 = vsel %vm2381_vm5, %v2357_v35, 0.0  ;;  %v6890_v22 = vpop.eup %6889  ;;  %v5802_v4 = vld [vmem:[%s7778_s23 + $0x728] sm:$0xff]  ;;  %v5803_v35 = vld [vmem:[%s7778_s23 + $0x730] sm:$0xff]  ;;  %v5804_v43 = vld [vmem:[%s7778_s23 + $0x738] sm:$0xff] }
 0x242   : > { %v2359_v6 = vsub.f32 %v17481_v54, %v6880_v42  ;;  %v2360_v58 = vsub.f32 %v17484_v38, %v6882_v14  ;;  %v2420_v49 = vadd.f32 %v2419_v37, %v2404_v45  ;;  %v2269_v26 = vsub.f32 %v17491_v7, %v17490_v46  ;;  %v6892_v33 = vpop.eup %6891  ;;  %v5805_v37 = vld [vmem:[%s7778_s23 + $0x740] sm:$0xff]  ;;  %v5819_v41 = vld [vmem:[%s7778_s23 + $0x7b0] sm:$0xff]  ;;  %v5820_v3 = vld [vmem:[%s7778_s23 + $0x7b8] sm:$0xff] }
 0x243   : > { %v2361_v11 = vsub.f32 %v17489_v0, %v6884_v44  ;;  %v2362_v24 = vsub.f32 %v2266_v28, %v6886_v1  ;;  %vm2383_vm7 = vcmp.lt.s32.totalorder %v11358_v21, 2560  ;;  %v2408_v12 = vsel %vm2382_vm6, %v2358_v31, 0.0  ;;  %v5809_v14 = vld [vmem:[%s7778_s23 + $0x760] sm:$0xff]  ;;  %v5823_v46 = vld [vmem:[%s7778_s23 + $0x7d0] sm:$0xff]  ;;  %v11635_v57 = vld [vmem:[%s7784_s19 + $0x7d8] sm:$0xff] }
 0x244   : > { %v2427_v52 = vadd.f32 %v2426_v62, %v2405_v16  ;;  %v2434_v8 = vadd.f32 %v2433_v18, %v2406_v10  ;;  %v11391_v47 = vmul.f32 %v5797_v36, %v5797_v36  ;;  %v11393_v2 = vmul.f32 %v5798_v15, %v5798_v15  ;;  %v5810_v16 = vld [vmem:[%s7778_s23 + $0x768] sm:$0xff]  ;;  %v5813_v54 = vld [vmem:[%s7778_s23 + $0x780] sm:$0xff]  ;;  %v5815_v10 = vld [vmem:[%s7778_s23 + $0x790] sm:$0xff]  ;;  %17529 = vst [vmem:[#allocation12_spill] sm:$0xff] %v11635_v57 }
 0x245   : > { %v2363_v28 = vsub.f32 %v2267_v59, %v6888_v23  ;;  %v2409_v27 = vsel %vm2382_vm6, %v2359_v6, 0.0  ;;  %v2410_v34 = vsel %vm2382_vm6, %v2360_v58, 0.0  ;;  %v2441_v48 = vadd.f32 %v2440_v17, %v2407_v9  ;;  %v5806_v59 = vld [vmem:[%s7778_s23 + $0x748] sm:$0xff]  ;;  %v5816_v17 = vld [vmem:[%s7778_s23 + $0x798] sm:$0xff]  ;;  %v5817_v36 = vld [vmem:[%s7778_s23 + $0x7a0] sm:$0xff] }
 0x246   : > { %v2364_v42 = vsub.f32 %v2268_v19, %v6890_v22  ;;  %v2411_v13 = vsel %vm2382_vm6, %v2361_v11, 0.0  ;;  %v2421_v60 = vadd.f32 %v2420_v49, %v2408_v12  ;;  %v11407_v32 = vmul.f32 %v5799_v30, %v5799_v30  ;;  %v5814_v6 = vld [vmem:[%s7778_s23 + $0x788] sm:$0xff]  ;;  %v5821_v49 = vld [vmem:[%s7778_s23 + $0x7c0] sm:$0xff]  ;;  %v5824_v12 = vld [vmem:[%s7778_s23 + $0x7d8] sm:$0xff] }
 0x247   : > { %v2365_v31 = vsub.f32 %v2269_v26, %v6892_v33  ;;  %v2412_v45 = vsel %vm2383_vm7, %v2362_v24, 0.0  ;;  %v11414_v62 = vmul.f32 %v5800_v20, %v5800_v20  ;;  %v11416_v18 = vmul.f32 %v5801_v55, %v5801_v55  ;;  %v5818_v19 = vld [vmem:[%s7778_s23 + $0x7a8] sm:$0xff]  ;;  %v5825_v30 = vld [vmem:[%s7778_s23 + $0x7e0] sm:$0xff]  ;;  %v5827_v55 = vld [vmem:[%s7778_s23 + $0x7f0] sm:$0xff] }
 0x248   : > { %v11418_v44 = vadd.f32 %v2427_v52, %v2409_v27  ;;  %v11420_v39 = vadd.f32 %v2434_v8, %v2410_v34  ;;  %v11425_v5 = vmul.f32 %v5802_v4, %v5802_v4  ;;  %v11427_v40 = vmul.f32 %v5803_v35, %v5803_v35  ;;  %v5822_v23 = vld [vmem:[%s7778_s23 + $0x7c8] sm:$0xff]  ;;  %v5828_v4 = vld [vmem:[%s7778_s23 + $0x7f8] sm:$0xff]  ;;  %v11482_v33 = vld [vmem:[%s7784_s19 + $0x700] sm:$0xff] }
 0x249   : > { %v11431_v38 = vsel %vm2383_vm7, %v2363_v28, 0.0  ;;  %v11433_v58 = vadd.f32 %v2441_v48, %v2411_v13  ;;  %v11438_v15 = vmul.f32 %v5804_v43, %v5804_v43  ;;  %v11440_v1 = vmul.f32 %v5805_v37, %v5805_v37  ;;  %v5826_v22 = vld [vmem:[%s7778_s23 + $0x7e8] sm:$0xff]  ;;  %v11496_v43 = vld [vmem:[%s7784_s19 + $0x710] sm:$0xff]  ;;  %v11499_v37 = vld [vmem:[%s7784_s19 + $0x718] sm:$0xff] }
 0x24a   : > { %17492 = vst [vmem:[#allocation45_spill] sm:$0xff] %v11418_v44  ;;  %17493 = vst [vmem:[#allocation17_spill] sm:$0xff] %v11420_v39  ;;  %v11444_v29 = vsel %vm2383_vm7, %v2364_v42, 0.0  ;;  %v11446_v51 = vadd.f32 %v2421_v60, %v2412_v45  ;;  %v11451_v0 = vmul.f32 %v5806_v59, %v5806_v59  ;;  %v11453_v11 = vmul.f32 %v5807_v25, %v5807_v25  ;;  %v11493_v35 = vld [vmem:[%s7784_s19 + $0x708] sm:$0xff]  ;;  %v11510_v25 = vld [vmem:[%s7784_s19 + $0x720] sm:$0xff] }
 0x24b   : > { %17494 = vst [vmem:[#allocation59_spill] sm:$0xff] %v11431_v38  ;;  %17495 = vst [vmem:[#allocation49_spill] sm:$0xff] %v11433_v58  ;;  %v11457_v9 = vsel %vm2383_vm7, %v2365_v31, 0.0  ;;  %v11462_v7 = vmul.f32 %v5808_v56, %v5808_v56  ;;  %v11464_v26 = vmul.f32 %v5809_v14, %v5809_v14  ;;  %v11466_v24 = vmul.f32 %v5810_v16, %v5810_v16  ;;  %v11513_v56 = vld [vmem:[%s7784_s19 + $0x728] sm:$0xff]  ;;  %v11516_v31 = vld [vmem:[%s7784_s19 + $0x730] sm:$0xff] }
 0x24c   : > { %17496 = vst [vmem:[#allocation51_spill] sm:$0xff] %v11444_v29  ;;  %17497 = vst [vmem:[#allocation43_spill] sm:$0xff] %v11446_v51  ;;  %v11471_v21 = vmul.f32 %v5811_v53, %v5811_v53  ;;  %v11473_v52 = vmul.f32 %v5812_v61, %v5812_v61  ;;  %v11475_v8 = vmul.f32 %v5813_v54, %v5813_v54  ;;  %v11527_v61 = vld [vmem:[%s7784_s19 + $0x738] sm:$0xff]  ;;  %v11530_v54 = vld [vmem:[%s7784_s19 + $0x740] sm:$0xff] }
 0x24d   : > { %17498 = vst [vmem:[#allocation52_spill] sm:$0xff] %v11457_v9  ;;  %17499 = vst [vmem:[#allocation33_spill] sm:$0xff] %v11466_v24  ;;  %v11477_v20 = vmul.f32 %v5814_v6, %v5814_v6  ;;  %v11484_v28 = vmul.f32 %v5815_v10, %v5815_v10  ;;  %v11486_v27 = vmul.f32 %v5816_v17, %v5816_v17  ;;  %v11533_v6 = vld [vmem:[%s7784_s19 + $0x748] sm:$0xff]  ;;  %v11584_v51 = vld [vmem:[%s7784_s19 + $0x790] sm:$0xff] }
 0x24e   : > { %17500 = vst [vmem:[#allocation20_spill] sm:$0xff] %v11471_v21  ;;  %17501 = vst [vmem:[#allocation38_spill] sm:$0xff] %v11473_v52  ;;  %v11488_v34 = vmul.f32 %v5817_v36, %v5817_v36  ;;  %v11490_v48 = vmul.f32 %v5818_v19, %v5818_v19  ;;  %v11501_v42 = vmul.f32 %v5819_v41, %v5819_v41  ;;  %v11544_v41 = vld [vmem:[%s7784_s19 + $0x750] sm:$0xff]  ;;  %v11578_v19 = vld [vmem:[%s7784_s19 + $0x780] sm:$0xff]  ;;  %v2617_v52 = vmul.f32 1.442695, %v11584_v51 }
 0x24f   : > { %17502 = vst [vmem:[#allocation28_spill] sm:$0xff] %v11475_v8  ;;  %17503 = vst [vmem:[#allocation53_spill] sm:$0xff] %v11477_v20  ;;  %v11503_v13 = vmul.f32 %v5820_v3, %v5820_v3  ;;  %v11505_v60 = vmul.f32 %v5821_v49, %v5821_v49  ;;  %v11507_v59 = vmul.f32 %v5822_v23, %v5822_v23  ;;  %v11547_v3 = vld [vmem:[%s7784_s19 + $0x758] sm:$0xff]  ;;  %v11550_v49 = vld [vmem:[%s7784_s19 + $0x760] sm:$0xff] }
 0x250   : > { %17504 = vst [vmem:[#allocation14_spill] sm:$0xff] %v11484_v28  ;;  %17505 = vst [vmem:[#allocation27_spill] sm:$0xff] %v11486_v27  ;;  %v11518_v45 = vmul.f32 %v5823_v46, %v5823_v46  ;;  %v11520_v14 = vmul.f32 %v5824_v12, %v5824_v12  ;;  %v11522_v16 = vmul.f32 %v5825_v30, %v5825_v30  ;;  %v11581_v36 = vld [vmem:[%s7784_s19 + $0x788] sm:$0xff]  ;;  %v11595_v58 = vld [vmem:[%s7784_s19 + $0x798] sm:$0xff]  ;;  %v2581_v12 = vmul.f32 1.442695, %v11482_v33 }
 0x251   : > { %17506 = vst [vmem:[#allocation48_spill] sm:$0xff] %v11488_v34  ;;  %17507 = vst [vmem:[#allocation57_spill] sm:$0xff] %v11490_v48  ;;  %v11524_v53 = vmul.f32 %v5826_v22, %v5826_v22  ;;  %v11535_v10 = vmul.f32 %v5827_v55, %v5827_v55  ;;  %v11537_v17 = vmul.f32 %v5828_v4, %v5828_v4  ;;  %v11561_v22 = vld [vmem:[%s7784_s19 + $0x768] sm:$0xff]  ;;  %v11564_v55 = vld [vmem:[%s7784_s19 + $0x770] sm:$0xff]  ;;  %v2583_v48 = vmul.f32 1.442695, %v11493_v35 }
 0x252   : > { %17508 = vst [vmem:[#allocation44_spill] sm:$0xff] %v11501_v42  ;;  %17509 = vst [vmem:[#allocation56_spill] sm:$0xff] %v11503_v13  ;;  %v11567_v4 = vld [vmem:[%s7784_s19 + $0x778] sm:$0xff]  ;;  %v11598_v9 = vld [vmem:[%s7784_s19 + $0x7a0] sm:$0xff]  ;;  %v2585_v34 = vmul.f32 1.442695, %v11496_v43  ;;  %6893 = vpow2.f32 %v2581_v12  ;;  %v11668_v46 = vstv %s2677_s29 }
 0x253   : > { %17510 = vst [vmem:[#allocation13_spill] sm:$0xff] %v11505_v60  ;;  %17511 = vst [vmem:[#allocation64_spill] sm:$0xff] %v11507_v59  ;;  %v11601_v39 = vld [vmem:[%s7784_s19 + $0x7a8] sm:$0xff]  ;;  %v11612_v29 = vld [vmem:[%s7784_s19 + $0x7b0] sm:$0xff]  ;;  %v2587_v27 = vmul.f32 1.442695, %v11499_v37  ;;  %6895 = vpow2.f32 %v2583_v48 }
 0x254   : > { %17512 = vst [vmem:[#allocation19_spill] sm:$0xff] %v11518_v45  ;;  %17513 = vst [vmem:[#allocation47_spill] sm:$0xff] %v11520_v14  ;;  %v11615_v44 = vld [vmem:[%s7784_s19 + $0x7b8] sm:$0xff]  ;;  %v11618_v38 = vld [vmem:[%s7784_s19 + $0x7c0] sm:$0xff]  ;;  %v2589_v60 = vmul.f32 1.442695, %v11510_v25  ;;  %6897 = vpow2.f32 %v2585_v34 }
 0x255   : > { %17514 = vst [vmem:[#allocation55_spill] sm:$0xff] %v11522_v16  ;;  %17515 = vst [vmem:[#allocation46_spill] sm:$0xff] %v11524_v53  ;;  %v11629_v23 = vld [vmem:[%s7784_s19 + $0x7c8] sm:$0xff]  ;;  %v11651_v20 = vld [vmem:[%s7784_s19 + $0x7e0] sm:$0xff]  ;;  %v2591_v13 = vmul.f32 1.442695, %v11513_v56  ;;  %6899 = vpow2.f32 %v2587_v27 }
 0x256   : > { %17516 = vst [vmem:[#allocation41_spill] sm:$0xff] %v11535_v10  ;;  %17517 = vst [vmem:[#allocation67_spill] sm:$0xff] %v11537_v17  ;;  %v11632_v10 = vld [vmem:[%s7784_s19 + $0x7d0] sm:$0xff]  ;;  %v11654_v17 = vld [vmem:[%s7784_s19 + $0x7e8] sm:$0xff]  ;;  %v2593_v42 = vmul.f32 1.442695, %v11516_v31  ;;  %6901 = vpow2.f32 %v2589_v60 }
 0x257   : > { %17518 = vst [vmem:[#allocation66_spill] sm:$0xff] %v11564_v55  ;;  %17519 = vst [vmem:[#allocation63_spill] sm:$0xff] %v11578_v19  ;;  %v2595_v28 = vmul.f32 1.442695, %v11527_v61  ;;  %v2597_v12 = vmul.f32 1.442695, %v11530_v54  ;;  %6903 = vpow2.f32 %v2591_v13 }
 0x258   : > { %17520 = vst [vmem:[#allocation58_spill] sm:$0xff] %v11584_v51  ;;  %17521 = vst [vmem:[#allocation60_spill] sm:$0xff] %v11595_v58  ;;  %v2599_v30 = vmul.f32 1.442695, %v11533_v6  ;;  %v2601_v16 = vmul.f32 1.442695, %v11544_v41  ;;  %6905 = vpow2.f32 %v2593_v42 }
 0x259   : > { %17522 = vst [vmem:[#allocation15_spill] sm:$0xff] %v11598_v9  ;;  %17523 = vst [vmem:[#allocation23_spill] sm:$0xff] %v11601_v39  ;;  %v2603_v48 = vmul.f32 1.442695, %v11547_v3  ;;  %v2605_v59 = vmul.f32 1.442695, %v11550_v49  ;;  %6907 = vpow2.f32 %v2595_v28 }
 0x25a   : > { %17524 = vst [vmem:[#allocation62_spill] sm:$0xff] %v11612_v29  ;;  %17525 = vst [vmem:[#allocation68_spill] sm:$0xff] %v11615_v44  ;;  %v2607_v34 = vmul.f32 1.442695, %v11561_v22  ;;  %v11677_v53 = vld [vmem:[%s7784_s19 + $0x7f0] sm:$0xff]  ;;  %v11683_v8 = vld [vmem:[%s7784_s19 + $0x7f8] sm:$0xff]  ;;  %6909 = vpow2.f32 %v2597_v12 }
 0x25b   : > { %17526 = vst [vmem:[#allocation29_spill] sm:$0xff] %v11618_v38  ;;  %17527 = vst [vmem:[#allocation16_spill] sm:$0xff] %v11629_v23  ;;  %v2609_v14 = vmul.f32 1.442695, %v11564_v55  ;;  %v2611_v27 = vmul.f32 1.442695, %v11567_v4  ;;  %6911 = vpow2.f32 %v2599_v30 }
 0x25c   : > { %17528 = vst [vmem:[#allocation50_spill] sm:$0xff] %v11632_v10  ;;  %17530 = vst [vmem:[#allocation35_spill] sm:$0xff] %v11651_v20  ;;  %v2613_v45 = vmul.f32 1.442695, %v11578_v19  ;;  %v2615_v60 = vmul.f32 1.442695, %v11581_v36  ;;  %v6894_v12 = vpop.eup %6893  ;;  %6913 = vpow2.f32 %v2601_v16 }
 0x25d   : > { %17531 = vst [vmem:[#allocation25_spill] sm:$0xff] %v11654_v17  ;;  %17532 = vst [vmem:[#allocation65_spill] sm:$0xff] %v11677_v53  ;;  %v2619_v21 = vmul.f32 1.442695, %v11595_v58  ;;  %v2621_v24 = vmul.f32 1.442695, %v11598_v9  ;;  %v6896_v30 = vpop.eup %6895  ;;  %6915 = vpow2.f32 %v2603_v48  ;;  %v11739_v48 = vadd.s32 %v11668_v46, %v7891_v63 }
 0x25e   : > { %17533 = vst [vmem:[#allocation61_spill] sm:$0xff] %v11683_v8  ;;  %v11690_v13 = vmul.f32 1.442695, %v11601_v39  ;;  %v11693_v55 = vmul.f32 1.442695, %v11612_v29  ;;  %v17534_v9 = vld [vmem:[#allocation11_spill] sm:$0xff]  ;;  %6917 = vpow2.f32 %v2605_v59  ;;  %v17543_v59 = vsub.f32 %v11496_v43, %v11407_v32 }
 0x25f   : > { %v11696_v19 = vmul.f32 1.442695, %v11615_v44  ;;  %v11699_v42 = vmul.f32 1.442695, %v11618_v38  ;;  %v11702_v51 = vmul.f32 1.442695, %v11629_v23  ;;  %v2679_v29 = vadd.s32 %v11668_v46, %v17534_v9 }
 0x260   : > { %v11705_v28 = vmul.f32 1.442695, %v11632_v10  ;;  %v11708_v39 = vmul.f32 1.442695, %v11635_v57  ;;  %v11713_v44 = vmul.f32 1.442695, %v11651_v20  ;;  %v6898_v20 = vpop.eup %6897  ;;  %6919 = vpow2.f32 %v2607_v34 }
 0x261   : > { %v11716_v38 = vmul.f32 1.442695, %v11654_v17  ;;  %v11719_v23 = vmul.f32 1.442695, %v11677_v53  ;;  %v11722_v10 = vmul.f32 1.442695, %v11683_v8  ;;  %v17540_v17 = vsub.f32 %v11482_v33, %v11391_v47  ;;  %v6900_v8 = vpop.eup %6899 }
 0x262   : > { %v17538_v57 = vld [vmem:[#allocation18_spill] sm:$0xff]  ;;  %vm2687_vm8 = vcmp.lt.s32.totalorder %v2679_v29, 2560  ;;  %v6902_v47 = vpop.eup %6901  ;;  %6921 = vpow2.f32 %v2609_v14  ;;  %v17544_v33 = vsub.f32 %v11499_v37, %v11414_v62  ;;  %v11756_v34 = vadd.s32 %v11668_v46, %v17461_v50  ;;  %v12150_v50 = vld [vmem:[%s7784_s19 + $0x8c0] sm:$0xff] }
 0x263   : > { %17535 = vst [vmem:[#allocation31_spill] sm:$0xff] %v11716_v38  ;;  %17536 = vst [vmem:[#allocation54_spill] sm:$0xff] %v11719_v23  ;;  %v2680_v58 = vadd.s32 %v11668_v46, %v17538_v57  ;;  %v17539_v9 = vld [vmem:[#allocation22_spill] sm:$0xff]  ;;  %v2645_v38 = vsub.f32 %v17540_v17, %v6894_v12  ;;  %6923 = vpow2.f32 %v2611_v27  ;;  %v17546_v32 = vsub.f32 %v11510_v25, %v11416_v18 }
 0x264   : > { %17537 = vst [vmem:[#allocation24_spill] sm:$0xff] %v11722_v10  ;;  %v11728_v16 = vadd.s32 %v11668_v46, %v17539_v9  ;;  %v17541_v53 = vld [vmem:[#allocation26_spill] sm:$0xff]  ;;  %v17542_v9 = vsub.f32 %v11493_v35, %v11393_v2  ;;  %v2647_v10 = vsub.f32 %v17543_v59, %v6898_v20  ;;  %v2648_v17 = vsub.f32 %v17544_v33, %v6900_v8  ;;  %v6904_v2 = vpop.eup %6903 }
 0x265   : > { %v11735_v23 = vadd.s32 %v11668_v46, %v17541_v53  ;;  %v17545_v12 = vld [vmem:[#allocation34_spill] sm:$0xff]  ;;  %vm2688_vm9 = vcmp.lt.s32.totalorder %v2680_v58, 2560  ;;  %v6906_v20 = vpop.eup %6905  ;;  %6925 = vpow2.f32 %v2613_v45  ;;  %v17547_v62 = vsub.f32 %v11513_v56, %v11425_v5 }
 0x266   : > { %v2646_v57 = vsub.f32 %v17542_v9, %v6896_v30  ;;  %v11752_v63 = vadd.s32 %v11668_v46, %v17545_v12  ;;  %v2649_v9 = vsub.f32 %v17546_v32, %v6902_v47  ;;  %vm2689_vm10 = vcmp.lt.s32.totalorder %v11728_v16, 2560  ;;  %v6908_v43 = vpop.eup %6907 }
 0x267   : > { %v2650_v8 = vsub.f32 %v17547_v62, %v6904_v2  ;;  %vm2690_vm11 = vcmp.lt.s32.totalorder %v11735_v23, 2560  ;;  %v2695_v35 = vsel %vm2687_vm8, %v2645_v38, 0.0  ;;  %6927 = vpow2.f32 %v2615_v60  ;;  %v6910_v27 = vpop.eup %6909 }
 0x268   : > { %v17548_v37 = vsub.f32 %v11516_v31, %v11427_v40  ;;  %v2696_v25 = vsel %vm2687_vm8, %v2646_v57, 0.0  ;;  %v2697_v14 = vsel %vm2687_vm8, %v2647_v10, 0.0  ;;  %6929 = vpow2.f32 %v2617_v52  ;;  %v6912_v60 = vpop.eup %6911 }
 0x269   : > { %v17549_v5 = vsub.f32 %v11527_v61, %v11438_v15  ;;  %vm2691_vm12 = vcmp.lt.s32.totalorder %v11739_v48, 2560  ;;  %v2698_v38 = vsel %vm2687_vm8, %v2648_v17, 0.0  ;;  %v2699_v45 = vsel %vm2688_vm9, %v2649_v9, 0.0  ;;  %v6914_v10 = vpop.eup %6913 }
 0x26a   : > { %v2651_v18 = vsub.f32 %v17548_v37, %v6906_v20  ;;  %6931 = vpow2.f32 %v2619_v21  ;;  %v17550_v40 = vsub.f32 %v11530_v54, %v11440_v1  ;;  %v2700_v31 = vsel %vm2688_vm9, %v2650_v8, 0.0  ;;  %v6916_v59 = vpop.eup %6915 }
 0x26b   : > { %v2652_v56 = vsub.f32 %v17549_v5, %v6908_v43  ;;  %6933 = vpow2.f32 %v2621_v24  ;;  %v17551_v15 = vsub.f32 %v11533_v6, %v11451_v0  ;;  %v2727_v30 = vadd.f32 %v2699_v45, %v2695_v35  ;;  %v6918_v33 = vpop.eup %6917 }
 0x26c   : > { %v2653_v57 = vsub.f32 %v17550_v40, %v6910_v27  ;;  %v2701_v52 = vsel %vm2688_vm9, %v2651_v18, 0.0  ;;  %6935 = vpow2.f32 %v11690_v13  ;;  %v17552_v1 = vsub.f32 %v11544_v41, %v11453_v11  ;;  %v6920_v13 = vpop.eup %6919  ;;  %v17563_v27 = vld [vmem:[#allocation28_spill] sm:$0xff] }
 0x26d   : > { %v2654_v61 = vsub.f32 %v17551_v15, %v6912_v60  ;;  %v2702_v29 = vsel %vm2688_vm9, %v2652_v56, 0.0  ;;  %v2734_v47 = vadd.f32 %v2700_v31, %v2696_v25  ;;  %6937 = vpow2.f32 %v11693_v55  ;;  %v6922_v55 = vpop.eup %6921  ;;  %v17569_v15 = vld [vmem:[#allocation14_spill] sm:$0xff] }
 0x26e   : > { %v2655_v21 = vsub.f32 %v17552_v1, %v6914_v10  ;;  %v2703_v54 = vsel %vm2689_vm10, %v2653_v57, 0.0  ;;  %v17553_v0 = vsub.f32 %v11547_v3, %v11462_v7  ;;  %6939 = vpow2.f32 %v11696_v19  ;;  %v17555_v7 = vld [vmem:[#allocation33_spill] sm:$0xff]  ;;  %v6924_v19 = vpop.eup %6923  ;;  %v17568_v10 = vld [vmem:[#allocation58_spill] sm:$0xff] }
 0x26f   : > { %v2704_v24 = vsel %vm2689_vm10, %v2654_v61, 0.0  ;;  %v2728_v6 = vadd.f32 %v2727_v30, %v2703_v54  ;;  %v17554_v11 = vsub.f32 %v11550_v49, %v11464_v26  ;;  %6941 = vpow2.f32 %v11699_v42  ;;  %v17557_v26 = vld [vmem:[#allocation66_spill] sm:$0xff]  ;;  %v17558_v49 = vld [vmem:[#allocation20_spill] sm:$0xff]  ;;  %v6926_v42 = vpop.eup %6925 }
 0x270   : > { %v2656_v58 = vsub.f32 %v17553_v0, %v6916_v59  ;;  %v2705_v17 = vsel %vm2689_vm10, %v2655_v21, 0.0  ;;  %v2735_v2 = vadd.f32 %v2734_v47, %v2704_v24  ;;  %v17556_v3 = vsub.f32 %v11561_v22, %v17555_v7  ;;  %v17560_v22 = vld [vmem:[#allocation38_spill] sm:$0xff]  ;;  %v17573_v21 = vld [vmem:[#allocation27_spill] sm:$0xff]  ;;  %v17575_v0 = vld [vmem:[#allocation24_spill] sm:$0xff] }
 0x271   : > { %v2657_v41 = vsub.f32 %v17554_v11, %v6918_v33  ;;  %v2741_v20 = vadd.f32 %v2701_v52, %v2697_v14  ;;  %6943 = vpow2.f32 %v11702_v51  ;;  %v17559_v62 = vsub.f32 %v17557_v26, %v17558_v49  ;;  %v6928_v51 = vpop.eup %6927  ;;  %v17562_v14 = vld [vmem:[#allocation63_spill] sm:$0xff]  ;;  %v17571_v1 = vld [vmem:[#allocation54_spill] sm:$0xff]  ;;  %v17577_v24 = vld [vmem:[#allocation48_spill] sm:$0xff] }
 0x272   : > { %v2658_v32 = vsub.f32 %v17556_v3, %v6920_v13  ;;  %v2706_v9 = vsel %vm2689_vm10, %v2656_v58, 0.0  ;;  %v2748_v43 = vadd.f32 %v2702_v29, %v2698_v38  ;;  %6945 = vpow2.f32 %v11705_v28  ;;  %v6930_v28 = vpop.eup %6929  ;;  %v17567_v52 = vld [vmem:[#allocation31_spill] sm:$0xff]  ;;  %v17582_v26 = vld [vmem:[#allocation62_spill] sm:$0xff]  ;;  %v17583_v49 = vld [vmem:[#allocation44_spill] sm:$0xff] }
 0x273   : > { %v2659_v8 = vsub.f32 %v17559_v62, %v6922_v55  ;;  %v2707_v35 = vsel %vm2690_vm11, %v2657_v41, 0.0  ;;  %v17561_v37 = vsub.f32 %v11567_v4, %v17560_v22  ;;  %6947 = vpow2.f32 %v11708_v39  ;;  %v17565_v4 = vld [vmem:[#allocation53_spill] sm:$0xff]  ;;  %v17576_v58 = vld [vmem:[#allocation15_spill] sm:$0xff] }
 0x274   : > { %v2708_v18 = vsel %vm2690_vm11, %v2658_v32, 0.0  ;;  %v2729_v25 = vadd.f32 %v2728_v6, %v2707_v35  ;;  %v17564_v5 = vsub.f32 %v17562_v14, %v17563_v27  ;;  %6949 = vpow2.f32 %v11713_v44  ;;  %v6932_v39 = vpop.eup %6931  ;;  %v17580_v55 = vld [vmem:[#allocation57_spill] sm:$0xff]  ;;  %v17585_v35 = vld [vmem:[#allocation40_spill] sm:$0xff] }
 0x275   : > { %v2660_v16 = vsub.f32 %v17561_v37, %v6924_v19  ;;  %v2709_v38 = vsel %vm2690_vm11, %v2659_v8, 0.0  ;;  %v2736_v45 = vadd.f32 %v2735_v2, %v2708_v18  ;;  %v17566_v60 = vsub.f32 %v11581_v36, %v17565_v4  ;;  %v6934_v44 = vpop.eup %6933  ;;  %v17572_v36 = vld [vmem:[#allocation60_spill] sm:$0xff]  ;;  %v17579_v2 = vld [vmem:[#allocation23_spill] sm:$0xff] }
 0x276   : > { %v2661_v56 = vsub.f32 %v17564_v5, %v6926_v42  ;;  %v2742_v31 = vadd.f32 %v2741_v20, %v2705_v17  ;;  %6951 = vpow2.f32 %v17567_v52  ;;  %v17570_v61 = vsub.f32 %v17568_v10, %v17569_v15  ;;  %v6936_v33 = vpop.eup %6935  ;;  %v17587_v18 = vld [vmem:[#allocation56_spill] sm:$0xff]  ;;  %v17589_v5 = vld [vmem:[#allocation41_spill] sm:$0xff] }
 0x277   : > { %v2662_v40 = vsub.f32 %v17566_v60, %v6928_v51  ;;  %v2710_v57 = vsel %vm2690_vm11, %v2660_v16, 0.0  ;;  %v2749_v59 = vadd.f32 %v2748_v43, %v2706_v9  ;;  %6953 = vpow2.f32 %v17571_v1  ;;  %v6938_v17 = vpop.eup %6937  ;;  %v17586_v16 = vld [vmem:[#allocation68_spill] sm:$0xff]  ;;  %v17599_v1 = vld [vmem:[#allocation50_spill] sm:$0xff] }
 0x278   : > { %v2663_v29 = vsub.f32 %v17570_v61, %v6930_v28  ;;  %v2711_v30 = vsel %vm2691_vm12, %v2661_v56, 0.0  ;;  %v17574_v54 = vsub.f32 %v17572_v36, %v17573_v21  ;;  %vm2692_vm13 = vcmp.lt.s32.totalorder %v11752_v63, 2560  ;;  %v6940_v19 = vpop.eup %6939  ;;  %v17590_v56 = vld [vmem:[#allocation65_spill] sm:$0xff]  ;;  %v17596_v10 = vld [vmem:[#allocation16_spill] sm:$0xff]  ;;  %v17600_v36 = vld [vmem:[#allocation19_spill] sm:$0xff] }
 0x279   : > { %v2712_v47 = vsel %vm2691_vm12, %v2662_v40, 0.0  ;;  %6955 = vpow2.f32 %v17575_v0  ;;  %v17578_v6 = vsub.f32 %v17576_v58, %v17577_v24  ;;  %v2730_v41 = vadd.f32 %v2729_v25, %v2711_v30  ;;  %v6942_v37 = vpop.eup %6941  ;;  %v17592_v28 = vld [vmem:[#allocation13_spill] sm:$0xff]  ;;  %v17597_v15 = vld [vmem:[#allocation64_spill] sm:$0xff]  ;;  %v17603_v24 = vld [vmem:[#allocation47_spill] sm:$0xff]  ;;  %17654 = vst [vmem:[#allocation19_spill] sm:$0xff] %v12150_v50 }
 0x27a   : > { %v2664_v23 = vsub.f32 %v17574_v54, %v6932_v39  ;;  %v2713_v11 = vsel %vm2691_vm12, %v2663_v29, 0.0  ;;  %v17581_v7 = vsub.f32 %v17579_v2, %v17580_v55  ;;  %v2743_v9 = vadd.f32 %v2742_v31, %v2709_v38  ;;  %v17594_v31 = vld [vmem:[#allocation67_spill] sm:$0xff]  ;;  %v17595_v39 = vld [vmem:[#allocation61_spill] sm:$0xff]  ;;  %v17602_v58 = vld [vmem:[#allocation12_spill] sm:$0xff] }
 0x27b   : > { %v2665_v13 = vsub.f32 %v17578_v6, %v6934_v44  ;;  %v2750_v20 = vadd.f32 %v2749_v59, %v2710_v57  ;;  %v17584_v62 = vsub.f32 %v17582_v26, %v17583_v49  ;;  %v2686_v43 = vadd.s32 %v11668_v46, %v17585_v35  ;;  %v6944_v27 = vpop.eup %6943  ;;  %v17591_v46 = vld [vmem:[#allocation29_spill] sm:$0xff]  ;;  %v12164_v35 = vld [vmem:[%s7784_s19 + $0x8d8] sm:$0xff] }
 0x27c   : > { %v2666_v3 = vsub.f32 %v17581_v7, %v6936_v33  ;;  %v2714_v32 = vsel %vm2691_vm12, %v2664_v23, 0.0  ;;  %v2737_v22 = vadd.f32 %v2736_v45, %v2712_v47  ;;  %v17588_v25 = vsub.f32 %v17586_v16, %v17587_v18  ;;  %v6946_v57 = vpop.eup %6945  ;;  %v17606_v2 = vld [vmem:[#allocation45_spill] sm:$0xff]  ;;  %v17607_v7 = vld [vmem:[#allocation51_spill] sm:$0xff]  ;;  %v17615_v16 = vld [vmem:[#allocation46_spill] sm:$0xff] }
 0x27d   : > { %v2667_v8 = vsub.f32 %v17584_v62, %v6938_v17  ;;  %v2715_v42 = vsel %vm2692_vm13, %v2665_v13, 0.0  ;;  %vm2693_vm14 = vcmp.lt.s32.totalorder %v11756_v34, 2560  ;;  %v2744_v14 = vadd.f32 %v2743_v9, %v2713_v11  ;;  %v6948_v44 = vpop.eup %6947  ;;  %v17605_v17 = vld [vmem:[#allocation59_spill] sm:$0xff]  ;;  %v5863_v34 = vld [vmem:[%s7778_s23 + $0x810] sm:$0xff] }
 0x27e   : > { %v2668_v48 = vsub.f32 %v17588_v25, %v6940_v19  ;;  %v2716_v51 = vsel %vm2692_vm13, %v2666_v3, 0.0  ;;  %v2579_v38 = vsub.f32 %v17590_v56, %v17589_v5  ;;  %v17593_v4 = vsub.f32 %v17591_v46, %v17592_v28  ;;  %v6950_v0 = vpop.eup %6949  ;;  %v17608_v3 = vld [vmem:[#allocation17_spill] sm:$0xff]  ;;  %v17609_v9 = vld [vmem:[#allocation35_spill] sm:$0xff]  ;;  %17657 = vst [vmem:[#allocation59_spill] sm:$0xff] %v12164_v35 }
 0x27f   : > { %v2717_v45 = vsel %vm2692_vm13, %v2667_v8, 0.0  ;;  %v2751_v40 = vadd.f32 %v2750_v20, %v2714_v32  ;;  %v2580_v52 = vsub.f32 %v17595_v39, %v17594_v31  ;;  %v17598_v61 = vsub.f32 %v17596_v10, %v17597_v15  ;;  %v17610_v20 = vld [vmem:[#allocation55_spill] sm:$0xff]  ;;  %v17612_v8 = vld [vmem:[#allocation52_spill] sm:$0xff] }
 0x280   : > { %v2669_v60 = vsub.f32 %v17593_v4, %v6942_v37  ;;  %v2718_v30 = vsel %vm2692_vm13, %v2668_v48, 0.0  ;;  %v2731_v59 = vadd.f32 %v2730_v41, %v2715_v42  ;;  %v17601_v21 = vsub.f32 %v17599_v1, %v17600_v36  ;;  %v6952_v41 = vpop.eup %6951  ;;  %v17613_v42 = vld [vmem:[#allocation49_spill] sm:$0xff]  ;;  %v5861_v28 = vld [vmem:[%s7778_s23 + $0x800] sm:$0xff]  ;;  %v5862_v4 = vld [vmem:[%s7778_s23 + $0x808] sm:$0xff] }
 0x281   : > { %v2670_v29 = vsub.f32 %v17598_v61, %v6944_v27  ;;  %v2738_v47 = vadd.f32 %v2737_v22, %v2716_v51  ;;  %v2745_v33 = vadd.f32 %v2744_v14, %v2717_v45  ;;  %v17604_v6 = vsub.f32 %v17602_v58, %v17603_v24  ;;  %v6954_v62 = vpop.eup %6953  ;;  %v17614_v37 = vld [vmem:[#allocation25_spill] sm:$0xff]  ;;  %v5865_v31 = vld [vmem:[%s7778_s23 + $0x820] sm:$0xff]  ;;  %v17619_v15 = vld [vmem:[#allocation32_spill] sm:$0xff] }
 0x282   : > { %v2671_v54 = vsub.f32 %v17601_v21, %v6946_v57  ;;  %v2719_v23 = vsel %vm2693_vm14, %v2669_v60, 0.0  ;;  %vm2694_vm15 = vcmp.lt.s32.totalorder %v2686_v43, 2560  ;;  %v2752_v11 = vadd.f32 %v2751_v40, %v2718_v30  ;;  %v5864_v57 = vld [vmem:[%s7778_s23 + $0x818] sm:$0xff]  ;;  %v17617_v39 = vld [vmem:[#allocation39_spill] sm:$0xff]  ;;  %v5867_v30 = vld [vmem:[%s7778_s23 + $0x830] sm:$0xff] }
 0x283   : > { %v2672_v13 = vsub.f32 %v17604_v6, %v6948_v44  ;;  %v2720_v63 = vsel %vm2693_vm14, %v2670_v29, 0.0  ;;  %v2429_v55 = vadd.f32 %v17606_v2, %v17605_v17  ;;  %v2436_v32 = vadd.f32 %v17608_v3, %v17607_v7  ;;  %v6956_v14 = vpop.eup %6955  ;;  %v17620_v44 = vld [vmem:[#allocation21_spill] sm:$0xff]  ;;  %v17621_v36 = vld [vmem:[#allocation42_spill] sm:$0xff] }
 0x284   : > { %v17611_v19 = vsub.f32 %v17609_v9, %v17610_v20  ;;  %v2721_v49 = vsel %vm2693_vm14, %v2671_v54, 0.0  ;;  %v2443_v22 = vadd.f32 %v17613_v42, %v17612_v8  ;;  %v17616_v18 = vsub.f32 %v17614_v37, %v17615_v16  ;;  %v5872_v6 = vld [vmem:[%s7778_s23 + $0x858] sm:$0xff]  ;;  %v5875_v17 = vld [vmem:[%s7778_s23 + $0x870] sm:$0xff]  ;;  %v5878_v9 = vld [vmem:[%s7778_s23 + $0x888] sm:$0xff] }
 0x285   : > { %v2722_v48 = vsel %vm2693_vm14, %v2672_v13, 0.0  ;;  %v2732_v51 = vadd.f32 %v2731_v59, %v2719_v23  ;;  %v2675_v27 = vsub.f32 %v2579_v38, %v6954_v62  ;;  %v2739_v56 = vadd.f32 %v2738_v47, %v2720_v63  ;;  %v17618_v38 = vld [vmem:[#allocation43_spill] sm:$0xff]  ;;  %v5868_v59 = vld [vmem:[%s7778_s23 + $0x838] sm:$0xff]  ;;  %v5874_v63 = vld [vmem:[%s7778_s23 + $0x868] sm:$0xff] }
 0x286   : > { %v2673_v26 = vsub.f32 %v17611_v19, %v6950_v0  ;;  %v2674_v25 = vsub.f32 %v17616_v18, %v6952_v41  ;;  %v2746_v46 = vadd.f32 %v2745_v33, %v2721_v49  ;;  %v2676_v60 = vsub.f32 %v2580_v52, %v6956_v14  ;;  %v5866_v52 = vld [vmem:[%s7778_s23 + $0x828] sm:$0xff]  ;;  %v5869_v47 = vld [vmem:[%s7778_s23 + $0x840] sm:$0xff]  ;;  %v5871_v0 = vld [vmem:[%s7778_s23 + $0x850] sm:$0xff] }
 0x287   : > { %v2753_v40 = vadd.f32 %v2752_v11, %v2722_v48  ;;  %v2444_v10 = vadd.f32 %v17618_v38, %v17617_v39  ;;  %v2445_v61 = vadd.f32 %v2429_v55, %v17619_v15  ;;  %v2725_v29 = vsel %vm2694_vm15, %v2675_v27, 0.0  ;;  %v5870_v33 = vld [vmem:[%s7778_s23 + $0x848] sm:$0xff]  ;;  %v5873_v13 = vld [vmem:[%s7778_s23 + $0x860] sm:$0xff]  ;;  %v5876_v2 = vld [vmem:[%s7778_s23 + $0x878] sm:$0xff] }
 0x288   : > { %v2723_v5 = vsel %vm2694_vm15, %v2673_v26, 0.0  ;;  %v2724_v45 = vsel %vm2694_vm15, %v2674_v25, 0.0  ;;  %v2446_v1 = vadd.f32 %v2436_v32, %v17620_v44  ;;  %v2447_v21 = vadd.f32 %v2443_v22, %v17621_v36  ;;  %v5877_v55 = vld [vmem:[%s7778_s23 + $0x880] sm:$0xff]  ;;  %v5879_v20 = vld [vmem:[%s7778_s23 + $0x890] sm:$0xff]  ;;  %v5880_v19 = vld [vmem:[%s7778_s23 + $0x898] sm:$0xff] }
 0x289   : > { %v2726_v54 = vsel %vm2694_vm15, %v2676_v60, 0.0  ;;  %v2733_v23 = vadd.f32 %v2732_v51, %v2723_v5  ;;  %v2740_v58 = vadd.f32 %v2739_v56, %v2724_v45  ;;  %v2747_v24 = vadd.f32 %v2746_v46, %v2725_v29  ;;  %v5881_v22 = vld [vmem:[%s7778_s23 + $0x8a0] sm:$0xff]  ;;  %v5882_v37 = vld [vmem:[%s7778_s23 + $0x8a8] sm:$0xff]  ;;  %v5883_v16 = vld [vmem:[%s7778_s23 + $0x8b0] sm:$0xff] }
 0x28a   : > { %v11935_v11 = vmul.f32 %v5861_v28, %v5861_v28  ;;  %v11937_v41 = vmul.f32 %v5862_v4, %v5862_v4  ;;  %v2754_v43 = vadd.f32 %v2753_v40, %v2726_v54  ;;  %v11942_v7 = vmul.f32 %v5863_v34, %v5863_v34  ;;  %v5884_v27 = vld [vmem:[%s7778_s23 + $0x8b8] sm:$0xff]  ;;  %v5885_v5 = vld [vmem:[%s7778_s23 + $0x8c0] sm:$0xff]  ;;  %v5886_v56 = vld [vmem:[%s7778_s23 + $0x8c8] sm:$0xff] }
 0x28b   : > { %v11944_v3 = vmul.f32 %v5864_v57, %v5864_v57  ;;  %v11946_v32 = vmul.f32 %v5865_v31, %v5865_v31  ;;  %v11951_v26 = vmul.f32 %v5866_v52, %v5866_v52  ;;  %v11953_v49 = vmul.f32 %v5867_v30, %v5867_v30  ;;  %v5887_v60 = vld [vmem:[%s7778_s23 + $0x8d0] sm:$0xff]  ;;  %v5888_v45 = vld [vmem:[%s7778_s23 + $0x8d8] sm:$0xff]  ;;  %v5889_v40 = vld [vmem:[%s7778_s23 + $0x8e0] sm:$0xff] }
 0x28c   : > { %v11955_v62 = vmul.f32 %v5868_v59, %v5868_v59  ;;  %v11957_v8 = vmul.f32 %v5869_v47, %v5869_v47  ;;  %v11959_v42 = vadd.f32 %v2733_v23, %v2444_v10  ;;  %v11964_v18 = vmul.f32 %v5870_v33, %v5870_v33  ;;  %v5890_v39 = vld [vmem:[%s7778_s23 + $0x8e8] sm:$0xff]  ;;  %v5891_v38 = vld [vmem:[%s7778_s23 + $0x8f0] sm:$0xff]  ;;  %v5892_v10 = vld [vmem:[%s7778_s23 + $0x8f8] sm:$0xff] }
 0x28d   : > { %v11966_v25 = vmul.f32 %v5871_v0, %v5871_v0  ;;  %v11968_v48 = vmul.f32 %v5872_v6, %v5872_v6  ;;  %v11970_v51 = vadd.f32 %v2740_v58, %v2445_v61  ;;  %v11972_v14 = vadd.f32 %v2747_v24, %v2446_v1  ;;  %v12004_v30 = vld [vmem:[%s7784_s19 + $0x800] sm:$0xff]  ;;  %v12007_v59 = vld [vmem:[%s7784_s19 + $0x808] sm:$0xff]  ;;  %v12010_v44 = vld [vmem:[%s7784_s19 + $0x810] sm:$0xff] }
 0x28e   : > { %17622 = vst [vmem:[#allocation36_spill] sm:$0xff] %v11959_v42  ;;  %v11977_v46 = vmul.f32 %v5873_v13, %v5873_v13  ;;  %v11979_v28 = vmul.f32 %v5874_v63, %v5874_v63  ;;  %v11981_v4 = vadd.f32 %v2754_v43, %v2447_v21  ;;  %v11986_v34 = vmul.f32 %v5875_v17, %v5875_v17  ;;  %v12021_v23 = vld [vmem:[%s7784_s19 + $0x818] sm:$0xff]  ;;  %v12024_v47 = vld [vmem:[%s7784_s19 + $0x820] sm:$0xff]  ;;  %v12027_v33 = vld [vmem:[%s7784_s19 + $0x828] sm:$0xff] }
 0x28f   : > { %17623 = vst [vmem:[#allocation33_spill] sm:$0xff] %v11970_v51  ;;  %17624 = vst [vmem:[#allocation66_spill] sm:$0xff] %v11972_v14  ;;  %v11988_v57 = vmul.f32 %v5876_v2, %v5876_v2  ;;  %v11990_v31 = vmul.f32 %v5877_v55, %v5877_v55  ;;  %v11995_v15 = vmul.f32 %v5878_v9, %v5878_v9  ;;  %v12038_v13 = vld [vmem:[%s7784_s19 + $0x830] sm:$0xff]  ;;  %v12041_v63 = vld [vmem:[%s7784_s19 + $0x838] sm:$0xff]  ;;  %v2892_v51 = vmul.f32 1.442695, %v12004_v30 }
 0x290   : > { %17625 = vst [vmem:[#allocation20_spill] sm:$0xff] %v11979_v28  ;;  %17626 = vst [vmem:[#allocation38_spill] sm:$0xff] %v11981_v4  ;;  %v11997_v61 = vmul.f32 %v5879_v20, %v5879_v20  ;;  %v11999_v29 = vmul.f32 %v5880_v19, %v5880_v19  ;;  %v12001_v52 = vmul.f32 %v5881_v22, %v5881_v22  ;;  %v12044_v43 = vld [vmem:[%s7784_s19 + $0x840] sm:$0xff]  ;;  %v12055_v20 = vld [vmem:[%s7784_s19 + $0x848] sm:$0xff]  ;;  %v2894_v42 = vmul.f32 1.442695, %v12007_v59 }
 0x291   : > { %17627 = vst [vmem:[#allocation63_spill] sm:$0xff] %v11986_v34  ;;  %17628 = vst [vmem:[#allocation28_spill] sm:$0xff] %v11988_v57  ;;  %v12012_v1 = vmul.f32 %v5882_v37, %v5882_v37  ;;  %v12014_v36 = vmul.f32 %v5883_v16, %v5883_v16  ;;  %v12016_v21 = vmul.f32 %v5884_v27, %v5884_v27  ;;  %v12058_v19 = vld [vmem:[%s7784_s19 + $0x850] sm:$0xff]  ;;  %v12061_v22 = vld [vmem:[%s7784_s19 + $0x858] sm:$0xff]  ;;  %v2896_v37 = vmul.f32 1.442695, %v12010_v44 }
 0x292   : > { %17629 = vst [vmem:[#allocation53_spill] sm:$0xff] %v11990_v31  ;;  %17630 = vst [vmem:[#allocation31_spill] sm:$0xff] %v11995_v15  ;;  %v12018_v54 = vmul.f32 %v5885_v5, %v5885_v5  ;;  %v12029_v0 = vmul.f32 %v5886_v56, %v5886_v56  ;;  %v12031_v58 = vmul.f32 %v5887_v60, %v5887_v60  ;;  %v12072_v56 = vld [vmem:[%s7784_s19 + $0x860] sm:$0xff]  ;;  %v12075_v60 = vld [vmem:[%s7784_s19 + $0x868] sm:$0xff]  ;;  %6957 = vpow2.f32 %v2892_v51 }
 0x293   : > { %17631 = vst [vmem:[#allocation58_spill] sm:$0xff] %v11997_v61  ;;  %17632 = vst [vmem:[#allocation14_spill] sm:$0xff] %v11999_v29  ;;  %v12033_v24 = vmul.f32 %v5888_v45, %v5888_v45  ;;  %v12035_v6 = vmul.f32 %v5889_v40, %v5889_v40  ;;  %v12046_v17 = vmul.f32 %v5890_v39, %v5890_v39  ;;  %v12078_v45 = vld [vmem:[%s7784_s19 + $0x870] sm:$0xff]  ;;  %v12089_v5 = vld [vmem:[%s7784_s19 + $0x878] sm:$0xff]  ;;  %6959 = vpow2.f32 %v2894_v42 }
 0x294   : > { %17633 = vst [vmem:[#allocation54_spill] sm:$0xff] %v12001_v52  ;;  %17634 = vst [vmem:[#allocation60_spill] sm:$0xff] %v12012_v1  ;;  %v12048_v2 = vmul.f32 %v5891_v38, %v5891_v38  ;;  %v12050_v55 = vmul.f32 %v5892_v10, %v5892_v10  ;;  %v12092_v27 = vld [vmem:[%s7784_s19 + $0x880] sm:$0xff]  ;;  %v12095_v16 = vld [vmem:[%s7784_s19 + $0x888] sm:$0xff]  ;;  %v2900_v38 = vmul.f32 1.442695, %v12024_v47  ;;  %v12158_v52 = vstv %s2988_s30 }
 0x295   : > { %17635 = vst [vmem:[#allocation27_spill] sm:$0xff] %v12014_v36  ;;  %17636 = vst [vmem:[#allocation24_spill] sm:$0xff] %v12016_v21  ;;  %v12106_v40 = vld [vmem:[%s7784_s19 + $0x890] sm:$0xff]  ;;  %v12109_v9 = vld [vmem:[%s7784_s19 + $0x898] sm:$0xff]  ;;  %v2902_v14 = vmul.f32 1.442695, %v12027_v33  ;;  %6961 = vpow2.f32 %v2896_v37 }
 0x296   : > { %17637 = vst [vmem:[#allocation15_spill] sm:$0xff] %v12018_v54  ;;  %17638 = vst [vmem:[#allocation48_spill] sm:$0xff] %v12029_v0  ;;  %v12112_v4 = vld [vmem:[%s7784_s19 + $0x8a0] sm:$0xff]  ;;  %v12132_v39 = vld [vmem:[%s7784_s19 + $0x8b0] sm:$0xff]  ;;  %v2904_v10 = vmul.f32 1.442695, %v12038_v13 }
 0x297   : > { %17639 = vst [vmem:[#allocation23_spill] sm:$0xff] %v12031_v58  ;;  %17640 = vst [vmem:[#allocation57_spill] sm:$0xff] %v12033_v24  ;;  %v12153_v61 = vld [vmem:[%s7784_s19 + $0x8c8] sm:$0xff]  ;;  %v12161_v29 = vld [vmem:[%s7784_s19 + $0x8d0] sm:$0xff]  ;;  %v2906_v36 = vmul.f32 1.442695, %v12041_v63 }
 0x298   : > { %17641 = vst [vmem:[#allocation62_spill] sm:$0xff] %v12035_v6  ;;  %17642 = vst [vmem:[#allocation44_spill] sm:$0xff] %v12046_v17  ;;  %v12142_v17 = vld [vmem:[%s7784_s19 + $0x8b8] sm:$0xff]  ;;  %v2908_v51 = vmul.f32 1.442695, %v12044_v43  ;;  %v17658_v0 = vld [vmem:[#allocation11_spill] sm:$0xff] }
 0x299   : > { %17643 = vst [vmem:[#allocation68_spill] sm:$0xff] %v12048_v2  ;;  %17644 = vst [vmem:[#allocation56_spill] sm:$0xff] %v12050_v55  ;;  %v12129_v55 = vld [vmem:[%s7784_s19 + $0x8a8] sm:$0xff]  ;;  %v2898_v2 = vmul.f32 1.442695, %v12021_v23  ;;  %v12180_v37 = vadd.s32 %v12158_v52, %v17658_v0  ;;  %v12186_v21 = vld [vmem:[%s7784_s19 + $0x8e0] sm:$0xff] }
 0x29a   : > { %17645 = vst [vmem:[#allocation41_spill] sm:$0xff] %v12078_v45  ;;  %17646 = vst [vmem:[#allocation65_spill] sm:$0xff] %v12089_v5  ;;  %v2910_v6 = vmul.f32 1.442695, %v12055_v20  ;;  %v2912_v42 = vmul.f32 1.442695, %v12058_v19 }
 0x29b   : > { %17647 = vst [vmem:[#allocation29_spill] sm:$0xff] %v12095_v16  ;;  %17648 = vst [vmem:[#allocation13_spill] sm:$0xff] %v12106_v40  ;;  %6963 = vpow2.f32 %v2898_v2  ;;  %v2914_v58 = vmul.f32 1.442695, %v12061_v22  ;;  %v2916_v2 = vmul.f32 1.442695, %v12072_v56 }
 0x29c   : > { %17649 = vst [vmem:[#allocation67_spill] sm:$0xff] %v12109_v9  ;;  %17650 = vst [vmem:[#allocation61_spill] sm:$0xff] %v12112_v4  ;;  %6965 = vpow2.f32 %v2900_v38  ;;  %v12189_v24 = vld [vmem:[%s7784_s19 + $0x8e8] sm:$0xff]  ;;  %v2918_v38 = vmul.f32 1.442695, %v12075_v60  ;;  %v12195_v0 = vld [vmem:[%s7784_s19 + $0x8f0] sm:$0xff] }
 0x29d   : > { %17651 = vst [vmem:[#allocation16_spill] sm:$0xff] %v12129_v55  ;;  %17652 = vst [vmem:[#allocation64_spill] sm:$0xff] %v12132_v39  ;;  %6967 = vpow2.f32 %v2902_v14  ;;  %v2920_v54 = vmul.f32 1.442695, %v12078_v45  ;;  %v2922_v1 = vmul.f32 1.442695, %v12089_v5 }
 0x29e   : > { %17653 = vst [vmem:[#allocation50_spill] sm:$0xff] %v12142_v17  ;;  %17655 = vst [vmem:[#allocation12_spill] sm:$0xff] %v12153_v61  ;;  %6969 = vpow2.f32 %v2904_v10  ;;  %v12198_v14 = vld [vmem:[%s7784_s19 + $0x8f8] sm:$0xff]  ;;  %v2924_v15 = vmul.f32 1.442695, %v12092_v27  ;;  %vm2998_vm0 = vcmp.lt.s32.totalorder %v12180_v37, 2560 }
 0x29f   : > { %17656 = vst [vmem:[#allocation47_spill] sm:$0xff] %v12161_v29  ;;  %17659 = vst [vmem:[#allocation45_spill] sm:$0xff] %v12186_v21  ;;  %6971 = vpow2.f32 %v2906_v36  ;;  %v2926_v31 = vmul.f32 1.442695, %v12095_v16  ;;  %v2928_v57 = vmul.f32 1.442695, %v12106_v40  ;;  %v6958_v16 = vpop.eup %6957 }
 0x2a0   : > { %17660 = vst [vmem:[#allocation51_spill] sm:$0xff] %v12189_v24  ;;  %17661 = vst [vmem:[#allocation17_spill] sm:$0xff] %v12195_v0  ;;  %6973 = vpow2.f32 %v2908_v51  ;;  %v2930_v10 = vmul.f32 1.442695, %v12109_v9  ;;  %v2932_v34 = vmul.f32 1.442695, %v12112_v4 }
 0x2a1   : > { %17662 = vst [vmem:[#allocation35_spill] sm:$0xff] %v12198_v14  ;;  %v2934_v45 = vmul.f32 1.442695, %v12129_v55  ;;  %6975 = vpow2.f32 %v2910_v6  ;;  %v12207_v5 = vmul.f32 1.442695, %v12132_v39  ;;  %v17663_v4 = vld [vmem:[#allocation18_spill] sm:$0xff]  ;;  %v6960_v55 = vpop.eup %6959 }
 0x2a2   : > { %v12210_v28 = vmul.f32 1.442695, %v12142_v17  ;;  %v12213_v36 = vmul.f32 1.442695, %v12150_v50  ;;  %6977 = vpow2.f32 %v2912_v42  ;;  %v12216_v51 = vmul.f32 1.442695, %v12153_v61  ;;  %v6962_v42 = vpop.eup %6961 }
 0x2a3   : > { %v12219_v9 = vmul.f32 1.442695, %v12161_v29  ;;  %v2991_v6 = vadd.s32 %v12158_v52, %v17663_v4  ;;  %6979 = vpow2.f32 %v2914_v58  ;;  %v12224_v39 = vmul.f32 1.442695, %v12164_v35  ;;  %v17665_v4 = vld [vmem:[#allocation22_spill] sm:$0xff] }
 0x2a4   : > { %v12227_v17 = vmul.f32 1.442695, %v12186_v21  ;;  %v12230_v50 = vmul.f32 1.442695, %v12189_v24  ;;  %6981 = vpow2.f32 %v2916_v2  ;;  %v12233_v61 = vmul.f32 1.442695, %v12195_v0 }
 0x2a5   : > { %v12236_v29 = vmul.f32 1.442695, %v12198_v14  ;;  %v12240_v58 = vadd.s32 %v12158_v52, %v17665_v4  ;;  %v6964_v35 = vpop.eup %6963  ;;  %6983 = vpow2.f32 %v2918_v38  ;;  %v17666_v21 = vsub.f32 %v12004_v30, %v11935_v11 }
 0x2a6   : > { %v12247_v24 = vadd.s32 %v12158_v52, %v17541_v53  ;;  %v6966_v2 = vpop.eup %6965  ;;  %6985 = vpow2.f32 %v2920_v54  ;;  %v17667_v14 = vsub.f32 %v12007_v59, %v11937_v41  ;;  %v17668_v4 = vsub.f32 %v12010_v44, %v11942_v7  ;;  %v17671_v54 = vld [vmem:[#allocation30_spill] sm:$0xff] }
 0x2a7   : > { %17664 = vst [vmem:[#allocation55_spill] sm:$0xff] %v12236_v29  ;;  %v2956_v40 = vsub.f32 %v17666_v21, %v6958_v16  ;;  %vm2999_vm1 = vcmp.lt.s32.totalorder %v2991_v6, 2560  ;;  %v6968_v29 = vpop.eup %6967  ;;  %6987 = vpow2.f32 %v2922_v1  ;;  %v17669_v11 = vsub.f32 %v12021_v23, %v11944_v3 }
 0x2a8   : > { %v2957_v0 = vsub.f32 %v17667_v14, %v6960_v55  ;;  %v2958_v38 = vsub.f32 %v17668_v4, %v6962_v42  ;;  %v17670_v21 = vsub.f32 %v12024_v47, %v11946_v32  ;;  %v12264_v53 = vadd.s32 %v12158_v52, %v17671_v54  ;;  %v6970_v41 = vpop.eup %6969 }
 0x2a9   : > { %v2959_v30 = vsub.f32 %v17669_v11, %v6964_v35  ;;  %6989 = vpow2.f32 %v2924_v15  ;;  %v17672_v7 = vsub.f32 %v12027_v33, %v11951_v26  ;;  %v12271_v59 = vadd.s32 %v12158_v52, %v17545_v12  ;;  %v6972_v35 = vpop.eup %6971 }
 0x2aa   : > { %v2960_v16 = vsub.f32 %v17670_v21, %v6966_v2  ;;  %vm3000_vm2 = vcmp.lt.s32.totalorder %v12240_v58, 2560  ;;  %6991 = vpow2.f32 %v2926_v31  ;;  %v17673_v3 = vsub.f32 %v12038_v13, %v11953_v49  ;;  %v6974_v1 = vpop.eup %6973 }
 0x2ab   : > { %v2961_v4 = vsub.f32 %v17672_v7, %v6968_v29  ;;  %v3006_v44 = vsel %vm2998_vm0, %v2956_v40, 0.0  ;;  %6993 = vpow2.f32 %v2928_v57  ;;  %v17674_v26 = vsub.f32 %v12041_v63, %v11955_v62  ;;  %v6976_v47 = vpop.eup %6975 }
 0x2ac   : > { %v2962_v32 = vsub.f32 %v17673_v3, %v6970_v41  ;;  %v3010_v15 = vsel %vm2999_vm1, %v2960_v16, 0.0  ;;  %v3007_v23 = vsel %vm2998_vm0, %v2957_v0, 0.0  ;;  %v3008_v31 = vsel %vm2998_vm0, %v2958_v38, 0.0  ;;  %v6978_v55 = vpop.eup %6977  ;;  %v17683_v16 = vld [vmem:[#allocation63_spill] sm:$0xff] }
 0x2ad   : > { %v2963_v29 = vsub.f32 %v17674_v26, %v6972_v35  ;;  %6995 = vpow2.f32 %v2930_v10  ;;  %v17675_v49 = vsub.f32 %v12044_v43, %v11957_v8  ;;  %v3009_v13 = vsel %vm2998_vm0, %v2959_v30, 0.0  ;;  %v6980_v14 = vpop.eup %6979 }
 0x2ae   : > { %v3011_v57 = vsel %vm2999_vm1, %v2961_v4, 0.0  ;;  %6997 = vpow2.f32 %v2932_v34  ;;  %v17676_v62 = vsub.f32 %v12055_v20, %v11964_v18  ;;  %v3012_v63 = vsel %vm2999_vm1, %v2962_v32, 0.0  ;;  %v6982_v42 = vpop.eup %6981  ;;  %v17686_v4 = vld [vmem:[#allocation28_spill] sm:$0xff] }
 0x2af   : > { %v2964_v33 = vsub.f32 %v17675_v49, %v6974_v1  ;;  %v3038_v40 = vadd.f32 %v3010_v15, %v3006_v44  ;;  %6999 = vpow2.f32 %v2934_v45  ;;  %v17677_v8 = vsub.f32 %v12058_v19, %v11966_v25  ;;  %v6984_v45 = vpop.eup %6983  ;;  %v17688_v15 = vld [vmem:[#allocation53_spill] sm:$0xff] }
 0x2b0   : > { %v2965_v0 = vsub.f32 %v17676_v62, %v6976_v47  ;;  %v3013_v37 = vsel %vm2999_vm1, %v2963_v29, 0.0  ;;  %7001 = vpow2.f32 %v12207_v5  ;;  %v17678_v18 = vsub.f32 %v12061_v22, %v11968_v48  ;;  %v6986_v38 = vpop.eup %6985  ;;  %v17680_v48 = vld [vmem:[#allocation20_spill] sm:$0xff]  ;;  %v17690_v29 = vld [vmem:[#allocation29_spill] sm:$0xff] }
 0x2b1   : > { %v2966_v43 = vsub.f32 %v17677_v8, %v6978_v55  ;;  %v3014_v10 = vsel %vm3000_vm2, %v2964_v33, 0.0  ;;  %vm3001_vm3 = vcmp.lt.s32.totalorder %v12247_v24, 2560  ;;  %v3045_v20 = vadd.f32 %v3011_v57, %v3007_v23  ;;  %v6988_v21 = vpop.eup %6987  ;;  %v17691_v23 = vld [vmem:[#allocation31_spill] sm:$0xff] }
 0x2b2   : > { %v2967_v34 = vsub.f32 %v17678_v18, %v6980_v14  ;;  %7003 = vpow2.f32 %v12210_v28  ;;  %v17679_v25 = vsub.f32 %v12072_v56, %v11977_v46  ;;  %v3015_v6 = vsel %vm3000_vm2, %v2965_v0, 0.0  ;;  %v17682_v28 = vld [vmem:[#allocation41_spill] sm:$0xff]  ;;  %v17701_v18 = vld [vmem:[#allocation54_spill] sm:$0xff] }
 0x2b3   : > { %v3052_v2 = vadd.f32 %v3012_v63, %v3008_v31  ;;  %7005 = vpow2.f32 %v12213_v36  ;;  %v17681_v22 = vsub.f32 %v12075_v60, %v17680_v48  ;;  %v3039_v11 = vadd.f32 %v3038_v40, %v3014_v10  ;;  %v6990_v36 = vpop.eup %6989  ;;  %v17685_v60 = vld [vmem:[#allocation65_spill] sm:$0xff]  ;;  %v17697_v40 = vld [vmem:[#allocation14_spill] sm:$0xff]  ;;  %v17699_v10 = vld [vmem:[#allocation55_spill] sm:$0xff] }
 0x2b4   : > { %v2968_v19 = vsub.f32 %v17679_v25, %v6982_v42  ;;  %v3059_v30 = vadd.f32 %v3013_v37, %v3009_v13  ;;  %7007 = vpow2.f32 %v12216_v51  ;;  %v17684_v46 = vsub.f32 %v17682_v28, %v17683_v16  ;;  %v6992_v44 = vpop.eup %6991  ;;  %v17700_v42 = vld [vmem:[#allocation61_spill] sm:$0xff]  ;;  %v17709_v28 = vld [vmem:[#allocation64_spill] sm:$0xff]  ;;  %v17710_v16 = vld [vmem:[#allocation27_spill] sm:$0xff] }
 0x2b5   : > { %v2969_v5 = vsub.f32 %v17681_v22, %v6984_v45  ;;  %v3016_v41 = vsel %vm3000_vm2, %v2966_v43, 0.0  ;;  %v3017_v7 = vsel %vm3000_vm2, %v2967_v34, 0.0  ;;  %7009 = vpow2.f32 %v12219_v9  ;;  %v6994_v58 = vpop.eup %6993 }
 0x2b6   : > { %v2970_v56 = vsub.f32 %v17684_v46, %v6986_v38  ;;  %v17687_v35 = vsub.f32 %v17685_v60, %v17686_v4  ;;  %v3018_v51 = vsel %vm3001_vm3, %v2968_v19, 0.0  ;;  %v3046_v32 = vadd.f32 %v3045_v20, %v3015_v6  ;;  %v17703_v19 = vld [vmem:[#allocation16_spill] sm:$0xff]  ;;  %v17706_v38 = vld [vmem:[#allocation37_spill] sm:$0xff] }
 0x2b7   : > { %7011 = vpow2.f32 %v12224_v39  ;;  %v17689_v1 = vsub.f32 %v12092_v27, %v17688_v15  ;;  %vm3002_vm4 = vcmp.lt.s32.totalorder %v12264_v53, 2560  ;;  %v3019_v9 = vsel %vm3001_vm3, %v2969_v5, 0.0  ;;  %v6996_v13 = vpop.eup %6995  ;;  %v17693_v39 = vld [vmem:[#allocation13_spill] sm:$0xff]  ;;  %v17694_v27 = vld [vmem:[#allocation58_spill] sm:$0xff]  ;;  %v17704_v6 = vld [vmem:[#allocation60_spill] sm:$0xff] }
 0x2b8   : > { %v2971_v3 = vsub.f32 %v17687_v35, %v6988_v21  ;;  %7013 = vpow2.f32 %v12227_v17  ;;  %v17692_v31 = vsub.f32 %v17690_v29, %v17691_v23  ;;  %v3053_v49 = vadd.f32 %v3052_v2, %v3016_v41  ;;  %v6998_v63 = vpop.eup %6997  ;;  %v17696_v17 = vld [vmem:[#allocation67_spill] sm:$0xff]  ;;  %v17712_v41 = vld [vmem:[#allocation40_spill] sm:$0xff] }
 0x2b9   : > { %v2972_v26 = vsub.f32 %v17689_v1, %v6990_v36  ;;  %v3060_v33 = vadd.f32 %v3059_v30, %v3017_v7  ;;  %7015 = vpow2.f32 %v12230_v50  ;;  %v17695_v57 = vsub.f32 %v17693_v39, %v17694_v27  ;;  %v7000_v50 = vpop.eup %6999  ;;  %v17708_v30 = vld [vmem:[#allocation45_spill] sm:$0xff]  ;;  %v17714_v15 = vld [vmem:[#allocation24_spill] sm:$0xff] }
 0x2ba   : > { %v2973_v47 = vsub.f32 %v17692_v31, %v6992_v44  ;;  %v3020_v62 = vsel %vm3001_vm3, %v2970_v56, 0.0  ;;  %v3040_v0 = vadd.f32 %v3039_v11, %v3018_v51  ;;  %7017 = vpow2.f32 %v12233_v61  ;;  %v7002_v25 = vpop.eup %7001  ;;  %v17707_v11 = vld [vmem:[#allocation62_spill] sm:$0xff]  ;;  %v17722_v39 = vld [vmem:[#allocation48_spill] sm:$0xff] }
 0x2bb   : > { %v2974_v55 = vsub.f32 %v17695_v57, %v6994_v58  ;;  %v17698_v14 = vsub.f32 %v17696_v17, %v17697_v40  ;;  %v3021_v43 = vsel %vm3001_vm3, %v2971_v3, 0.0  ;;  %v3047_v37 = vadd.f32 %v3046_v32, %v3019_v9  ;;  %v17713_v44 = vld [vmem:[#allocation50_spill] sm:$0xff]  ;;  %v17716_v9 = vld [vmem:[#allocation19_spill] sm:$0xff]  ;;  %v17726_v40 = vld [vmem:[#allocation56_spill] sm:$0xff] }
 0x2bc   : > { %7019 = vpow2.f32 %v17699_v10  ;;  %v17702_v34 = vsub.f32 %v17700_v42, %v17701_v18  ;;  %v3022_v45 = vsel %vm3002_vm4, %v2972_v26, 0.0  ;;  %v3023_v61 = vsel %vm3002_vm4, %v2973_v47, 0.0  ;;  %v7004_v5 = vpop.eup %7003  ;;  %v17717_v58 = vld [vmem:[#allocation15_spill] sm:$0xff]  ;;  %v17719_v47 = vld [vmem:[#allocation44_spill] sm:$0xff] }
 0x2bd   : > { %v2975_v8 = vsub.f32 %v17698_v14, %v6996_v13  ;;  %v17705_v2 = vsub.f32 %v17703_v19, %v17704_v6  ;;  %v12368_v48 = vadd.s32 %v12158_v52, %v17706_v38  ;;  %vm3003_vm5 = vcmp.lt.s32.totalorder %v12271_v59, 2560  ;;  %v7006_v60 = vpop.eup %7005  ;;  %v17721_v13 = vld [vmem:[#allocation12_spill] sm:$0xff]  ;;  %v17727_v14 = vld [vmem:[#allocation35_spill] sm:$0xff]  ;;  %v5927_v19 = vld [vmem:[%s7778_s23 + $0x910] sm:$0xff] }
 0x2be   : > { %v2976_v20 = vsub.f32 %v17702_v34, %v6998_v63  ;;  %v3054_v22 = vadd.f32 %v3053_v49, %v3020_v62  ;;  %v2888_v21 = vsub.f32 %v17708_v30, %v17707_v11  ;;  %v17711_v46 = vsub.f32 %v17709_v28, %v17710_v16  ;;  %v7008_v32 = vpop.eup %7007  ;;  %v17720_v49 = vld [vmem:[#allocation51_spill] sm:$0xff]  ;;  %v17725_v63 = vld [vmem:[#allocation17_spill] sm:$0xff]  ;;  %v5928_v16 = vld [vmem:[%s7778_s23 + $0x918] sm:$0xff] }
 0x2bf   : > { %v2977_v24 = vsub.f32 %v17705_v2, %v7000_v50  ;;  %v12378_v7 = vadd.s32 %v12158_v52, %v17712_v41  ;;  %v3024_v36 = vsel %vm3002_vm4, %v2974_v55, 0.0  ;;  %v3025_v4 = vsel %vm3002_vm4, %v2975_v8, 0.0  ;;  %v7010_v31 = vpop.eup %7009  ;;  %v5925_v18 = vld [vmem:[%s7778_s23 + $0x900] sm:$0xff] }
 0x2c0   : > { %v2978_v56 = vsub.f32 %v17711_v46, %v7002_v25  ;;  %v3041_v35 = vadd.f32 %v3040_v0, %v3022_v45  ;;  %v3048_v3 = vadd.f32 %v3047_v37, %v3023_v61  ;;  %v3061_v51 = vadd.f32 %v3060_v33, %v3021_v43  ;;  %v17724_v0 = vld [vmem:[#allocation68_spill] sm:$0xff]  ;;  %v17728_v43 = vld [vmem:[#allocation47_spill] sm:$0xff] }
 0x2c1   : > { %v17715_v1 = vsub.f32 %v17713_v44, %v17714_v15  ;;  %v17718_v52 = vsub.f32 %v17716_v9, %v17717_v58  ;;  %v3026_v23 = vsel %vm3003_vm5, %v2976_v20, 0.0  ;;  %v3027_v53 = vsel %vm3003_vm5, %v2977_v24, 0.0  ;;  %v7012_v62 = vpop.eup %7011  ;;  %v17729_v37 = vld [vmem:[#allocation23_spill] sm:$0xff]  ;;  %v5926_v25 = vld [vmem:[%s7778_s23 + $0x908] sm:$0xff]  ;;  %v17732_v24 = vld [vmem:[#allocation57_spill] sm:$0xff] }
 0x2c2   : > { %v2889_v33 = vsub.f32 %v17720_v49, %v17719_v47  ;;  %v17723_v27 = vsub.f32 %v17721_v13, %v17722_v39  ;;  %vm3004_vm6 = vcmp.lt.s32.totalorder %v12368_v48, 2560  ;;  %v3055_v55 = vadd.f32 %v3054_v22, %v3024_v36  ;;  %v7014_v34 = vpop.eup %7013  ;;  %v17731_v2 = vld [vmem:[#allocation59_spill] sm:$0xff]  ;;  %v5932_v44 = vld [vmem:[%s7778_s23 + $0x938] sm:$0xff] }
 0x2c3   : > { %v2979_v26 = vsub.f32 %v17715_v1, %v7004_v5  ;;  %v2980_v29 = vsub.f32 %v17718_v52, %v7006_v60  ;;  %v2890_v17 = vsub.f32 %v17725_v63, %v17724_v0  ;;  %v2891_v8 = vsub.f32 %v17727_v14, %v17726_v40  ;;  %v7016_v6 = vpop.eup %7015  ;;  %v5929_v46 = vld [vmem:[%s7778_s23 + $0x920] sm:$0xff]  ;;  %v5934_v52 = vld [vmem:[%s7778_s23 + $0x948] sm:$0xff]  ;;  %v5936_v13 = vld [vmem:[%s7778_s23 + $0x958] sm:$0xff] }
 0x2c4   : > { %v2981_v57 = vsub.f32 %v17723_v27, %v7008_v32  ;;  %v17730_v50 = vsub.f32 %v17728_v43, %v17729_v37  ;;  %v3028_v42 = vsel %vm3003_vm5, %v2978_v56, 0.0  ;;  %vm3005_vm7 = vcmp.lt.s32.totalorder %v12378_v7, 2560  ;;  %v7018_v56 = vpop.eup %7017  ;;  %v5931_v32 = vld [vmem:[%s7778_s23 + $0x930] sm:$0xff]  ;;  %v5933_v58 = vld [vmem:[%s7778_s23 + $0x940] sm:$0xff]  ;;  %v5938_v27 = vld [vmem:[%s7778_s23 + $0x968] sm:$0xff] }
 0x2c5   : > { %v3042_v20 = vadd.f32 %v3041_v35, %v3026_v23  ;;  %v3049_v45 = vadd.f32 %v3048_v3, %v3027_v53  ;;  %v3062_v61 = vadd.f32 %v3061_v51, %v3025_v4  ;;  %v17733_v22 = vsub.f32 %v17731_v2, %v17732_v24  ;;  %v5930_v51 = vld [vmem:[%s7778_s23 + $0x928] sm:$0xff]  ;;  %v5937_v39 = vld [vmem:[%s7778_s23 + $0x960] sm:$0xff]  ;;  %v5940_v0 = vld [vmem:[%s7778_s23 + $0x978] sm:$0xff] }
 0x2c6   : > { %v2982_v10 = vsub.f32 %v17730_v50, %v7010_v31  ;;  %v2984_v11 = vsub.f32 %v2888_v21, %v7014_v34  ;;  %v3029_v30 = vsel %vm3003_vm5, %v2979_v26, 0.0  ;;  %v3030_v28 = vsel %vm3004_vm6, %v2980_v29, 0.0  ;;  %v7020_v21 = vpop.eup %7019  ;;  %v5935_v29 = vld [vmem:[%s7778_s23 + $0x950] sm:$0xff]  ;;  %v5941_v48 = vld [vmem:[%s7778_s23 + $0x980] sm:$0xff]  ;;  %v5942_v14 = vld [vmem:[%s7778_s23 + $0x988] sm:$0xff] }
 0x2c7   : > { %v2983_v5 = vsub.f32 %v17733_v22, %v7012_v62  ;;  %v2985_v36 = vsub.f32 %v2889_v33, %v7016_v6  ;;  %v3031_v60 = vsel %vm3004_vm6, %v2981_v57, 0.0  ;;  %v3056_v4 = vadd.f32 %v3055_v55, %v3028_v42  ;;  %v5939_v62 = vld [vmem:[%s7778_s23 + $0x970] sm:$0xff]  ;;  %v5944_v43 = vld [vmem:[%s7778_s23 + $0x998] sm:$0xff]  ;;  %v5945_v34 = vld [vmem:[%s7778_s23 + $0x9a0] sm:$0xff] }
 0x2c8   : > { %v12424_v35 = vmul.f32 %v5925_v18, %v5925_v18  ;;  %v2986_v3 = vsub.f32 %v2890_v17, %v7018_v56  ;;  %v3032_v59 = vsel %vm3004_vm6, %v2982_v10, 0.0  ;;  %v12431_v15 = vmul.f32 %v5926_v25, %v5926_v25  ;;  %v5948_v2 = vld [vmem:[%s7778_s23 + $0x9b8] sm:$0xff]  ;;  %v5949_v24 = vld [vmem:[%s7778_s23 + $0x9c0] sm:$0xff]  ;;  %v5950_v22 = vld [vmem:[%s7778_s23 + $0x9c8] sm:$0xff] }
 0x2c9   : > { %v12433_v1 = vmul.f32 %v5927_v19, %v5927_v19  ;;  %v3043_v26 = vadd.f32 %v3042_v20, %v3030_v28  ;;  %v3063_v9 = vadd.f32 %v3062_v61, %v3029_v30  ;;  %v12438_v23 = vmul.f32 %v5928_v16, %v5928_v16  ;;  %v5946_v20 = vld [vmem:[%s7778_s23 + $0x9a8] sm:$0xff]  ;;  %v5951_v28 = vld [vmem:[%s7778_s23 + $0x9d0] sm:$0xff]  ;;  %v5952_v7 = vld [vmem:[%s7778_s23 + $0x9d8] sm:$0xff] }
 0x2ca   : > { %v12440_v53 = vmul.f32 %v5929_v46, %v5929_v46  ;;  %v2987_v31 = vsub.f32 %v2891_v8, %v7020_v21  ;;  %v3033_v47 = vsel %vm3004_vm6, %v2983_v5, 0.0  ;;  %v3034_v49 = vsel %vm3005_vm7, %v2984_v11, 0.0  ;;  %v5943_v8 = vld [vmem:[%s7778_s23 + $0x990] sm:$0xff]  ;;  %v5953_v16 = vld [vmem:[%s7778_s23 + $0x9e0] sm:$0xff]  ;;  %v5956_v21 = vld [vmem:[%s7778_s23 + $0x9f8] sm:$0xff] }
 0x2cb   : > { %v3050_v33 = vadd.f32 %v3049_v45, %v3031_v60  ;;  %v3035_v57 = vsel %vm3005_vm7, %v2985_v36, 0.0  ;;  %v3057_v55 = vadd.f32 %v3056_v4, %v3032_v59  ;;  %v12454_v63 = vmul.f32 %v5930_v51, %v5930_v51  ;;  %v5947_v45 = vld [vmem:[%s7778_s23 + $0x9b0] sm:$0xff]  ;;  %v5954_v60 = vld [vmem:[%s7778_s23 + $0x9e8] sm:$0xff] }
 0x2cc   : > { %v12456_v17 = vmul.f32 %v5931_v32, %v5931_v32  ;;  %v3036_v40 = vsel %vm3005_vm7, %v2986_v3, 0.0  ;;  %v12463_v37 = vmul.f32 %v5932_v44, %v5932_v44  ;;  %v12465_v50 = vmul.f32 %v5933_v58, %v5933_v58  ;;  %v5955_v4 = vld [vmem:[%s7778_s23 + $0x9f0] sm:$0xff]  ;;  %v12508_v3 = vld [vmem:[%s7784_s19 + $0x900] sm:$0xff]  ;;  %v12525_v58 = vld [vmem:[%s7784_s19 + $0x918] sm:$0xff] }
 0x2cd   : > { %v12467_v10 = vmul.f32 %v5934_v52, %v5934_v52  ;;  %v12469_v42 = vadd.f32 %v3043_v26, %v3034_v49  ;;  %v12471_v18 = vadd.f32 %v3063_v9, %v3033_v47  ;;  %v12476_v61 = vmul.f32 %v5935_v29, %v5935_v29  ;;  %v12519_v26 = vld [vmem:[%s7784_s19 + $0x908] sm:$0xff]  ;;  %v12522_v9 = vld [vmem:[%s7784_s19 + $0x910] sm:$0xff]  ;;  %v12536_v49 = vld [vmem:[%s7784_s19 + $0x920] sm:$0xff] }
 0x2ce   : > { %v12478_v25 = vmul.f32 %v5936_v13, %v5936_v13  ;;  %v12482_v19 = vsel %vm3005_vm7, %v2987_v31, 0.0  ;;  %v12484_v6 = vadd.f32 %v3050_v33, %v3035_v57  ;;  %v12489_v5 = vmul.f32 %v5937_v39, %v5937_v39  ;;  %v12539_v33 = vld [vmem:[%s7784_s19 + $0x928] sm:$0xff]  ;;  %v12542_v13 = vld [vmem:[%s7784_s19 + $0x930] sm:$0xff] }
 0x2cf   : > { %17734 = vst [vmem:[#allocation52_spill] sm:$0xff] %v12469_v42  ;;  %17735 = vst [vmem:[#allocation49_spill] sm:$0xff] %v12471_v18  ;;  %v12491_v11 = vmul.f32 %v5938_v27, %v5938_v27  ;;  %v12493_v30 = vadd.f32 %v3057_v55, %v3036_v40  ;;  %v12498_v46 = vmul.f32 %v5939_v62, %v5939_v62  ;;  %v12553_v62 = vld [vmem:[%s7784_s19 + $0x938] sm:$0xff]  ;;  %v12627_v42 = vld [vmem:[%s7784_s19 + $0x9a8] sm:$0xff]  ;;  %v3205_v41 = vmul.f32 1.442695, %v12519_v26 }
 0x2d0   : > { %17736 = vst [vmem:[#allocation25_spill] sm:$0xff] %v12482_v19  ;;  %17737 = vst [vmem:[#allocation46_spill] sm:$0xff] %v12484_v6  ;;  %v12500_v56 = vmul.f32 %v5940_v0, %v5940_v0  ;;  %v12502_v36 = vmul.f32 %v5941_v48, %v5941_v48  ;;  %v12510_v59 = vmul.f32 %v5942_v14, %v5942_v14  ;;  %v12556_v0 = vld [vmem:[%s7784_s19 + $0x940] sm:$0xff]  ;;  %v12559_v48 = vld [vmem:[%s7784_s19 + $0x948] sm:$0xff] }
 0x2d1   : > { %17738 = vst [vmem:[#allocation39_spill] sm:$0xff] %v12491_v11  ;;  %17739 = vst [vmem:[#allocation43_spill] sm:$0xff] %v12493_v30  ;;  %v12512_v51 = vmul.f32 %v5943_v8, %v5943_v8  ;;  %v12514_v32 = vmul.f32 %v5944_v43, %v5944_v43  ;;  %v12516_v44 = vmul.f32 %v5945_v34, %v5945_v34  ;;  %v12570_v34 = vld [vmem:[%s7784_s19 + $0x950] sm:$0xff]  ;;  %v12621_v30 = vld [vmem:[%s7784_s19 + $0x998] sm:$0xff] }
 0x2d2   : > { %17740 = vst [vmem:[#allocation32_spill] sm:$0xff] %v12498_v46  ;;  %17741 = vst [vmem:[#allocation21_spill] sm:$0xff] %v12500_v56  ;;  %v12527_v52 = vmul.f32 %v5946_v20, %v5946_v20  ;;  %v12529_v29 = vmul.f32 %v5947_v45, %v5947_v45  ;;  %v12531_v31 = vmul.f32 %v5948_v2, %v5948_v2  ;;  %v12573_v20 = vld [vmem:[%s7784_s19 + $0x958] sm:$0xff]  ;;  %v12576_v45 = vld [vmem:[%s7784_s19 + $0x960] sm:$0xff]  ;;  %v3241_v11 = vmul.f32 1.442695, %v12621_v30 }
 0x2d3   : > { %17742 = vst [vmem:[#allocation42_spill] sm:$0xff] %v12502_v36  ;;  %17743 = vst [vmem:[#allocation20_spill] sm:$0xff] %v12510_v59  ;;  %v12533_v47 = vmul.f32 %v5949_v24, %v5949_v24  ;;  %v12544_v39 = vmul.f32 %v5950_v22, %v5950_v22  ;;  %v12546_v27 = vmul.f32 %v5951_v28, %v5951_v28  ;;  %v12604_v24 = vld [vmem:[%s7784_s19 + $0x980] sm:$0xff]  ;;  %v12607_v2 = vld [vmem:[%s7784_s19 + $0x988] sm:$0xff]  ;;  %v3209_v28 = vmul.f32 1.442695, %v12525_v58 }
 0x2d4   : > { %17744 = vst [vmem:[#allocation41_spill] sm:$0xff] %v12512_v51  ;;  %17745 = vst [vmem:[#allocation63_spill] sm:$0xff] %v12514_v32  ;;  %v12548_v57 = vmul.f32 %v5952_v7, %v5952_v7  ;;  %v12550_v55 = vmul.f32 %v5953_v16, %v5953_v16  ;;  %v12561_v40 = vmul.f32 %v5954_v60, %v5954_v60  ;;  %v12587_v7 = vld [vmem:[%s7784_s19 + $0x968] sm:$0xff]  ;;  %v12590_v16 = vld [vmem:[%s7784_s19 + $0x970] sm:$0xff]  ;;  %v3219_v32 = vmul.f32 1.442695, %v12556_v0 }
 0x2d5   : > { %17746 = vst [vmem:[#allocation65_spill] sm:$0xff] %v12516_v44  ;;  %17747 = vst [vmem:[#allocation28_spill] sm:$0xff] %v12527_v52  ;;  %v12563_v14 = vmul.f32 %v5955_v4, %v5955_v4  ;;  %v12565_v8 = vmul.f32 %v5956_v21, %v5956_v21  ;;  %v12593_v60 = vld [vmem:[%s7784_s19 + $0x978] sm:$0xff]  ;;  %v12610_v43 = vld [vmem:[%s7784_s19 + $0x990] sm:$0xff]  ;;  %v3213_v21 = vmul.f32 1.442695, %v12539_v33 }
 0x2d6   : > { %17748 = vst [vmem:[#allocation53_spill] sm:$0xff] %v12529_v29  ;;  %17749 = vst [vmem:[#allocation29_spill] sm:$0xff] %v12531_v31  ;;  %v12624_v6 = vld [vmem:[%s7784_s19 + $0x9a0] sm:$0xff]  ;;  %v12638_v4 = vld [vmem:[%s7784_s19 + $0x9b0] sm:$0xff]  ;;  %v3215_v44 = vmul.f32 1.442695, %v12542_v13 }
 0x2d7   : > { %17750 = vst [vmem:[#allocation31_spill] sm:$0xff] %v12533_v47  ;;  %17751 = vst [vmem:[#allocation13_spill] sm:$0xff] %v12544_v39  ;;  %v12641_v19 = vld [vmem:[%s7784_s19 + $0x9b8] sm:$0xff]  ;;  %v12661_v18 = vld [vmem:[%s7784_s19 + $0x9c8] sm:$0xff]  ;;  %v12684_v47 = vstv %s3299_s3  ;;  %v3217_v39 = vmul.f32 1.442695, %v12553_v62 }
 0x2d8   : > { %17752 = vst [vmem:[#allocation58_spill] sm:$0xff] %v12546_v27  ;;  %17753 = vst [vmem:[#allocation67_spill] sm:$0xff] %v12548_v57  ;;  %v12664_v59 = vld [vmem:[%s7784_s19 + $0x9d0] sm:$0xff]  ;;  %v12674_v52 = vld [vmem:[%s7784_s19 + $0x9d8] sm:$0xff]  ;;  %v3223_v22 = vmul.f32 1.442695, %v12570_v34 }
 0x2d9   : > { %17754 = vst [vmem:[#allocation14_spill] sm:$0xff] %v12550_v55  ;;  %17755 = vst [vmem:[#allocation55_spill] sm:$0xff] %v12561_v40  ;;  %v3203_v40 = vmul.f32 1.442695, %v12508_v3  ;;  %v3207_v55 = vmul.f32 1.442695, %v12522_v9 }
 0x2da   : > { %17756 = vst [vmem:[#allocation61_spill] sm:$0xff] %v12563_v14  ;;  %17757 = vst [vmem:[#allocation54_spill] sm:$0xff] %v12565_v8  ;;  %v12644_v8 = vld [vmem:[%s7784_s19 + $0x9c0] sm:$0xff]  ;;  %v3211_v14 = vmul.f32 1.442695, %v12536_v49  ;;  %v12699_v29 = vld [vmem:[%s7784_s19 + $0x9e8] sm:$0xff] }
 0x2db   : > { %17758 = vst [vmem:[#allocation16_spill] sm:$0xff] %v12587_v7  ;;  %17759 = vst [vmem:[#allocation60_spill] sm:$0xff] %v12590_v16  ;;  %7021 = vpow2.f32 %v3203_v40  ;;  %v3221_v40 = vmul.f32 1.442695, %v12559_v48  ;;  %v12693_v57 = vld [vmem:[%s7784_s19 + $0x9e0] sm:$0xff]  ;;  %v12702_v51 = vld [vmem:[%s7784_s19 + $0x9f0] sm:$0xff] }
 0x2dc   : > { %17760 = vst [vmem:[#allocation62_spill] sm:$0xff] %v12604_v24  ;;  %17761 = vst [vmem:[#allocation45_spill] sm:$0xff] %v12607_v2  ;;  %7023 = vpow2.f32 %v3205_v41  ;;  %v3225_v41 = vmul.f32 1.442695, %v12573_v20  ;;  %v3227_v27 = vmul.f32 1.442695, %v12576_v45 }
 0x2dd   : > { %17762 = vst [vmem:[#allocation64_spill] sm:$0xff] %v12610_v43  ;;  %17763 = vst [vmem:[#allocation27_spill] sm:$0xff] %v12621_v30  ;;  %7025 = vpow2.f32 %v3207_v55  ;;  %v3229_v55 = vmul.f32 1.442695, %v12587_v7  ;;  %v3231_v31 = vmul.f32 1.442695, %v12590_v16 }
 0x2de   : > { %17764 = vst [vmem:[#allocation50_spill] sm:$0xff] %v12624_v6  ;;  %17765 = vst [vmem:[#allocation24_spill] sm:$0xff] %v12627_v42  ;;  %7027 = vpow2.f32 %v3209_v28  ;;  %v3233_v28 = vmul.f32 1.442695, %v12593_v60  ;;  %v3235_v36 = vmul.f32 1.442695, %v12604_v24 }
 0x2df   : > { %17766 = vst [vmem:[#allocation19_spill] sm:$0xff] %v12638_v4  ;;  %17767 = vst [vmem:[#allocation15_spill] sm:$0xff] %v12641_v19  ;;  %7029 = vpow2.f32 %v3211_v14  ;;  %v3237_v56 = vmul.f32 1.442695, %v12607_v2  ;;  %v12708_v46 = vld [vmem:[%s7784_s19 + $0x9f8] sm:$0xff] }
 0x2e0   : > { %17768 = vst [vmem:[#allocation44_spill] sm:$0xff] %v12644_v8  ;;  %17769 = vst [vmem:[#allocation51_spill] sm:$0xff] %v12661_v18  ;;  %7031 = vpow2.f32 %v3213_v21  ;;  %v3239_v14 = vmul.f32 1.442695, %v12610_v43  ;;  %v12713_v16 = vmul.f32 1.442695, %v12624_v6 }
 0x2e1   : > { %17770 = vst [vmem:[#allocation12_spill] sm:$0xff] %v12664_v59  ;;  %17771 = vst [vmem:[#allocation48_spill] sm:$0xff] %v12674_v52  ;;  %7033 = vpow2.f32 %v3215_v44  ;;  %v12716_v7 = vmul.f32 1.442695, %v12627_v42  ;;  %v12719_v21 = vmul.f32 1.442695, %v12638_v4 }
 0x2e2   : > { %17772 = vst [vmem:[#allocation68_spill] sm:$0xff] %v12693_v57  ;;  %17773 = vst [vmem:[#allocation17_spill] sm:$0xff] %v12699_v29  ;;  %7035 = vpow2.f32 %v3217_v39  ;;  %v12722_v24 = vmul.f32 1.442695, %v12641_v19  ;;  %v12725_v44 = vmul.f32 1.442695, %v12644_v8 }
 0x2e3   : > { %17774 = vst [vmem:[#allocation56_spill] sm:$0xff] %v12702_v51  ;;  %17775 = vst [vmem:[#allocation35_spill] sm:$0xff] %v12708_v46  ;;  %7037 = vpow2.f32 %v3219_v32  ;;  %v12728_v43 = vmul.f32 1.442695, %v12661_v18  ;;  %v12731_v6 = vmul.f32 1.442695, %v12664_v59 }
 0x2e4   : > { %7039 = vpow2.f32 %v3221_v40  ;;  %v12734_v39 = vmul.f32 1.442695, %v12674_v52  ;;  %v12737_v4 = vmul.f32 1.442695, %v12693_v57  ;;  %v17776_v42 = vld [vmem:[#allocation11_spill] sm:$0xff]  ;;  %v17778_v59 = vld [vmem:[#allocation18_spill] sm:$0xff] }
 0x2e5   : > { %v3301_v19 = vadd.s32 %v12684_v47, %v17776_v42  ;;  %v7022_v32 = vpop.eup %7021  ;;  %7041 = vpow2.f32 %v3223_v22  ;;  %v12742_v8 = vmul.f32 1.442695, %v12699_v29  ;;  %v12745_v18 = vmul.f32 1.442695, %v12702_v51  ;;  %v17780_v57 = vld [vmem:[#allocation22_spill] sm:$0xff] }
 0x2e6   : > { %v3302_v40 = vadd.s32 %v12684_v47, %v17778_v59  ;;  %v7024_v30 = vpop.eup %7023  ;;  %7043 = vpow2.f32 %v3225_v41  ;;  %v12750_v52 = vmul.f32 1.442695, %v12708_v46  ;;  %v12754_v2 = vadd.s32 %v12684_v47, %v17780_v57  ;;  %v17781_v42 = vld [vmem:[#allocation26_spill] sm:$0xff] }
 0x2e7   : > { %17777 = vst [vmem:[#allocation47_spill] sm:$0xff] %v12745_v18  ;;  %v12758_v22 = vadd.s32 %v12684_v47, %v17781_v42  ;;  %v7026_v29 = vpop.eup %7025  ;;  %7045 = vpow2.f32 %v3227_v27  ;;  %v17782_v51 = vsub.f32 %v12508_v3, %v12424_v35  ;;  %v17783_v41 = vsub.f32 %v12519_v26, %v12431_v15 }
 0x2e8   : > { %17779 = vst [vmem:[#allocation23_spill] sm:$0xff] %v12750_v52  ;;  %v12768_v46 = vadd.s32 %v12684_v47, %v17671_v54  ;;  %v7028_v57 = vpop.eup %7027  ;;  %7047 = vpow2.f32 %v3229_v55  ;;  %v17784_v42 = vsub.f32 %v12522_v9, %v12433_v1  ;;  %v12775_v27 = vadd.s32 %v12684_v47, %v17545_v12 }
 0x2e9   : > { %v3267_v18 = vsub.f32 %v17782_v51, %v7022_v32  ;;  %v3268_v59 = vsub.f32 %v17783_v41, %v7024_v30  ;;  %vm3309_vm8 = vcmp.lt.s32.totalorder %v3301_v19, 2560  ;;  %v7030_v35 = vpop.eup %7029  ;;  %7049 = vpow2.f32 %v3231_v31 }
 0x2ea   : > { %v3269_v52 = vsub.f32 %v17784_v42, %v7026_v29  ;;  %v17785_v15 = vsub.f32 %v12525_v58, %v12438_v23  ;;  %v12782_v3 = vadd.s32 %v12684_v47, %v17706_v38  ;;  %vm3310_vm9 = vcmp.lt.s32.totalorder %v3302_v40, 2560  ;;  %v7032_v51 = vpop.eup %7031 }
 0x2eb   : > { %7051 = vpow2.f32 %v3233_v28  ;;  %v17786_v1 = vsub.f32 %v12536_v49, %v12440_v53  ;;  %vm3311_vm10 = vcmp.lt.s32.totalorder %v12754_v2, 2560  ;;  %vm3312_vm11 = vcmp.lt.s32.totalorder %v12758_v22, 2560  ;;  %v7034_v26 = vpop.eup %7033 }
 0x2ec   : > { %v3270_v30 = vsub.f32 %v17785_v15, %v7028_v57  ;;  %7053 = vpow2.f32 %v3235_v36  ;;  %v17787_v23 = vsub.f32 %v12539_v33, %v12454_v63  ;;  %v3317_v58 = vsel %vm3309_vm8, %v3267_v18, 0.0  ;;  %v7036_v31 = vpop.eup %7035 }
 0x2ed   : > { %v3271_v42 = vsub.f32 %v17786_v1, %v7030_v35  ;;  %v3318_v29 = vsel %vm3309_vm8, %v3268_v59, 0.0  ;;  %7055 = vpow2.f32 %v3237_v56  ;;  %v17788_v53 = vsub.f32 %v12542_v13, %v12456_v17  ;;  %v7038_v28 = vpop.eup %7037 }
 0x2ee   : > { %v3272_v9 = vsub.f32 %v17787_v23, %v7032_v51  ;;  %v3319_v57 = vsel %vm3309_vm8, %v3269_v52, 0.0  ;;  %7057 = vpow2.f32 %v3239_v14  ;;  %v17789_v63 = vsub.f32 %v12553_v62, %v12463_v37  ;;  %v7040_v33 = vpop.eup %7039 }
 0x2ef   : > { %v3273_v49 = vsub.f32 %v17788_v53, %v7034_v26  ;;  %v3321_v55 = vsel %vm3310_vm9, %v3271_v42, 0.0  ;;  %v3320_v18 = vsel %vm3309_vm8, %v3270_v30, 0.0  ;;  %7059 = vpow2.f32 %v3241_v11  ;;  %v7042_v32 = vpop.eup %7041 }
 0x2f0   : > { %v3274_v36 = vsub.f32 %v17789_v63, %v7036_v31  ;;  %v3322_v59 = vsel %vm3310_vm9, %v3272_v9, 0.0  ;;  %v17790_v17 = vsub.f32 %v12556_v0, %v12465_v50  ;;  %v3349_v13 = vadd.f32 %v3321_v55, %v3317_v58  ;;  %v7044_v41 = vpop.eup %7043  ;;  %v17801_v31 = vld [vmem:[#allocation21_spill] sm:$0xff]  ;;  %v17803_v55 = vld [vmem:[#allocation62_spill] sm:$0xff] }
 0x2f1   : > { %v3323_v52 = vsel %vm3310_vm9, %v3273_v49, 0.0  ;;  %7061 = vpow2.f32 %v12713_v16  ;;  %v17791_v37 = vsub.f32 %v12559_v48, %v12467_v10  ;;  %v3356_v14 = vadd.f32 %v3322_v59, %v3318_v29  ;;  %v7046_v15 = vpop.eup %7045 }
 0x2f2   : > { %v3275_v56 = vsub.f32 %v17790_v17, %v7038_v28  ;;  %v3324_v19 = vsel %vm3310_vm9, %v3274_v36, 0.0  ;;  %7063 = vpow2.f32 %v12716_v7  ;;  %v17792_v50 = vsub.f32 %v12570_v34, %v12476_v61  ;;  %v7048_v7 = vpop.eup %7047  ;;  %v17804_v28 = vld [vmem:[#allocation42_spill] sm:$0xff]  ;;  %v17807_v17 = vld [vmem:[#allocation20_spill] sm:$0xff] }
 0x2f3   : > { %v3276_v62 = vsub.f32 %v17791_v37, %v7040_v33  ;;  %v3363_v35 = vadd.f32 %v3323_v52, %v3319_v57  ;;  %7065 = vpow2.f32 %v12719_v21  ;;  %v17793_v10 = vsub.f32 %v12573_v20, %v12478_v25  ;;  %v7050_v21 = vpop.eup %7049  ;;  %v17795_v25 = vld [vmem:[#allocation16_spill] sm:$0xff]  ;;  %v17796_v20 = vld [vmem:[#allocation39_spill] sm:$0xff]  ;;  %v17810_v37 = vld [vmem:[#allocation41_spill] sm:$0xff] }
 0x2f4   : > { %v3277_v11 = vsub.f32 %v17792_v50, %v7042_v32  ;;  %v3325_v0 = vsel %vm3311_vm10, %v3275_v56, 0.0  ;;  %v3370_v40 = vadd.f32 %v3324_v19, %v3320_v18  ;;  %7067 = vpow2.f32 %v12722_v24  ;;  %v17812_v50 = vld [vmem:[#allocation47_spill] sm:$0xff] }
 0x2f5   : > { %v3278_v48 = vsub.f32 %v17793_v10, %v7044_v41  ;;  %v3326_v16 = vsel %vm3311_vm10, %v3276_v62, 0.0  ;;  %v17794_v61 = vsub.f32 %v12576_v45, %v12489_v5  ;;  %v3350_v51 = vadd.f32 %v3349_v13, %v3325_v0  ;;  %v7052_v24 = vpop.eup %7051  ;;  %v17798_v5 = vld [vmem:[#allocation60_spill] sm:$0xff]  ;;  %v17814_v0 = vld [vmem:[#allocation63_spill] sm:$0xff] }
 0x2f6   : > { %v3327_v30 = vsel %vm3311_vm10, %v3277_v11, 0.0  ;;  %7069 = vpow2.f32 %v12725_v44  ;;  %v17797_v1 = vsub.f32 %v17795_v25, %v17796_v20  ;;  %v3357_v23 = vadd.f32 %v3356_v14, %v3326_v16  ;;  %v17799_v45 = vld [vmem:[#allocation32_spill] sm:$0xff]  ;;  %v7054_v29 = vpop.eup %7053  ;;  %v17813_v11 = vld [vmem:[#allocation27_spill] sm:$0xff] }
 0x2f7   : > { %v3279_v34 = vsub.f32 %v17794_v61, %v7046_v15  ;;  %v3328_v26 = vsel %vm3311_vm10, %v3278_v48, 0.0  ;;  %7071 = vpow2.f32 %v12728_v43  ;;  %v17800_v9 = vsub.f32 %v17798_v5, %v17799_v45  ;;  %v7056_v57 = vpop.eup %7055  ;;  %v17816_v48 = vld [vmem:[#allocation14_spill] sm:$0xff]  ;;  %v17817_v16 = vld [vmem:[#allocation68_spill] sm:$0xff]  ;;  %v17820_v61 = vld [vmem:[#allocation65_spill] sm:$0xff] }
 0x2f8   : > { %v3280_v42 = vsub.f32 %v17797_v1, %v7048_v7  ;;  %vm3313_vm12 = vcmp.lt.s32.totalorder %v12768_v46, 2560  ;;  %7073 = vpow2.f32 %v12731_v6  ;;  %v17802_v2 = vsub.f32 %v12593_v60, %v17801_v31  ;;  %v7058_v33 = vpop.eup %7057  ;;  %v17806_v6 = vld [vmem:[#allocation45_spill] sm:$0xff]  ;;  %v17819_v7 = vld [vmem:[#allocation50_spill] sm:$0xff]  ;;  %v17822_v25 = vld [vmem:[#allocation24_spill] sm:$0xff] }
 0x2f9   : > { %v3281_v58 = vsub.f32 %v17800_v9, %v7050_v21  ;;  %v3329_v44 = vsel %vm3312_vm11, %v3279_v34, 0.0  ;;  %v3364_v43 = vadd.f32 %v3363_v35, %v3327_v30  ;;  %7075 = vpow2.f32 %v12734_v39  ;;  %v7060_v32 = vpop.eup %7059  ;;  %v17809_v39 = vld [vmem:[#allocation64_spill] sm:$0xff]  ;;  %v17825_v45 = vld [vmem:[#allocation19_spill] sm:$0xff]  ;;  %v17826_v9 = vld [vmem:[#allocation53_spill] sm:$0xff] }
 0x2fa   : > { %v3282_v53 = vsub.f32 %v17802_v2, %v7052_v24  ;;  %v3330_v49 = vsel %vm3312_vm11, %v3280_v42, 0.0  ;;  %v17805_v63 = vsub.f32 %v17803_v55, %v17804_v28  ;;  %v3351_v18 = vadd.f32 %v3350_v51, %v3329_v44  ;;  %v17823_v20 = vld [vmem:[#allocation28_spill] sm:$0xff] }
 0x2fb   : > { %v3371_v59 = vadd.f32 %v3370_v40, %v3328_v26  ;;  %7077 = vpow2.f32 %v12737_v4  ;;  %v17808_v60 = vsub.f32 %v17806_v6, %v17807_v17  ;;  %v3331_v52 = vsel %vm3312_vm11, %v3281_v58, 0.0  ;;  %v7062_v41 = vpop.eup %7061  ;;  %v17818_v40 = vld [vmem:[#allocation23_spill] sm:$0xff]  ;;  %v17831_v28 = vld [vmem:[#allocation40_spill] sm:$0xff]  ;;  %v17834_v6 = vld [vmem:[#allocation61_spill] sm:$0xff] }
 0x2fc   : > { %v3283_v36 = vsub.f32 %v17805_v63, %v7054_v29  ;;  %v3358_v13 = vadd.f32 %v3357_v23, %v3330_v49  ;;  %7079 = vpow2.f32 %v12742_v8  ;;  %v17811_v62 = vsub.f32 %v17809_v39, %v17810_v37  ;;  %v7064_v10 = vpop.eup %7063  ;;  %v17828_v49 = vld [vmem:[#allocation15_spill] sm:$0xff]  ;;  %v17835_v17 = vld [vmem:[#allocation56_spill] sm:$0xff] }
 0x2fd   : > { %v3284_v56 = vsub.f32 %v17808_v60, %v7056_v57  ;;  %v3332_v14 = vsel %vm3312_vm11, %v3282_v53, 0.0  ;;  %7081 = vpow2.f32 %v17812_v50  ;;  %v17815_v35 = vsub.f32 %v17813_v11, %v17814_v0  ;;  %v7066_v21 = vpop.eup %7065  ;;  %v17842_v0 = vld [vmem:[#allocation12_spill] sm:$0xff] }
 0x2fe   : > { %v3285_v19 = vsub.f32 %v17811_v62, %v7058_v33  ;;  %v3333_v4 = vsel %vm3313_vm12, %v3283_v36, 0.0  ;;  %vm3314_vm13 = vcmp.lt.s32.totalorder %v12775_v27, 2560  ;;  %v3199_v22 = vsub.f32 %v17817_v16, %v17816_v48  ;;  %v7068_v5 = vpop.eup %7067  ;;  %v17840_v62 = vld [vmem:[#allocation13_spill] sm:$0xff] }
 0x2ff   : > { %v3286_v15 = vsub.f32 %v17815_v35, %v7060_v32  ;;  %v3334_v8 = vsel %vm3313_vm12, %v3284_v56, 0.0  ;;  %7083 = vpow2.f32 %v17818_v40  ;;  %v17821_v34 = vsub.f32 %v17819_v7, %v17820_v61  ;;  %v17836_v56 = vld [vmem:[#allocation44_spill] sm:$0xff]  ;;  %v17843_v35 = vld [vmem:[#allocation58_spill] sm:$0xff]  ;;  %v17846_v61 = vld [vmem:[#allocation35_spill] sm:$0xff] }
 0x300   : > { %v3365_v51 = vadd.f32 %v3364_v43, %v3331_v52  ;;  %v17824_v1 = vsub.f32 %v17822_v25, %v17823_v20  ;;  %v3335_v26 = vsel %vm3313_vm12, %v3285_v19, 0.0  ;;  %v3352_v23 = vadd.f32 %v3351_v18, %v3333_v4  ;;  %v7070_v53 = vpop.eup %7069  ;;  %v17829_v43 = vld [vmem:[#allocation29_spill] sm:$0xff]  ;;  %v17832_v18 = vld [vmem:[#allocation55_spill] sm:$0xff]  ;;  %v17845_v7 = vld [vmem:[#allocation54_spill] sm:$0xff] }
 0x301   : > { %v3287_v30 = vsub.f32 %v17821_v34, %v7062_v41  ;;  %v3372_v24 = vadd.f32 %v3371_v59, %v3332_v14  ;;  %v17827_v58 = vsub.f32 %v17825_v45, %v17826_v9  ;;  %v3336_v29 = vsel %vm3313_vm12, %v3286_v15, 0.0  ;;  %v7072_v46 = vpop.eup %7071  ;;  %v17833_v59 = vld [vmem:[#allocation17_spill] sm:$0xff]  ;;  %v17837_v52 = vld [vmem:[#allocation31_spill] sm:$0xff] }
 0x302   : > { %v3288_v42 = vsub.f32 %v17824_v1, %v7064_v10  ;;  %v3359_v2 = vadd.f32 %v3358_v13, %v3334_v8  ;;  %v17830_v57 = vsub.f32 %v17828_v49, %v17829_v43  ;;  %v12898_v63 = vadd.s32 %v12684_v47, %v17831_v28  ;;  %v7074_v37 = vpop.eup %7073  ;;  %v17839_v47 = vld [vmem:[#allocation51_spill] sm:$0xff]  ;;  %v17850_v1 = vld [vmem:[#allocation25_spill] sm:$0xff]  ;;  %v5990_v49 = vld [vmem:[%s7778_s23 + $0xa08] sm:$0xff] }
 0x303   : > { %v3289_v44 = vsub.f32 %v17827_v58, %v7066_v21  ;;  %v3337_v31 = vsel %vm3314_vm13, %v3287_v30, 0.0  ;;  %vm3315_vm14 = vcmp.lt.s32.totalorder %v12782_v3, 2560  ;;  %v3200_v33 = vsub.f32 %v17833_v59, %v17832_v18  ;;  %v7076_v11 = vpop.eup %7075  ;;  %v17847_v30 = vld [vmem:[#allocation48_spill] sm:$0xff]  ;;  %v5991_v43 = vld [vmem:[%s7778_s23 + $0xa10] sm:$0xff]  ;;  %v5992_v18 = vld [vmem:[%s7778_s23 + $0xa18] sm:$0xff] }
 0x304   : > { %v3290_v55 = vsub.f32 %v17830_v57, %v7068_v5  ;;  %v3338_v36 = vsel %vm3314_vm13, %v3288_v42, 0.0  ;;  %v3201_v60 = vsub.f32 %v17835_v17, %v17834_v6  ;;  %v17838_v13 = vsub.f32 %v17836_v56, %v17837_v52  ;;  %v17851_v42 = vld [vmem:[#allocation49_spill] sm:$0xff]  ;;  %v5993_v59 = vld [vmem:[%s7778_s23 + $0xa20] sm:$0xff]  ;;  %v17855_v6 = vld [vmem:[#allocation46_spill] sm:$0xff] }
 0x305   : > { %v3366_v39 = vadd.f32 %v3365_v51, %v3335_v26  ;;  %v17841_v19 = vsub.f32 %v17839_v47, %v17840_v62  ;;  %v3339_v4 = vsel %vm3314_vm13, %v3289_v44, 0.0  ;;  %v3353_v41 = vadd.f32 %v3352_v23, %v3337_v31  ;;  %v7078_v40 = vpop.eup %7077  ;;  %v17848_v51 = vld [vmem:[#allocation67_spill] sm:$0xff]  ;;  %v17852_v23 = vld [vmem:[#allocation36_spill] sm:$0xff]  ;;  %v17856_v56 = vld [vmem:[#allocation66_spill] sm:$0xff] }
 0x306   : > { %v3291_v32 = vsub.f32 %v17838_v13, %v7070_v53  ;;  %v3373_v50 = vadd.f32 %v3372_v24, %v3336_v29  ;;  %v17844_v15 = vsub.f32 %v17842_v0, %v17843_v35  ;;  %v3340_v10 = vsel %vm3314_vm13, %v3290_v55, 0.0  ;;  %v7080_v20 = vpop.eup %7079  ;;  %v17853_v24 = vld [vmem:[#allocation52_spill] sm:$0xff]  ;;  %v5989_v53 = vld [vmem:[%s7778_s23 + $0xa00] sm:$0xff]  ;;  %v17859_v47 = vld [vmem:[#allocation38_spill] sm:$0xff] }
 0x307   : > { %v3292_v14 = vsub.f32 %v17841_v19, %v7072_v46  ;;  %v3360_v16 = vadd.f32 %v3359_v2, %v3338_v36  ;;  %v3202_v34 = vsub.f32 %v17846_v61, %v17845_v7  ;;  %v17849_v21 = vsub.f32 %v17847_v30, %v17848_v51  ;;  %v7082_v58 = vpop.eup %7081  ;;  %v17857_v52 = vld [vmem:[#allocation43_spill] sm:$0xff]  ;;  %v6004_v30 = vld [vmem:[%s7778_s23 + $0xa78] sm:$0xff] }
 0x308   : > { %v3293_v8 = vsub.f32 %v17844_v15, %v7074_v37  ;;  %v3341_v48 = vsel %vm3315_vm14, %v3291_v32, 0.0  ;;  %vm3316_vm15 = vcmp.lt.s32.totalorder %v12898_v63, 2560  ;;  %v3065_v26 = vadd.f32 %v17851_v42, %v17850_v1  ;;  %v5996_v37 = vld [vmem:[%s7778_s23 + $0xa38] sm:$0xff]  ;;  %v5997_v19 = vld [vmem:[%s7778_s23 + $0xa40] sm:$0xff] }
 0x309   : > { %v3294_v25 = vsub.f32 %v17849_v21, %v7076_v11  ;;  %v3342_v27 = vsel %vm3315_vm14, %v3292_v14, 0.0  ;;  %v3066_v5 = vadd.f32 %v17853_v24, %v17852_v23  ;;  %v3295_v45 = vsub.f32 %v3199_v22, %v7078_v40  ;;  %v7084_v57 = vpop.eup %7083  ;;  %v5998_v14 = vld [vmem:[%s7778_s23 + $0xa48] sm:$0xff]  ;;  %v6005_v51 = vld [vmem:[%s7778_s23 + $0xa80] sm:$0xff]  ;;  %v13175_v28 = vld [vmem:[%s7784_s19 + $0xab8] sm:$0xff] }
 0x30a   : > { %v3367_v9 = vadd.f32 %v3366_v39, %v3339_v4  ;;  %v3296_v44 = vsub.f32 %v3200_v33, %v7080_v20  ;;  %v3343_v29 = vsel %vm3315_vm14, %v3293_v8, 0.0  ;;  %v3354_v31 = vadd.f32 %v3353_v41, %v3341_v48  ;;  %v17854_v33 = vld [vmem:[#allocation33_spill] sm:$0xff]  ;;  %v6000_v8 = vld [vmem:[%s7778_s23 + $0xa58] sm:$0xff]  ;;  %v6002_v48 = vld [vmem:[%s7778_s23 + $0xa68] sm:$0xff]  ;;  %17891 = vst [vmem:[#allocation31_spill] sm:$0xff] %v13175_v28 }
 0x30b   : > { %v3374_v2 = vadd.f32 %v3373_v50, %v3340_v10  ;;  %v3297_v55 = vsub.f32 %v3201_v60, %v7082_v58  ;;  %v3344_v22 = vsel %vm3315_vm14, %v3294_v25, 0.0  ;;  %v3345_v36 = vsel %vm3316_vm15, %v3295_v45, 0.0  ;;  %v5994_v60 = vld [vmem:[%s7778_s23 + $0xa28] sm:$0xff]  ;;  %v5995_v39 = vld [vmem:[%s7778_s23 + $0xa30] sm:$0xff]  ;;  %v6001_v10 = vld [vmem:[%s7778_s23 + $0xa60] sm:$0xff] }
 0x30c   : > { %v3361_v46 = vadd.f32 %v3360_v16, %v3342_v27  ;;  %v3067_v17 = vadd.f32 %v17855_v6, %v17854_v33  ;;  %v12949_v13 = vadd.f32 %v17857_v52, %v17856_v56  ;;  %v3298_v32 = vsub.f32 %v3202_v34, %v7084_v57  ;;  %v5999_v4 = vld [vmem:[%s7778_s23 + $0xa50] sm:$0xff]  ;;  %v6006_v25 = vld [vmem:[%s7778_s23 + $0xa88] sm:$0xff]  ;;  %v6008_v20 = vld [vmem:[%s7778_s23 + $0xa98] sm:$0xff] }
 0x30d   : > { %v3346_v3 = vsel %vm3316_vm15, %v3296_v44, 0.0  ;;  %v12957_v62 = vadd.f32 %v3065_v26, %v17859_v47  ;;  %v12962_v41 = vmul.f32 %v5989_v53, %v5989_v53  ;;  %v12964_v50 = vmul.f32 %v5990_v49, %v5990_v49  ;;  %v6003_v34 = vld [vmem:[%s7778_s23 + $0xa70] sm:$0xff]  ;;  %v6009_v23 = vld [vmem:[%s7778_s23 + $0xaa0] sm:$0xff]  ;;  %v6010_v24 = vld [vmem:[%s7778_s23 + $0xaa8] sm:$0xff] }
 0x30e   : > { %17858 = vst [vmem:[#allocation59_spill] sm:$0xff] %v12949_v13  ;;  %v12966_v11 = vmul.f32 %v5991_v43, %v5991_v43  ;;  %v3355_v0 = vadd.f32 %v3354_v31, %v3345_v36  ;;  %v3368_v35 = vadd.f32 %v3367_v9, %v3343_v29  ;;  %v3375_v15 = vadd.f32 %v3374_v2, %v3344_v22  ;;  %v6007_v27 = vld [vmem:[%s7778_s23 + $0xa90] sm:$0xff]  ;;  %v6012_v49 = vld [vmem:[%s7778_s23 + $0xab8] sm:$0xff]  ;;  %v6013_v43 = vld [vmem:[%s7778_s23 + $0xac0] sm:$0xff] }
 0x30f   : > { %17860 = vst [vmem:[#allocation57_spill] sm:$0xff] %v12957_v62  ;;  %v12971_v16 = vmul.f32 %v5992_v18, %v5992_v18  ;;  %v3347_v40 = vsel %vm3316_vm15, %v3297_v55, 0.0  ;;  %v3348_v7 = vsel %vm3316_vm15, %v3298_v32, 0.0  ;;  %v3362_v61 = vadd.f32 %v3361_v46, %v3346_v3  ;;  %v6011_v45 = vld [vmem:[%s7778_s23 + $0xab0] sm:$0xff]  ;;  %v6014_v57 = vld [vmem:[%s7778_s23 + $0xac8] sm:$0xff]  ;;  %v6016_v46 = vld [vmem:[%s7778_s23 + $0xad8] sm:$0xff] }
 0x310   : > { %v12980_v21 = vmul.f32 %v5993_v59, %v5993_v59  ;;  %v12985_v1 = vmul.f32 %v5994_v60, %v5994_v60  ;;  %v12987_v42 = vmul.f32 %v5995_v39, %v5995_v39  ;;  %v12989_v26 = vmul.f32 %v5996_v37, %v5996_v37  ;;  %v6015_v36 = vld [vmem:[%s7778_s23 + $0xad0] sm:$0xff]  ;;  %v6017_v18 = vld [vmem:[%s7778_s23 + $0xae0] sm:$0xff]  ;;  %v6018_v6 = vld [vmem:[%s7778_s23 + $0xae8] sm:$0xff] }
 0x311   : > { %v12991_v63 = vmul.f32 %v5997_v19, %v5997_v19  ;;  %v12996_v9 = vmul.f32 %v5998_v14, %v5998_v14  ;;  %v12998_v58 = vmul.f32 %v5999_v4, %v5999_v4  ;;  %v13000_v44 = vmul.f32 %v6000_v8, %v6000_v8  ;;  %v6019_v56 = vld [vmem:[%s7778_s23 + $0xaf0] sm:$0xff]  ;;  %v6020_v52 = vld [vmem:[%s7778_s23 + $0xaf8] sm:$0xff]  ;;  %v13038_v39 = vld [vmem:[%s7784_s19 + $0xa00] sm:$0xff] }
 0x312   : > { %v13002_v29 = vmul.f32 %v6001_v10, %v6001_v10  ;;  %v13004_v31 = vadd.f32 %v3368_v35, %v3347_v40  ;;  %v13006_v2 = vadd.f32 %v3375_v15, %v3348_v7  ;;  %v13008_v53 = vadd.f32 %v3355_v0, %v3066_v5  ;;  %v13041_v37 = vld [vmem:[%s7784_s19 + $0xa08] sm:$0xff]  ;;  %v13052_v0 = vld [vmem:[%s7784_s19 + $0xa10] sm:$0xff]  ;;  %v13055_v35 = vld [vmem:[%s7784_s19 + $0xa18] sm:$0xff] }
 0x313   : > { %v13013_v55 = vmul.f32 %v6002_v48, %v6002_v48  ;;  %v13015_v22 = vadd.f32 %v3362_v61, %v3067_v17  ;;  %v13020_v59 = vmul.f32 %v6003_v34, %v6003_v34  ;;  %v13022_v33 = vmul.f32 %v6004_v30, %v6004_v30  ;;  %v13058_v15 = vld [vmem:[%s7784_s19 + $0xa20] sm:$0xff]  ;;  %v13069_v7 = vld [vmem:[%s7784_s19 + $0xa28] sm:$0xff]  ;;  %v13072_v61 = vld [vmem:[%s7784_s19 + $0xa30] sm:$0xff] }
 0x314   : > { %17861 = vst [vmem:[#allocation16_spill] sm:$0xff] %v13004_v31  ;;  %17862 = vst [vmem:[#allocation39_spill] sm:$0xff] %v13006_v2  ;;  %v13024_v5 = vmul.f32 %v6005_v51, %v6005_v51  ;;  %v13029_v32 = vmul.f32 %v6006_v25, %v6006_v25  ;;  %v13031_v3 = vmul.f32 %v6007_v27, %v6007_v27  ;;  %v13075_v34 = vld [vmem:[%s7784_s19 + $0xa38] sm:$0xff]  ;;  %v13137_v27 = vld [vmem:[%s7784_s19 + $0xa88] sm:$0xff]  ;;  %v3518_v13 = vmul.f32 1.442695, %v13052_v0 }
 0x315   : > { %17863 = vst [vmem:[#allocation60_spill] sm:$0xff] %v13008_v53  ;;  %17864 = vst [vmem:[#allocation32_spill] sm:$0xff] %v13015_v22  ;;  %v13033_v17 = vmul.f32 %v6008_v20, %v6008_v20  ;;  %v13035_v60 = vmul.f32 %v6009_v23, %v6009_v23  ;;  %v13043_v47 = vmul.f32 %v6010_v24, %v6010_v24  ;;  %v13086_v20 = vld [vmem:[%s7784_s19 + $0xa40] sm:$0xff]  ;;  %v13089_v23 = vld [vmem:[%s7784_s19 + $0xa48] sm:$0xff]  ;;  %v3520_v53 = vmul.f32 1.442695, %v13055_v35 }
 0x316   : > { %17865 = vst [vmem:[#allocation21_spill] sm:$0xff] %v13020_v59  ;;  %17866 = vst [vmem:[#allocation62_spill] sm:$0xff] %v13022_v33  ;;  %v13045_v19 = vmul.f32 %v6011_v45, %v6011_v45  ;;  %v13047_v14 = vmul.f32 %v6012_v49, %v6012_v49  ;;  %v13049_v4 = vmul.f32 %v6013_v43, %v6013_v43  ;;  %v13092_v24 = vld [vmem:[%s7784_s19 + $0xa50] sm:$0xff]  ;;  %v13123_v49 = vld [vmem:[%s7784_s19 + $0xa78] sm:$0xff]  ;;  %v3522_v31 = vmul.f32 1.442695, %v13058_v15 }
 0x317   : > { %17867 = vst [vmem:[#allocation42_spill] sm:$0xff] %v13024_v5  ;;  %17868 = vst [vmem:[#allocation45_spill] sm:$0xff] %v13029_v32  ;;  %v13060_v8 = vmul.f32 %v6014_v57, %v6014_v57  ;;  %v13062_v10 = vmul.f32 %v6015_v36, %v6015_v36  ;;  %v13064_v48 = vmul.f32 %v6016_v46, %v6016_v46  ;;  %v13103_v36 = vld [vmem:[%s7784_s19 + $0xa58] sm:$0xff]  ;;  %v13106_v46 = vld [vmem:[%s7784_s19 + $0xa60] sm:$0xff]  ;;  %v3528_v38 = vmul.f32 1.442695, %v13075_v34 }
 0x318   : > { %17869 = vst [vmem:[#allocation20_spill] sm:$0xff] %v13031_v3  ;;  %17870 = vst [vmem:[#allocation64_spill] sm:$0xff] %v13033_v17  ;;  %v13066_v40 = vmul.f32 %v6017_v18, %v6017_v18  ;;  %v13077_v30 = vmul.f32 %v6018_v6, %v6018_v6  ;;  %v13079_v51 = vmul.f32 %v6019_v56, %v6019_v56  ;;  %v13109_v18 = vld [vmem:[%s7784_s19 + $0xa68] sm:$0xff]  ;;  %v13120_v57 = vld [vmem:[%s7784_s19 + $0xa70] sm:$0xff]  ;;  %v3514_v6 = vmul.f32 1.442695, %v13038_v39 }
 0x319   : > { %17871 = vst [vmem:[#allocation41_spill] sm:$0xff] %v13035_v60  ;;  %17872 = vst [vmem:[#allocation47_spill] sm:$0xff] %v13043_v47  ;;  %v13081_v25 = vmul.f32 %v6020_v52, %v6020_v52  ;;  %v13126_v45 = vld [vmem:[%s7784_s19 + $0xa80] sm:$0xff]  ;;  %v13140_v22 = vld [vmem:[%s7784_s19 + $0xa90] sm:$0xff]  ;;  %v3516_v56 = vmul.f32 1.442695, %v13041_v37  ;;  %v13204_v60 = vstv %s3610_s4 }
 0x31a   : > { %17873 = vst [vmem:[#allocation27_spill] sm:$0xff] %v13045_v19  ;;  %17874 = vst [vmem:[#allocation63_spill] sm:$0xff] %v13047_v14  ;;  %v13151_v2 = vld [vmem:[%s7784_s19 + $0xa98] sm:$0xff]  ;;  %v13154_v43 = vld [vmem:[%s7784_s19 + $0xaa0] sm:$0xff]  ;;  %7085 = vpow2.f32 %v3514_v6  ;;  %v3526_v19 = vmul.f32 1.442695, %v13072_v61 }
 0x31b   : > { %17875 = vst [vmem:[#allocation14_spill] sm:$0xff] %v13049_v4  ;;  %17876 = vst [vmem:[#allocation68_spill] sm:$0xff] %v13060_v8  ;;  %v13166_v52 = vld [vmem:[%s7784_s19 + $0xab0] sm:$0xff]  ;;  %7087 = vpow2.f32 %v3516_v56  ;;  %v3530_v14 = vmul.f32 1.442695, %v13086_v20  ;;  %v13216_v4 = vld [vmem:[%s7784_s19 + $0xae0] sm:$0xff] }
 0x31c   : > { %17877 = vst [vmem:[#allocation23_spill] sm:$0xff] %v13062_v10  ;;  %17878 = vst [vmem:[#allocation50_spill] sm:$0xff] %v13064_v48  ;;  %v13187_v48 = vld [vmem:[%s7784_s19 + $0xac8] sm:$0xff]  ;;  %v13190_v62 = vld [vmem:[%s7784_s19 + $0xad0] sm:$0xff]  ;;  %7089 = vpow2.f32 %v3518_v13  ;;  %v3532_v56 = vmul.f32 1.442695, %v13089_v23 }
 0x31d   : > { %17879 = vst [vmem:[#allocation65_spill] sm:$0xff] %v13066_v40  ;;  %17880 = vst [vmem:[#allocation24_spill] sm:$0xff] %v13077_v30  ;;  %v3524_v30 = vmul.f32 1.442695, %v13069_v7  ;;  %7091 = vpow2.f32 %v3520_v53  ;;  %v3534_v6 = vmul.f32 1.442695, %v13092_v24 }
 0x31e   : > { %17881 = vst [vmem:[#allocation28_spill] sm:$0xff] %v13079_v51  ;;  %17882 = vst [vmem:[#allocation19_spill] sm:$0xff] %v13081_v25  ;;  %v13163_v25 = vld [vmem:[%s7784_s19 + $0xaa8] sm:$0xff]  ;;  %v13178_v51 = vld [vmem:[%s7784_s19 + $0xac0] sm:$0xff]  ;;  %7093 = vpow2.f32 %v3522_v31  ;;  %v3536_v8 = vmul.f32 1.442695, %v13103_v36 }
 0x31f   : > { %17883 = vst [vmem:[#allocation53_spill] sm:$0xff] %v13123_v49  ;;  %17884 = vst [vmem:[#allocation15_spill] sm:$0xff] %v13126_v45  ;;  %v13210_v40 = vld [vmem:[%s7784_s19 + $0xad8] sm:$0xff]  ;;  %7095 = vpow2.f32 %v3524_v30  ;;  %v3538_v13 = vmul.f32 1.442695, %v13106_v46  ;;  %v13219_v47 = vld [vmem:[%s7784_s19 + $0xae8] sm:$0xff] }
 0x320   : > { %17885 = vst [vmem:[#allocation29_spill] sm:$0xff] %v13137_v27  ;;  %17886 = vst [vmem:[#allocation55_spill] sm:$0xff] %v13140_v22  ;;  %v3540_v53 = vmul.f32 1.442695, %v13109_v18  ;;  %v3542_v10 = vmul.f32 1.442695, %v13120_v57  ;;  %7097 = vpow2.f32 %v3526_v19 }
 0x321   : > { %17887 = vst [vmem:[#allocation17_spill] sm:$0xff] %v13151_v2  ;;  %17888 = vst [vmem:[#allocation61_spill] sm:$0xff] %v13154_v43  ;;  %v3544_v31 = vmul.f32 1.442695, %v13123_v49  ;;  %v3546_v17 = vmul.f32 1.442695, %v13126_v45  ;;  %7099 = vpow2.f32 %v3528_v38 }
 0x322   : > { %17889 = vst [vmem:[#allocation56_spill] sm:$0xff] %v13163_v25  ;;  %17890 = vst [vmem:[#allocation44_spill] sm:$0xff] %v13166_v52  ;;  %v3548_v3 = vmul.f32 1.442695, %v13137_v27  ;;  %v3550_v30 = vmul.f32 1.442695, %v13140_v22  ;;  %7101 = vpow2.f32 %v3530_v14 }
 0x323   : > { %17892 = vst [vmem:[#allocation51_spill] sm:$0xff] %v13178_v51  ;;  %17893 = vst [vmem:[#allocation13_spill] sm:$0xff] %v13187_v48  ;;  %v3552_v32 = vmul.f32 1.442695, %v13151_v2  ;;  %v3554_v5 = vmul.f32 1.442695, %v13154_v43  ;;  %7103 = vpow2.f32 %v3532_v56 }
 0x324   : > { %17894 = vst [vmem:[#allocation12_spill] sm:$0xff] %v13190_v62  ;;  %17895 = vst [vmem:[#allocation58_spill] sm:$0xff] %v13210_v40  ;;  %v13228_v33 = vmul.f32 1.442695, %v13163_v25  ;;  %v13231_v19 = vmul.f32 1.442695, %v13166_v52  ;;  %v7086_v25 = vpop.eup %7085  ;;  %7105 = vpow2.f32 %v3534_v6 }
 0x325   : > { %17896 = vst [vmem:[#allocation54_spill] sm:$0xff] %v13216_v4  ;;  %17897 = vst [vmem:[#allocation35_spill] sm:$0xff] %v13219_v47  ;;  %v13234_v49 = vmul.f32 1.442695, %v13175_v28  ;;  %v13237_v45 = vld [vmem:[%s7784_s19 + $0xaf0] sm:$0xff]  ;;  %v17899_v43 = vld [vmem:[#allocation11_spill] sm:$0xff]  ;;  %v7088_v27 = vpop.eup %7087  ;;  %7107 = vpow2.f32 %v3536_v8 }
 0x326   : > { %17898 = vst [vmem:[#allocation48_spill] sm:$0xff] %v13237_v45  ;;  %v13240_v38 = vmul.f32 1.442695, %v13178_v51  ;;  %v13243_v2 = vmul.f32 1.442695, %v13187_v48  ;;  %v3612_v14 = vadd.s32 %v13204_v60, %v17899_v43  ;;  %v13248_v22 = vld [vmem:[%s7784_s19 + $0xaf8] sm:$0xff]  ;;  %7109 = vpow2.f32 %v3538_v13 }
 0x327   : > { %v13251_v52 = vmul.f32 1.442695, %v13190_v62  ;;  %v13254_v28 = vmul.f32 1.442695, %v13210_v40  ;;  %v17901_v56 = vld [vmem:[#allocation18_spill] sm:$0xff]  ;;  %v7090_v62 = vpop.eup %7089  ;;  %7111 = vpow2.f32 %v3540_v53  ;;  %v17907_v53 = vsub.f32 %v13052_v0, %v12966_v11 }
 0x328   : > { %v3613_v51 = vadd.s32 %v13204_v60, %v17901_v56  ;;  %v13259_v48 = vmul.f32 1.442695, %v13216_v4  ;;  %v13262_v43 = vmul.f32 1.442695, %v13219_v47  ;;  %v17903_v59 = vld [vmem:[#allocation22_spill] sm:$0xff]  ;;  %v17904_v56 = vsub.f32 %v13038_v39, %v12962_v41 }
 0x329   : > { %17900 = vst [vmem:[#allocation67_spill] sm:$0xff] %v13254_v28  ;;  %v13266_v6 = vadd.s32 %v13204_v60, %v17903_v59  ;;  %v13269_v40 = vmul.f32 1.442695, %v13237_v45  ;;  %v17905_v8 = vld [vmem:[#allocation26_spill] sm:$0xff]  ;;  %v13279_v47 = vmul.f32 1.442695, %v13248_v22  ;;  %v17906_v59 = vsub.f32 %v13041_v37, %v12964_v50 }
 0x32a   : > { %17902 = vst [vmem:[#allocation25_spill] sm:$0xff] %v13259_v48  ;;  %v3578_v28 = vsub.f32 %v17904_v56, %v7086_v25  ;;  %v13276_v4 = vadd.s32 %v13204_v60, %v17905_v8  ;;  %v7092_v48 = vpop.eup %7091  ;;  %vm3620_vm0 = vcmp.lt.s32.totalorder %v3612_v14, 2560  ;;  %7113 = vpow2.f32 %v3542_v10 }
 0x32b   : > { %v3579_v13 = vsub.f32 %v17906_v59, %v7088_v27  ;;  %v7094_v45 = vpop.eup %7093  ;;  %v13286_v41 = vadd.s32 %v13204_v60, %v17671_v54  ;;  %v13290_v39 = vadd.s32 %v13204_v60, %v17545_v12  ;;  %vm3621_vm1 = vcmp.lt.s32.totalorder %v3613_v51, 2560 }
 0x32c   : > { %v7096_v25 = vpop.eup %7095  ;;  %7115 = vpow2.f32 %v3544_v31  ;;  %v3580_v56 = vsub.f32 %v17907_v53, %v7090_v62  ;;  %v17908_v50 = vsub.f32 %v13058_v15, %v12980_v21  ;;  %vm3622_vm2 = vcmp.lt.s32.totalorder %v13266_v6, 2560 }
 0x32d   : > { %v7098_v37 = vpop.eup %7097  ;;  %7117 = vpow2.f32 %v3546_v17  ;;  %v17909_v10 = vsub.f32 %v13069_v7, %v12985_v1  ;;  %vm3623_vm3 = vcmp.lt.s32.totalorder %v13276_v4, 2560  ;;  %v3628_v31 = vsel %vm3620_vm0, %v3578_v28, 0.0  ;;  %v17943_v4 = vld [vmem:[#allocation58_spill] sm:$0xff] }
 0x32e   : > { %v3582_v59 = vsub.f32 %v17908_v50, %v7094_v45  ;;  %v7100_v12 = vpop.eup %7099  ;;  %7119 = vpow2.f32 %v3548_v3  ;;  %v17910_v62 = vsub.f32 %v13055_v35, %v12971_v16  ;;  %v17911_v21 = vsub.f32 %v13072_v61, %v12987_v42 }
 0x32f   : > { %v3583_v27 = vsub.f32 %v17909_v10, %v7096_v25  ;;  %v3629_v17 = vsel %vm3620_vm0, %v3579_v13, 0.0  ;;  %v7102_v15 = vpop.eup %7101  ;;  %7121 = vpow2.f32 %v3550_v30  ;;  %v17912_v1 = vsub.f32 %v13075_v34, %v12989_v26 }
 0x330   : > { %v3581_v11 = vsub.f32 %v17910_v62, %v7092_v48  ;;  %v3584_v0 = vsub.f32 %v17911_v21, %v7098_v37  ;;  %vm3624_vm4 = vcmp.lt.s32.totalorder %v13286_v41, 2560  ;;  %v3632_v28 = vsel %vm3621_vm1, %v3582_v59, 0.0  ;;  %v7104_v16 = vpop.eup %7103 }
 0x331   : > { %v3585_v7 = vsub.f32 %v17912_v1, %v7100_v12  ;;  %v3633_v3 = vsel %vm3621_vm1, %v3583_v27, 0.0  ;;  %7123 = vpow2.f32 %v3552_v32  ;;  %v17913_v42 = vsub.f32 %v13086_v20, %v12991_v63  ;;  %v7106_v45 = vpop.eup %7105 }
 0x332   : > { %v3630_v48 = vsel %vm3620_vm0, %v3580_v56, 0.0  ;;  %v3660_v61 = vadd.f32 %v3632_v28, %v3628_v31  ;;  %7125 = vpow2.f32 %v3554_v5  ;;  %v17914_v12 = vsub.f32 %v13089_v23, %v12996_v9  ;;  %v7108_v13 = vpop.eup %7107 }
 0x333   : > { %v3586_v35 = vsub.f32 %v17913_v42, %v7102_v15  ;;  %v3634_v34 = vsel %vm3621_vm1, %v3584_v0, 0.0  ;;  %v3667_v30 = vadd.f32 %v3633_v3, %v3629_v17  ;;  %7127 = vpow2.f32 %v13228_v33  ;;  %v7110_v5 = vpop.eup %7109  ;;  %v17925_v0 = vld [vmem:[#allocation15_spill] sm:$0xff]  ;;  %v17926_v17 = vld [vmem:[#allocation42_spill] sm:$0xff]  ;;  %v17928_v3 = vld [vmem:[#allocation25_spill] sm:$0xff] }
 0x334   : > { %v3587_v26 = vsub.f32 %v17914_v12, %v7104_v16  ;;  %v17915_v32 = vsub.f32 %v13092_v24, %v12998_v58  ;;  %v3631_v20 = vsel %vm3620_vm0, %v3581_v11, 0.0  ;;  %7129 = vpow2.f32 %v13231_v19  ;;  %v7112_v56 = vpop.eup %7111  ;;  %v17929_v16 = vld [vmem:[#allocation29_spill] sm:$0xff]  ;;  %v17932_v12 = vld [vmem:[#allocation55_spill] sm:$0xff] }
 0x335   : > { %v3636_v25 = vsel %vm3622_vm2, %v3586_v35, 0.0  ;;  %v17916_v9 = vsub.f32 %v13103_v36, %v13000_v44  ;;  %v3635_v53 = vsel %vm3621_vm1, %v3585_v7, 0.0  ;;  %7131 = vpow2.f32 %v13234_v49  ;;  %v7114_v59 = vpop.eup %7113  ;;  %v17919_v49 = vld [vmem:[#allocation21_spill] sm:$0xff] }
 0x336   : > { %v3588_v63 = vsub.f32 %v17915_v32, %v7106_v45  ;;  %v3637_v33 = vsel %vm3622_vm2, %v3587_v26, 0.0  ;;  %v17917_v58 = vsub.f32 %v13106_v46, %v13002_v29  ;;  %v3661_v14 = vadd.f32 %v3660_v61, %v3636_v25  ;;  %v7116_v37 = vpop.eup %7115  ;;  %v17930_v42 = vld [vmem:[#allocation45_spill] sm:$0xff]  ;;  %v17933_v26 = vld [vmem:[#allocation20_spill] sm:$0xff] }
 0x337   : > { %v3589_v23 = vsub.f32 %v17916_v9, %v7108_v13  ;;  %v3674_v50 = vadd.f32 %v3634_v34, %v3630_v48  ;;  %7133 = vpow2.f32 %v13240_v38  ;;  %v17918_v44 = vsub.f32 %v13109_v18, %v13013_v55  ;;  %v7118_v38 = vpop.eup %7117  ;;  %v17921_v55 = vld [vmem:[#allocation53_spill] sm:$0xff]  ;;  %v17922_v18 = vld [vmem:[#allocation62_spill] sm:$0xff]  ;;  %v17936_v25 = vld [vmem:[#allocation64_spill] sm:$0xff] }
 0x338   : > { %v3590_v24 = vsub.f32 %v17917_v58, %v7110_v5  ;;  %v3638_v36 = vsel %vm3622_vm2, %v3588_v63, 0.0  ;;  %v3668_v19 = vadd.f32 %v3667_v30, %v3637_v33  ;;  %7135 = vpow2.f32 %v13243_v2  ;;  %v7120_v21 = vpop.eup %7119  ;;  %v17938_v33 = vld [vmem:[#allocation61_spill] sm:$0xff] }
 0x339   : > { %v3591_v51 = vsub.f32 %v17918_v44, %v7112_v56  ;;  %v17920_v29 = vsub.f32 %v13120_v57, %v17919_v49  ;;  %v3681_v27 = vadd.f32 %v3635_v53, %v3631_v20  ;;  %7137 = vpow2.f32 %v13251_v52  ;;  %v17924_v57 = vld [vmem:[#allocation67_spill] sm:$0xff]  ;;  %v7122_v52 = vpop.eup %7121  ;;  %v17935_v20 = vld [vmem:[#allocation17_spill] sm:$0xff] }
 0x33a   : > { %v3640_v10 = vsel %vm3623_vm3, %v3590_v24, 0.0  ;;  %v17923_v31 = vsub.f32 %v17921_v55, %v17922_v18  ;;  %v3639_v11 = vsel %vm3622_vm2, %v3589_v23, 0.0  ;;  %7139 = vpow2.f32 %v17924_v57  ;;  %v17939_v56 = vld [vmem:[#allocation41_spill] sm:$0xff] }
 0x33b   : > { %v3592_v46 = vsub.f32 %v17920_v29, %v7114_v59  ;;  %v3641_v2 = vsel %vm3623_vm3, %v3591_v51, 0.0  ;;  %v17927_v15 = vsub.f32 %v17925_v0, %v17926_v17  ;;  %v3662_v7 = vadd.f32 %v3661_v14, %v3640_v10  ;;  %v7124_v45 = vpop.eup %7123  ;;  %v17941_v14 = vld [vmem:[#allocation37_spill] sm:$0xff]  ;;  %v17942_v59 = vld [vmem:[#allocation50_spill] sm:$0xff]  ;;  %v17944_v51 = vld [vmem:[#allocation56_spill] sm:$0xff] }
 0x33c   : > { %v3593_v62 = vsub.f32 %v17923_v31, %v7116_v37  ;;  %v3675_v28 = vadd.f32 %v3674_v50, %v3638_v36  ;;  %7141 = vpow2.f32 %v17928_v3  ;;  %v17931_v35 = vsub.f32 %v17929_v16, %v17930_v42  ;;  %v7126_v63 = vpop.eup %7125  ;;  %v17945_v36 = vld [vmem:[#allocation47_spill] sm:$0xff]  ;;  %v17955_v3 = vld [vmem:[#allocation24_spill] sm:$0xff] }
 0x33d   : > { %v3594_v1 = vsub.f32 %v17927_v15, %v7118_v38  ;;  %v3642_v48 = vsel %vm3623_vm3, %v3592_v46, 0.0  ;;  %v3669_v61 = vadd.f32 %v3668_v19, %v3641_v2  ;;  %7143 = vpow2.f32 %v13262_v43  ;;  %v7128_v53 = vpop.eup %7127  ;;  %v17947_v46 = vld [vmem:[#allocation44_spill] sm:$0xff]  ;;  %v17948_v10 = vld [vmem:[#allocation27_spill] sm:$0xff] }
 0x33e   : > { %v3595_v6 = vsub.f32 %v17931_v35, %v7120_v21  ;;  %v17934_v34 = vsub.f32 %v17932_v12, %v17933_v26  ;;  %v3682_v32 = vadd.f32 %v3681_v27, %v3639_v11  ;;  %7145 = vpow2.f32 %v13269_v40  ;;  %v7130_v50 = vpop.eup %7129  ;;  %v17950_v11 = vld [vmem:[#allocation31_spill] sm:$0xff]  ;;  %v17961_v12 = vld [vmem:[#allocation48_spill] sm:$0xff] }
 0x33f   : > { %v3644_v13 = vsel %vm3624_vm4, %v3594_v1, 0.0  ;;  %v17937_v5 = vsub.f32 %v17935_v20, %v17936_v25  ;;  %v3643_v23 = vsel %vm3623_vm3, %v3593_v62, 0.0  ;;  %7147 = vpow2.f32 %v13279_v47  ;;  %v7132_v29 = vpop.eup %7131  ;;  %v17951_v2 = vld [vmem:[#allocation63_spill] sm:$0xff] }
 0x340   : > { %v3596_v30 = vsub.f32 %v17934_v34, %v7122_v52  ;;  %v3645_v43 = vsel %vm3624_vm4, %v3595_v6, 0.0  ;;  %v17940_v58 = vsub.f32 %v17938_v33, %v17939_v56  ;;  %v13393_v40 = vadd.s32 %v13204_v60, %v17941_v14  ;;  %v17956_v16 = vld [vmem:[#allocation35_spill] sm:$0xff]  ;;  %v17958_v6 = vld [vmem:[#allocation14_spill] sm:$0xff]  ;;  %v17962_v34 = vld [vmem:[#allocation13_spill] sm:$0xff] }
 0x341   : > { %v3597_v9 = vsub.f32 %v17937_v5, %v7124_v45  ;;  %vm3625_vm5 = vcmp.lt.s32.totalorder %v13290_v39, 2560  ;;  %v3509_v44 = vsub.f32 %v17943_v4, %v17942_v59  ;;  %v17946_v19 = vsub.f32 %v17944_v51, %v17945_v36  ;;  %v7134_v62 = vpop.eup %7133  ;;  %v17957_v35 = vld [vmem:[#allocation51_spill] sm:$0xff]  ;;  %v17960_v45 = vld [vmem:[#allocation28_spill] sm:$0xff] }
 0x342   : > { %v3598_v24 = vsub.f32 %v17940_v58, %v7126_v63  ;;  %v3663_v49 = vadd.f32 %v3662_v7, %v3644_v13  ;;  %v3676_v47 = vadd.f32 %v3675_v28, %v3642_v48  ;;  %v17949_v27 = vsub.f32 %v17947_v46, %v17948_v10  ;;  %v7136_v1 = vpop.eup %7135  ;;  %v17953_v7 = vld [vmem:[#allocation65_spill] sm:$0xff]  ;;  %v17954_v28 = vld [vmem:[#allocation54_spill] sm:$0xff]  ;;  %v17965_v63 = vld [vmem:[#allocation40_spill] sm:$0xff] }
 0x343   : > { %v3599_v37 = vsub.f32 %v17946_v19, %v7128_v53  ;;  %v3646_v55 = vsel %vm3624_vm4, %v3596_v30, 0.0  ;;  %v3670_v18 = vadd.f32 %v3669_v61, %v3645_v43  ;;  %v3683_v31 = vadd.f32 %v3682_v32, %v3643_v23  ;;  %v7138_v41 = vpop.eup %7137  ;;  %v17963_v30 = vld [vmem:[#allocation68_spill] sm:$0xff]  ;;  %v6053_v33 = vld [vmem:[%s7778_s23 + $0xb00] sm:$0xff] }
 0x344   : > { %v3600_v38 = vsub.f32 %v17949_v27, %v7130_v50  ;;  %v17952_v21 = vsub.f32 %v17950_v11, %v17951_v2  ;;  %v3647_v0 = vsel %vm3624_vm4, %v3597_v9, 0.0  ;;  %v3648_v17 = vsel %vm3625_vm5, %v3598_v24, 0.0  ;;  %v7140_v5 = vpop.eup %7139  ;;  %v17966_v58 = vld [vmem:[#allocation12_spill] sm:$0xff]  ;;  %v17967_v24 = vld [vmem:[#allocation23_spill] sm:$0xff]  ;;  %v17973_v27 = vld [vmem:[#allocation57_spill] sm:$0xff] }
 0x345   : > { %v3649_v15 = vsel %vm3625_vm5, %v3599_v37, 0.0  ;;  %v3510_v52 = vsub.f32 %v17954_v28, %v17953_v7  ;;  %v3511_v42 = vsub.f32 %v17956_v16, %v17955_v3  ;;  %v17959_v48 = vsub.f32 %v17957_v35, %v17958_v6  ;;  %v6054_v36 = vld [vmem:[%s7778_s23 + $0xb08] sm:$0xff]  ;;  %v17969_v37 = vld [vmem:[#allocation59_spill] sm:$0xff]  ;;  %v6063_v6 = vld [vmem:[%s7778_s23 + $0xb50] sm:$0xff] }
 0x346   : > { %v3601_v57 = vsub.f32 %v17952_v21, %v7132_v29  ;;  %vm3626_vm6 = vcmp.lt.s32.totalorder %v13393_v40, 2560  ;;  %v3512_v26 = vsub.f32 %v17961_v12, %v17960_v45  ;;  %v17964_v13 = vsub.f32 %v17962_v34, %v17963_v30  ;;  %v7142_v56 = vpop.eup %7141  ;;  %v17972_v29 = vld [vmem:[#allocation19_spill] sm:$0xff]  ;;  %v6062_v35 = vld [vmem:[%s7778_s23 + $0xb48] sm:$0xff]  ;;  %v6064_v45 = vld [vmem:[%s7778_s23 + $0xb58] sm:$0xff] }
 0x347   : > { %v3602_v61 = vsub.f32 %v17959_v48, %v7134_v62  ;;  %v13430_v20 = vadd.s32 %v13204_v60, %v17965_v63  ;;  %v3677_v25 = vadd.f32 %v3676_v47, %v3646_v55  ;;  %v3650_v9 = vsel %vm3625_vm5, %v3600_v38, 0.0  ;;  %v7144_v19 = vpop.eup %7143  ;;  %v17974_v38 = vld [vmem:[#allocation39_spill] sm:$0xff]  ;;  %v6056_v62 = vld [vmem:[%s7778_s23 + $0xb18] sm:$0xff]  ;;  %v6067_v40 = vld [vmem:[%s7778_s23 + $0xb70] sm:$0xff] }
 0x348   : > { %v3603_v32 = vsub.f32 %v17964_v13, %v7136_v1  ;;  %v3664_v23 = vadd.f32 %v3663_v49, %v3648_v17  ;;  %v3671_v43 = vadd.f32 %v3670_v18, %v3649_v15  ;;  %v3684_v53 = vadd.f32 %v3683_v31, %v3647_v0  ;;  %v17970_v49 = vld [vmem:[#allocation16_spill] sm:$0xff]  ;;  %v6055_v31 = vld [vmem:[%s7778_s23 + $0xb10] sm:$0xff]  ;;  %v6057_v11 = vld [vmem:[%s7778_s23 + $0xb20] sm:$0xff] }
 0x349   : > { %v17968_v50 = vsub.f32 %v17966_v58, %v17967_v24  ;;  %v3605_v4 = vsub.f32 %v3509_v44, %v7140_v5  ;;  %v3651_v60 = vsel %vm3625_vm5, %v3601_v57, 0.0  ;;  %v3652_v51 = vsel %vm3626_vm6, %v3602_v61, 0.0  ;;  %v7146_v44 = vpop.eup %7145  ;;  %v6058_v17 = vld [vmem:[%s7778_s23 + $0xb28] sm:$0xff]  ;;  %v6059_v15 = vld [vmem:[%s7778_s23 + $0xb30] sm:$0xff]  ;;  %v6060_v1 = vld [vmem:[%s7778_s23 + $0xb38] sm:$0xff] }
 0x34a   : > { %v13445_v47 = vadd.f32 %v17970_v49, %v17969_v37  ;;  %v3513_v46 = vsub.f32 %v13248_v22, %v17972_v29  ;;  %v3606_v10 = vsub.f32 %v3510_v52, %v7142_v56  ;;  %v3653_v39 = vsel %vm3626_vm6, %v3603_v32, 0.0  ;;  %v7148_v2 = vpop.eup %7147  ;;  %v6065_v12 = vld [vmem:[%s7778_s23 + $0xb60] sm:$0xff]  ;;  %v6068_v30 = vld [vmem:[%s7778_s23 + $0xb78] sm:$0xff] }
 0x34b   : > { %v3604_v59 = vsub.f32 %v17968_v50, %v7138_v41  ;;  %v13453_v55 = vadd.f32 %v17974_v38, %v17973_v27  ;;  %v3607_v18 = vsub.f32 %v3511_v42, %v7144_v19  ;;  %vm3627_vm7 = vcmp.lt.s32.totalorder %v13430_v20, 2560  ;;  %v6061_v42 = vld [vmem:[%s7778_s23 + $0xb40] sm:$0xff]  ;;  %v6072_v56 = vld [vmem:[%s7778_s23 + $0xb98] sm:$0xff]  ;;  %v6079_v27 = vld [vmem:[%s7778_s23 + $0xbd0] sm:$0xff] }
 0x34c   : > { %17971 = vst [vmem:[#allocation49_spill] sm:$0xff] %v13445_v47  ;;  %v13459_v22 = vmul.f32 %v6053_v33, %v6053_v33  ;;  %v3665_v21 = vadd.f32 %v3664_v23, %v3652_v51  ;;  %v3678_v57 = vadd.f32 %v3677_v25, %v3650_v9  ;;  %v3685_v0 = vadd.f32 %v3684_v53, %v3651_v60  ;;  %v6069_v13 = vld [vmem:[%s7778_s23 + $0xb80] sm:$0xff]  ;;  %v6070_v53 = vld [vmem:[%s7778_s23 + $0xb88] sm:$0xff]  ;;  %v6071_v33 = vld [vmem:[%s7778_s23 + $0xb90] sm:$0xff] }
 0x34d   : > { %17975 = vst [vmem:[#allocation36_spill] sm:$0xff] %v13453_v55  ;;  %v13464_v7 = vmul.f32 %v6054_v36, %v6054_v36  ;;  %v3608_v28 = vsub.f32 %v3512_v26, %v7146_v44  ;;  %v3654_v52 = vsel %vm3626_vm6, %v3604_v59, 0.0  ;;  %v3655_v3 = vsel %vm3626_vm6, %v3605_v4, 0.0  ;;  %v6066_v26 = vld [vmem:[%s7778_s23 + $0xb68] sm:$0xff]  ;;  %v6073_v60 = vld [vmem:[%s7778_s23 + $0xba0] sm:$0xff]  ;;  %v6075_v36 = vld [vmem:[%s7778_s23 + $0xbb0] sm:$0xff] }
 0x34e   : > { %v3672_v16 = vadd.f32 %v3671_v43, %v3653_v39  ;;  %v3609_v48 = vsub.f32 %v3513_v46, %v7148_v2  ;;  %v3656_v61 = vsel %vm3627_vm7, %v3606_v10, 0.0  ;;  %v3657_v41 = vsel %vm3627_vm7, %v3607_v18, 0.0  ;;  %v6074_v51 = vld [vmem:[%s7778_s23 + $0xba8] sm:$0xff]  ;;  %v6076_v49 = vld [vmem:[%s7778_s23 + $0xbb8] sm:$0xff]  ;;  %v6077_v29 = vld [vmem:[%s7778_s23 + $0xbc0] sm:$0xff] }
 0x34f   : > { %v13480_v34 = vmul.f32 %v6055_v31, %v6055_v31  ;;  %v13485_v32 = vmul.f32 %v6056_v62, %v6056_v62  ;;  %v13487_v25 = vmul.f32 %v6057_v11, %v6057_v11  ;;  %v13489_v5 = vmul.f32 %v6058_v17, %v6058_v17  ;;  %v6078_v46 = vld [vmem:[%s7778_s23 + $0xbc8] sm:$0xff]  ;;  %v6080_v38 = vld [vmem:[%s7778_s23 + $0xbd8] sm:$0xff]  ;;  %v6081_v18 = vld [vmem:[%s7778_s23 + $0xbe0] sm:$0xff] }
 0x350   : > { %v13491_v9 = vmul.f32 %v6059_v15, %v6059_v15  ;;  %v13493_v23 = vadd.f32 %v3678_v57, %v3654_v52  ;;  %v13495_v43 = vadd.f32 %v3685_v0, %v3655_v3  ;;  %v13500_v58 = vmul.f32 %v6060_v1, %v6060_v1  ;;  %v6082_v2 = vld [vmem:[%s7778_s23 + $0xbe8] sm:$0xff]  ;;  %v6084_v57 = vld [vmem:[%s7778_s23 + $0xbf8] sm:$0xff]  ;;  %v13559_v3 = vld [vmem:[%s7784_s19 + $0xb10] sm:$0xff] }
 0x351   : > { %v13502_v24 = vmul.f32 %v6061_v42, %v6061_v42  ;;  %v13506_v50 = vsel %vm3627_vm7, %v3608_v28, 0.0  ;;  %v13508_v59 = vadd.f32 %v3665_v21, %v3656_v61  ;;  %v13510_v4 = vadd.f32 %v3672_v16, %v3657_v41  ;;  %v6083_v21 = vld [vmem:[%s7778_s23 + $0xbf0] sm:$0xff]  ;;  %v13553_v28 = vld [vmem:[%s7784_s19 + $0xb00] sm:$0xff]  ;;  %v13556_v52 = vld [vmem:[%s7784_s19 + $0xb08] sm:$0xff] }
 0x352   : > { %17976 = vst [vmem:[#allocation52_spill] sm:$0xff] %v13493_v23  ;;  %17977 = vst [vmem:[#allocation33_spill] sm:$0xff] %v13495_v43  ;;  %v13515_v19 = vmul.f32 %v6062_v35, %v6062_v35  ;;  %v13519_v37 = vsel %vm3627_vm7, %v3609_v48, 0.0  ;;  %v13524_v10 = vmul.f32 %v6063_v6, %v6063_v6  ;;  %v13526_v39 = vmul.f32 %v6064_v45, %v6064_v45  ;;  %v13570_v48 = vld [vmem:[%s7784_s19 + $0xb18] sm:$0xff]  ;;  %v13573_v61 = vld [vmem:[%s7784_s19 + $0xb20] sm:$0xff] }
 0x353   : > { %17978 = vst [vmem:[#allocation46_spill] sm:$0xff] %v13506_v50  ;;  %17979 = vst [vmem:[#allocation66_spill] sm:$0xff] %v13508_v59  ;;  %v13528_v44 = vmul.f32 %v6065_v12, %v6065_v12  ;;  %v13533_v20 = vmul.f32 %v6066_v26, %v6066_v26  ;;  %v13535_v31 = vmul.f32 %v6067_v40, %v6067_v40  ;;  %v13576_v41 = vld [vmem:[%s7784_s19 + $0xb28] sm:$0xff]  ;;  %v13641_v55 = vld [vmem:[%s7784_s19 + $0xb80] sm:$0xff] }
 0x354   : > { %17980 = vst [vmem:[#allocation43_spill] sm:$0xff] %v13510_v4  ;;  %17981 = vst [vmem:[#allocation38_spill] sm:$0xff] %v13519_v37  ;;  %v13537_v62 = vmul.f32 %v6068_v30, %v6068_v30  ;;  %v13539_v11 = vmul.f32 %v6069_v13, %v6069_v13  ;;  %v13544_v0 = vmul.f32 %v6070_v53, %v6070_v53  ;;  %v13587_v30 = vld [vmem:[%s7784_s19 + $0xb30] sm:$0xff]  ;;  %v13590_v13 = vld [vmem:[%s7784_s19 + $0xb38] sm:$0xff] }
 0x355   : > { %17982 = vst [vmem:[#allocation21_spill] sm:$0xff] %v13533_v20  ;;  %17983 = vst [vmem:[#allocation53_spill] sm:$0xff] %v13535_v31  ;;  %v13546_v17 = vmul.f32 %v6071_v33, %v6071_v33  ;;  %v13548_v15 = vmul.f32 %v6072_v56, %v6072_v56  ;;  %v13550_v1 = vmul.f32 %v6073_v60, %v6073_v60  ;;  %v13593_v53 = vld [vmem:[%s7784_s19 + $0xb40] sm:$0xff]  ;;  %v13644_v47 = vld [vmem:[%s7784_s19 + $0xb88] sm:$0xff]  ;;  %v3837_v63 = vmul.f32 1.442695, %v13587_v30 }
 0x356   : > { %17984 = vst [vmem:[#allocation62_spill] sm:$0xff] %v13537_v62  ;;  %17985 = vst [vmem:[#allocation67_spill] sm:$0xff] %v13539_v11  ;;  %v13561_v16 = vmul.f32 %v6074_v51, %v6074_v51  ;;  %v13563_v42 = vmul.f32 %v6075_v36, %v6075_v36  ;;  %v13565_v35 = vmul.f32 %v6076_v49, %v6076_v49  ;;  %v13604_v36 = vld [vmem:[%s7784_s19 + $0xb48] sm:$0xff]  ;;  %v13607_v49 = vld [vmem:[%s7784_s19 + $0xb50] sm:$0xff]  ;;  %v3857_v11 = vmul.f32 1.442695, %v13641_v55 }
 0x357   : > { %17986 = vst [vmem:[#allocation15_spill] sm:$0xff] %v13544_v0  ;;  %17987 = vst [vmem:[#allocation42_spill] sm:$0xff] %v13546_v17  ;;  %v13567_v6 = vmul.f32 %v6077_v29, %v6077_v29  ;;  %v13578_v45 = vmul.f32 %v6078_v46, %v6078_v46  ;;  %v13580_v12 = vmul.f32 %v6079_v27, %v6079_v27  ;;  %v13610_v29 = vld [vmem:[%s7784_s19 + $0xb58] sm:$0xff]  ;;  %v13655_v4 = vld [vmem:[%s7784_s19 + $0xb90] sm:$0xff]  ;;  %v3831_v17 = vmul.f32 1.442695, %v13570_v48 }
 0x358   : > { %17988 = vst [vmem:[#allocation25_spill] sm:$0xff] %v13548_v15  ;;  %17989 = vst [vmem:[#allocation29_spill] sm:$0xff] %v13550_v1  ;;  %v13582_v26 = vmul.f32 %v6080_v38, %v6080_v38  ;;  %v13584_v40 = vmul.f32 %v6081_v18, %v6081_v18  ;;  %v13595_v33 = vmul.f32 %v6082_v2, %v6082_v2  ;;  %v13621_v2 = vld [vmem:[%s7784_s19 + $0xb60] sm:$0xff]  ;;  %v13638_v51 = vld [vmem:[%s7784_s19 + $0xb78] sm:$0xff]  ;;  %v3825_v38 = vmul.f32 1.442695, %v13553_v28 }
 0x359   : > { %17990 = vst [vmem:[#allocation45_spill] sm:$0xff] %v13561_v16  ;;  %17991 = vst [vmem:[#allocation55_spill] sm:$0xff] %v13563_v42  ;;  %v13597_v56 = vmul.f32 %v6083_v21, %v6083_v21  ;;  %v13599_v60 = vmul.f32 %v6084_v57, %v6084_v57  ;;  %v13624_v21 = vld [vmem:[%s7784_s19 + $0xb68] sm:$0xff]  ;;  %v13627_v57 = vld [vmem:[%s7784_s19 + $0xb70] sm:$0xff]  ;;  %v3827_v1 = vmul.f32 1.442695, %v13556_v52 }
 0x35a   : > { %17992 = vst [vmem:[#allocation20_spill] sm:$0xff] %v13565_v35  ;;  %17993 = vst [vmem:[#allocation17_spill] sm:$0xff] %v13567_v6  ;;  %v13658_v59 = vld [vmem:[%s7784_s19 + $0xb98] sm:$0xff]  ;;  %v13661_v43 = vld [vmem:[%s7784_s19 + $0xba0] sm:$0xff]  ;;  %v3829_v15 = vmul.f32 1.442695, %v13559_v3  ;;  %7149 = vpow2.f32 %v3825_v38  ;;  %v13728_v38 = vstv %s3921_s7 }
 0x35b   : > { %17994 = vst [vmem:[#allocation64_spill] sm:$0xff] %v13578_v45  ;;  %17995 = vst [vmem:[#allocation61_spill] sm:$0xff] %v13580_v12  ;;  %v13672_v37 = vld [vmem:[%s7784_s19 + $0xba8] sm:$0xff]  ;;  %v13675_v23 = vld [vmem:[%s7784_s19 + $0xbb0] sm:$0xff]  ;;  %v3833_v35 = vmul.f32 1.442695, %v13573_v61  ;;  %7151 = vpow2.f32 %v3827_v1 }
 0x35c   : > { %17996 = vst [vmem:[#allocation41_spill] sm:$0xff] %v13582_v26  ;;  %17997 = vst [vmem:[#allocation50_spill] sm:$0xff] %v13584_v40  ;;  %v13678_v50 = vld [vmem:[%s7784_s19 + $0xbb8] sm:$0xff]  ;;  %v13689_v46 = vld [vmem:[%s7784_s19 + $0xbc0] sm:$0xff]  ;;  %v3835_v42 = vmul.f32 1.442695, %v13576_v41  ;;  %7153 = vpow2.f32 %v3829_v15 }
 0x35d   : > { %17998 = vst [vmem:[#allocation58_spill] sm:$0xff] %v13595_v33  ;;  %17999 = vst [vmem:[#allocation56_spill] sm:$0xff] %v13597_v56  ;;  %v13692_v56 = vld [vmem:[%s7784_s19 + $0xbc8] sm:$0xff]  ;;  %v13695_v33 = vld [vmem:[%s7784_s19 + $0xbd0] sm:$0xff]  ;;  %v3839_v45 = vmul.f32 1.442695, %v13590_v13  ;;  %7155 = vpow2.f32 %v3831_v17 }
 0x35e   : > { %18000 = vst [vmem:[#allocation47_spill] sm:$0xff] %v13599_v60  ;;  %18001 = vst [vmem:[#allocation44_spill] sm:$0xff] %v13624_v21  ;;  %v13711_v0 = vld [vmem:[%s7784_s19 + $0xbd8] sm:$0xff]  ;;  %v13714_v60 = vld [vmem:[%s7784_s19 + $0xbe0] sm:$0xff]  ;;  %v3841_v27 = vmul.f32 1.442695, %v13593_v53  ;;  %7157 = vpow2.f32 %v3833_v35 }
 0x35f   : > { %18002 = vst [vmem:[#allocation27_spill] sm:$0xff] %v13627_v57  ;;  %18003 = vst [vmem:[#allocation31_spill] sm:$0xff] %v13641_v55  ;;  %v3843_v18 = vmul.f32 1.442695, %v13604_v36  ;;  %v3845_v26 = vmul.f32 1.442695, %v13607_v49  ;;  %7159 = vpow2.f32 %v3835_v42 }
 0x360   : > { %18004 = vst [vmem:[#allocation63_spill] sm:$0xff] %v13655_v4  ;;  %18005 = vst [vmem:[#allocation65_spill] sm:$0xff] %v13658_v59  ;;  %v3847_v1 = vmul.f32 1.442695, %v13610_v29  ;;  %v3849_v6 = vmul.f32 1.442695, %v13621_v2  ;;  %7161 = vpow2.f32 %v3837_v63 }
 0x361   : > { %18006 = vst [vmem:[#allocation54_spill] sm:$0xff] %v13661_v43  ;;  %18007 = vst [vmem:[#allocation24_spill] sm:$0xff] %v13672_v37  ;;  %v3851_v15 = vmul.f32 1.442695, %v13624_v21  ;;  %v13737_v40 = vld [vmem:[%s7784_s19 + $0xbe8] sm:$0xff]  ;;  %v13740_v12 = vld [vmem:[%s7784_s19 + $0xbf0] sm:$0xff]  ;;  %7163 = vpow2.f32 %v3839_v45 }
 0x362   : > { %18008 = vst [vmem:[#allocation35_spill] sm:$0xff] %v13675_v23  ;;  %18009 = vst [vmem:[#allocation51_spill] sm:$0xff] %v13678_v50  ;;  %v3853_v17 = vmul.f32 1.442695, %v13627_v57  ;;  %v3855_v16 = vmul.f32 1.442695, %v13638_v51  ;;  %7165 = vpow2.f32 %v3841_v27 }
 0x363   : > { %18010 = vst [vmem:[#allocation14_spill] sm:$0xff] %v13689_v46  ;;  %18011 = vst [vmem:[#allocation28_spill] sm:$0xff] %v13692_v56  ;;  %v13746_v62 = vld [vmem:[%s7784_s19 + $0xbf8] sm:$0xff]  ;;  %v3859_v35 = vmul.f32 1.442695, %v13644_v47  ;;  %7167 = vpow2.f32 %v3843_v18 }
 0x364   : > { %18012 = vst [vmem:[#allocation48_spill] sm:$0xff] %v13695_v33  ;;  %18013 = vst [vmem:[#allocation13_spill] sm:$0xff] %v13711_v0  ;;  %v3861_v31 = vmul.f32 1.442695, %v13655_v4  ;;  %v3863_v20 = vmul.f32 1.442695, %v13658_v59  ;;  %v7150_v27 = vpop.eup %7149  ;;  %7169 = vpow2.f32 %v3845_v26 }
 0x365   : > { %18014 = vst [vmem:[#allocation68_spill] sm:$0xff] %v13714_v60  ;;  %18015 = vst [vmem:[#allocation12_spill] sm:$0xff] %v13737_v40  ;;  %v3865_v21 = vmul.f32 1.442695, %v13661_v43  ;;  %v13753_v42 = vmul.f32 1.442695, %v13672_v37  ;;  %v7152_v18 = vpop.eup %7151  ;;  %7171 = vpow2.f32 %v3847_v1  ;;  %v13802_v1 = vadd.s32 %v13728_v38, %v17671_v54 }
 0x366   : > { %18016 = vst [vmem:[#allocation23_spill] sm:$0xff] %v13740_v12  ;;  %18017 = vst [vmem:[#allocation59_spill] sm:$0xff] %v13746_v62  ;;  %v13756_v57 = vmul.f32 1.442695, %v13675_v23  ;;  %v13759_v55 = vmul.f32 1.442695, %v13678_v50  ;;  %7173 = vpow2.f32 %v3849_v6  ;;  %v18025_v6 = vsub.f32 %v13559_v3, %v13480_v34 }
 0x367   : > { %v13762_v63 = vmul.f32 1.442695, %v13689_v46  ;;  %v13765_v4 = vmul.f32 1.442695, %v13692_v56  ;;  %v13768_v45 = vmul.f32 1.442695, %v13695_v33  ;;  %7175 = vpow2.f32 %v3851_v15 }
 0x368   : > { %v13771_v37 = vmul.f32 1.442695, %v13711_v0  ;;  %v18018_v43 = vld [vmem:[#allocation11_spill] sm:$0xff]  ;;  %v13776_v50 = vmul.f32 1.442695, %v13714_v60  ;;  %v18021_v0 = vld [vmem:[#allocation18_spill] sm:$0xff]  ;;  %v7154_v60 = vpop.eup %7153  ;;  %7177 = vpow2.f32 %v3853_v17  ;;  %v13819_v15 = vadd.s32 %v13728_v38, %v17941_v14 }
 0x369   : > { %v3923_v23 = vadd.s32 %v13728_v38, %v18018_v43  ;;  %v13779_v46 = vmul.f32 1.442695, %v13737_v40  ;;  %v13782_v56 = vmul.f32 1.442695, %v13740_v12  ;;  %v13785_v33 = vmul.f32 1.442695, %v13746_v62  ;;  %v7156_v62 = vpop.eup %7155 }
 0x36a   : > { %v3924_v59 = vadd.s32 %v13728_v38, %v18021_v0  ;;  %v18022_v43 = vld [vmem:[#allocation22_spill] sm:$0xff]  ;;  %v18023_v40 = vsub.f32 %v13553_v28, %v13459_v22  ;;  %v13798_v12 = vadd.s32 %v13728_v38, %v17905_v8  ;;  %v7158_v22 = vpop.eup %7157  ;;  %v18026_v28 = vsub.f32 %v13570_v48, %v13485_v32 }
 0x36b   : > { %18019 = vst [vmem:[#allocation16_spill] sm:$0xff] %v13779_v46  ;;  %18020 = vst [vmem:[#allocation19_spill] sm:$0xff] %v13785_v33  ;;  %v13791_v26 = vadd.s32 %v13728_v38, %v18022_v43  ;;  %v18024_v43 = vsub.f32 %v13556_v52, %v13464_v7  ;;  %v3891_v33 = vsub.f32 %v18025_v6, %v7154_v60  ;;  %vm3931_vm8 = vcmp.lt.s32.totalorder %v3923_v23, 2560  ;;  %v7160_v7 = vpop.eup %7159 }
 0x36c   : > { %v3889_v46 = vsub.f32 %v18023_v40, %v7150_v27  ;;  %v3892_v40 = vsub.f32 %v18026_v28, %v7156_v62  ;;  %v18027_v27 = vld [vmem:[#allocation34_spill] sm:$0xff]  ;;  %7179 = vpow2.f32 %v3855_v16  ;;  %v18028_v34 = vsub.f32 %v13573_v61, %v13487_v25  ;;  %v7162_v52 = vpop.eup %7161 }
 0x36d   : > { %v3890_v0 = vsub.f32 %v18024_v43, %v7152_v18  ;;  %v13815_v54 = vadd.s32 %v13728_v38, %v18027_v27  ;;  %vm3932_vm9 = vcmp.lt.s32.totalorder %v3924_v59, 2560  ;;  %vm3933_vm10 = vcmp.lt.s32.totalorder %v13791_v26, 2560  ;;  %v7164_v48 = vpop.eup %7163 }
 0x36e   : > { %v3893_v43 = vsub.f32 %v18028_v34, %v7158_v22  ;;  %7181 = vpow2.f32 %v3857_v11  ;;  %v18029_v32 = vsub.f32 %v13576_v41, %v13489_v5  ;;  %vm3934_vm11 = vcmp.lt.s32.totalorder %v13798_v12, 2560  ;;  %v7166_v17 = vpop.eup %7165 }
 0x36f   : > { %v3939_v3 = vsel %vm3931_vm8, %v3889_v46, 0.0  ;;  %7183 = vpow2.f32 %v3859_v35  ;;  %v18030_v16 = vsub.f32 %v13587_v30, %v13491_v9  ;;  %v3940_v61 = vsel %vm3931_vm8, %v3890_v0, 0.0  ;;  %v7168_v35 = vpop.eup %7167 }
 0x370   : > { %v3894_v62 = vsub.f32 %v18029_v32, %v7160_v7  ;;  %v3941_v60 = vsel %vm3931_vm8, %v3891_v33, 0.0  ;;  %7185 = vpow2.f32 %v3861_v31  ;;  %v18031_v5 = vsub.f32 %v13590_v13, %v13500_v58  ;;  %v7170_v33 = vpop.eup %7169 }
 0x371   : > { %v3895_v25 = vsub.f32 %v18030_v16, %v7162_v52  ;;  %vm3935_vm12 = vcmp.lt.s32.totalorder %v13802_v1, 2560  ;;  %v3942_v41 = vsel %vm3931_vm8, %v3892_v40, 0.0  ;;  %v3943_v46 = vsel %vm3932_vm9, %v3893_v43, 0.0  ;;  %v7172_v6 = vpop.eup %7171  ;;  %v18073_v1 = vld [vmem:[#allocation56_spill] sm:$0xff] }
 0x372   : > { %v3896_v11 = vsub.f32 %v18031_v5, %v7164_v48  ;;  %7187 = vpow2.f32 %v3863_v20  ;;  %v18032_v9 = vsub.f32 %v13593_v53, %v13502_v24  ;;  %v3944_v30 = vsel %vm3932_vm9, %v3894_v62, 0.0  ;;  %v7174_v28 = vpop.eup %7173  ;;  %v18045_v5 = vld [vmem:[#allocation31_spill] sm:$0xff] }
 0x373   : > { %v3945_v31 = vsel %vm3932_vm9, %v3895_v25, 0.0  ;;  %7189 = vpow2.f32 %v3865_v21  ;;  %v18033_v58 = vsub.f32 %v13604_v36, %v13515_v19  ;;  %v3971_v18 = vadd.f32 %v3943_v46, %v3939_v3  ;;  %v18043_v25 = vld [vmem:[#allocation62_spill] sm:$0xff] }
 0x374   : > { %v3897_v0 = vsub.f32 %v18032_v9, %v7166_v17  ;;  %v3946_v23 = vsel %vm3932_vm9, %v3896_v11, 0.0  ;;  %7191 = vpow2.f32 %v13753_v42  ;;  %v18034_v24 = vsub.f32 %v13607_v49, %v13524_v10  ;;  %v7176_v42 = vpop.eup %7175  ;;  %v18046_v11 = vld [vmem:[#allocation67_spill] sm:$0xff] }
 0x375   : > { %v3898_v13 = vsub.f32 %v18033_v58, %v7168_v35  ;;  %v3978_v22 = vadd.f32 %v3944_v30, %v3940_v61  ;;  %7193 = vpow2.f32 %v13756_v57  ;;  %v18035_v19 = vsub.f32 %v13610_v29, %v13526_v39  ;;  %v7178_v57 = vpop.eup %7177  ;;  %v18037_v39 = vld [vmem:[#allocation44_spill] sm:$0xff]  ;;  %v18038_v29 = vld [vmem:[#allocation21_spill] sm:$0xff] }
 0x376   : > { %v3899_v20 = vsub.f32 %v18034_v24, %v7170_v33  ;;  %v3947_v53 = vsel %vm3933_vm10, %v3897_v0, 0.0  ;;  %7195 = vpow2.f32 %v13759_v55  ;;  %v18036_v10 = vsub.f32 %v13621_v2, %v13528_v44  ;;  %v7180_v55 = vpop.eup %7179  ;;  %v18040_v44 = vld [vmem:[#allocation27_spill] sm:$0xff]  ;;  %v18041_v2 = vld [vmem:[#allocation53_spill] sm:$0xff]  ;;  %v18050_v58 = vld [vmem:[#allocation16_spill] sm:$0xff] }
 0x377   : > { %v3900_v59 = vsub.f32 %v18035_v19, %v7172_v6  ;;  %v3948_v36 = vsel %vm3933_vm10, %v3898_v13, 0.0  ;;  %v3972_v21 = vadd.f32 %v3971_v18, %v3947_v53  ;;  %7197 = vpow2.f32 %v13762_v63  ;;  %v18051_v13 = vld [vmem:[#allocation63_spill] sm:$0xff]  ;;  %v18055_v53 = vld [vmem:[#allocation25_spill] sm:$0xff] }
 0x378   : > { %v3901_v49 = vsub.f32 %v18036_v10, %v7174_v28  ;;  %v3949_v40 = vsel %vm3933_vm10, %v3899_v20, 0.0  ;;  %v3979_v7 = vadd.f32 %v3978_v22, %v3948_v36  ;;  %v18039_v34 = vsub.f32 %v18037_v39, %v18038_v29  ;;  %v7182_v63 = vpop.eup %7181  ;;  %v18058_v36 = vld [vmem:[#allocation54_spill] sm:$0xff] }
 0x379   : > { %v3950_v52 = vsel %vm3933_vm10, %v3900_v59, 0.0  ;;  %v3985_v32 = vadd.f32 %v3945_v31, %v3941_v60  ;;  %7199 = vpow2.f32 %v13765_v4  ;;  %v18042_v62 = vsub.f32 %v18040_v44, %v18041_v2  ;;  %v7184_v4 = vpop.eup %7183  ;;  %v18057_v59 = vld [vmem:[#allocation19_spill] sm:$0xff] }
 0x37a   : > { %v3902_v43 = vsub.f32 %v18039_v34, %v7176_v42  ;;  %v3951_v48 = vsel %vm3934_vm11, %v3901_v49, 0.0  ;;  %v3992_v16 = vadd.f32 %v3946_v23, %v3942_v41  ;;  %7201 = vpow2.f32 %v13768_v45  ;;  %v7186_v45 = vpop.eup %7185  ;;  %v18052_v23 = vld [vmem:[#allocation42_spill] sm:$0xff]  ;;  %v18065_v44 = vld [vmem:[#allocation55_spill] sm:$0xff] }
 0x37b   : > { %v3903_v3 = vsub.f32 %v18042_v62, %v7178_v57  ;;  %v18044_v61 = vsub.f32 %v13638_v51, %v18043_v25  ;;  %v3973_v17 = vadd.f32 %v3972_v21, %v3951_v48  ;;  %7203 = vpow2.f32 %v13771_v37  ;;  %v18048_v51 = vld [vmem:[#allocation15_spill] sm:$0xff]  ;;  %v18059_v21 = vld [vmem:[#allocation29_spill] sm:$0xff] }
 0x37c   : > { %v3952_v60 = vsel %vm3934_vm11, %v3902_v43, 0.0  ;;  %v18047_v46 = vsub.f32 %v18045_v5, %v18046_v11  ;;  %7205 = vpow2.f32 %v13776_v50  ;;  %v18049_v0 = vsub.f32 %v13644_v47, %v18048_v51  ;;  %v7188_v37 = vpop.eup %7187  ;;  %v18054_v47 = vld [vmem:[#allocation65_spill] sm:$0xff] }
 0x37d   : > { %v3904_v26 = vsub.f32 %v18044_v61, %v7180_v55  ;;  %v3953_v41 = vsel %vm3934_vm11, %v3903_v3, 0.0  ;;  %v3980_v9 = vadd.f32 %v3979_v7, %v3952_v60  ;;  %v3986_v33 = vadd.f32 %v3985_v32, %v3949_v40  ;;  %v7190_v50 = vpop.eup %7189  ;;  %v18061_v7 = vld [vmem:[#allocation24_spill] sm:$0xff]  ;;  %v18062_v57 = vld [vmem:[#allocation45_spill] sm:$0xff]  ;;  %v18064_v55 = vld [vmem:[#allocation35_spill] sm:$0xff] }
 0x37e   : > { %v3905_v35 = vsub.f32 %v18047_v46, %v7182_v63  ;;  %v3906_v30 = vsub.f32 %v18049_v0, %v7184_v4  ;;  %7207 = vpow2.f32 %v18050_v58  ;;  %v18053_v18 = vsub.f32 %v18051_v13, %v18052_v23  ;;  %v7192_v19 = vpop.eup %7191  ;;  %v18067_v3 = vld [vmem:[#allocation40_spill] sm:$0xff]  ;;  %v18068_v61 = vld [vmem:[#allocation51_spill] sm:$0xff]  ;;  %v18076_v51 = vld [vmem:[#allocation17_spill] sm:$0xff] }
 0x37f   : > { %v3954_v31 = vsel %vm3934_vm11, %v3904_v26, 0.0  ;;  %v3993_v20 = vadd.f32 %v3992_v16, %v3950_v52  ;;  %7209 = vpow2.f32 %v13782_v56  ;;  %v18056_v22 = vsub.f32 %v18054_v47, %v18055_v53  ;;  %v7194_v40 = vpop.eup %7193  ;;  %v18069_v26 = vld [vmem:[#allocation20_spill] sm:$0xff]  ;;  %v18082_v47 = vld [vmem:[#allocation61_spill] sm:$0xff] }
 0x380   : > { %v3907_v6 = vsub.f32 %v18053_v18, %v7186_v45  ;;  %v3955_v24 = vsel %vm3935_vm12, %v3905_v35, 0.0  ;;  %vm3936_vm13 = vcmp.lt.s32.totalorder %v13815_v54, 2560  ;;  %v3956_v28 = vsel %vm3935_vm12, %v3906_v30, 0.0  ;;  %v7196_v32 = vpop.eup %7195  ;;  %v18072_v46 = vld [vmem:[#allocation12_spill] sm:$0xff]  ;;  %v18075_v45 = vld [vmem:[#allocation14_spill] sm:$0xff] }
 0x381   : > { %v3908_v12 = vsub.f32 %v18056_v22, %v7188_v37  ;;  %7211 = vpow2.f32 %v18057_v59  ;;  %v18060_v42 = vsub.f32 %v18058_v36, %v18059_v21  ;;  %v3974_v56 = vadd.f32 %v3973_v17, %v3955_v24  ;;  %v7198_v25 = vpop.eup %7197  ;;  %v18078_v37 = vld [vmem:[#allocation28_spill] sm:$0xff]  ;;  %v18084_v36 = vld [vmem:[#allocation47_spill] sm:$0xff] }
 0x382   : > { %v3957_v49 = vsel %vm3935_vm12, %v3907_v6, 0.0  ;;  %v18063_v39 = vsub.f32 %v18061_v7, %v18062_v57  ;;  %v3981_v34 = vadd.f32 %v3980_v9, %v3956_v28  ;;  %v3987_v43 = vadd.f32 %v3986_v33, %v3953_v41  ;;  %v18074_v41 = vld [vmem:[#allocation23_spill] sm:$0xff]  ;;  %v18079_v58 = vld [vmem:[#allocation64_spill] sm:$0xff]  ;;  %v18089_v57 = vld [vmem:[#allocation46_spill] sm:$0xff] }
 0x383   : > { %v3909_v10 = vsub.f32 %v18060_v42, %v7190_v50  ;;  %v3994_v52 = vadd.f32 %v3993_v20, %v3954_v31  ;;  %v18066_v2 = vsub.f32 %v18064_v55, %v18065_v44  ;;  %v13925_v48 = vadd.s32 %v13728_v38, %v18067_v3  ;;  %v7200_v11 = vpop.eup %7199  ;;  %v18071_v38 = vld [vmem:[#allocation58_spill] sm:$0xff]  ;;  %v18081_v50 = vld [vmem:[#allocation48_spill] sm:$0xff]  ;;  %v18085_v21 = vld [vmem:[#allocation59_spill] sm:$0xff] }
 0x384   : > { %v3910_v29 = vsub.f32 %v18063_v39, %v7192_v19  ;;  %v3958_v16 = vsel %vm3935_vm12, %v3908_v12, 0.0  ;;  %v18070_v60 = vsub.f32 %v18068_v61, %v18069_v26  ;;  %vm3937_vm14 = vcmp.lt.s32.totalorder %v13819_v15, 2560  ;;  %v7202_v33 = vpop.eup %7201  ;;  %v18090_v39 = vld [vmem:[#allocation52_spill] sm:$0xff]  ;;  %v18094_v55 = vld [vmem:[#allocation50_spill] sm:$0xff] }
 0x385   : > { %v3911_v62 = vsub.f32 %v18066_v2, %v7194_v40  ;;  %v3959_v63 = vsel %vm3936_vm13, %v3909_v10, 0.0  ;;  %v3988_v5 = vadd.f32 %v3987_v43, %v3957_v49  ;;  %v3822_v35 = vsub.f32 %v18072_v46, %v18071_v38  ;;  %v7204_v20 = vpop.eup %7203  ;;  %v18086_v10 = vld [vmem:[#allocation13_spill] sm:$0xff]  ;;  %v6118_v46 = vld [vmem:[%s7778_s23 + $0xc08] sm:$0xff]  ;;  %v14209_v3 = vld [vmem:[%s7784_s19 + $0xcb8] sm:$0xff] }
 0x386   : > { %v3912_v17 = vsub.f32 %v18070_v60, %v7196_v32  ;;  %v3960_v4 = vsel %vm3936_vm13, %v3910_v29, 0.0  ;;  %v3823_v9 = vsub.f32 %v18074_v41, %v18073_v1  ;;  %v18077_v0 = vsub.f32 %v18075_v45, %v18076_v51  ;;  %v7206_v59 = vpop.eup %7205  ;;  %v18087_v49 = vld [vmem:[#allocation41_spill] sm:$0xff]  ;;  %v18093_v32 = vld [vmem:[#allocation68_spill] sm:$0xff]  ;;  %v6117_v60 = vld [vmem:[%s7778_s23 + $0xc00] sm:$0xff]  ;;  %18135 = vst [vmem:[#allocation48_spill] sm:$0xff] %v14209_v3 }
 0x387   : > { %v3961_v31 = vsel %vm3936_vm13, %v3911_v62, 0.0  ;;  %v18080_v13 = vsub.f32 %v18078_v37, %v18079_v58  ;;  %v3975_v18 = vadd.f32 %v3974_v56, %v3959_v63  ;;  %v3982_v6 = vadd.f32 %v3981_v34, %v3960_v4  ;;  %v18091_v34 = vld [vmem:[#allocation38_spill] sm:$0xff]  ;;  %v18092_v43 = vld [vmem:[#allocation33_spill] sm:$0xff]  ;;  %v18096_v41 = vld [vmem:[#allocation60_spill] sm:$0xff] }
 0x388   : > { %v3913_v30 = vsub.f32 %v18077_v0, %v7198_v25  ;;  %v3995_v24 = vadd.f32 %v3994_v52, %v3958_v16  ;;  %v18083_v53 = vsub.f32 %v18081_v50, %v18082_v47  ;;  %v3962_v12 = vsel %vm3936_vm13, %v3912_v17, 0.0  ;;  %v7208_v54 = vpop.eup %7207  ;;  %v6120_v1 = vld [vmem:[%s7778_s23 + $0xc18] sm:$0xff]  ;;  %v18099_v37 = vld [vmem:[#allocation43_spill] sm:$0xff]  ;;  %v6126_v47 = vld [vmem:[%s7778_s23 + $0xc48] sm:$0xff] }
 0x389   : > { %v3914_v23 = vsub.f32 %v18080_v13, %v7200_v11  ;;  %v3989_v19 = vadd.f32 %v3988_v5, %v3961_v31  ;;  %v3824_v42 = vsub.f32 %v18085_v21, %v18084_v36  ;;  %v18088_v56 = vsub.f32 %v18086_v10, %v18087_v49  ;;  %v7210_v16 = vpop.eup %7209  ;;  %v18097_v45 = vld [vmem:[#allocation66_spill] sm:$0xff]  ;;  %v6123_v31 = vld [vmem:[%s7778_s23 + $0xc30] sm:$0xff]  ;;  %v6125_v50 = vld [vmem:[%s7778_s23 + $0xc40] sm:$0xff] }
 0x38a   : > { %v3915_v22 = vsub.f32 %v18083_v53, %v7202_v33  ;;  %v3963_v28 = vsel %vm3937_vm14, %v3913_v30, 0.0  ;;  %vm3938_vm15 = vcmp.lt.s32.totalorder %v13925_v48, 2560  ;;  %v3680_v29 = vadd.f32 %v18090_v39, %v18089_v57  ;;  %v6122_v30 = vld [vmem:[%s7778_s23 + $0xc28] sm:$0xff]  ;;  %v18100_v13 = vld [vmem:[#allocation49_spill] sm:$0xff] }
 0x38b   : > { %v3916_v40 = vsub.f32 %v18088_v56, %v7204_v20  ;;  %v3964_v7 = vsel %vm3937_vm14, %v3914_v23, 0.0  ;;  %v3687_v52 = vadd.f32 %v18092_v43, %v18091_v34  ;;  %v18095_v44 = vsub.f32 %v18093_v32, %v18094_v55  ;;  %v7212_v17 = vpop.eup %7211  ;;  %v18098_v33 = vld [vmem:[#allocation32_spill] sm:$0xff]  ;;  %v6124_v20 = vld [vmem:[%s7778_s23 + $0xc38] sm:$0xff]  ;;  %v6131_v49 = vld [vmem:[%s7778_s23 + $0xc70] sm:$0xff] }
 0x38c   : > { %v3965_v62 = vsel %vm3937_vm14, %v3915_v22, 0.0  ;;  %v3918_v63 = vsub.f32 %v3822_v35, %v7208_v54  ;;  %v3976_v25 = vadd.f32 %v3975_v18, %v3963_v28  ;;  %v3983_v61 = vadd.f32 %v3982_v6, %v3964_v7  ;;  %v6119_v35 = vld [vmem:[%s7778_s23 + $0xc10] sm:$0xff]  ;;  %v18101_v18 = vld [vmem:[#allocation36_spill] sm:$0xff]  ;;  %v6132_v56 = vld [vmem:[%s7778_s23 + $0xc78] sm:$0xff] }
 0x38d   : > { %v3917_v2 = vsub.f32 %v18095_v44, %v7206_v59  ;;  %v3996_v26 = vadd.f32 %v3995_v24, %v3962_v12  ;;  %v3919_v4 = vsub.f32 %v3823_v9, %v7210_v16  ;;  %v3966_v5 = vsel %vm3937_vm14, %v3916_v40, 0.0  ;;  %v6121_v9 = vld [vmem:[%s7778_s23 + $0xc20] sm:$0xff]  ;;  %v6127_v28 = vld [vmem:[%s7778_s23 + $0xc50] sm:$0xff]  ;;  %v6130_v10 = vld [vmem:[%s7778_s23 + $0xc68] sm:$0xff] }
 0x38e   : > { %v3990_v38 = vadd.f32 %v3989_v19, %v3965_v62  ;;  %v3688_v51 = vadd.f32 %v18097_v45, %v18096_v41  ;;  %v3920_v0 = vsub.f32 %v3824_v42, %v7212_v17  ;;  %v3968_v15 = vsel %vm3938_vm15, %v3918_v63, 0.0  ;;  %v6128_v19 = vld [vmem:[%s7778_s23 + $0xc58] sm:$0xff]  ;;  %v6129_v59 = vld [vmem:[%s7778_s23 + $0xc60] sm:$0xff]  ;;  %v6134_v57 = vld [vmem:[%s7778_s23 + $0xc88] sm:$0xff] }
 0x38f   : > { %v3967_v11 = vsel %vm3938_vm15, %v3917_v2, 0.0  ;;  %v3689_v58 = vadd.f32 %v18099_v37, %v18098_v33  ;;  %v3690_v23 = vadd.f32 %v3680_v29, %v18100_v13  ;;  %v13992_v6 = vadd.f32 %v3687_v52, %v18101_v18  ;;  %v6133_v54 = vld [vmem:[%s7778_s23 + $0xc80] sm:$0xff]  ;;  %v6135_v39 = vld [vmem:[%s7778_s23 + $0xc90] sm:$0xff]  ;;  %v6136_v52 = vld [vmem:[%s7778_s23 + $0xc98] sm:$0xff] }
 0x390   : > { %v3969_v24 = vsel %vm3938_vm15, %v3919_v4, 0.0  ;;  %v3977_v53 = vadd.f32 %v3976_v25, %v3967_v11  ;;  %v3984_v22 = vadd.f32 %v3983_v61, %v3968_v15  ;;  %v3997_v12 = vadd.f32 %v3996_v26, %v3966_v5  ;;  %v6137_v32 = vld [vmem:[%s7778_s23 + $0xca0] sm:$0xff]  ;;  %v6138_v55 = vld [vmem:[%s7778_s23 + $0xca8] sm:$0xff]  ;;  %v6139_v26 = vld [vmem:[%s7778_s23 + $0xcb0] sm:$0xff] }
 0x391   : > { %18102 = vst [vmem:[#allocation57_spill] sm:$0xff] %v13992_v6  ;;  %v14002_v36 = vmul.f32 %v6117_v60, %v6117_v60  ;;  %v3970_v21 = vsel %vm3938_vm15, %v3920_v0, 0.0  ;;  %v3991_v42 = vadd.f32 %v3990_v38, %v3969_v24  ;;  %v14009_v40 = vmul.f32 %v6118_v46, %v6118_v46  ;;  %v6140_v60 = vld [vmem:[%s7778_s23 + $0xcb8] sm:$0xff]  ;;  %v6141_v17 = vld [vmem:[%s7778_s23 + $0xcc0] sm:$0xff]  ;;  %v6142_v11 = vld [vmem:[%s7778_s23 + $0xcc8] sm:$0xff] }
 0x392   : > { %v14011_v7 = vmul.f32 %v6119_v35, %v6119_v35  ;;  %v14016_v29 = vmul.f32 %v6120_v1, %v6120_v1  ;;  %v14018_v48 = vmul.f32 %v6121_v9, %v6121_v9  ;;  %v14020_v34 = vmul.f32 %v6122_v30, %v6122_v30  ;;  %v6143_v38 = vld [vmem:[%s7778_s23 + $0xcd0] sm:$0xff]  ;;  %v6144_v46 = vld [vmem:[%s7778_s23 + $0xcd8] sm:$0xff]  ;;  %v6145_v45 = vld [vmem:[%s7778_s23 + $0xce0] sm:$0xff] }
 0x393   : > { %v14022_v43 = vmul.f32 %v6123_v31, %v6123_v31  ;;  %v14027_v44 = vmul.f32 %v6124_v20, %v6124_v20  ;;  %v14029_v2 = vmul.f32 %v6125_v50, %v6125_v50  ;;  %v14031_v62 = vmul.f32 %v6126_v47, %v6126_v47  ;;  %v6147_v0 = vld [vmem:[%s7778_s23 + $0xcf0] sm:$0xff]  ;;  %v6148_v33 = vld [vmem:[%s7778_s23 + $0xcf8] sm:$0xff]  ;;  %v14070_v37 = vld [vmem:[%s7784_s19 + $0xc00] sm:$0xff] }
 0x394   : > { %v14033_v16 = vmul.f32 %v6127_v28, %v6127_v28  ;;  %v14035_v63 = vadd.f32 %v3997_v12, %v3970_v21  ;;  %v14037_v25 = vadd.f32 %v3977_v53, %v3688_v51  ;;  %v14039_v61 = vadd.f32 %v3984_v22, %v3689_v58  ;;  %v6146_v51 = vld [vmem:[%s7778_s23 + $0xce8] sm:$0xff]  ;;  %v14084_v20 = vld [vmem:[%s7784_s19 + $0xc10] sm:$0xff]  ;;  %v14087_v50 = vld [vmem:[%s7784_s19 + $0xc18] sm:$0xff] }
 0x395   : > { %v14044_v4 = vmul.f32 %v6128_v19, %v6128_v19  ;;  %v14046_v5 = vadd.f32 %v3991_v42, %v3690_v23  ;;  %v14051_v35 = vmul.f32 %v6129_v59, %v6129_v59  ;;  %v14053_v1 = vmul.f32 %v6130_v10, %v6130_v10  ;;  %v14073_v58 = vld [vmem:[%s7784_s19 + $0xc08] sm:$0xff]  ;;  %v14090_v47 = vld [vmem:[%s7784_s19 + $0xc20] sm:$0xff]  ;;  %v14104_v59 = vld [vmem:[%s7784_s19 + $0xc30] sm:$0xff] }
 0x396   : > { %18103 = vst [vmem:[#allocation39_spill] sm:$0xff] %v14035_v63  ;;  %18104 = vst [vmem:[#allocation34_spill] sm:$0xff] %v14037_v25  ;;  %v14055_v41 = vmul.f32 %v6131_v49, %v6131_v49  ;;  %v14060_v15 = vmul.f32 %v6132_v56, %v6132_v56  ;;  %v14062_v9 = vmul.f32 %v6133_v54, %v6133_v54  ;;  %v14101_v19 = vld [vmem:[%s7784_s19 + $0xc28] sm:$0xff]  ;;  %v14107_v21 = vld [vmem:[%s7784_s19 + $0xc38] sm:$0xff]  ;;  %v4136_v63 = vmul.f32 1.442695, %v14070_v37 }
 0x397   : > { %18105 = vst [vmem:[#allocation44_spill] sm:$0xff] %v14039_v61  ;;  %18106 = vst [vmem:[#allocation21_spill] sm:$0xff] %v14046_v5  ;;  %v14064_v30 = vmul.f32 %v6134_v57, %v6134_v57  ;;  %v14066_v31 = vmul.f32 %v6135_v39, %v6135_v39  ;;  %v14075_v13 = vmul.f32 %v6136_v52, %v6136_v52  ;;  %v14118_v54 = vld [vmem:[%s7784_s19 + $0xc40] sm:$0xff]  ;;  %v14121_v57 = vld [vmem:[%s7784_s19 + $0xc48] sm:$0xff]  ;;  %v4138_v6 = vmul.f32 1.442695, %v14073_v58 }
 0x398   : > { %18107 = vst [vmem:[#allocation27_spill] sm:$0xff] %v14053_v1  ;;  %18108 = vst [vmem:[#allocation53_spill] sm:$0xff] %v14055_v41  ;;  %v14077_v23 = vmul.f32 %v6137_v32, %v6137_v32  ;;  %v14079_v18 = vmul.f32 %v6138_v55, %v6138_v55  ;;  %v14081_v24 = vmul.f32 %v6139_v26, %v6139_v26  ;;  %v14124_v39 = vld [vmem:[%s7784_s19 + $0xc50] sm:$0xff]  ;;  %v14158_v26 = vld [vmem:[%s7784_s19 + $0xc80] sm:$0xff]  ;;  %v4140_v61 = vmul.f32 1.442695, %v14084_v20 }
 0x399   : > { %18109 = vst [vmem:[#allocation62_spill] sm:$0xff] %v14060_v15  ;;  %18110 = vst [vmem:[#allocation31_spill] sm:$0xff] %v14062_v9  ;;  %v14092_v53 = vmul.f32 %v6140_v60, %v6140_v60  ;;  %v14094_v22 = vmul.f32 %v6141_v17, %v6141_v17  ;;  %v14096_v12 = vmul.f32 %v6142_v11, %v6142_v11  ;;  %v14135_v60 = vld [vmem:[%s7784_s19 + $0xc58] sm:$0xff]  ;;  %v14138_v17 = vld [vmem:[%s7784_s19 + $0xc60] sm:$0xff]  ;;  %7213 = vpow2.f32 %v4136_v63 }
 0x39a   : > { %18111 = vst [vmem:[#allocation67_spill] sm:$0xff] %v14064_v30  ;;  %18112 = vst [vmem:[#allocation15_spill] sm:$0xff] %v14066_v31  ;;  %v14098_v28 = vmul.f32 %v6143_v38, %v6143_v38  ;;  %v14109_v42 = vmul.f32 %v6144_v46, %v6144_v46  ;;  %v14111_v10 = vmul.f32 %v6145_v45, %v6145_v45  ;;  %v14141_v11 = vld [vmem:[%s7784_s19 + $0xc68] sm:$0xff]  ;;  %v14172_v32 = vld [vmem:[%s7784_s19 + $0xc90] sm:$0xff]  ;;  %v4144_v31 = vmul.f32 1.442695, %v14090_v47 }
 0x39b   : > { %18113 = vst [vmem:[#allocation16_spill] sm:$0xff] %v14075_v13  ;;  %18114 = vst [vmem:[#allocation63_spill] sm:$0xff] %v14077_v23  ;;  %v14113_v49 = vmul.f32 %v6146_v51, %v6146_v51  ;;  %v14115_v56 = vmul.f32 %v6147_v0, %v6147_v0  ;;  %v14126_v52 = vmul.f32 %v6148_v33, %v6148_v33  ;;  %v14152_v0 = vld [vmem:[%s7784_s19 + $0xc70] sm:$0xff]  ;;  %v14155_v33 = vld [vmem:[%s7784_s19 + $0xc78] sm:$0xff]  ;;  %v14227_v30 = vstv %s4232_s8 }
 0x39c   : > { %18115 = vst [vmem:[#allocation42_spill] sm:$0xff] %v14079_v18  ;;  %18116 = vst [vmem:[#allocation65_spill] sm:$0xff] %v14081_v24  ;;  %v14169_v55 = vld [vmem:[%s7784_s19 + $0xc88] sm:$0xff]  ;;  %v14175_v5 = vld [vmem:[%s7784_s19 + $0xc98] sm:$0xff]  ;;  %7215 = vpow2.f32 %v4138_v6  ;;  %v4146_v18 = vmul.f32 1.442695, %v14101_v19 }
 0x39d   : > { %18117 = vst [vmem:[#allocation25_spill] sm:$0xff] %v14092_v53  ;;  %18118 = vst [vmem:[#allocation19_spill] sm:$0xff] %v14094_v22  ;;  %v14186_v51 = vld [vmem:[%s7784_s19 + $0xca0] sm:$0xff]  ;;  %v14189_v25 = vld [vmem:[%s7784_s19 + $0xca8] sm:$0xff]  ;;  %7217 = vpow2.f32 %v4140_v61  ;;  %v4148_v53 = vmul.f32 1.442695, %v14104_v59 }
 0x39e   : > { %18119 = vst [vmem:[#allocation54_spill] sm:$0xff] %v14096_v12  ;;  %18120 = vst [vmem:[#allocation29_spill] sm:$0xff] %v14098_v28  ;;  %v14230_v45 = vld [vmem:[%s7784_s19 + $0xcd0] sm:$0xff]  ;;  %v14233_v38 = vld [vmem:[%s7784_s19 + $0xcd8] sm:$0xff]  ;;  %v4150_v46 = vmul.f32 1.442695, %v14107_v21 }
 0x39f   : > { %18121 = vst [vmem:[#allocation24_spill] sm:$0xff] %v14109_v42  ;;  %18122 = vst [vmem:[#allocation45_spill] sm:$0xff] %v14111_v10  ;;  %v14222_v10 = vld [vmem:[%s7784_s19 + $0xcc8] sm:$0xff]  ;;  %v4152_v22 = vmul.f32 1.442695, %v14118_v54  ;;  %v18140_v24 = vld [vmem:[#allocation11_spill] sm:$0xff] }
 0x3a0   : > { %18123 = vst [vmem:[#allocation35_spill] sm:$0xff] %v14113_v49  ;;  %18124 = vst [vmem:[#allocation55_spill] sm:$0xff] %v14115_v56  ;;  %v4142_v56 = vmul.f32 1.442695, %v14087_v50  ;;  %v14219_v49 = vld [vmem:[%s7784_s19 + $0xcc0] sm:$0xff]  ;;  %v14249_v6 = vadd.s32 %v14227_v30, %v18140_v24  ;;  %v14261_v23 = vld [vmem:[%s7784_s19 + $0xce8] sm:$0xff] }
 0x3a1   : > { %18125 = vst [vmem:[#allocation51_spill] sm:$0xff] %v14126_v52  ;;  %18126 = vst [vmem:[#allocation20_spill] sm:$0xff] %v14141_v11  ;;  %v14192_v52 = vld [vmem:[%s7784_s19 + $0xcb0] sm:$0xff]  ;;  %v4154_v63 = vmul.f32 1.442695, %v14121_v57  ;;  %v14255_v42 = vld [vmem:[%s7784_s19 + $0xce0] sm:$0xff] }
 0x3a2   : > { %18127 = vst [vmem:[#allocation58_spill] sm:$0xff] %v14152_v0  ;;  %18128 = vst [vmem:[#allocation12_spill] sm:$0xff] %v14155_v33  ;;  %7219 = vpow2.f32 %v4142_v56  ;;  %v4156_v13 = vmul.f32 1.442695, %v14124_v39  ;;  %v4158_v61 = vmul.f32 1.442695, %v14135_v60 }
 0x3a3   : > { %18129 = vst [vmem:[#allocation56_spill] sm:$0xff] %v14169_v55  ;;  %18130 = vst [vmem:[#allocation23_spill] sm:$0xff] %v14172_v32  ;;  %7221 = vpow2.f32 %v4144_v31  ;;  %v4160_v56 = vmul.f32 1.442695, %v14138_v17  ;;  %v4162_v28 = vmul.f32 1.442695, %v14141_v11 }
 0x3a4   : > { %18131 = vst [vmem:[#allocation14_spill] sm:$0xff] %v14175_v5  ;;  %18132 = vst [vmem:[#allocation17_spill] sm:$0xff] %v14186_v51  ;;  %7223 = vpow2.f32 %v4146_v18  ;;  %v4164_v12 = vmul.f32 1.442695, %v14152_v0  ;;  %v14264_v24 = vld [vmem:[%s7784_s19 + $0xcf0] sm:$0xff]  ;;  %v14270_v41 = vld [vmem:[%s7784_s19 + $0xcf8] sm:$0xff] }
 0x3a5   : > { %18133 = vst [vmem:[#allocation28_spill] sm:$0xff] %v14189_v25  ;;  %18134 = vst [vmem:[#allocation64_spill] sm:$0xff] %v14192_v52  ;;  %7225 = vpow2.f32 %v4148_v53  ;;  %v4166_v31 = vmul.f32 1.442695, %v14155_v33  ;;  %v4168_v9 = vmul.f32 1.442695, %v14158_v26 }
 0x3a6   : > { %18136 = vst [vmem:[#allocation61_spill] sm:$0xff] %v14219_v49  ;;  %18137 = vst [vmem:[#allocation47_spill] sm:$0xff] %v14222_v10  ;;  %v4170_v15 = vmul.f32 1.442695, %v14169_v55  ;;  %7227 = vpow2.f32 %v4150_v46  ;;  %v4172_v18 = vmul.f32 1.442695, %v14172_v32 }
 0x3a7   : > { %18138 = vst [vmem:[#allocation59_spill] sm:$0xff] %v14230_v45  ;;  %18139 = vst [vmem:[#allocation13_spill] sm:$0xff] %v14233_v38  ;;  %v4174_v1 = vmul.f32 1.442695, %v14175_v5  ;;  %v4176_v0 = vmul.f32 1.442695, %v14186_v51  ;;  %7229 = vpow2.f32 %v4152_v22  ;;  %v7214_v51 = vpop.eup %7213 }
 0x3a8   : > { %18141 = vst [vmem:[#allocation41_spill] sm:$0xff] %v14255_v42  ;;  %18142 = vst [vmem:[#allocation46_spill] sm:$0xff] %v14261_v23  ;;  %v4178_v11 = vmul.f32 1.442695, %v14189_v25  ;;  %v14277_v53 = vmul.f32 1.442695, %v14192_v52  ;;  %7231 = vpow2.f32 %v4154_v63  ;;  %v7216_v25 = vpop.eup %7215 }
 0x3a9   : > { %18143 = vst [vmem:[#allocation52_spill] sm:$0xff] %v14264_v24  ;;  %18144 = vst [vmem:[#allocation38_spill] sm:$0xff] %v14270_v41  ;;  %v14280_v33 = vmul.f32 1.442695, %v14209_v3  ;;  %v14283_v55 = vmul.f32 1.442695, %v14219_v49  ;;  %7233 = vpow2.f32 %v4156_v13 }
 0x3aa   : > { %v14286_v46 = vmul.f32 1.442695, %v14222_v10  ;;  %v14289_v5 = vmul.f32 1.442695, %v14230_v45  ;;  %v14292_v22 = vmul.f32 1.442695, %v14233_v38  ;;  %7235 = vpow2.f32 %v4158_v61  ;;  %v7218_v38 = vpop.eup %7217 }
 0x3ab   : > { %v14295_v52 = vmul.f32 1.442695, %v14255_v42  ;;  %v18145_v3 = vld [vmem:[#allocation18_spill] sm:$0xff]  ;;  %v14300_v49 = vmul.f32 1.442695, %v14261_v23  ;;  %7237 = vpow2.f32 %v4160_v56  ;;  %v14325_v56 = vadd.s32 %v14227_v30, %v18027_v27 }
 0x3ac   : > { %v4235_v63 = vadd.s32 %v14227_v30, %v18145_v3  ;;  %v14303_v10 = vmul.f32 1.442695, %v14264_v24  ;;  %v18146_v45 = vld [vmem:[#allocation22_spill] sm:$0xff]  ;;  %v14310_v42 = vmul.f32 1.442695, %v14270_v41  ;;  %v14314_v3 = vadd.s32 %v14227_v30, %v17905_v8  ;;  %v7220_v32 = vpop.eup %7219 }
 0x3ad   : > { %v14307_v13 = vadd.s32 %v14227_v30, %v18146_v45  ;;  %v18148_v61 = vld [vmem:[#allocation30_spill] sm:$0xff]  ;;  %7239 = vpow2.f32 %v4162_v28  ;;  %v18149_v24 = vsub.f32 %v14070_v37, %v14002_v36  ;;  %v14329_v41 = vadd.s32 %v14227_v30, %v17941_v14  ;;  %v7222_v8 = vpop.eup %7221 }
 0x3ae   : > { %18147 = vst [vmem:[#allocation33_spill] sm:$0xff] %v14310_v42  ;;  %v14318_v23 = vadd.s32 %v14227_v30, %v18148_v61  ;;  %7241 = vpow2.f32 %v4164_v12  ;;  %v18150_v61 = vsub.f32 %v14073_v58, %v14009_v40  ;;  %vm4242_vm0 = vcmp.lt.s32.totalorder %v14249_v6, 2560  ;;  %v7224_v28 = vpop.eup %7223 }
 0x3af   : > { %v4200_v45 = vsub.f32 %v18149_v24, %v7214_v51  ;;  %vm4243_vm1 = vcmp.lt.s32.totalorder %v4235_v63, 2560  ;;  %7243 = vpow2.f32 %v4166_v31  ;;  %v18151_v36 = vsub.f32 %v14084_v20, %v14011_v7  ;;  %v7226_v12 = vpop.eup %7225 }
 0x3b0   : > { %v4201_v42 = vsub.f32 %v18150_v61, %v7216_v25  ;;  %v18152_v24 = vsub.f32 %v14090_v47, %v14018_v48  ;;  %vm4244_vm2 = vcmp.lt.s32.totalorder %v14307_v13, 2560  ;;  %7245 = vpow2.f32 %v4168_v9  ;;  %v7228_v7 = vpop.eup %7227 }
 0x3b1   : > { %v4202_v37 = vsub.f32 %v18151_v36, %v7218_v38  ;;  %v18153_v40 = vsub.f32 %v14087_v50, %v14016_v29  ;;  %v18154_v58 = vsub.f32 %v14101_v19, %v14020_v34  ;;  %vm4245_vm3 = vcmp.lt.s32.totalorder %v14314_v3, 2560  ;;  %v7230_v47 = vpop.eup %7229 }
 0x3b2   : > { %v4204_v51 = vsub.f32 %v18152_v24, %v7222_v8  ;;  %7247 = vpow2.f32 %v4170_v15  ;;  %v18155_v48 = vsub.f32 %v14104_v59, %v14022_v43  ;;  %v4250_v20 = vsel %vm4242_vm0, %v4200_v45, 0.0  ;;  %v7232_v19 = vpop.eup %7231 }
 0x3b3   : > { %v4203_v25 = vsub.f32 %v18153_v40, %v7220_v32  ;;  %v4205_v31 = vsub.f32 %v18154_v58, %v7224_v28  ;;  %7249 = vpow2.f32 %v4172_v18  ;;  %v18156_v29 = vsub.f32 %v14107_v21, %v14027_v44  ;;  %v7234_v45 = vpop.eup %7233 }
 0x3b4   : > { %v4206_v8 = vsub.f32 %v18155_v48, %v7226_v12  ;;  %v4254_v9 = vsel %vm4243_vm1, %v4204_v51, 0.0  ;;  %v4251_v50 = vsel %vm4242_vm0, %v4201_v42, 0.0  ;;  %7251 = vpow2.f32 %v4174_v1  ;;  %v7236_v1 = vpop.eup %7235  ;;  %v18169_v48 = vld [vmem:[#allocation62_spill] sm:$0xff] }
 0x3b5   : > { %v4207_v34 = vsub.f32 %v18156_v29, %v7228_v7  ;;  %v4255_v15 = vsel %vm4243_vm1, %v4205_v31, 0.0  ;;  %v18157_v43 = vsub.f32 %v14118_v54, %v14029_v2  ;;  %v4252_v32 = vsel %vm4242_vm0, %v4202_v37, 0.0  ;;  %v7238_v36 = vpop.eup %7237 }
 0x3b6   : > { %v4256_v38 = vsel %vm4243_vm1, %v4206_v8, 0.0  ;;  %7253 = vpow2.f32 %v4176_v0  ;;  %v18158_v44 = vsub.f32 %v14121_v57, %v14031_v62  ;;  %v4253_v42 = vsel %vm4242_vm0, %v4203_v25, 0.0 }
 0x3b7   : > { %v4208_v59 = vsub.f32 %v18157_v43, %v7230_v47  ;;  %v4282_v18 = vadd.f32 %v4254_v9, %v4250_v20  ;;  %7255 = vpow2.f32 %v4178_v11  ;;  %v18159_v2 = vsub.f32 %v14124_v39, %v14033_v16  ;;  %v7240_v37 = vpop.eup %7239  ;;  %v18174_v43 = vld [vmem:[#allocation67_spill] sm:$0xff] }
 0x3b8   : > { %v4209_v21 = vsub.f32 %v18158_v44, %v7232_v19  ;;  %v4257_v61 = vsel %vm4243_vm1, %v4207_v34, 0.0  ;;  %v4289_v28 = vadd.f32 %v4255_v15, %v4251_v50  ;;  %7257 = vpow2.f32 %v14277_v53  ;;  %v7242_v63 = vpop.eup %7241  ;;  %v18173_v19 = vld [vmem:[#allocation56_spill] sm:$0xff]  ;;  %v18177_v44 = vld [vmem:[#allocation15_spill] sm:$0xff] }
 0x3b9   : > { %v4210_v54 = vsub.f32 %v18159_v2, %v7234_v45  ;;  %v18160_v62 = vsub.f32 %v14135_v60, %v14044_v4  ;;  %v4258_v0 = vsel %vm4244_vm2, %v4208_v59, 0.0  ;;  %v4296_v6 = vadd.f32 %v4256_v38, %v4252_v32  ;;  %v18162_v4 = vld [vmem:[#allocation20_spill] sm:$0xff]  ;;  %v18163_v60 = vld [vmem:[#allocation27_spill] sm:$0xff]  ;;  %v7244_v12 = vpop.eup %7243 }
 0x3ba   : > { %7259 = vpow2.f32 %v14280_v33  ;;  %v18161_v16 = vsub.f32 %v14138_v17, %v14051_v35  ;;  %v4259_v11 = vsel %vm4244_vm2, %v4209_v21, 0.0  ;;  %v18164_v24 = vsub.f32 %v18162_v4, %v18163_v60  ;;  %v18165_v35 = vld [vmem:[#allocation58_spill] sm:$0xff]  ;;  %v18166_v17 = vld [vmem:[#allocation53_spill] sm:$0xff]  ;;  %v7246_v7 = vpop.eup %7245  ;;  %v18180_v2 = vld [vmem:[#allocation16_spill] sm:$0xff] }
 0x3bb   : > { %v4211_v57 = vsub.f32 %v18160_v62, %v7236_v1  ;;  %v4260_v53 = vsel %vm4244_vm2, %v4210_v54, 0.0  ;;  %7261 = vpow2.f32 %v14283_v55  ;;  %vm4246_vm4 = vcmp.lt.s32.totalorder %v14318_v23, 2560  ;;  %v18168_v55 = vld [vmem:[#allocation12_spill] sm:$0xff]  ;;  %v18179_v1 = vld [vmem:[#allocation14_spill] sm:$0xff] }
 0x3bc   : > { %v4212_v39 = vsub.f32 %v18161_v16, %v7238_v36  ;;  %v4213_v51 = vsub.f32 %v18164_v24, %v7240_v37  ;;  %v4303_v33 = vadd.f32 %v4257_v61, %v4253_v42  ;;  %7263 = vpow2.f32 %v14286_v46  ;;  %v7248_v29 = vpop.eup %7247  ;;  %v18171_v46 = vld [vmem:[#allocation31_spill] sm:$0xff] }
 0x3bd   : > { %v18167_v40 = vsub.f32 %v18165_v35, %v18166_v17  ;;  %v4261_v58 = vsel %vm4244_vm2, %v4211_v57, 0.0  ;;  %v4283_v31 = vadd.f32 %v4282_v18, %v4258_v0  ;;  %7265 = vpow2.f32 %v14289_v5  ;;  %v7250_v5 = vpop.eup %7249  ;;  %v18183_v57 = vld [vmem:[#allocation17_spill] sm:$0xff]  ;;  %v18184_v0 = vld [vmem:[#allocation63_spill] sm:$0xff] }
 0x3be   : > { %v18170_v8 = vsub.f32 %v18168_v55, %v18169_v48  ;;  %v4290_v9 = vadd.f32 %v4289_v28, %v4259_v11  ;;  %v4297_v47 = vadd.f32 %v4296_v6, %v4260_v53  ;;  %7267 = vpow2.f32 %v14292_v22  ;;  %v7252_v45 = vpop.eup %7251  ;;  %v18186_v11 = vld [vmem:[#allocation28_spill] sm:$0xff]  ;;  %v18191_v17 = vld [vmem:[#allocation35_spill] sm:$0xff] }
 0x3bf   : > { %v4214_v25 = vsub.f32 %v18167_v40, %v7242_v63  ;;  %v18172_v34 = vsub.f32 %v14158_v26, %v18171_v46  ;;  %v4262_v13 = vsel %vm4245_vm3, %v4212_v39, 0.0  ;;  %v4263_v15 = vsel %vm4245_vm3, %v4213_v51, 0.0  ;;  %v18176_v26 = vld [vmem:[#allocation23_spill] sm:$0xff]  ;;  %v18192_v40 = vld [vmem:[#allocation46_spill] sm:$0xff]  ;;  %v18199_v46 = vld [vmem:[#allocation40_spill] sm:$0xff] }
 0x3c0   : > { %v4215_v20 = vsub.f32 %v18170_v8, %v7244_v12  ;;  %7269 = vpow2.f32 %v14295_v52  ;;  %v18175_v59 = vsub.f32 %v18173_v19, %v18174_v43  ;;  %v4304_v38 = vadd.f32 %v4303_v33, %v4261_v58  ;;  %v7254_v18 = vpop.eup %7253  ;;  %v18189_v33 = vld [vmem:[#allocation45_spill] sm:$0xff]  ;;  %v18193_v58 = vld [vmem:[#allocation64_spill] sm:$0xff] }
 0x3c1   : > { %v4216_v50 = vsub.f32 %v18172_v34, %v7246_v7  ;;  %v4264_v22 = vsel %vm4245_vm3, %v4214_v25, 0.0  ;;  %7271 = vpow2.f32 %v14300_v49  ;;  %v18178_v21 = vsub.f32 %v18176_v26, %v18177_v44  ;;  %v7256_v62 = vpop.eup %7255  ;;  %v18182_v49 = vld [vmem:[#allocation33_spill] sm:$0xff] }
 0x3c2   : > { %v4217_v32 = vsub.f32 %v18175_v59, %v7248_v29  ;;  %vm4247_vm5 = vcmp.lt.s32.totalorder %v14325_v56, 2560  ;;  %v4265_v52 = vsel %vm4245_vm3, %v4215_v20, 0.0  ;;  %7273 = vpow2.f32 %v14303_v10  ;;  %v7258_v39 = vpop.eup %7257  ;;  %v18187_v10 = vld [vmem:[#allocation42_spill] sm:$0xff]  ;;  %v18190_v12 = vld [vmem:[#allocation41_spill] sm:$0xff]  ;;  %v18196_v20 = vld [vmem:[#allocation48_spill] sm:$0xff] }
 0x3c3   : > { %v4218_v42 = vsub.f32 %v18178_v21, %v7250_v5  ;;  %v18181_v54 = vsub.f32 %v18179_v1, %v18180_v2  ;;  %v4284_v28 = vadd.f32 %v4283_v31, %v4262_v13  ;;  %v4291_v36 = vadd.f32 %v4290_v9, %v4263_v15  ;;  %v18194_v31 = vld [vmem:[#allocation65_spill] sm:$0xff]  ;;  %v18201_v5 = vld [vmem:[#allocation19_spill] sm:$0xff] }
 0x3c4   : > { %7275 = vpow2.f32 %v18182_v49  ;;  %v18185_v6 = vsub.f32 %v18183_v57, %v18184_v0  ;;  %v4266_v3 = vsel %vm4246_vm4, %v4216_v50, 0.0  ;;  %v4298_v16 = vadd.f32 %v4297_v47, %v4264_v22  ;;  %v7260_v51 = vpop.eup %7259  ;;  %v18197_v9 = vld [vmem:[#allocation25_spill] sm:$0xff]  ;;  %v18207_v1 = vld [vmem:[#allocation39_spill] sm:$0xff] }
 0x3c5   : > { %v4219_v61 = vsub.f32 %v18181_v54, %v7252_v45  ;;  %v18188_v53 = vsub.f32 %v18186_v11, %v18187_v10  ;;  %v4267_v4 = vsel %vm4246_vm4, %v4217_v32, 0.0  ;;  %v4268_v60 = vsel %vm4246_vm4, %v4218_v42, 0.0  ;;  %v7262_v8 = vpop.eup %7261  ;;  %v18200_v15 = vld [vmem:[#allocation61_spill] sm:$0xff]  ;;  %v18204_v45 = vld [vmem:[#allocation54_spill] sm:$0xff]  ;;  %v18209_v54 = vld [vmem:[#allocation55_spill] sm:$0xff] }
 0x3c6   : > { %v4220_v37 = vsub.f32 %v18185_v6, %v7254_v18  ;;  %v4305_v24 = vadd.f32 %v4304_v38, %v4265_v52  ;;  %v4132_v35 = vsub.f32 %v18190_v12, %v18189_v33  ;;  %v4133_v25 = vsub.f32 %v18192_v40, %v18191_v17  ;;  %v7264_v13 = vpop.eup %7263  ;;  %v18203_v38 = vld [vmem:[#allocation47_spill] sm:$0xff]  ;;  %v18206_v18 = vld [vmem:[#allocation57_spill] sm:$0xff]  ;;  %v18217_v11 = vld [vmem:[#allocation24_spill] sm:$0xff] }
 0x3c7   : > { %v4221_v63 = vsub.f32 %v18188_v53, %v7256_v62  ;;  %v18195_v7 = vsub.f32 %v18193_v58, %v18194_v31  ;;  %v4269_v48 = vsel %vm4246_vm4, %v4219_v61, 0.0  ;;  %v18198_v47 = vsub.f32 %v18196_v20, %v18197_v9  ;;  %v7266_v22 = vpop.eup %7265  ;;  %v18210_v61 = vld [vmem:[#allocation52_spill] sm:$0xff]  ;;  %v18212_v62 = vld [vmem:[#allocation29_spill] sm:$0xff]  ;;  %v6184_v40 = vld [vmem:[%s7778_s23 + $0xd18] sm:$0xff] }
 0x3c8   : > { %v14457_v34 = vadd.s32 %v14227_v30, %v18199_v46  ;;  %vm4248_vm6 = vcmp.lt.s32.totalorder %v14329_v41, 2560  ;;  %v4285_v50 = vadd.f32 %v4284_v28, %v4266_v3  ;;  %v18202_v19 = vsub.f32 %v18200_v15, %v18201_v5  ;;  %v7268_v52 = vpop.eup %7267  ;;  %v18215_v3 = vld [vmem:[#allocation38_spill] sm:$0xff]  ;;  %v6183_v17 = vld [vmem:[%s7778_s23 + $0xd10] sm:$0xff] }
 0x3c9   : > { %v4222_v55 = vsub.f32 %v18195_v7, %v7258_v39  ;;  %v4223_v29 = vsub.f32 %v18198_v47, %v7260_v51  ;;  %v4270_v23 = vsel %vm4247_vm5, %v4220_v37, 0.0  ;;  %v4292_v59 = vadd.f32 %v4291_v36, %v4267_v4  ;;  %v18211_v36 = vld [vmem:[#allocation59_spill] sm:$0xff]  ;;  %v18216_v39 = vld [vmem:[#allocation13_spill] sm:$0xff]  ;;  %v6186_v47 = vld [vmem:[%s7778_s23 + $0xd28] sm:$0xff] }
 0x3ca   : > { %v4224_v43 = vsub.f32 %v18202_v19, %v7262_v8  ;;  %v4299_v32 = vadd.f32 %v4298_v16, %v4268_v60  ;;  %v18205_v26 = vsub.f32 %v18203_v38, %v18204_v45  ;;  %v4271_v44 = vsel %vm4247_vm5, %v4221_v63, 0.0  ;;  %v7270_v6 = vpop.eup %7269  ;;  %v18214_v37 = vld [vmem:[#allocation51_spill] sm:$0xff]  ;;  %v6182_v60 = vld [vmem:[%s7778_s23 + $0xd08] sm:$0xff]  ;;  %v6192_v45 = vld [vmem:[%s7778_s23 + $0xd58] sm:$0xff] }
 0x3cb   : > { %v4272_v21 = vsel %vm4247_vm5, %v4222_v55, 0.0  ;;  %v4306_v42 = vadd.f32 %v4305_v24, %v4269_v48  ;;  %v14474_v2 = vadd.f32 %v18207_v1, %v18206_v18  ;;  %v4134_v28 = vsub.f32 %v18210_v61, %v18209_v54  ;;  %v6181_v4 = vld [vmem:[%s7778_s23 + $0xd00] sm:$0xff]  ;;  %v7272_v24 = vpop.eup %7271  ;;  %v6195_v18 = vld [vmem:[%s7778_s23 + $0xd70] sm:$0xff]  ;;  %v6196_v1 = vld [vmem:[%s7778_s23 + $0xd78] sm:$0xff] }
 0x3cc   : > { %v4225_v30 = vsub.f32 %v18205_v26, %v7264_v13  ;;  %v18213_v49 = vsub.f32 %v18211_v36, %v18212_v62  ;;  %v4273_v0 = vsel %vm4247_vm5, %v4223_v29, 0.0  ;;  %v4135_v16 = vsub.f32 %v18215_v3, %v18214_v37  ;;  %v7274_v58 = vpop.eup %7273  ;;  %v6185_v48 = vld [vmem:[%s7778_s23 + $0xd20] sm:$0xff]  ;;  %v6187_v29 = vld [vmem:[%s7778_s23 + $0xd30] sm:$0xff]  ;;  %v6198_v36 = vld [vmem:[%s7778_s23 + $0xd88] sm:$0xff] }
 0x3cd   : > { %18208 = vst [vmem:[#allocation68_spill] sm:$0xff] %v14474_v2  ;;  %v18218_v10 = vsub.f32 %v18216_v39, %v18217_v11  ;;  %vm4249_vm7 = vcmp.lt.s32.totalorder %v14457_v34, 2560  ;;  %v4286_v63 = vadd.f32 %v4285_v50, %v4270_v23  ;;  %v4228_v51 = vsub.f32 %v4132_v35, %v7270_v6  ;;  %v6189_v19 = vld [vmem:[%s7778_s23 + $0xd40] sm:$0xff]  ;;  %v6191_v23 = vld [vmem:[%s7778_s23 + $0xd50] sm:$0xff]  ;;  %v6202_v34 = vld [vmem:[%s7778_s23 + $0xda8] sm:$0xff] }
 0x3ce   : > { %v4226_v57 = vsub.f32 %v18213_v49, %v7266_v22  ;;  %v4274_v56 = vsel %vm4248_vm6, %v4224_v43, 0.0  ;;  %v4293_v33 = vadd.f32 %v4292_v59, %v4271_v44  ;;  %v4300_v12 = vadd.f32 %v4299_v32, %v4272_v21  ;;  %v7276_v8 = vpop.eup %7275  ;;  %v6190_v43 = vld [vmem:[%s7778_s23 + $0xd48] sm:$0xff]  ;;  %v6193_v26 = vld [vmem:[%s7778_s23 + $0xd60] sm:$0xff]  ;;  %v6199_v62 = vld [vmem:[%s7778_s23 + $0xd90] sm:$0xff] }
 0x3cf   : > { %v4227_v53 = vsub.f32 %v18218_v10, %v7268_v52  ;;  %v4229_v31 = vsub.f32 %v4133_v25, %v7272_v24  ;;  %v4275_v7 = vsel %vm4248_vm6, %v4225_v30, 0.0  ;;  %v4307_v55 = vadd.f32 %v4306_v42, %v4273_v0  ;;  %v6188_v25 = vld [vmem:[%s7778_s23 + $0xd38] sm:$0xff]  ;;  %v6194_v30 = vld [vmem:[%s7778_s23 + $0xd68] sm:$0xff]  ;;  %v6197_v54 = vld [vmem:[%s7778_s23 + $0xd80] sm:$0xff] }
 0x3d0   : > { %v4276_v35 = vsel %vm4248_vm6, %v4226_v57, 0.0  ;;  %v4230_v20 = vsub.f32 %v4134_v28, %v7274_v58  ;;  %v14505_v50 = vmul.f32 %v6181_v4, %v6181_v4  ;;  %v14507_v13 = vmul.f32 %v6182_v60, %v6182_v60  ;;  %v6200_v49 = vld [vmem:[%s7778_s23 + $0xd98] sm:$0xff]  ;;  %v6201_v3 = vld [vmem:[%s7778_s23 + $0xda0] sm:$0xff]  ;;  %v6206_v24 = vld [vmem:[%s7778_s23 + $0xdc8] sm:$0xff] }
 0x3d1   : > { %v4277_v9 = vsel %vm4248_vm6, %v4227_v53, 0.0  ;;  %v4231_v15 = vsub.f32 %v4135_v16, %v7276_v8  ;;  %v4287_v5 = vadd.f32 %v4286_v63, %v4274_v56  ;;  %v14512_v41 = vmul.f32 %v6183_v17, %v6183_v17  ;;  %v6203_v16 = vld [vmem:[%s7778_s23 + $0xdb0] sm:$0xff]  ;;  %v6204_v4 = vld [vmem:[%s7778_s23 + $0xdb8] sm:$0xff]  ;;  %v6205_v60 = vld [vmem:[%s7778_s23 + $0xdc0] sm:$0xff] }
 0x3d2   : > { %v14514_v59 = vmul.f32 %v6184_v40, %v6184_v40  ;;  %v4278_v32 = vsel %vm4249_vm7, %v4228_v51, 0.0  ;;  %v4294_v22 = vadd.f32 %v4293_v33, %v4275_v7  ;;  %v4301_v38 = vadd.f32 %v4300_v12, %v4276_v35  ;;  %v6207_v12 = vld [vmem:[%s7778_s23 + $0xdd0] sm:$0xff]  ;;  %v6208_v17 = vld [vmem:[%s7778_s23 + $0xdd8] sm:$0xff]  ;;  %v6209_v40 = vld [vmem:[%s7778_s23 + $0xde0] sm:$0xff] }
 0x3d3   : > { %v14521_v44 = vmul.f32 %v6185_v48, %v6185_v48  ;;  %v4279_v21 = vsel %vm4249_vm7, %v4229_v31, 0.0  ;;  %v4280_v42 = vsel %vm4249_vm7, %v4230_v20, 0.0  ;;  %v4308_v52 = vadd.f32 %v4307_v55, %v4277_v9  ;;  %v6210_v35 = vld [vmem:[%s7778_s23 + $0xde8] sm:$0xff]  ;;  %v6211_v55 = vld [vmem:[%s7778_s23 + $0xdf0] sm:$0xff]  ;;  %v6212_v48 = vld [vmem:[%s7778_s23 + $0xdf8] sm:$0xff] }
 0x3d4   : > { %v14530_v61 = vmul.f32 %v6186_v47, %v6186_v47  ;;  %v4281_v28 = vsel %vm4249_vm7, %v4231_v15, 0.0  ;;  %v14537_v57 = vmul.f32 %v6187_v29, %v6187_v29  ;;  %v14539_v0 = vmul.f32 %v6188_v25, %v6188_v25  ;;  %v14580_v8 = vld [vmem:[%s7784_s19 + $0xd00] sm:$0xff]  ;;  %v14591_v25 = vld [vmem:[%s7784_s19 + $0xd08] sm:$0xff]  ;;  %v14594_v15 = vld [vmem:[%s7784_s19 + $0xd10] sm:$0xff] }
 0x3d5   : > { %v14541_v6 = vmul.f32 %v6189_v19, %v6189_v19  ;;  %v14543_v37 = vadd.f32 %v4287_v5, %v4278_v32  ;;  %v14548_v39 = vmul.f32 %v6190_v43, %v6190_v43  ;;  %v14550_v11 = vmul.f32 %v6191_v23, %v6191_v23  ;;  %v14597_v5 = vld [vmem:[%s7784_s19 + $0xd18] sm:$0xff]  ;;  %v14699_v2 = vld [vmem:[%s7784_s19 + $0xda8] sm:$0xff] }
 0x3d6   : > { %v14552_v10 = vmul.f32 %v6192_v45, %v6192_v45  ;;  %v14554_v53 = vadd.f32 %v4294_v22, %v4279_v21  ;;  %v14556_v63 = vadd.f32 %v4301_v38, %v4280_v42  ;;  %v14561_v51 = vmul.f32 %v6193_v26, %v6193_v26  ;;  %v14608_v22 = vld [vmem:[%s7784_s19 + $0xd20] sm:$0xff]  ;;  %v14611_v38 = vld [vmem:[%s7784_s19 + $0xd28] sm:$0xff]  ;;  %v14614_v45 = vld [vmem:[%s7784_s19 + $0xd30] sm:$0xff]  ;;  %18248 = vst [vmem:[#allocation64_spill] sm:$0xff] %v14699_v2 }
 0x3d7   : > { %18219 = vst [vmem:[#allocation50_spill] sm:$0xff] %v14543_v37  ;;  %v14563_v56 = vmul.f32 %v6194_v30, %v6194_v30  ;;  %v14565_v33 = vadd.f32 %v4308_v52, %v4281_v28  ;;  %v14570_v58 = vmul.f32 %v6195_v18, %v6195_v18  ;;  %v14572_v31 = vmul.f32 %v6196_v1, %v6196_v1  ;;  %v14625_v52 = vld [vmem:[%s7784_s19 + $0xd38] sm:$0xff]  ;;  %v14628_v18 = vld [vmem:[%s7784_s19 + $0xd40] sm:$0xff]  ;;  %v14631_v1 = vld [vmem:[%s7784_s19 + $0xd48] sm:$0xff] }
 0x3d8   : > { %18220 = vst [vmem:[#allocation60_spill] sm:$0xff] %v14554_v53  ;;  %18221 = vst [vmem:[#allocation66_spill] sm:$0xff] %v14556_v63  ;;  %v14574_v7 = vmul.f32 %v6197_v54, %v6197_v54  ;;  %v14582_v20 = vmul.f32 %v6198_v36, %v6198_v36  ;;  %v14584_v9 = vmul.f32 %v6199_v62, %v6199_v62  ;;  %v14693_v62 = vld [vmem:[%s7784_s19 + $0xd98] sm:$0xff]  ;;  %v14716_v37 = vld [vmem:[%s7784_s19 + $0xdc0] sm:$0xff]  ;;  %v4451_v46 = vmul.f32 1.442695, %v14594_v15 }
 0x3d9   : > { %18222 = vst [vmem:[#allocation32_spill] sm:$0xff] %v14563_v56  ;;  %18223 = vst [vmem:[#allocation43_spill] sm:$0xff] %v14565_v33  ;;  %v14586_v47 = vmul.f32 %v6200_v49, %v6200_v49  ;;  %v14588_v29 = vmul.f32 %v6201_v3, %v6201_v3  ;;  %v14599_v19 = vmul.f32 %v6202_v34, %v6202_v34  ;;  %v14642_v49 = vld [vmem:[%s7784_s19 + $0xd50] sm:$0xff]  ;;  %v14645_v3 = vld [vmem:[%s7784_s19 + $0xd58] sm:$0xff]  ;;  %v14788_v56 = vmul.f32 1.442695, %v14699_v2 }
 0x3da   : > { %18224 = vst [vmem:[#allocation49_spill] sm:$0xff] %v14570_v58  ;;  %18225 = vst [vmem:[#allocation36_spill] sm:$0xff] %v14572_v31  ;;  %v14601_v43 = vmul.f32 %v6203_v16, %v6203_v16  ;;  %v14603_v23 = vmul.f32 %v6204_v4, %v6204_v4  ;;  %v14605_v32 = vmul.f32 %v6205_v60, %v6205_v60  ;;  %v14648_v34 = vld [vmem:[%s7784_s19 + $0xd60] sm:$0xff]  ;;  %v14679_v4 = vld [vmem:[%s7784_s19 + $0xd88] sm:$0xff]  ;;  %v4485_v58 = vmul.f32 1.442695, %v14693_v62 }
 0x3db   : > { %18226 = vst [vmem:[#allocation20_spill] sm:$0xff] %v14574_v7  ;;  %18227 = vst [vmem:[#allocation27_spill] sm:$0xff] %v14582_v20  ;;  %v14616_v26 = vmul.f32 %v6206_v24, %v6206_v24  ;;  %v14618_v30 = vmul.f32 %v6207_v12, %v6207_v12  ;;  %v14620_v21 = vmul.f32 %v6208_v17, %v6208_v17  ;;  %v14659_v12 = vld [vmem:[%s7784_s19 + $0xd68] sm:$0xff]  ;;  %v14662_v17 = vld [vmem:[%s7784_s19 + $0xd70] sm:$0xff]  ;;  %v4453_v24 = vmul.f32 1.442695, %v14597_v5 }
 0x3dc   : > { %18228 = vst [vmem:[#allocation58_spill] sm:$0xff] %v14584_v9  ;;  %18229 = vst [vmem:[#allocation53_spill] sm:$0xff] %v14586_v47  ;;  %v14622_v42 = vmul.f32 %v6209_v40, %v6209_v40  ;;  %v14633_v54 = vmul.f32 %v6210_v35, %v6210_v35  ;;  %v14635_v28 = vmul.f32 %v6211_v55, %v6211_v55  ;;  %v14665_v40 = vld [vmem:[%s7784_s19 + $0xd78] sm:$0xff]  ;;  %v14676_v60 = vld [vmem:[%s7784_s19 + $0xd80] sm:$0xff]  ;;  %v4457_v55 = vmul.f32 1.442695, %v14611_v38 }
 0x3dd   : > { %18230 = vst [vmem:[#allocation12_spill] sm:$0xff] %v14588_v29  ;;  %18231 = vst [vmem:[#allocation62_spill] sm:$0xff] %v14599_v19  ;;  %v14637_v36 = vmul.f32 %v6212_v48, %v6212_v48  ;;  %v14682_v16 = vld [vmem:[%s7784_s19 + $0xd90] sm:$0xff]  ;;  %v14696_v33 = vld [vmem:[%s7784_s19 + $0xda0] sm:$0xff]  ;;  %v4459_v29 = vmul.f32 1.442695, %v14614_v45 }
 0x3de   : > { %18232 = vst [vmem:[#allocation31_spill] sm:$0xff] %v14601_v43  ;;  %18233 = vst [vmem:[#allocation56_spill] sm:$0xff] %v14603_v23  ;;  %v14710_v35 = vld [vmem:[%s7784_s19 + $0xdb0] sm:$0xff]  ;;  %v14713_v53 = vld [vmem:[%s7784_s19 + $0xdb8] sm:$0xff]  ;;  %v4463_v47 = vmul.f32 1.442695, %v14628_v18 }
 0x3df   : > { %18234 = vst [vmem:[#allocation67_spill] sm:$0xff] %v14605_v32  ;;  %18235 = vst [vmem:[#allocation23_spill] sm:$0xff] %v14616_v26  ;;  %v14733_v63 = vld [vmem:[%s7784_s19 + $0xdc8] sm:$0xff]  ;;  %v14746_v19 = vld [vmem:[%s7784_s19 + $0xdd8] sm:$0xff]  ;;  %v14756_v32 = vstv %s4543_s17  ;;  %v4461_v26 = vmul.f32 1.442695, %v14625_v52 }
 0x3e0   : > { %18236 = vst [vmem:[#allocation15_spill] sm:$0xff] %v14618_v30  ;;  %18237 = vst [vmem:[#allocation14_spill] sm:$0xff] %v14620_v21  ;;  %v4467_v48 = vmul.f32 1.442695, %v14642_v49  ;;  %v14765_v21 = vld [vmem:[%s7784_s19 + $0xde0] sm:$0xff]  ;;  %v14771_v43 = vld [vmem:[%s7784_s19 + $0xde8] sm:$0xff] }
 0x3e1   : > { %18238 = vst [vmem:[#allocation16_spill] sm:$0xff] %v14622_v42  ;;  %18239 = vst [vmem:[#allocation33_spill] sm:$0xff] %v14633_v54  ;;  %v4449_v54 = vmul.f32 1.442695, %v14591_v25  ;;  %v14736_v42 = vld [vmem:[%s7784_s19 + $0xdd0] sm:$0xff]  ;;  %v14780_v31 = vld [vmem:[%s7784_s19 + $0xdf8] sm:$0xff] }
 0x3e2   : > { %18240 = vst [vmem:[#allocation17_spill] sm:$0xff] %v14635_v28  ;;  %18241 = vst [vmem:[#allocation63_spill] sm:$0xff] %v14637_v36  ;;  %v4447_v28 = vmul.f32 1.442695, %v14580_v8  ;;  %v4455_v36 = vmul.f32 1.442695, %v14608_v22 }
 0x3e3   : > { %18242 = vst [vmem:[#allocation28_spill] sm:$0xff] %v14662_v17  ;;  %18243 = vst [vmem:[#allocation42_spill] sm:$0xff] %v14676_v60  ;;  %v4471_v30 = vmul.f32 1.442695, %v14648_v34  ;;  %v4475_v23 = vmul.f32 1.442695, %v14662_v17 }
 0x3e4   : > { %18244 = vst [vmem:[#allocation45_spill] sm:$0xff] %v14679_v4  ;;  %18245 = vst [vmem:[#allocation41_spill] sm:$0xff] %v14682_v16  ;;  %7277 = vpow2.f32 %v4447_v28  ;;  %v4465_v28 = vmul.f32 1.442695, %v14631_v1  ;;  %v14774_v9 = vld [vmem:[%s7784_s19 + $0xdf0] sm:$0xff]  ;;  %v18259_v2 = vld [vmem:[#allocation11_spill] sm:$0xff] }
 0x3e5   : > { %18246 = vst [vmem:[#allocation35_spill] sm:$0xff] %v14693_v62  ;;  %18247 = vst [vmem:[#allocation46_spill] sm:$0xff] %v14696_v33  ;;  %7279 = vpow2.f32 %v4449_v54  ;;  %v4469_v54 = vmul.f32 1.442695, %v14645_v3  ;;  %v4479_v20 = vmul.f32 1.442695, %v14676_v60 }
 0x3e6   : > { %18249 = vst [vmem:[#allocation65_spill] sm:$0xff] %v14710_v35  ;;  %18250 = vst [vmem:[#allocation48_spill] sm:$0xff] %v14713_v53  ;;  %7281 = vpow2.f32 %v4451_v46  ;;  %v4473_v46 = vmul.f32 1.442695, %v14659_v12  ;;  %v4481_v7 = vmul.f32 1.442695, %v14679_v4 }
 0x3e7   : > { %18251 = vst [vmem:[#allocation25_spill] sm:$0xff] %v14716_v37  ;;  %18252 = vst [vmem:[#allocation61_spill] sm:$0xff] %v14733_v63  ;;  %7283 = vpow2.f32 %v4453_v24  ;;  %v4477_v24 = vmul.f32 1.442695, %v14665_v40  ;;  %v14785_v17 = vmul.f32 1.442695, %v14696_v33 }
 0x3e8   : > { %18253 = vst [vmem:[#allocation19_spill] sm:$0xff] %v14736_v42  ;;  %18254 = vst [vmem:[#allocation47_spill] sm:$0xff] %v14746_v19  ;;  %7285 = vpow2.f32 %v4455_v36  ;;  %v4483_v36 = vmul.f32 1.442695, %v14682_v16  ;;  %v14794_v60 = vmul.f32 1.442695, %v14713_v53  ;;  %v4545_v53 = vadd.s32 %v14756_v32, %v18259_v2 }
 0x3e9   : > { %18255 = vst [vmem:[#allocation54_spill] sm:$0xff] %v14765_v21  ;;  %18256 = vst [vmem:[#allocation57_spill] sm:$0xff] %v14771_v43  ;;  %7287 = vpow2.f32 %v4457_v55  ;;  %v14791_v55 = vmul.f32 1.442695, %v14710_v35  ;;  %v14800_v16 = vmul.f32 1.442695, %v14733_v63 }
 0x3ea   : > { %18257 = vst [vmem:[#allocation39_spill] sm:$0xff] %v14774_v9  ;;  %18258 = vst [vmem:[#allocation55_spill] sm:$0xff] %v14780_v31  ;;  %7289 = vpow2.f32 %v4459_v29  ;;  %v14797_v29 = vmul.f32 1.442695, %v14716_v37  ;;  %v14803_v33 = vmul.f32 1.442695, %v14736_v42 }
 0x3eb   : > { %7291 = vpow2.f32 %v4461_v26  ;;  %v14806_v26 = vmul.f32 1.442695, %v14746_v19  ;;  %v14809_v35 = vmul.f32 1.442695, %v14765_v21  ;;  %v14814_v37 = vmul.f32 1.442695, %v14771_v43 }
 0x3ec   : > { %7293 = vpow2.f32 %v4463_v47  ;;  %v14817_v63 = vmul.f32 1.442695, %v14774_v9  ;;  %v18262_v42 = vld [vmem:[#allocation18_spill] sm:$0xff]  ;;  %v14822_v19 = vmul.f32 1.442695, %v14780_v31  ;;  %v18266_v9 = vsub.f32 %v14580_v8, %v14505_v50 }
 0x3ed   : > { %7295 = vpow2.f32 %v4465_v28  ;;  %18260 = vst [vmem:[#allocation52_spill] sm:$0xff] %v14814_v37  ;;  %v4546_v28 = vadd.s32 %v14756_v32, %v18262_v42  ;;  %v18264_v21 = vld [vmem:[#allocation22_spill] sm:$0xff]  ;;  %vm4553_vm8 = vcmp.lt.s32.totalorder %v4545_v53, 2560 }
 0x3ee   : > { %v7278_v47 = vpop.eup %7277  ;;  %7297 = vpow2.f32 %v4467_v48  ;;  %18261 = vst [vmem:[#allocation59_spill] sm:$0xff] %v14817_v63  ;;  %18263 = vst [vmem:[#allocation29_spill] sm:$0xff] %v14822_v19  ;;  %v14826_v4 = vadd.s32 %v14756_v32, %v18264_v21  ;;  %v18265_v2 = vld [vmem:[#allocation26_spill] sm:$0xff] }
 0x3ef   : > { %v7280_v62 = vpop.eup %7279  ;;  %7299 = vpow2.f32 %v4469_v54  ;;  %v14830_v48 = vadd.s32 %v14756_v32, %v18265_v2  ;;  %v4511_v63 = vsub.f32 %v18266_v9, %v7278_v47  ;;  %v18267_v54 = vsub.f32 %v14591_v25, %v14507_v13  ;;  %v18268_v31 = vld [vmem:[#allocation30_spill] sm:$0xff] }
 0x3f0   : > { %v7282_v43 = vpop.eup %7281  ;;  %7301 = vpow2.f32 %v4471_v30  ;;  %v14840_v19 = vadd.s32 %v14756_v32, %v18268_v31  ;;  %v18269_v2 = vsub.f32 %v14594_v15, %v14512_v41  ;;  %v14847_v30 = vadd.s32 %v14756_v32, %v18027_v27 }
 0x3f1   : > { %v4512_v42 = vsub.f32 %v18267_v54, %v7280_v62  ;;  %v7284_v21 = vpop.eup %7283  ;;  %7303 = vpow2.f32 %v4473_v46  ;;  %v18270_v13 = vsub.f32 %v14597_v5, %v14514_v59  ;;  %v14854_v9 = vadd.s32 %v14756_v32, %v17941_v14 }
 0x3f2   : > { %v4513_v37 = vsub.f32 %v18269_v2, %v7282_v43  ;;  %v7286_v50 = vpop.eup %7285  ;;  %7305 = vpow2.f32 %v4475_v23  ;;  %vm4554_vm9 = vcmp.lt.s32.totalorder %v4546_v28, 2560  ;;  %v18271_v2 = vsub.f32 %v14608_v22, %v14521_v44 }
 0x3f3   : > { %v4514_v8 = vsub.f32 %v18270_v13, %v7284_v21  ;;  %v7288_v25 = vpop.eup %7287  ;;  %7307 = vpow2.f32 %v4477_v24  ;;  %vm4555_vm10 = vcmp.lt.s32.totalorder %v14826_v4, 2560  ;;  %vm4556_vm11 = vcmp.lt.s32.totalorder %v14830_v48, 2560 }
 0x3f4   : > { %v4515_v41 = vsub.f32 %v18271_v2, %v7286_v50  ;;  %v7290_v15 = vpop.eup %7289  ;;  %7309 = vpow2.f32 %v4479_v20  ;;  %v18272_v59 = vsub.f32 %v14611_v38, %v14530_v61  ;;  %v4561_v43 = vsel %vm4553_vm8, %v4511_v63, 0.0 }
 0x3f5   : > { %v4562_v23 = vsel %vm4553_vm8, %v4512_v42, 0.0  ;;  %v7292_v21 = vpop.eup %7291  ;;  %7311 = vpow2.f32 %v4481_v7  ;;  %v18273_v44 = vsub.f32 %v14614_v45, %v14537_v57  ;;  %v4563_v62 = vsel %vm4553_vm8, %v4513_v37, 0.0 }
 0x3f6   : > { %v4516_v5 = vsub.f32 %v18272_v59, %v7288_v25  ;;  %v4565_v46 = vsel %vm4554_vm9, %v4515_v41, 0.0  ;;  %v7294_v24 = vpop.eup %7293  ;;  %7313 = vpow2.f32 %v4483_v36  ;;  %v18274_v61 = vsub.f32 %v14625_v52, %v14539_v0 }
 0x3f7   : > { %v4517_v22 = vsub.f32 %v18273_v44, %v7290_v15  ;;  %vm4557_vm12 = vcmp.lt.s32.totalorder %v14840_v19, 2560  ;;  %v4564_v63 = vsel %vm4553_vm8, %v4514_v8, 0.0  ;;  %v7296_v38 = vpop.eup %7295  ;;  %7315 = vpow2.f32 %v4485_v58 }
 0x3f8   : > { %v4518_v20 = vsub.f32 %v18274_v61, %v7292_v21  ;;  %v4566_v7 = vsel %vm4554_vm9, %v4516_v5, 0.0  ;;  %v18275_v57 = vsub.f32 %v14628_v18, %v14541_v6  ;;  %v4593_v42 = vadd.f32 %v4565_v46, %v4561_v43  ;;  %v7298_v36 = vpop.eup %7297  ;;  %v18288_v46 = vld [vmem:[#allocation20_spill] sm:$0xff] }
 0x3f9   : > { %v4567_v45 = vsel %vm4554_vm9, %v4517_v22, 0.0  ;;  %7317 = vpow2.f32 %v14785_v17  ;;  %v18276_v0 = vsub.f32 %v14631_v1, %v14548_v39  ;;  %v4600_v47 = vadd.f32 %v4566_v7, %v4562_v23  ;;  %v7300_v54 = vpop.eup %7299  ;;  %v18291_v7 = vld [vmem:[#allocation27_spill] sm:$0xff] }
 0x3fa   : > { %v4519_v37 = vsub.f32 %v18275_v57, %v7294_v24  ;;  %v4568_v53 = vsel %vm4554_vm9, %v4518_v20, 0.0  ;;  %7319 = vpow2.f32 %v14788_v56  ;;  %v18277_v6 = vsub.f32 %v14642_v49, %v14550_v11  ;;  %v7302_v13 = vpop.eup %7301 }
 0x3fb   : > { %v4520_v52 = vsub.f32 %v18276_v0, %v7296_v38  ;;  %v4607_v50 = vadd.f32 %v4567_v45, %v4563_v62  ;;  %7321 = vpow2.f32 %v14791_v55  ;;  %v18278_v39 = vsub.f32 %v14645_v3, %v14552_v10  ;;  %v7304_v56 = vpop.eup %7303  ;;  %v18280_v10 = vld [vmem:[#allocation32_spill] sm:$0xff]  ;;  %v18287_v62 = vld [vmem:[#allocation42_spill] sm:$0xff] }
 0x3fc   : > { %v4521_v58 = vsub.f32 %v18277_v6, %v7298_v36  ;;  %v4569_v18 = vsel %vm4555_vm10, %v4519_v37, 0.0  ;;  %v4614_v28 = vadd.f32 %v4568_v53, %v4564_v63  ;;  %7323 = vpow2.f32 %v14794_v60  ;;  %v7306_v55 = vpop.eup %7305  ;;  %v18294_v36 = vld [vmem:[#allocation41_spill] sm:$0xff]  ;;  %v18295_v0 = vld [vmem:[#allocation58_spill] sm:$0xff]  ;;  %v18297_v6 = vld [vmem:[#allocation59_spill] sm:$0xff] }
 0x3fd   : > { %v4522_v1 = vsub.f32 %v18278_v39, %v7300_v54  ;;  %v4570_v17 = vsel %vm4555_vm10, %v4520_v52, 0.0  ;;  %v18279_v11 = vsub.f32 %v14648_v34, %v14561_v51  ;;  %v4594_v25 = vadd.f32 %v4593_v42, %v4569_v18  ;;  %v7308_v60 = vpop.eup %7307  ;;  %v18282_v51 = vld [vmem:[#allocation28_spill] sm:$0xff]  ;;  %v18283_v34 = vld [vmem:[#allocation49_spill] sm:$0xff] }
 0x3fe   : > { %v4571_v8 = vsel %vm4555_vm10, %v4521_v58, 0.0  ;;  %7325 = vpow2.f32 %v14797_v29  ;;  %v18281_v3 = vsub.f32 %v14659_v12, %v18280_v10  ;;  %v4601_v15 = vadd.f32 %v4600_v47, %v4570_v17  ;;  %v7310_v29 = vpop.eup %7309  ;;  %v18285_v12 = vld [vmem:[#allocation36_spill] sm:$0xff]  ;;  %v18298_v58 = vld [vmem:[#allocation35_spill] sm:$0xff]  ;;  %v18299_v18 = vld [vmem:[#allocation53_spill] sm:$0xff] }
 0x3ff   : > { %v4523_v49 = vsub.f32 %v18279_v11, %v7302_v13  ;;  %v4572_v41 = vsel %vm4555_vm10, %v4522_v1, 0.0  ;;  %7327 = vpow2.f32 %v14800_v16  ;;  %v18284_v59 = vsub.f32 %v18282_v51, %v18283_v34  ;;  %v7312_v16 = vpop.eup %7311  ;;  %v18293_v42 = vld [vmem:[#allocation52_spill] sm:$0xff]  ;;  %v18301_v1 = vld [vmem:[#allocation29_spill] sm:$0xff]  ;;  %v18302_v17 = vld [vmem:[#allocation46_spill] sm:$0xff] }
 0x400   : > { %v4524_v2 = vsub.f32 %v18281_v3, %v7304_v56  ;;  %v4608_v23 = vadd.f32 %v4607_v50, %v4571_v8  ;;  %7329 = vpow2.f32 %v14803_v33  ;;  %v18286_v21 = vsub.f32 %v14665_v40, %v18285_v12  ;;  %v7314_v33 = vpop.eup %7313  ;;  %v18290_v40 = vld [vmem:[#allocation45_spill] sm:$0xff]  ;;  %v18306_v10 = vld [vmem:[#allocation54_spill] sm:$0xff] }
 0x401   : > { %v4525_v5 = vsub.f32 %v18284_v59, %v7306_v55  ;;  %v4573_v43 = vsel %vm4556_vm11, %v4523_v49, 0.0  ;;  %v4615_v22 = vadd.f32 %v4614_v28, %v4572_v41  ;;  %7331 = vpow2.f32 %v14806_v26  ;;  %v7316_v26 = vpop.eup %7315  ;;  %v18303_v28 = vld [vmem:[#allocation12_spill] sm:$0xff]  ;;  %v18308_v41 = vld [vmem:[#allocation62_spill] sm:$0xff] }
 0x402   : > { %v4526_v4 = vsub.f32 %v18286_v21, %v7308_v60  ;;  %v4574_v44 = vsel %vm4556_vm11, %v4524_v2, 0.0  ;;  %v18289_v24 = vsub.f32 %v18287_v62, %v18288_v46  ;;  %v4595_v63 = vadd.f32 %v4594_v25, %v4573_v43  ;;  %v18305_v55 = vld [vmem:[#allocation16_spill] sm:$0xff]  ;;  %v18311_v43 = vld [vmem:[#allocation31_spill] sm:$0xff] }
 0x403   : > { %v4575_v20 = vsel %vm4556_vm11, %v4525_v5, 0.0  ;;  %7333 = vpow2.f32 %v14809_v35  ;;  %v18292_v38 = vsub.f32 %v18290_v40, %v18291_v7  ;;  %v4602_v45 = vadd.f32 %v4601_v15, %v4574_v44  ;;  %v7318_v35 = vpop.eup %7317  ;;  %v18307_v2 = vld [vmem:[#allocation64_spill] sm:$0xff]  ;;  %v18310_v5 = vld [vmem:[#allocation65_spill] sm:$0xff] }
 0x404   : > { %v4527_v61 = vsub.f32 %v18289_v24, %v7310_v29  ;;  %v4576_v37 = vsel %vm4556_vm11, %v4526_v4, 0.0  ;;  %7335 = vpow2.f32 %v18293_v42  ;;  %v18296_v52 = vsub.f32 %v18294_v36, %v18295_v0  ;;  %v7320_v39 = vpop.eup %7319  ;;  %v18314_v62 = vld [vmem:[#allocation56_spill] sm:$0xff]  ;;  %v18319_v7 = vld [vmem:[#allocation25_spill] sm:$0xff]  ;;  %v18323_v36 = vld [vmem:[#allocation39_spill] sm:$0xff] }
 0x405   : > { %v4528_v57 = vsub.f32 %v18292_v38, %v7312_v16  ;;  %v4609_v54 = vadd.f32 %v4608_v23, %v4575_v20  ;;  %7337 = vpow2.f32 %v18297_v6  ;;  %v18300_v50 = vsub.f32 %v18298_v58, %v18299_v18  ;;  %v7322_v25 = vpop.eup %7321  ;;  %v18313_v16 = vld [vmem:[#allocation48_spill] sm:$0xff]  ;;  %v18320_v38 = vld [vmem:[#allocation67_spill] sm:$0xff] }
 0x406   : > { %v4529_v53 = vsub.f32 %v18296_v52, %v7314_v33  ;;  %v4577_v47 = vsel %vm4557_vm12, %v4527_v61, 0.0  ;;  %vm4558_vm13 = vcmp.lt.s32.totalorder %v14847_v30, 2560  ;;  %7339 = vpow2.f32 %v18301_v1  ;;  %v7324_v59 = vpop.eup %7323  ;;  %v18316_v61 = vld [vmem:[#allocation40_spill] sm:$0xff]  ;;  %v18318_v33 = vld [vmem:[#allocation57_spill] sm:$0xff]  ;;  %v18327_v18 = vld [vmem:[#allocation19_spill] sm:$0xff] }
 0x407   : > { %v4530_v48 = vsub.f32 %v18300_v50, %v7316_v26  ;;  %v4578_v13 = vsel %vm4557_vm12, %v4528_v57, 0.0  ;;  %v18304_v56 = vsub.f32 %v18302_v17, %v18303_v28  ;;  %v4596_v8 = vadd.f32 %v4595_v63, %v4577_v47  ;;  %v18317_v63 = vld [vmem:[#allocation33_spill] sm:$0xff]  ;;  %v18328_v50 = vld [vmem:[#allocation15_spill] sm:$0xff] }
 0x408   : > { %v4579_v49 = vsel %vm4557_vm12, %v4529_v53, 0.0  ;;  %v4443_v3 = vsub.f32 %v18306_v10, %v18305_v55  ;;  %v18309_v15 = vsub.f32 %v18307_v2, %v18308_v41  ;;  %v4603_v51 = vadd.f32 %v4602_v45, %v4578_v13  ;;  %v7326_v44 = vpop.eup %7325  ;;  %v18324_v52 = vld [vmem:[#allocation61_spill] sm:$0xff]  ;;  %v18325_v53 = vld [vmem:[#allocation23_spill] sm:$0xff]  ;;  %v18335_v41 = vld [vmem:[#allocation34_spill] sm:$0xff] }
 0x409   : > { %v4531_v11 = vsub.f32 %v18304_v56, %v7318_v35  ;;  %v4616_v34 = vadd.f32 %v4615_v22, %v4576_v37  ;;  %v18312_v23 = vsub.f32 %v18310_v5, %v18311_v43  ;;  %v4580_v12 = vsel %vm4557_vm12, %v4530_v48, 0.0  ;;  %v7328_v19 = vpop.eup %7327  ;;  %v18330_v56 = vld [vmem:[#allocation63_spill] sm:$0xff]  ;;  %v18337_v43 = vld [vmem:[#allocation44_spill] sm:$0xff] }
 0x40a   : > { %v4532_v60 = vsub.f32 %v18309_v15, %v7320_v39  ;;  %v4610_v4 = vadd.f32 %v4609_v54, %v4579_v49  ;;  %v18315_v46 = vsub.f32 %v18313_v16, %v18314_v62  ;;  %v14970_v22 = vadd.s32 %v14756_v32, %v18316_v61  ;;  %v7330_v42 = vpop.eup %7329  ;;  %v18322_v32 = vld [vmem:[#allocation17_spill] sm:$0xff]  ;;  %v18336_v15 = vld [vmem:[#allocation50_spill] sm:$0xff]  ;;  %v6246_v16 = vld [vmem:[%s7778_s23 + $0xe08] sm:$0xff] }
 0x40b   : > { %v4533_v29 = vsub.f32 %v18312_v23, %v7322_v25  ;;  %v4581_v21 = vsel %vm4558_vm13, %v4531_v11, 0.0  ;;  %vm4559_vm14 = vcmp.lt.s32.totalorder %v14854_v9, 2560  ;;  %v4444_v40 = vsub.f32 %v18318_v33, %v18317_v63  ;;  %v7332_v58 = vpop.eup %7331  ;;  %v18331_v11 = vld [vmem:[#allocation55_spill] sm:$0xff]  ;;  %v18333_v25 = vld [vmem:[#allocation14_spill] sm:$0xff]  ;;  %v18338_v23 = vld [vmem:[#allocation60_spill] sm:$0xff] }
 0x40c   : > { %v4534_v24 = vsub.f32 %v18315_v46, %v7324_v59  ;;  %v4582_v20 = vsel %vm4558_vm13, %v4532_v60, 0.0  ;;  %v18321_v57 = vsub.f32 %v18319_v7, %v18320_v38  ;;  %v4597_v26 = vadd.f32 %v4596_v8, %v4581_v21  ;;  %v18332_v8 = vld [vmem:[#allocation47_spill] sm:$0xff]  ;;  %v6248_v63 = vld [vmem:[%s7778_s23 + $0xe18] sm:$0xff]  ;;  %v18339_v7 = vld [vmem:[#allocation21_spill] sm:$0xff] }
 0x40d   : > { %v4583_v45 = vsel %vm4558_vm13, %v4533_v29, 0.0  ;;  %v4445_v0 = vsub.f32 %v18323_v36, %v18322_v32  ;;  %v18326_v47 = vsub.f32 %v18324_v52, %v18325_v53  ;;  %v4604_v35 = vadd.f32 %v4603_v51, %v4582_v20  ;;  %v7334_v28 = vpop.eup %7333  ;;  %v6249_v33 = vld [vmem:[%s7778_s23 + $0xe20] sm:$0xff]  ;;  %v18340_v38 = vld [vmem:[#allocation66_spill] sm:$0xff]  ;;  %v6251_v32 = vld [vmem:[%s7778_s23 + $0xe30] sm:$0xff] }
 0x40e   : > { %v4535_v37 = vsub.f32 %v18321_v57, %v7326_v44  ;;  %v4617_v6 = vadd.f32 %v4616_v34, %v4580_v12  ;;  %v18329_v48 = vsub.f32 %v18327_v18, %v18328_v50  ;;  %v4584_v39 = vsel %vm4558_vm13, %v4534_v24, 0.0  ;;  %v7336_v2 = vpop.eup %7335  ;;  %v6245_v44 = vld [vmem:[%s7778_s23 + $0xe00] sm:$0xff]  ;;  %v6252_v36 = vld [vmem:[%s7778_s23 + $0xe38] sm:$0xff] }
 0x40f   : > { %v4536_v54 = vsub.f32 %v18326_v47, %v7328_v19  ;;  %v4611_v17 = vadd.f32 %v4610_v4, %v4583_v45  ;;  %v4446_v49 = vsub.f32 %v18331_v11, %v18330_v56  ;;  %v18334_v55 = vsub.f32 %v18332_v8, %v18333_v25  ;;  %v7338_v5 = vpop.eup %7337  ;;  %v18342_v45 = vld [vmem:[#allocation43_spill] sm:$0xff]  ;;  %v6254_v47 = vld [vmem:[%s7778_s23 + $0xe48] sm:$0xff]  ;;  %v6260_v11 = vld [vmem:[%s7778_s23 + $0xe78] sm:$0xff] }
 0x410   : > { %v4537_v13 = vsub.f32 %v18329_v48, %v7330_v42  ;;  %v4585_v1 = vsel %vm4559_vm14, %v4535_v37, 0.0  ;;  %vm4560_vm15 = vcmp.lt.s32.totalorder %v14970_v22, 2560  ;;  %v4310_v60 = vadd.f32 %v18336_v15, %v18335_v41  ;;  %v7340_v62 = vpop.eup %7339  ;;  %v18341_v37 = vld [vmem:[#allocation68_spill] sm:$0xff]  ;;  %v6257_v48 = vld [vmem:[%s7778_s23 + $0xe60] sm:$0xff] }
 0x411   : > { %v4538_v10 = vsub.f32 %v18334_v55, %v7332_v58  ;;  %v4586_v30 = vsel %vm4559_vm14, %v4536_v54, 0.0  ;;  %v4539_v51 = vsub.f32 %v4443_v3, %v7334_v28  ;;  %v4598_v59 = vadd.f32 %v4597_v26, %v4585_v1  ;;  %v6247_v3 = vld [vmem:[%s7778_s23 + $0xe10] sm:$0xff]  ;;  %v6262_v8 = vld [vmem:[%s7778_s23 + $0xe88] sm:$0xff]  ;;  %v15250_v61 = vld [vmem:[%s7784_s19 + $0xec0] sm:$0xff] }
 0x412   : > { %v4587_v34 = vsel %vm4559_vm14, %v4537_v13, 0.0  ;;  %v4311_v29 = vadd.f32 %v18338_v23, %v18337_v43  ;;  %v4540_v12 = vsub.f32 %v4444_v40, %v7336_v2  ;;  %v4605_v21 = vadd.f32 %v4604_v35, %v4586_v30  ;;  %v6250_v40 = vld [vmem:[%s7778_s23 + $0xe28] sm:$0xff]  ;;  %v6255_v54 = vld [vmem:[%s7778_s23 + $0xe50] sm:$0xff]  ;;  %v6256_v35 = vld [vmem:[%s7778_s23 + $0xe58] sm:$0xff]  ;;  %18376 = vst [vmem:[#allocation67_spill] sm:$0xff] %v15250_v61 }
 0x413   : > { %v4618_v4 = vadd.f32 %v4617_v6, %v4584_v39  ;;  %v4541_v46 = vsub.f32 %v4445_v0, %v7338_v5  ;;  %v4588_v24 = vsel %vm4559_vm14, %v4538_v10, 0.0  ;;  %v4589_v20 = vsel %vm4560_vm15, %v4539_v51, 0.0  ;;  %v6253_v0 = vld [vmem:[%s7778_s23 + $0xe40] sm:$0xff]  ;;  %v6258_v13 = vld [vmem:[%s7778_s23 + $0xe68] sm:$0xff]  ;;  %v6259_v39 = vld [vmem:[%s7778_s23 + $0xe70] sm:$0xff] }
 0x414   : > { %v4612_v19 = vadd.f32 %v4611_v17, %v4587_v34  ;;  %v4312_v57 = vadd.f32 %v18340_v38, %v18339_v7  ;;  %v15022_v26 = vadd.f32 %v18342_v45, %v18341_v37  ;;  %v4542_v9 = vsub.f32 %v4446_v49, %v7340_v62  ;;  %v6261_v49 = vld [vmem:[%s7778_s23 + $0xe80] sm:$0xff]  ;;  %v6263_v10 = vld [vmem:[%s7778_s23 + $0xe90] sm:$0xff]  ;;  %v6264_v30 = vld [vmem:[%s7778_s23 + $0xe98] sm:$0xff] }
 0x415   : > { %v4590_v42 = vsel %vm4560_vm15, %v4540_v12, 0.0  ;;  %v4591_v52 = vsel %vm4560_vm15, %v4541_v46, 0.0  ;;  %v4599_v53 = vadd.f32 %v4598_v59, %v4589_v20  ;;  %v15034_v6 = vmul.f32 %v6245_v44, %v6245_v44  ;;  %v6265_v2 = vld [vmem:[%s7778_s23 + $0xea0] sm:$0xff]  ;;  %v6266_v59 = vld [vmem:[%s7778_s23 + $0xea8] sm:$0xff]  ;;  %v6267_v5 = vld [vmem:[%s7778_s23 + $0xeb0] sm:$0xff] }
 0x416   : > { %18343 = vst [vmem:[#allocation51_spill] sm:$0xff] %v15022_v26  ;;  %v15036_v58 = vmul.f32 %v6246_v16, %v6246_v16  ;;  %v4606_v18 = vadd.f32 %v4605_v21, %v4590_v42  ;;  %v4619_v50 = vadd.f32 %v4618_v4, %v4588_v24  ;;  %v15041_v1 = vmul.f32 %v6247_v3, %v6247_v3  ;;  %v6268_v43 = vld [vmem:[%s7778_s23 + $0xeb8] sm:$0xff]  ;;  %v6269_v16 = vld [vmem:[%s7778_s23 + $0xec0] sm:$0xff]  ;;  %v6271_v3 = vld [vmem:[%s7778_s23 + $0xed0] sm:$0xff] }
 0x417   : > { %v15043_v17 = vmul.f32 %v6248_v63, %v6248_v63  ;;  %v4592_v28 = vsel %vm4560_vm15, %v4542_v9, 0.0  ;;  %v4613_v56 = vadd.f32 %v4612_v19, %v4591_v52  ;;  %v15050_v25 = vmul.f32 %v6249_v33, %v6249_v33  ;;  %v6272_v20 = vld [vmem:[%s7778_s23 + $0xed8] sm:$0xff]  ;;  %v6273_v19 = vld [vmem:[%s7778_s23 + $0xee0] sm:$0xff]  ;;  %v6274_v63 = vld [vmem:[%s7778_s23 + $0xee8] sm:$0xff] }
 0x418   : > { %v15052_v55 = vmul.f32 %v6250_v40, %v6250_v40  ;;  %v15057_v41 = vmul.f32 %v6251_v32, %v6251_v32  ;;  %v15059_v22 = vmul.f32 %v6252_v36, %v6252_v36  ;;  %v15061_v15 = vmul.f32 %v6253_v0, %v6253_v0  ;;  %v6275_v7 = vld [vmem:[%s7778_s23 + $0xef0] sm:$0xff]  ;;  %v6276_v38 = vld [vmem:[%s7778_s23 + $0xef8] sm:$0xff]  ;;  %v15109_v42 = vld [vmem:[%s7784_s19 + $0xe00] sm:$0xff] }
 0x419   : > { %v15063_v51 = vmul.f32 %v6254_v47, %v6254_v47  ;;  %v15065_v34 = vadd.f32 %v4599_v53, %v4310_v60  ;;  %v15070_v23 = vmul.f32 %v6255_v54, %v6255_v54  ;;  %v15072_v12 = vmul.f32 %v6256_v35, %v6256_v35  ;;  %v6270_v60 = vld [vmem:[%s7778_s23 + $0xec8] sm:$0xff]  ;;  %v15115_v36 = vld [vmem:[%s7784_s19 + $0xe10] sm:$0xff]  ;;  %v15126_v54 = vld [vmem:[%s7784_s19 + $0xe18] sm:$0xff] }
 0x41a   : > { %v15074_v21 = vmul.f32 %v6257_v48, %v6257_v48  ;;  %v15076_v4 = vadd.f32 %v4619_v50, %v4592_v28  ;;  %v15078_v44 = vadd.f32 %v4606_v18, %v4311_v29  ;;  %v15083_v62 = vmul.f32 %v6258_v13, %v6258_v13  ;;  %v15112_v32 = vld [vmem:[%s7784_s19 + $0xe08] sm:$0xff]  ;;  %v15129_v35 = vld [vmem:[%s7784_s19 + $0xe20] sm:$0xff]  ;;  %v15143_v28 = vld [vmem:[%s7784_s19 + $0xe30] sm:$0xff] }
 0x41b   : > { %18344 = vst [vmem:[#allocation38_spill] sm:$0xff] %v15065_v34  ;;  %v15085_v46 = vmul.f32 %v6259_v39, %v6259_v39  ;;  %v15087_v24 = vadd.f32 %v4613_v56, %v4312_v57  ;;  %v15092_v33 = vmul.f32 %v6260_v11, %v6260_v11  ;;  %v15094_v29 = vmul.f32 %v6261_v49, %v6261_v49  ;;  %v15132_v18 = vld [vmem:[%s7784_s19 + $0xe28] sm:$0xff]  ;;  %v15146_v56 = vld [vmem:[%s7784_s19 + $0xe38] sm:$0xff]  ;;  %v15149_v11 = vld [vmem:[%s7784_s19 + $0xe40] sm:$0xff] }
 0x41c   : > { %18345 = vst [vmem:[#allocation13_spill] sm:$0xff] %v15076_v4  ;;  %18346 = vst [vmem:[#allocation24_spill] sm:$0xff] %v15078_v44  ;;  %v15096_v40 = vmul.f32 %v6262_v8, %v6262_v8  ;;  %v15100_v37 = vmul.f32 %v6263_v10, %v6263_v10  ;;  %v15102_v45 = vmul.f32 %v6264_v30, %v6264_v30  ;;  %v15200_v30 = vld [vmem:[%s7784_s19 + $0xe88] sm:$0xff]  ;;  %v15211_v10 = vld [vmem:[%s7784_s19 + $0xe90] sm:$0xff]  ;;  %v4764_v26 = vmul.f32 1.442695, %v15126_v54 }
 0x41d   : > { %18347 = vst [vmem:[#allocation30_spill] sm:$0xff] %v15085_v46  ;;  %18348 = vst [vmem:[#allocation32_spill] sm:$0xff] %v15087_v24  ;;  %v15104_v57 = vmul.f32 %v6265_v2, %v6265_v2  ;;  %v15106_v9 = vmul.f32 %v6266_v59, %v6266_v59  ;;  %v15117_v0 = vmul.f32 %v6267_v5, %v6267_v5  ;;  %v15160_v2 = vld [vmem:[%s7784_s19 + $0xe48] sm:$0xff]  ;;  %v15163_v59 = vld [vmem:[%s7784_s19 + $0xe50] sm:$0xff] }
 0x41e   : > { %18349 = vst [vmem:[#allocation28_spill] sm:$0xff] %v15092_v33  ;;  %18350 = vst [vmem:[#allocation49_spill] sm:$0xff] %v15094_v29  ;;  %v15119_v52 = vmul.f32 %v6268_v43, %v6268_v43  ;;  %v15121_v53 = vmul.f32 %v6269_v16, %v6269_v16  ;;  %v15123_v47 = vmul.f32 %v6270_v60, %v6270_v60  ;;  %v15166_v5 = vld [vmem:[%s7784_s19 + $0xe58] sm:$0xff]  ;;  %v15197_v43 = vld [vmem:[%s7784_s19 + $0xe80] sm:$0xff]  ;;  %v4772_v16 = vmul.f32 1.442695, %v15146_v56 }
 0x41f   : > { %18351 = vst [vmem:[#allocation36_spill] sm:$0xff] %v15096_v40  ;;  %18352 = vst [vmem:[#allocation42_spill] sm:$0xff] %v15100_v37  ;;  %v15134_v50 = vmul.f32 %v6271_v3, %v6271_v3  ;;  %v15136_v48 = vmul.f32 %v6272_v20, %v6272_v20  ;;  %v15138_v13 = vmul.f32 %v6273_v19, %v6273_v19  ;;  %v15177_v20 = vld [vmem:[%s7784_s19 + $0xe60] sm:$0xff]  ;;  %v15180_v19 = vld [vmem:[%s7784_s19 + $0xe68] sm:$0xff]  ;;  %v4766_v3 = vmul.f32 1.442695, %v15129_v35 }
 0x420   : > { %18353 = vst [vmem:[#allocation20_spill] sm:$0xff] %v15102_v45  ;;  %18354 = vst [vmem:[#allocation45_spill] sm:$0xff] %v15104_v57  ;;  %v15140_v39 = vmul.f32 %v6274_v63, %v6274_v63  ;;  %v15151_v49 = vmul.f32 %v6275_v7, %v6275_v7  ;;  %v15153_v8 = vmul.f32 %v6276_v38, %v6276_v38  ;;  %v15183_v63 = vld [vmem:[%s7784_s19 + $0xe70] sm:$0xff]  ;;  %v15194_v60 = vld [vmem:[%s7784_s19 + $0xe78] sm:$0xff]  ;;  %v4758_v38 = vmul.f32 1.442695, %v15109_v42 }
 0x421   : > { %18355 = vst [vmem:[#allocation27_spill] sm:$0xff] %v15106_v9  ;;  %18356 = vst [vmem:[#allocation52_spill] sm:$0xff] %v15117_v0  ;;  %v15214_v24 = vld [vmem:[%s7784_s19 + $0xe98] sm:$0xff]  ;;  %v15217_v44 = vld [vmem:[%s7784_s19 + $0xea0] sm:$0xff]  ;;  %v4768_v45 = vmul.f32 1.442695, %v15132_v18 }
 0x422   : > { %18357 = vst [vmem:[#allocation41_spill] sm:$0xff] %v15119_v52  ;;  %18358 = vst [vmem:[#allocation58_spill] sm:$0xff] %v15121_v53  ;;  %v15228_v34 = vld [vmem:[%s7784_s19 + $0xea8] sm:$0xff]  ;;  %v15231_v4 = vld [vmem:[%s7784_s19 + $0xeb0] sm:$0xff]  ;;  %7341 = vpow2.f32 %v4758_v38  ;;  %v4770_v38 = vmul.f32 1.442695, %v15143_v28 }
 0x423   : > { %18359 = vst [vmem:[#allocation59_spill] sm:$0xff] %v15123_v47  ;;  %18360 = vst [vmem:[#allocation35_spill] sm:$0xff] %v15134_v50  ;;  %v15253_v7 = vld [vmem:[%s7784_s19 + $0xec8] sm:$0xff]  ;;  %v15261_v57 = vld [vmem:[%s7784_s19 + $0xed0] sm:$0xff]  ;;  %v4774_v53 = vmul.f32 1.442695, %v15149_v11 }
 0x424   : > { %18361 = vst [vmem:[#allocation53_spill] sm:$0xff] %v15136_v48  ;;  %18362 = vst [vmem:[#allocation29_spill] sm:$0xff] %v15138_v13  ;;  %v15271_v48 = vstv %s4854_s26  ;;  %v4776_v9 = vmul.f32 1.442695, %v15160_v2  ;;  %v4780_v47 = vmul.f32 1.442695, %v15166_v5 }
 0x425   : > { %18363 = vst [vmem:[#allocation46_spill] sm:$0xff] %v15140_v39  ;;  %18364 = vst [vmem:[#allocation12_spill] sm:$0xff] %v15151_v49  ;;  %v15240_v49 = vld [vmem:[%s7784_s19 + $0xeb8] sm:$0xff]  ;;  %v4762_v39 = vmul.f32 1.442695, %v15115_v36  ;;  %v15283_v50 = vld [vmem:[%s7784_s19 + $0xee0] sm:$0xff] }
 0x426   : > { %18365 = vst [vmem:[#allocation16_spill] sm:$0xff] %v15153_v8  ;;  %18366 = vst [vmem:[#allocation54_spill] sm:$0xff] %v15183_v63  ;;  %v4760_v8 = vmul.f32 1.442695, %v15112_v32  ;;  %v15280_v13 = vld [vmem:[%s7784_s19 + $0xed8] sm:$0xff]  ;;  %v15289_v37 = vld [vmem:[%s7784_s19 + $0xee8] sm:$0xff] }
 0x427   : > { %18367 = vst [vmem:[#allocation64_spill] sm:$0xff] %v15194_v60  ;;  %18368 = vst [vmem:[#allocation62_spill] sm:$0xff] %v15197_v43  ;;  %v4786_v52 = vmul.f32 1.442695, %v15183_v63  ;;  %v4788_v0 = vmul.f32 1.442695, %v15194_v60 }
 0x428   : > { %18369 = vst [vmem:[#allocation65_spill] sm:$0xff] %v15200_v30  ;;  %18370 = vst [vmem:[#allocation31_spill] sm:$0xff] %v15211_v10  ;;  %7343 = vpow2.f32 %v4760_v8  ;;  %v4778_v8 = vmul.f32 1.442695, %v15163_v59  ;;  %v4790_v40 = vmul.f32 1.442695, %v15197_v43 }
 0x429   : > { %18371 = vst [vmem:[#allocation48_spill] sm:$0xff] %v15214_v24  ;;  %18372 = vst [vmem:[#allocation56_spill] sm:$0xff] %v15217_v44  ;;  %7345 = vpow2.f32 %v4762_v39  ;;  %v4782_v39 = vmul.f32 1.442695, %v15177_v20  ;;  %v4792_v29 = vmul.f32 1.442695, %v15200_v30 }
 0x42a   : > { %18373 = vst [vmem:[#allocation33_spill] sm:$0xff] %v15228_v34  ;;  %18374 = vst [vmem:[#allocation57_spill] sm:$0xff] %v15231_v4  ;;  %7347 = vpow2.f32 %v4764_v26  ;;  %v4784_v26 = vmul.f32 1.442695, %v15180_v19  ;;  %v4794_v33 = vmul.f32 1.442695, %v15211_v10 }
 0x42b   : > { %18375 = vst [vmem:[#allocation25_spill] sm:$0xff] %v15240_v49  ;;  %18377 = vst [vmem:[#allocation17_spill] sm:$0xff] %v15253_v7  ;;  %7349 = vpow2.f32 %v4766_v3  ;;  %v15292_v3 = vld [vmem:[%s7784_s19 + $0xef0] sm:$0xff]  ;;  %v4798_v46 = vmul.f32 1.442695, %v15217_v44  ;;  %v15312_v30 = vld [vmem:[%s7784_s19 + $0xef8] sm:$0xff] }
 0x42c   : > { %18378 = vst [vmem:[#allocation39_spill] sm:$0xff] %v15261_v57  ;;  %18379 = vst [vmem:[#allocation61_spill] sm:$0xff] %v15280_v13  ;;  %7351 = vpow2.f32 %v4768_v45  ;;  %v4796_v45 = vmul.f32 1.442695, %v15214_v24  ;;  %v15300_v63 = vmul.f32 1.442695, %v15228_v34 }
 0x42d   : > { %18380 = vst [vmem:[#allocation23_spill] sm:$0xff] %v15283_v50  ;;  %18381 = vst [vmem:[#allocation19_spill] sm:$0xff] %v15289_v37  ;;  %7353 = vpow2.f32 %v4770_v38  ;;  %v15303_v60 = vmul.f32 1.442695, %v15231_v4  ;;  %v15306_v38 = vmul.f32 1.442695, %v15240_v49  ;;  %v7342_v4 = vpop.eup %7341 }
 0x42e   : > { %18382 = vst [vmem:[#allocation15_spill] sm:$0xff] %v15292_v3  ;;  %7355 = vpow2.f32 %v4772_v16  ;;  %v15309_v43 = vmul.f32 1.442695, %v15250_v61  ;;  %18383 = vst [vmem:[#allocation63_spill] sm:$0xff] %v15312_v30  ;;  %v15315_v16 = vmul.f32 1.442695, %v15253_v7 }
 0x42f   : > { %7357 = vpow2.f32 %v4774_v53  ;;  %v15318_v44 = vmul.f32 1.442695, %v15261_v57  ;;  %v18384_v34 = vld [vmem:[#allocation11_spill] sm:$0xff]  ;;  %v15323_v49 = vmul.f32 1.442695, %v15280_v13  ;;  %v18386_v24 = vld [vmem:[#allocation18_spill] sm:$0xff] }
 0x430   : > { %7359 = vpow2.f32 %v4776_v9  ;;  %v4856_v53 = vadd.s32 %v15271_v48, %v18384_v34  ;;  %v15326_v61 = vmul.f32 1.442695, %v15283_v50  ;;  %v4857_v9 = vadd.s32 %v15271_v48, %v18386_v24  ;;  %v18388_v34 = vld [vmem:[#allocation22_spill] sm:$0xff] }
 0x431   : > { %7361 = vpow2.f32 %v4778_v8  ;;  %v15331_v7 = vmul.f32 1.442695, %v15289_v37  ;;  %v15334_v57 = vmul.f32 1.442695, %v15292_v3  ;;  %v15338_v8 = vadd.s32 %v15271_v48, %v18388_v34 }
 0x432   : > { %18385 = vst [vmem:[#allocation55_spill] sm:$0xff] %v15326_v61  ;;  %v7344_v10 = vpop.eup %7343  ;;  %7363 = vpow2.f32 %v4780_v47  ;;  %v15341_v50 = vmul.f32 1.442695, %v15312_v30  ;;  %v18389_v24 = vsub.f32 %v15109_v42, %v15034_v6  ;;  %v18390_v47 = vld [vmem:[#allocation26_spill] sm:$0xff]  ;;  %v18391_v3 = vsub.f32 %v15112_v32, %v15036_v58 }
 0x433   : > { %18387 = vst [vmem:[#allocation47_spill] sm:$0xff] %v15331_v7  ;;  %v7346_v13 = vpop.eup %7345  ;;  %7365 = vpow2.f32 %v4782_v39  ;;  %v15348_v37 = vadd.s32 %v15271_v48, %v18390_v47  ;;  %v15355_v39 = vadd.s32 %v15271_v48, %v18268_v31  ;;  %vm4864_vm0 = vcmp.lt.s32.totalorder %v4856_v53, 2560 }
 0x434   : > { %v4822_v61 = vsub.f32 %v18389_v24, %v7342_v4  ;;  %v7348_v7 = vpop.eup %7347  ;;  %7367 = vpow2.f32 %v4784_v26  ;;  %v4823_v34 = vsub.f32 %v18391_v3, %v7344_v10  ;;  %v15359_v6 = vadd.s32 %v15271_v48, %v18027_v27 }
 0x435   : > { %v7350_v30 = vpop.eup %7349  ;;  %7369 = vpow2.f32 %v4786_v52  ;;  %v15363_v4 = vadd.s32 %v15271_v48, %v17941_v14  ;;  %vm4865_vm1 = vcmp.lt.s32.totalorder %v4857_v9, 2560  ;;  %v18392_v58 = vsub.f32 %v15115_v36, %v15041_v1 }
 0x436   : > { %v7352_v24 = vpop.eup %7351  ;;  %7371 = vpow2.f32 %v4788_v0  ;;  %v18393_v32 = vsub.f32 %v15129_v35, %v15050_v25  ;;  %vm4866_vm2 = vcmp.lt.s32.totalorder %v15338_v8, 2560  ;;  %v18394_v26 = vsub.f32 %v15132_v18, %v15052_v55 }
 0x437   : > { %v4824_v42 = vsub.f32 %v18392_v58, %v7346_v13  ;;  %v7354_v52 = vpop.eup %7353  ;;  %7373 = vpow2.f32 %v4790_v40  ;;  %vm4867_vm3 = vcmp.lt.s32.totalorder %v15348_v37, 2560  ;;  %v4872_v0 = vsel %vm4864_vm0, %v4822_v61, 0.0  ;;  %v18429_v37 = vld [vmem:[#allocation29_spill] sm:$0xff] }
 0x438   : > { %v4826_v10 = vsub.f32 %v18393_v32, %v7350_v30  ;;  %v4827_v3 = vsub.f32 %v18394_v26, %v7352_v24  ;;  %v7356_v14 = vpop.eup %7355  ;;  %7375 = vpow2.f32 %v4792_v29  ;;  %v18395_v1 = vsub.f32 %v15126_v54, %v15043_v17  ;;  %v18405_v26 = vld [vmem:[#allocation30_spill] sm:$0xff] }
 0x439   : > { %v18396_v25 = vsub.f32 %v15143_v28, %v15057_v41  ;;  %v4873_v40 = vsel %vm4864_vm0, %v4823_v34, 0.0  ;;  %v7358_v13 = vpop.eup %7357  ;;  %7377 = vpow2.f32 %v4794_v33  ;;  %v18397_v55 = vsub.f32 %v15146_v56, %v15059_v22 }
 0x43a   : > { %v4825_v36 = vsub.f32 %v18395_v1, %v7348_v7  ;;  %v4876_v61 = vsel %vm4865_vm1, %v4826_v10, 0.0  ;;  %v4877_v29 = vsel %vm4865_vm1, %v4827_v3, 0.0  ;;  %v7360_v30 = vpop.eup %7359  ;;  %7379 = vpow2.f32 %v4796_v45 }
 0x43b   : > { %v4828_v35 = vsub.f32 %v18396_v25, %v7354_v52  ;;  %v4829_v18 = vsub.f32 %v18397_v55, %v7356_v14  ;;  %v18398_v17 = vsub.f32 %v15149_v11, %v15061_v15  ;;  %vm4868_vm4 = vcmp.lt.s32.totalorder %v15355_v39, 2560  ;;  %v7362_v33 = vpop.eup %7361  ;;  %v18445_v39 = vld [vmem:[#allocation19_spill] sm:$0xff] }
 0x43c   : > { %v4874_v41 = vsel %vm4864_vm0, %v4824_v42, 0.0  ;;  %v4904_v34 = vadd.f32 %v4876_v61, %v4872_v0  ;;  %7381 = vpow2.f32 %v4798_v46  ;;  %v18399_v14 = vsub.f32 %v15160_v2, %v15063_v51  ;;  %v7364_v7 = vpop.eup %7363 }
 0x43d   : > { %v4830_v54 = vsub.f32 %v18398_v17, %v7358_v13  ;;  %v4878_v28 = vsel %vm4865_vm1, %v4828_v35, 0.0  ;;  %v4911_v56 = vadd.f32 %v4877_v29, %v4873_v40  ;;  %7383 = vpow2.f32 %v15300_v63  ;;  %v7366_v46 = vpop.eup %7365  ;;  %v18410_v40 = vld [vmem:[#allocation62_spill] sm:$0xff]  ;;  %v18411_v13 = vld [vmem:[#allocation49_spill] sm:$0xff]  ;;  %v18413_v29 = vld [vmem:[#allocation55_spill] sm:$0xff] }
 0x43e   : > { %v4831_v22 = vsub.f32 %v18399_v14, %v7360_v30  ;;  %v18400_v15 = vsub.f32 %v15163_v59, %v15070_v23  ;;  %v4875_v45 = vsel %vm4864_vm0, %v4825_v36, 0.0  ;;  %7385 = vpow2.f32 %v15303_v60  ;;  %v7368_v42 = vpop.eup %7367  ;;  %v18414_v30 = vld [vmem:[#allocation65_spill] sm:$0xff]  ;;  %v18415_v17 = vld [vmem:[#allocation36_spill] sm:$0xff]  ;;  %v18418_v14 = vld [vmem:[#allocation31_spill] sm:$0xff] }
 0x43f   : > { %v4880_v24 = vsel %vm4866_vm2, %v4830_v54, 0.0  ;;  %v18401_v51 = vsub.f32 %v15166_v5, %v15072_v12  ;;  %v4879_v58 = vsel %vm4865_vm1, %v4829_v18, 0.0  ;;  %7387 = vpow2.f32 %v15306_v38  ;;  %v7370_v10 = vpop.eup %7369  ;;  %v18404_v38 = vld [vmem:[#allocation54_spill] sm:$0xff] }
 0x440   : > { %v4832_v11 = vsub.f32 %v18400_v15, %v7362_v33  ;;  %v4881_v63 = vsel %vm4866_vm2, %v4831_v22, 0.0  ;;  %v18402_v23 = vsub.f32 %v15177_v20, %v15074_v21  ;;  %v4905_v53 = vadd.f32 %v4904_v34, %v4880_v24  ;;  %v7372_v52 = vpop.eup %7371  ;;  %v18419_v22 = vld [vmem:[#allocation42_spill] sm:$0xff]  ;;  %v18422_v24 = vld [vmem:[#allocation20_spill] sm:$0xff] }
 0x441   : > { %v4833_v2 = vsub.f32 %v18401_v51, %v7364_v7  ;;  %v4918_v32 = vadd.f32 %v4878_v28, %v4874_v41  ;;  %7389 = vpow2.f32 %v15309_v43  ;;  %v18403_v12 = vsub.f32 %v15180_v19, %v15083_v62  ;;  %v7374_v43 = vpop.eup %7373  ;;  %v18407_v62 = vld [vmem:[#allocation64_spill] sm:$0xff] }
 0x442   : > { %v4834_v59 = vsub.f32 %v18402_v23, %v7366_v46  ;;  %v4882_v60 = vsel %vm4866_vm2, %v4832_v11, 0.0  ;;  %v4912_v9 = vadd.f32 %v4911_v56, %v4881_v63  ;;  %7391 = vpow2.f32 %v15315_v16  ;;  %v18408_v19 = vld [vmem:[#allocation28_spill] sm:$0xff]  ;;  %v7376_v35 = vpop.eup %7375  ;;  %v18425_v23 = vld [vmem:[#allocation45_spill] sm:$0xff] }
 0x443   : > { %v4835_v5 = vsub.f32 %v18403_v12, %v7368_v42  ;;  %v18406_v21 = vsub.f32 %v18404_v38, %v18405_v26  ;;  %v4925_v0 = vadd.f32 %v4879_v58, %v4875_v45  ;;  %7393 = vpow2.f32 %v15318_v44  ;;  %v7378_v61 = vpop.eup %7377  ;;  %v18421_v45 = vld [vmem:[#allocation48_spill] sm:$0xff]  ;;  %v18427_v12 = vld [vmem:[#allocation53_spill] sm:$0xff]  ;;  %v18432_v26 = vld [vmem:[#allocation27_spill] sm:$0xff] }
 0x444   : > { %v4884_v3 = vsel %vm4867_vm3, %v4834_v59, 0.0  ;;  %v18409_v1 = vsub.f32 %v18407_v62, %v18408_v19  ;;  %v4883_v25 = vsel %vm4866_vm2, %v4833_v2, 0.0  ;;  %7395 = vpow2.f32 %v15323_v49  ;;  %v7380_v33 = vpop.eup %7379  ;;  %v18417_v49 = vld [vmem:[#allocation47_spill] sm:$0xff]  ;;  %v18424_v42 = vld [vmem:[#allocation56_spill] sm:$0xff]  ;;  %v18431_v38 = vld [vmem:[#allocation33_spill] sm:$0xff] }
 0x445   : > { %v4836_v20 = vsub.f32 %v18406_v21, %v7370_v10  ;;  %v4885_v16 = vsel %vm4867_vm3, %v4835_v5, 0.0  ;;  %v18412_v55 = vsub.f32 %v18410_v40, %v18411_v13  ;;  %vm4869_vm5 = vcmp.lt.s32.totalorder %v15359_v6, 2560  ;;  %v18428_v5 = vld [vmem:[#allocation61_spill] sm:$0xff] }
 0x446   : > { %v4837_v36 = vsub.f32 %v18409_v1, %v7372_v52  ;;  %v4919_v44 = vadd.f32 %v4918_v32, %v4882_v60  ;;  %7397 = vpow2.f32 %v18413_v29  ;;  %v18416_v8 = vsub.f32 %v18414_v30, %v18415_v17  ;;  %v7382_v11 = vpop.eup %7381  ;;  %v18437_v1 = vld [vmem:[#allocation40_spill] sm:$0xff]  ;;  %v18438_v40 = vld [vmem:[#allocation25_spill] sm:$0xff]  ;;  %v18441_v17 = vld [vmem:[#allocation67_spill] sm:$0xff] }
 0x447   : > { %v4838_v18 = vsub.f32 %v18412_v55, %v7374_v43  ;;  %v4886_v41 = vsel %vm4867_vm3, %v4836_v20, 0.0  ;;  %v4906_v34 = vadd.f32 %v4905_v53, %v4884_v3  ;;  %7399 = vpow2.f32 %v18417_v49  ;;  %v7384_v63 = vpop.eup %7383  ;;  %v18435_v43 = vld [vmem:[#allocation52_spill] sm:$0xff]  ;;  %v18439_v13 = vld [vmem:[#allocation41_spill] sm:$0xff]  ;;  %v18444_v49 = vld [vmem:[#allocation46_spill] sm:$0xff] }
 0x448   : > { %v4839_v54 = vsub.f32 %v18416_v8, %v7376_v35  ;;  %v18420_v28 = vsub.f32 %v18418_v14, %v18419_v22  ;;  %v4913_v7 = vadd.f32 %v4912_v9, %v4885_v16  ;;  %v4926_v15 = vadd.f32 %v4925_v0, %v4883_v25  ;;  %v7386_v10 = vpop.eup %7385  ;;  %v18430_v9 = vld [vmem:[#allocation23_spill] sm:$0xff]  ;;  %v18434_v0 = vld [vmem:[#allocation57_spill] sm:$0xff]  ;;  %v18442_v8 = vld [vmem:[#allocation58_spill] sm:$0xff] }
 0x449   : > { %7401 = vpow2.f32 %v15334_v57  ;;  %v18423_v46 = vsub.f32 %v18421_v45, %v18422_v24  ;;  %v4887_v2 = vsel %vm4867_vm3, %v4837_v36, 0.0  ;;  %v4888_v58 = vsel %vm4868_vm4, %v4838_v18, 0.0  ;;  %v7388_v3 = vpop.eup %7387  ;;  %v18446_v22 = vld [vmem:[#allocation12_spill] sm:$0xff]  ;;  %v6311_v6 = vld [vmem:[%s7778_s23 + $0xf10] sm:$0xff] }
 0x44a   : > { %v4840_v56 = vsub.f32 %v18420_v28, %v7378_v61  ;;  %7403 = vpow2.f32 %v15341_v50  ;;  %v18426_v59 = vsub.f32 %v18424_v42, %v18425_v23  ;;  %v4889_v57 = vsel %vm4868_vm4, %v4839_v54, 0.0  ;;  %v18447_v28 = vld [vmem:[#allocation15_spill] sm:$0xff] }
 0x44b   : > { %v4841_v51 = vsub.f32 %v18423_v46, %v7380_v33  ;;  %v4920_v32 = vadd.f32 %v4919_v44, %v4886_v41  ;;  %v4753_v60 = vsub.f32 %v18428_v5, %v18427_v12  ;;  %v4754_v52 = vsub.f32 %v18430_v9, %v18429_v37  ;;  %v7390_v35 = vpop.eup %7389  ;;  %v18454_v42 = vld [vmem:[#allocation35_spill] sm:$0xff] }
 0x44c   : > { %v4842_v53 = vsub.f32 %v18426_v59, %v7382_v11  ;;  %v18433_v21 = vsub.f32 %v18431_v38, %v18432_v26  ;;  %v4890_v50 = vsel %vm4868_vm4, %v4840_v56, 0.0  ;;  %v18436_v62 = vsub.f32 %v18434_v0, %v18435_v43  ;;  %v7392_v30 = vpop.eup %7391  ;;  %v6310_v38 = vld [vmem:[%s7778_s23 + $0xf08] sm:$0xff]  ;;  %v18457_v0 = vld [vmem:[#allocation13_spill] sm:$0xff] }
 0x44d   : > { %v15479_v36 = vadd.s32 %v15271_v48, %v18437_v1  ;;  %v4907_v25 = vadd.f32 %v4906_v34, %v4888_v58  ;;  %v4927_v16 = vadd.f32 %v4926_v15, %v4887_v2  ;;  %v18440_v55 = vsub.f32 %v18438_v40, %v18439_v13  ;;  %v7394_v33 = vpop.eup %7393  ;;  %v18449_v15 = vld [vmem:[#allocation59_spill] sm:$0xff]  ;;  %v15760_v1 = vld [vmem:[%s7784_s19 + $0xfd0] sm:$0xff] }
 0x44e   : > { %v4843_v20 = vsub.f32 %v18433_v21, %v7384_v63  ;;  %v4844_v19 = vsub.f32 %v18436_v62, %v7386_v10  ;;  %v4891_v44 = vsel %vm4868_vm4, %v4841_v51, 0.0  ;;  %v4892_v61 = vsel %vm4869_vm5, %v4842_v53, 0.0  ;;  %v7396_v46 = vpop.eup %7395  ;;  %v18451_v51 = vld [vmem:[#allocation16_spill] sm:$0xff]  ;;  %v18452_v2 = vld [vmem:[#allocation63_spill] sm:$0xff]  ;;  %18494 = vst [vmem:[#allocation67_spill] sm:$0xff] %v15760_v1 }
 0x44f   : > { %v4845_v18 = vsub.f32 %v18440_v55, %v7388_v3  ;;  %v4914_v29 = vadd.f32 %v4913_v7, %v4889_v57  ;;  %v18443_v48 = vsub.f32 %v18441_v17, %v18442_v8  ;;  %vm4870_vm6 = vcmp.lt.s32.totalorder %v15363_v4, 2560  ;;  %v18448_v7 = vld [vmem:[#allocation17_spill] sm:$0xff]  ;;  %v18453_v63 = vld [vmem:[#allocation39_spill] sm:$0xff] }
 0x450   : > { %v4893_v41 = vsel %vm4869_vm5, %v4843_v20, 0.0  ;;  %v4921_v34 = vadd.f32 %v4920_v32, %v4890_v50  ;;  %v4755_v14 = vsub.f32 %v18445_v39, %v18444_v49  ;;  %v4756_v56 = vsub.f32 %v18447_v28, %v18446_v22  ;;  %v6309_v32 = vld [vmem:[%s7778_s23 + $0xf00] sm:$0xff]  ;;  %v7398_v10 = vpop.eup %7397  ;;  %v6322_v22 = vld [vmem:[%s7778_s23 + $0xf68] sm:$0xff]  ;;  %v6323_v28 = vld [vmem:[%s7778_s23 + $0xf70] sm:$0xff] }
 0x451   : > { %v4846_v54 = vsub.f32 %v18443_v48, %v7390_v35  ;;  %v18450_v11 = vsub.f32 %v18448_v7, %v18449_v15  ;;  %v4894_v24 = vsel %vm4869_vm5, %v4844_v19, 0.0  ;;  %v4757_v58 = vsub.f32 %v18452_v2, %v18451_v51  ;;  %v7400_v26 = vpop.eup %7399  ;;  %v18456_v3 = vld [vmem:[#allocation51_spill] sm:$0xff]  ;;  %v6324_v15 = vld [vmem:[%s7778_s23 + $0xf78] sm:$0xff] }
 0x452   : > { %v18455_v23 = vsub.f32 %v18453_v63, %v18454_v42  ;;  %v4908_v53 = vadd.f32 %v4907_v25, %v4892_v61  ;;  %v4928_v57 = vadd.f32 %v4927_v16, %v4891_v44  ;;  %v4849_v12 = vsub.f32 %v4753_v60, %v7396_v46  ;;  %v6313_v25 = vld [vmem:[%s7778_s23 + $0xf20] sm:$0xff]  ;;  %v6314_v16 = vld [vmem:[%s7778_s23 + $0xf28] sm:$0xff]  ;;  %v6315_v44 = vld [vmem:[%s7778_s23 + $0xf30] sm:$0xff] }
 0x453   : > { %v4847_v45 = vsub.f32 %v18450_v11, %v7392_v30  ;;  %v4895_v5 = vsel %vm4869_vm5, %v4845_v18, 0.0  ;;  %v4896_v37 = vsel %vm4870_vm6, %v4846_v54, 0.0  ;;  %v4915_v9 = vadd.f32 %v4914_v29, %v4893_v41  ;;  %v7402_v50 = vpop.eup %7401  ;;  %v6316_v61 = vld [vmem:[%s7778_s23 + $0xf38] sm:$0xff]  ;;  %v6317_v29 = vld [vmem:[%s7778_s23 + $0xf40] sm:$0xff]  ;;  %v6318_v54 = vld [vmem:[%s7778_s23 + $0xf48] sm:$0xff] }
 0x454   : > { %v4848_v59 = vsub.f32 %v18455_v23, %v7394_v33  ;;  %v4850_v21 = vsub.f32 %v4754_v52, %v7398_v10  ;;  %vm4871_vm7 = vcmp.lt.s32.totalorder %v15479_v36, 2560  ;;  %v4922_v60 = vadd.f32 %v4921_v34, %v4894_v24  ;;  %v6312_v52 = vld [vmem:[%s7778_s23 + $0xf18] sm:$0xff]  ;;  %v7404_v40 = vpop.eup %7403  ;;  %v6319_v41 = vld [vmem:[%s7778_s23 + $0xf50] sm:$0xff]  ;;  %v6325_v11 = vld [vmem:[%s7778_s23 + $0xf80] sm:$0xff] }
 0x455   : > { %v4897_v20 = vsel %vm4870_vm6, %v4847_v45, 0.0  ;;  %v15520_v43 = vadd.f32 %v18457_v0, %v18456_v3  ;;  %v4851_v62 = vsub.f32 %v4755_v14, %v7400_v26  ;;  %v15527_v35 = vmul.f32 %v6309_v32, %v6309_v32  ;;  %v6320_v34 = vld [vmem:[%s7778_s23 + $0xf58] sm:$0xff]  ;;  %v6321_v14 = vld [vmem:[%s7778_s23 + $0xf60] sm:$0xff]  ;;  %v6326_v45 = vld [vmem:[%s7778_s23 + $0xf88] sm:$0xff] }
 0x456   : > { %v4898_v19 = vsel %vm4870_vm6, %v4848_v59, 0.0  ;;  %v4852_v13 = vsub.f32 %v4756_v56, %v7402_v50  ;;  %v4909_v55 = vadd.f32 %v4908_v53, %v4896_v37  ;;  %v4929_v18 = vadd.f32 %v4928_v57, %v4895_v5  ;;  %v6327_v63 = vld [vmem:[%s7778_s23 + $0xf90] sm:$0xff]  ;;  %v6328_v42 = vld [vmem:[%s7778_s23 + $0xf98] sm:$0xff]  ;;  %v6329_v23 = vld [vmem:[%s7778_s23 + $0xfa0] sm:$0xff] }
 0x457   : > { %18458 = vst [vmem:[#allocation14_spill] sm:$0xff] %v15520_v43  ;;  %v15532_v30 = vmul.f32 %v6310_v38, %v6310_v38  ;;  %v4899_v17 = vsel %vm4870_vm6, %v4849_v12, 0.0  ;;  %v4900_v8 = vsel %vm4871_vm7, %v4850_v21, 0.0  ;;  %v4916_v48 = vadd.f32 %v4915_v9, %v4897_v20  ;;  %v6330_v32 = vld [vmem:[%s7778_s23 + $0xfa8] sm:$0xff]  ;;  %v6331_v10 = vld [vmem:[%s7778_s23 + $0xfb0] sm:$0xff]  ;;  %v6332_v12 = vld [vmem:[%s7778_s23 + $0xfb8] sm:$0xff] }
 0x458   : > { %v15541_v33 = vmul.f32 %v6311_v6, %v6311_v6  ;;  %v4853_v49 = vsub.f32 %v4757_v58, %v7404_v40  ;;  %v4901_v39 = vsel %vm4871_vm7, %v4851_v62, 0.0  ;;  %v4923_v4 = vadd.f32 %v4922_v60, %v4898_v19  ;;  %v6333_v21 = vld [vmem:[%s7778_s23 + $0xfc0] sm:$0xff]  ;;  %v6334_v20 = vld [vmem:[%s7778_s23 + $0xfc8] sm:$0xff]  ;;  %v6335_v60 = vld [vmem:[%s7778_s23 + $0xfd0] sm:$0xff] }
 0x459   : > { %v15548_v56 = vmul.f32 %v6312_v52, %v6312_v52  ;;  %v4902_v7 = vsel %vm4871_vm7, %v4852_v13, 0.0  ;;  %v15555_v24 = vmul.f32 %v6313_v25, %v6313_v25  ;;  %v15557_v46 = vmul.f32 %v6314_v16, %v6314_v16  ;;  %v6336_v3 = vld [vmem:[%s7778_s23 + $0xfd8] sm:$0xff]  ;;  %v6337_v0 = vld [vmem:[%s7778_s23 + $0xfe0] sm:$0xff]  ;;  %v6338_v62 = vld [vmem:[%s7778_s23 + $0xfe8] sm:$0xff] }
 0x45a   : > { %v15559_v51 = vmul.f32 %v6315_v44, %v6315_v44  ;;  %v15561_v2 = vadd.f32 %v4909_v55, %v4900_v8  ;;  %v15563_v58 = vadd.f32 %v4929_v18, %v4899_v17  ;;  %v15568_v59 = vmul.f32 %v6316_v61, %v6316_v61  ;;  %v6339_v16 = vld [vmem:[%s7778_s23 + $0xff0] sm:$0xff]  ;;  %v6340_v40 = vld [vmem:[%s7778_s23 + $0xff8] sm:$0xff]  ;;  %v15610_v13 = vld [vmem:[%s7784_s19 + $0xf00] sm:$0xff] }
 0x45b   : > { %v15570_v53 = vmul.f32 %v6317_v29, %v6317_v29  ;;  %v15572_v57 = vadd.f32 %v4916_v48, %v4901_v39  ;;  %v15577_v5 = vmul.f32 %v6318_v54, %v6318_v54  ;;  %v15579_v37 = vmul.f32 %v6319_v41, %v6319_v41  ;;  %v15621_v29 = vld [vmem:[%s7784_s19 + $0xf08] sm:$0xff]  ;;  %v15624_v17 = vld [vmem:[%s7784_s19 + $0xf10] sm:$0xff]  ;;  %v15627_v8 = vld [vmem:[%s7784_s19 + $0xf18] sm:$0xff] }
 0x45c   : > { %18459 = vst [vmem:[#allocation34_spill] sm:$0xff] %v15561_v2  ;;  %18460 = vst [vmem:[#allocation50_spill] sm:$0xff] %v15563_v58  ;;  %v15581_v9 = vmul.f32 %v6320_v34, %v6320_v34  ;;  %v15585_v38 = vsel %vm4871_vm7, %v4853_v49, 0.0  ;;  %v15587_v26 = vadd.f32 %v4923_v4, %v4902_v7  ;;  %v15592_v6 = vmul.f32 %v6321_v14, %v6321_v14  ;;  %v15638_v49 = vld [vmem:[%s7784_s19 + $0xf20] sm:$0xff]  ;;  %v15641_v39 = vld [vmem:[%s7784_s19 + $0xf28] sm:$0xff] }
 0x45d   : > { %18461 = vst [vmem:[#allocation44_spill] sm:$0xff] %v15572_v57  ;;  %18462 = vst [vmem:[#allocation60_spill] sm:$0xff] %v15585_v38  ;;  %v15594_v50 = vmul.f32 %v6322_v22, %v6322_v22  ;;  %v15599_v36 = vmul.f32 %v6323_v28, %v6323_v28  ;;  %v15601_v19 = vmul.f32 %v6324_v15, %v6324_v15  ;;  %v15644_v4 = vld [vmem:[%s7784_s19 + $0xf30] sm:$0xff]  ;;  %v15655_v15 = vld [vmem:[%s7784_s19 + $0xf38] sm:$0xff] }
 0x45e   : > { %18463 = vst [vmem:[#allocation21_spill] sm:$0xff] %v15587_v26  ;;  %v15603_v52 = vmul.f32 %v6325_v11, %v6325_v11  ;;  %v15605_v25 = vmul.f32 %v6326_v45, %v6326_v45  ;;  %v15612_v55 = vmul.f32 %v6327_v63, %v6327_v63  ;;  %v15614_v18 = vmul.f32 %v6328_v42, %v6328_v42  ;;  %v15658_v11 = vld [vmem:[%s7784_s19 + $0xf40] sm:$0xff]  ;;  %v15661_v45 = vld [vmem:[%s7784_s19 + $0xf48] sm:$0xff]  ;;  %v15712_v43 = vld [vmem:[%s7784_s19 + $0xf90] sm:$0xff] }
 0x45f   : > { %18464 = vst [vmem:[#allocation66_spill] sm:$0xff] %v15594_v50  ;;  %18465 = vst [vmem:[#allocation68_spill] sm:$0xff] %v15599_v36  ;;  %v15616_v44 = vmul.f32 %v6329_v23, %v6329_v23  ;;  %v15618_v61 = vmul.f32 %v6330_v32, %v6330_v32  ;;  %v15629_v48 = vmul.f32 %v6331_v10, %v6331_v10  ;;  %v15672_v10 = vld [vmem:[%s7784_s19 + $0xf50] sm:$0xff]  ;;  %v15706_v32 = vld [vmem:[%s7784_s19 + $0xf80] sm:$0xff]  ;;  %v5105_v36 = vmul.f32 1.442695, %v15712_v43 }
 0x460   : > { %18466 = vst [vmem:[#allocation43_spill] sm:$0xff] %v15601_v19  ;;  %18467 = vst [vmem:[#allocation26_spill] sm:$0xff] %v15603_v52  ;;  %v15631_v54 = vmul.f32 %v6332_v12, %v6332_v12  ;;  %v15633_v41 = vmul.f32 %v6333_v21, %v6333_v21  ;;  %v15635_v34 = vmul.f32 %v6334_v20, %v6334_v20  ;;  %v15675_v12 = vld [vmem:[%s7784_s19 + $0xf58] sm:$0xff]  ;;  %v15678_v21 = vld [vmem:[%s7784_s19 + $0xf60] sm:$0xff] }
 0x461   : > { %18468 = vst [vmem:[#allocation54_spill] sm:$0xff] %v15605_v25  ;;  %18469 = vst [vmem:[#allocation30_spill] sm:$0xff] %v15612_v55  ;;  %v15646_v14 = vmul.f32 %v6335_v60, %v6335_v60  ;;  %v15648_v22 = vmul.f32 %v6336_v3, %v6336_v3  ;;  %v15650_v28 = vmul.f32 %v6337_v0, %v6337_v0  ;;  %v15709_v23 = vld [vmem:[%s7784_s19 + $0xf88] sm:$0xff]  ;;  %v15723_v26 = vld [vmem:[%s7784_s19 + $0xf98] sm:$0xff]  ;;  %v5069_v3 = vmul.f32 1.442695, %v15610_v13 }
 0x462   : > { %18470 = vst [vmem:[#allocation64_spill] sm:$0xff] %v15614_v18  ;;  %18471 = vst [vmem:[#allocation28_spill] sm:$0xff] %v15616_v44  ;;  %v15652_v7 = vmul.f32 %v6338_v62, %v6338_v62  ;;  %v15663_v63 = vmul.f32 %v6339_v16, %v6339_v16  ;;  %v15665_v42 = vmul.f32 %v6340_v40, %v6340_v40  ;;  %v15689_v62 = vld [vmem:[%s7784_s19 + $0xf68] sm:$0xff]  ;;  %v15692_v16 = vld [vmem:[%s7784_s19 + $0xf70] sm:$0xff]  ;;  %v5073_v44 = vmul.f32 1.442695, %v15624_v17 }
 0x463   : > { %18472 = vst [vmem:[#allocation62_spill] sm:$0xff] %v15618_v61  ;;  %18473 = vst [vmem:[#allocation49_spill] sm:$0xff] %v15629_v48  ;;  %v15695_v40 = vld [vmem:[%s7784_s19 + $0xf78] sm:$0xff]  ;;  %v15726_v57 = vld [vmem:[%s7784_s19 + $0xfa0] sm:$0xff]  ;;  %v5071_v61 = vmul.f32 1.442695, %v15621_v29  ;;  %7405 = vpow2.f32 %v5069_v3  ;;  %v15796_v60 = vstv %s5165_s18 }
 0x464   : > { %18474 = vst [vmem:[#allocation55_spill] sm:$0xff] %v15631_v54  ;;  %18475 = vst [vmem:[#allocation65_spill] sm:$0xff] %v15633_v41  ;;  %v15729_v2 = vld [vmem:[%s7784_s19 + $0xfa8] sm:$0xff]  ;;  %v15740_v58 = vld [vmem:[%s7784_s19 + $0xfb0] sm:$0xff]  ;;  %v5075_v18 = vmul.f32 1.442695, %v15627_v8 }
 0x465   : > { %18476 = vst [vmem:[#allocation36_spill] sm:$0xff] %v15635_v34  ;;  %18477 = vst [vmem:[#allocation47_spill] sm:$0xff] %v15646_v14  ;;  %v15743_v38 = vld [vmem:[%s7784_s19 + $0xfb8] sm:$0xff]  ;;  %v15757_v20 = vld [vmem:[%s7784_s19 + $0xfc8] sm:$0xff]  ;;  %v5077_v41 = vmul.f32 1.442695, %v15638_v49  ;;  %7407 = vpow2.f32 %v5071_v61 }
 0x466   : > { %18478 = vst [vmem:[#allocation31_spill] sm:$0xff] %v15648_v22  ;;  %18479 = vst [vmem:[#allocation42_spill] sm:$0xff] %v15650_v28  ;;  %v15763_v25 = vld [vmem:[%s7784_s19 + $0xfd8] sm:$0xff]  ;;  %v15779_v52 = vld [vmem:[%s7784_s19 + $0xfe0] sm:$0xff]  ;;  %v5079_v54 = vmul.f32 1.442695, %v15641_v39  ;;  %7409 = vpow2.f32 %v5073_v44 }
 0x467   : > { %18480 = vst [vmem:[#allocation48_spill] sm:$0xff] %v15652_v7  ;;  %18481 = vst [vmem:[#allocation20_spill] sm:$0xff] %v15663_v63  ;;  %v15782_v63 = vld [vmem:[%s7784_s19 + $0xfe8] sm:$0xff]  ;;  %v5081_v48 = vmul.f32 1.442695, %v15644_v4  ;;  %7411 = vpow2.f32 %v5075_v18  ;;  %v15805_v7 = vld [vmem:[%s7784_s19 + $0xff0] sm:$0xff] }
 0x468   : > { %18482 = vst [vmem:[#allocation56_spill] sm:$0xff] %v15665_v42  ;;  %18483 = vst [vmem:[#allocation45_spill] sm:$0xff] %v15689_v62  ;;  %v15746_v42 = vld [vmem:[%s7784_s19 + $0xfc0] sm:$0xff]  ;;  %v5083_v55 = vmul.f32 1.442695, %v15655_v15  ;;  %7413 = vpow2.f32 %v5077_v41  ;;  %v15811_v19 = vld [vmem:[%s7784_s19 + $0xff8] sm:$0xff] }
 0x469   : > { %18484 = vst [vmem:[#allocation53_spill] sm:$0xff] %v15692_v16  ;;  %18485 = vst [vmem:[#allocation61_spill] sm:$0xff] %v15706_v32  ;;  %v5085_v3 = vmul.f32 1.442695, %v15658_v11  ;;  %v5087_v0 = vmul.f32 1.442695, %v15661_v45  ;;  %7415 = vpow2.f32 %v5079_v54 }
 0x46a   : > { %18486 = vst [vmem:[#allocation29_spill] sm:$0xff] %v15712_v43  ;;  %18487 = vst [vmem:[#allocation23_spill] sm:$0xff] %v15723_v26  ;;  %v5089_v28 = vmul.f32 1.442695, %v15672_v10  ;;  %v5091_v61 = vmul.f32 1.442695, %v15675_v12  ;;  %7417 = vpow2.f32 %v5081_v48 }
 0x46b   : > { %18488 = vst [vmem:[#allocation33_spill] sm:$0xff] %v15726_v57  ;;  %18489 = vst [vmem:[#allocation27_spill] sm:$0xff] %v15729_v2  ;;  %v5093_v34 = vmul.f32 1.442695, %v15678_v21  ;;  %v5095_v44 = vmul.f32 1.442695, %v15689_v62  ;;  %7419 = vpow2.f32 %v5083_v55 }
 0x46c   : > { %18490 = vst [vmem:[#allocation57_spill] sm:$0xff] %v15740_v58  ;;  %18491 = vst [vmem:[#allocation52_spill] sm:$0xff] %v15743_v38  ;;  %v5097_v22 = vmul.f32 1.442695, %v15692_v16  ;;  %v5099_v18 = vmul.f32 1.442695, %v15695_v40  ;;  %7421 = vpow2.f32 %v5085_v3 }
 0x46d   : > { %18492 = vst [vmem:[#allocation25_spill] sm:$0xff] %v15746_v42  ;;  %18493 = vst [vmem:[#allocation41_spill] sm:$0xff] %v15757_v20  ;;  %v5101_v14 = vmul.f32 1.442695, %v15706_v32  ;;  %v5103_v41 = vmul.f32 1.442695, %v15709_v23  ;;  %7423 = vpow2.f32 %v5087_v0  ;;  %v7406_v3 = vpop.eup %7405 }
 0x46e   : > { %18495 = vst [vmem:[#allocation58_spill] sm:$0xff] %v15763_v25  ;;  %18496 = vst [vmem:[#allocation46_spill] sm:$0xff] %v15779_v52  ;;  %v5107_v50 = vmul.f32 1.442695, %v15723_v26  ;;  %v5109_v62 = vmul.f32 1.442695, %v15726_v57  ;;  %7425 = vpow2.f32 %v5089_v28 }
 0x46f   : > { %18497 = vst [vmem:[#allocation19_spill] sm:$0xff] %v15782_v63  ;;  %18498 = vst [vmem:[#allocation12_spill] sm:$0xff] %v15805_v7  ;;  %v15818_v54 = vmul.f32 1.442695, %v15729_v2  ;;  %v15821_v16 = vmul.f32 1.442695, %v15740_v58  ;;  %v7408_v0 = vpop.eup %7407  ;;  %7427 = vpow2.f32 %v5091_v61  ;;  %v15867_v61 = vadd.s32 %v15796_v60, %v18268_v31 }
 0x470   : > { %18499 = vst [vmem:[#allocation15_spill] sm:$0xff] %v15811_v19  ;;  %v15824_v32 = vmul.f32 1.442695, %v15743_v38  ;;  %v15827_v48 = vmul.f32 1.442695, %v15746_v42  ;;  %v18500_v57 = vld [vmem:[#allocation11_spill] sm:$0xff]  ;;  %7429 = vpow2.f32 %v5093_v34  ;;  %v18507_v34 = vsub.f32 %v15624_v17, %v15541_v33 }
 0x471   : > { %v15830_v43 = vmul.f32 1.442695, %v15757_v20  ;;  %v15833_v55 = vmul.f32 1.442695, %v15760_v1  ;;  %v15836_v2 = vmul.f32 1.442695, %v15763_v25  ;;  %v5167_v58 = vadd.s32 %v15796_v60, %v18500_v57 }
 0x472   : > { %v15841_v38 = vmul.f32 1.442695, %v15779_v52  ;;  %v15844_v42 = vmul.f32 1.442695, %v15782_v63  ;;  %v15847_v20 = vmul.f32 1.442695, %v15805_v7  ;;  %v7410_v52 = vpop.eup %7409  ;;  %v18505_v63 = vsub.f32 %v15610_v13, %v15527_v35 }
 0x473   : > { %v15850_v1 = vmul.f32 1.442695, %v15811_v19  ;;  %v18503_v25 = vld [vmem:[#allocation18_spill] sm:$0xff]  ;;  %v15863_v7 = vadd.s32 %v15796_v60, %v18390_v47  ;;  %v7412_v19 = vpop.eup %7411  ;;  %7431 = vpow2.f32 %v5095_v44  ;;  %vm5175_vm8 = vcmp.lt.s32.totalorder %v5167_v58, 2560 }
 0x474   : > { %18501 = vst [vmem:[#allocation17_spill] sm:$0xff] %v15844_v42  ;;  %v5168_v26 = vadd.s32 %v15796_v60, %v18503_v25  ;;  %v18504_v57 = vld [vmem:[#allocation22_spill] sm:$0xff]  ;;  %v5133_v42 = vsub.f32 %v18505_v63, %v7406_v3  ;;  %v18506_v25 = vsub.f32 %v15621_v29, %v15532_v30  ;;  %v7414_v35 = vpop.eup %7413  ;;  %7433 = vpow2.f32 %v5097_v22  ;;  %v18509_v63 = vld [vmem:[#allocation37_spill] sm:$0xff] }
 0x475   : > { %18502 = vst [vmem:[#allocation59_spill] sm:$0xff] %v15850_v1  ;;  %v15856_v28 = vadd.s32 %v15796_v60, %v18504_v57  ;;  %v5135_v1 = vsub.f32 %v18507_v34, %v7410_v52  ;;  %v18508_v47 = vsub.f32 %v15627_v8, %v15548_v56  ;;  %v15880_v31 = vadd.s32 %v15796_v60, %v18027_v27  ;;  %v7416_v30 = vpop.eup %7415 }
 0x476   : > { %v5134_v57 = vsub.f32 %v18506_v25, %v7408_v0  ;;  %v15884_v44 = vadd.s32 %v15796_v60, %v18509_v63  ;;  %7435 = vpow2.f32 %v5099_v18  ;;  %v18510_v33 = vsub.f32 %v15638_v49, %v15555_v24  ;;  %v7418_v29 = vpop.eup %7417 }
 0x477   : > { %v5136_v13 = vsub.f32 %v18508_v47, %v7412_v19  ;;  %vm5176_vm9 = vcmp.lt.s32.totalorder %v5168_v26, 2560  ;;  %vm5177_vm10 = vcmp.lt.s32.totalorder %v15856_v28, 2560  ;;  %7437 = vpow2.f32 %v5101_v14  ;;  %v7420_v17 = vpop.eup %7419 }
 0x478   : > { %v5137_v52 = vsub.f32 %v18510_v33, %v7414_v35  ;;  %v18511_v56 = vsub.f32 %v15641_v39, %v15557_v46  ;;  %vm5178_vm11 = vcmp.lt.s32.totalorder %v15863_v7, 2560  ;;  %v5183_v19 = vsel %vm5175_vm8, %v5133_v42, 0.0  ;;  %v7422_v18 = vpop.eup %7421 }
 0x479   : > { %7439 = vpow2.f32 %v5103_v41  ;;  %v18512_v8 = vsub.f32 %v15644_v4, %v15559_v51  ;;  %v5184_v49 = vsel %vm5175_vm8, %v5134_v57, 0.0  ;;  %v5185_v22 = vsel %vm5175_vm8, %v5135_v1, 0.0  ;;  %v7424_v41 = vpop.eup %7423 }
 0x47a   : > { %v5138_v27 = vsub.f32 %v18511_v56, %v7416_v30  ;;  %7441 = vpow2.f32 %v5105_v36  ;;  %v18513_v46 = vsub.f32 %v15655_v15, %v15568_v59  ;;  %vm5179_vm12 = vcmp.lt.s32.totalorder %v15867_v61, 2560  ;;  %v7426_v3 = vpop.eup %7425 }
 0x47b   : > { %v5139_v24 = vsub.f32 %v18512_v8, %v7418_v29  ;;  %v5186_v14 = vsel %vm5175_vm8, %v5136_v13, 0.0  ;;  %v5187_v42 = vsel %vm5176_vm9, %v5137_v52, 0.0  ;;  %7443 = vpow2.f32 %v5107_v50  ;;  %v7428_v25 = vpop.eup %7427 }
 0x47c   : > { %v5140_v39 = vsub.f32 %v18513_v46, %v7420_v17  ;;  %v18514_v51 = vsub.f32 %v15658_v11, %v15570_v53  ;;  %v5188_v1 = vsel %vm5176_vm9, %v5138_v27, 0.0  ;;  %7445 = vpow2.f32 %v5109_v62  ;;  %v7430_v34 = vpop.eup %7429 }
 0x47d   : > { %v5189_v36 = vsel %vm5176_vm9, %v5139_v24, 0.0  ;;  %v18515_v59 = vsub.f32 %v15661_v45, %v15577_v5  ;;  %v5215_v0 = vadd.f32 %v5187_v42, %v5183_v19  ;;  %7447 = vpow2.f32 %v15818_v54  ;;  %v7432_v54 = vpop.eup %7431  ;;  %v18525_v19 = vld [vmem:[#allocation43_spill] sm:$0xff] }
 0x47e   : > { %v5141_v4 = vsub.f32 %v18514_v51, %v7422_v18  ;;  %v5190_v58 = vsel %vm5176_vm9, %v5140_v39, 0.0  ;;  %v18516_v53 = vsub.f32 %v15672_v10, %v15579_v37  ;;  %v5222_v57 = vadd.f32 %v5188_v1, %v5184_v49  ;;  %v7434_v47 = vpop.eup %7433  ;;  %v18527_v49 = vld [vmem:[#allocation61_spill] sm:$0xff] }
 0x47f   : > { %v5142_v15 = vsub.f32 %v18515_v59, %v7424_v41  ;;  %7449 = vpow2.f32 %v15821_v16  ;;  %v18517_v5 = vsub.f32 %v15675_v12, %v15581_v9  ;;  %vm5180_vm13 = vcmp.lt.s32.totalorder %v15880_v31, 2560  ;;  %v18519_v9 = vld [vmem:[#allocation45_spill] sm:$0xff]  ;;  %v18520_v12 = vld [vmem:[#allocation66_spill] sm:$0xff] }
 0x480   : > { %v5143_v50 = vsub.f32 %v18516_v53, %v7426_v3  ;;  %v5191_v11 = vsel %vm5177_vm10, %v5141_v4, 0.0  ;;  %7451 = vpow2.f32 %v15824_v32  ;;  %v18518_v37 = vsub.f32 %v15678_v21, %v15592_v6  ;;  %v7436_v32 = vpop.eup %7435  ;;  %v18522_v6 = vld [vmem:[#allocation53_spill] sm:$0xff]  ;;  %v18523_v21 = vld [vmem:[#allocation68_spill] sm:$0xff]  ;;  %v18534_v3 = vld [vmem:[#allocation30_spill] sm:$0xff] }
 0x481   : > { %v5144_v26 = vsub.f32 %v18517_v5, %v7428_v25  ;;  %v5192_v45 = vsel %vm5177_vm10, %v5142_v15, 0.0  ;;  %v5216_v62 = vadd.f32 %v5215_v0, %v5191_v11  ;;  %7453 = vpow2.f32 %v15827_v48  ;;  %v7438_v48 = vpop.eup %7437  ;;  %v18532_v1 = vld [vmem:[#allocation17_spill] sm:$0xff]  ;;  %v18537_v25 = vld [vmem:[#allocation64_spill] sm:$0xff] }
 0x482   : > { %v5145_v10 = vsub.f32 %v18518_v37, %v7430_v34  ;;  %v5193_v16 = vsel %vm5177_vm10, %v5143_v50, 0.0  ;;  %v5223_v35 = vadd.f32 %v5222_v57, %v5192_v45  ;;  %v18521_v13 = vsub.f32 %v18519_v9, %v18520_v12  ;;  %v18539_v34 = vld [vmem:[#allocation59_spill] sm:$0xff]  ;;  %v18540_v5 = vld [vmem:[#allocation33_spill] sm:$0xff] }
 0x483   : > { %v5194_v30 = vsel %vm5177_vm10, %v5144_v26, 0.0  ;;  %v5229_v33 = vadd.f32 %v5189_v36, %v5185_v22  ;;  %7455 = vpow2.f32 %v15830_v43  ;;  %v18524_v52 = vsub.f32 %v18522_v6, %v18523_v21  ;;  %v7440_v43 = vpop.eup %7439  ;;  %v18528_v22 = vld [vmem:[#allocation26_spill] sm:$0xff]  ;;  %v18533_v36 = vld [vmem:[#allocation29_spill] sm:$0xff]  ;;  %v18541_v26 = vld [vmem:[#allocation28_spill] sm:$0xff] }
 0x484   : > { %v5146_v63 = vsub.f32 %v18521_v13, %v7432_v54  ;;  %v5195_v56 = vsel %vm5178_vm11, %v5145_v10, 0.0  ;;  %v5236_v27 = vadd.f32 %v5190_v58, %v5186_v14  ;;  %7457 = vpow2.f32 %v15833_v55  ;;  %v7442_v55 = vpop.eup %7441  ;;  %v18543_v10 = vld [vmem:[#allocation27_spill] sm:$0xff]  ;;  %v18549_v21 = vld [vmem:[#allocation40_spill] sm:$0xff] }
 0x485   : > { %v5147_v29 = vsub.f32 %v18524_v52, %v7434_v47  ;;  %v18526_v17 = vsub.f32 %v15695_v40, %v18525_v19  ;;  %v5217_v24 = vadd.f32 %v5216_v62, %v5195_v56  ;;  %7459 = vpow2.f32 %v15836_v2  ;;  %v18530_v40 = vld [vmem:[#allocation54_spill] sm:$0xff]  ;;  %v7444_v2 = vpop.eup %7443 }
 0x486   : > { %v5196_v8 = vsel %vm5178_vm11, %v5146_v63, 0.0  ;;  %v18529_v18 = vsub.f32 %v18527_v49, %v18528_v22  ;;  %7461 = vpow2.f32 %v15841_v38  ;;  %v18531_v42 = vsub.f32 %v15709_v23, %v18530_v40  ;;  %v7446_v38 = vpop.eup %7445  ;;  %v18536_v23 = vld [vmem:[#allocation23_spill] sm:$0xff]  ;;  %v18554_v49 = vld [vmem:[#allocation65_spill] sm:$0xff]  ;;  %v18557_v40 = vld [vmem:[#allocation12_spill] sm:$0xff] }
 0x487   : > { %v5148_v28 = vsub.f32 %v18526_v17, %v7436_v32  ;;  %v5197_v39 = vsel %vm5178_vm11, %v5147_v29, 0.0  ;;  %v5224_v14 = vadd.f32 %v5223_v35, %v5196_v8  ;;  %v5230_v4 = vadd.f32 %v5229_v33, %v5193_v16  ;;  %v7448_v57 = vpop.eup %7447  ;;  %v18544_v16 = vld [vmem:[#allocation62_spill] sm:$0xff]  ;;  %v18547_v33 = vld [vmem:[#allocation49_spill] sm:$0xff] }
 0x488   : > { %v5149_v46 = vsub.f32 %v18529_v18, %v7438_v48  ;;  %v5150_v41 = vsub.f32 %v18531_v42, %v7440_v43  ;;  %7463 = vpow2.f32 %v18532_v1  ;;  %v18535_v59 = vsub.f32 %v18533_v36, %v18534_v3  ;;  %v18551_v48 = vld [vmem:[#allocation55_spill] sm:$0xff]  ;;  %v18553_v43 = vld [vmem:[#allocation25_spill] sm:$0xff] }
 0x489   : > { %v5198_v51 = vsel %vm5178_vm11, %v5148_v28, 0.0  ;;  %v5237_v0 = vadd.f32 %v5236_v27, %v5194_v30  ;;  %7465 = vpow2.f32 %v15847_v20  ;;  %v18538_v53 = vsub.f32 %v18536_v23, %v18537_v25  ;;  %v7450_v20 = vpop.eup %7449  ;;  %v18546_v30 = vld [vmem:[#allocation57_spill] sm:$0xff]  ;;  %v18550_v27 = vld [vmem:[#allocation52_spill] sm:$0xff] }
 0x48a   : > { %v5151_v15 = vsub.f32 %v18535_v59, %v7442_v55  ;;  %v5199_v58 = vsel %vm5179_vm12, %v5149_v46, 0.0  ;;  %v5200_v50 = vsel %vm5179_vm12, %v5150_v41, 0.0  ;;  %7467 = vpow2.f32 %v18539_v34  ;;  %v7452_v63 = vpop.eup %7451  ;;  %v18556_v55 = vld [vmem:[#allocation20_spill] sm:$0xff]  ;;  %v18558_v41 = vld [vmem:[#allocation41_spill] sm:$0xff] }
 0x48b   : > { %v5152_v7 = vsub.f32 %v18538_v53, %v7444_v2  ;;  %v5218_v11 = vadd.f32 %v5217_v24, %v5199_v58  ;;  %v18542_v45 = vsub.f32 %v18540_v5, %v18541_v26  ;;  %v5225_v37 = vadd.f32 %v5224_v14, %v5200_v50  ;;  %v7454_v56 = vpop.eup %7453  ;;  %v18561_v59 = vld [vmem:[#allocation56_spill] sm:$0xff] }
 0x48c   : > { %v5201_v54 = vsel %vm5179_vm12, %v5151_v15, 0.0  ;;  %v18545_v35 = vsub.f32 %v18543_v10, %v18544_v16  ;;  %v5231_v12 = vadd.f32 %v5230_v4, %v5197_v39  ;;  %v5238_v13 = vadd.f32 %v5237_v0, %v5198_v51  ;;  %v18559_v51 = vld [vmem:[#allocation36_spill] sm:$0xff]  ;;  %v18562_v15 = vld [vmem:[#allocation15_spill] sm:$0xff]  ;;  %v18572_v10 = vld [vmem:[#allocation42_spill] sm:$0xff] }
 0x48d   : > { %v5153_v62 = vsub.f32 %v18542_v45, %v7446_v38  ;;  %v5202_v9 = vsel %vm5179_vm12, %v5152_v7, 0.0  ;;  %v18548_v32 = vsub.f32 %v18546_v30, %v18547_v33  ;;  %v5174_v52 = vadd.s32 %v15796_v60, %v18549_v21  ;;  %v7456_v24 = vpop.eup %7455  ;;  %v18563_v0 = vld [vmem:[#allocation67_spill] sm:$0xff] }
 0x48e   : > { %v5154_v47 = vsub.f32 %v18545_v35, %v7448_v57  ;;  %vm5181_vm14 = vcmp.lt.s32.totalorder %v15884_v44, 2560  ;;  %v18552_v61 = vsub.f32 %v18550_v27, %v18551_v48  ;;  %v5232_v8 = vadd.f32 %v5231_v12, %v5201_v54  ;;  %v7458_v14 = vpop.eup %7457  ;;  %v18564_v38 = vld [vmem:[#allocation47_spill] sm:$0xff]  ;;  %v18570_v54 = vld [vmem:[#allocation50_spill] sm:$0xff]  ;;  %v18579_v48 = vld [vmem:[#allocation24_spill] sm:$0xff] }
 0x48f   : > { %v5155_v6 = vsub.f32 %v18548_v32, %v7450_v20  ;;  %v5203_v29 = vsel %vm5180_vm13, %v5153_v62, 0.0  ;;  %v18555_v22 = vsub.f32 %v18553_v43, %v18554_v49  ;;  %v5239_v39 = vadd.f32 %v5238_v13, %v5202_v9  ;;  %v7460_v3 = vpop.eup %7459  ;;  %v18567_v57 = vld [vmem:[#allocation31_spill] sm:$0xff]  ;;  %v18569_v62 = vld [vmem:[#allocation60_spill] sm:$0xff]  ;;  %v18571_v20 = vld [vmem:[#allocation46_spill] sm:$0xff] }
 0x490   : > { %v5156_v19 = vsub.f32 %v18552_v61, %v7452_v63  ;;  %v5204_v17 = vsel %vm5180_vm13, %v5154_v47, 0.0  ;;  %v5219_v28 = vadd.f32 %v5218_v11, %v5203_v29  ;;  %v5067_v42 = vsub.f32 %v18557_v40, %v18556_v55  ;;  %v7462_v50 = vpop.eup %7461  ;;  %v18566_v11 = vld [vmem:[#allocation58_spill] sm:$0xff]  ;;  %v18576_v33 = vld [vmem:[#allocation19_spill] sm:$0xff]  ;;  %v18577_v32 = vld [vmem:[#allocation48_spill] sm:$0xff] }
 0x491   : > { %v5157_v60 = vsub.f32 %v18555_v22, %v7454_v56  ;;  %v5205_v18 = vsel %vm5180_vm13, %v5155_v6, 0.0  ;;  %v5226_v46 = vadd.f32 %v5225_v37, %v5204_v17  ;;  %v18560_v4 = vsub.f32 %v18558_v41, %v18559_v51  ;;  %v18574_v13 = vld [vmem:[#allocation38_spill] sm:$0xff]  ;;  %v18580_v61 = vld [vmem:[#allocation44_spill] sm:$0xff]  ;;  %v18582_v43 = vld [vmem:[#allocation21_spill] sm:$0xff] }
 0x492   : > { %v5206_v1 = vsel %vm5180_vm13, %v5156_v19, 0.0  ;;  %v5233_v36 = vadd.f32 %v5232_v8, %v5205_v18  ;;  %v5068_v58 = vsub.f32 %v18562_v15, %v18561_v59  ;;  %v18565_v23 = vsub.f32 %v18563_v0, %v18564_v38  ;;  %v7464_v45 = vpop.eup %7463  ;;  %v18575_v63 = vld [vmem:[#allocation34_spill] sm:$0xff]  ;;  %v5247_v55 = vld [vmem:[#allocation7] sm:$0xff]  ;;  %v5248_v51 = vld [vmem:[#allocation7 + $0x8] sm:$0xff] }
 0x493   : > { %v5158_v2 = vsub.f32 %v18560_v4, %v7456_v24  ;;  %v5207_v53 = vsel %vm5181_vm14, %v5157_v60, 0.0  ;;  %v5240_v7 = vadd.f32 %v5239_v39, %v5206_v1  ;;  %v18568_v34 = vsub.f32 %v18566_v11, %v18567_v57  ;;  %v7466_v12 = vpop.eup %7465  ;;  %v18581_v24 = vld [vmem:[#allocation32_spill] sm:$0xff]  ;;  %v5249_v1 = vld [vmem:[#allocation7 + $0x10] sm:$0xff] }
 0x494   : > { %v5159_v25 = vsub.f32 %v18565_v23, %v7458_v14  ;;  %vm5182_vm15 = vcmp.lt.s32.totalorder %v5174_v52, 2560  ;;  %v5220_v26 = vadd.f32 %v5219_v28, %v5207_v53  ;;  %v4931_v37 = vadd.f32 %v18570_v54, %v18569_v62  ;;  %v7468_v27 = vpop.eup %7467 }
 0x495   : > { %v5160_v5 = vsub.f32 %v18568_v34, %v7460_v3  ;;  %v5208_v31 = vsel %vm5181_vm14, %v5158_v2, 0.0  ;;  %v18573_v16 = vsub.f32 %v18571_v20, %v18572_v10  ;;  %v4932_v30 = vadd.f32 %v18575_v63, %v18574_v13  ;;  %v5250_v3 = vld [vmem:[#allocation7 + $0x18] sm:$0xff] }
 0x496   : > { %v5209_v47 = vsel %vm5181_vm14, %v5159_v25, 0.0  ;;  %v5227_v9 = vadd.f32 %v5226_v46, %v5208_v31  ;;  %v18578_v6 = vsub.f32 %v18576_v33, %v18577_v32  ;;  %v4933_v19 = vadd.f32 %v18580_v61, %v18579_v48  ;;  %v18583_v46 = vld [vmem:[#allocation14_spill] sm:$0xff] }
 0x497   : > { %v5161_v35 = vsub.f32 %v18573_v16, %v7462_v50  ;;  %v5210_v29 = vsel %vm5181_vm14, %v5160_v5, 0.0  ;;  %v5234_v56 = vadd.f32 %v5233_v36, %v5209_v47  ;;  %v5163_v17 = vsub.f32 %v5067_v42, %v7466_v12 }
 0x498   : > { %v5162_v21 = vsub.f32 %v18578_v6, %v7464_v45  ;;  %v5241_v8 = vadd.f32 %v5240_v7, %v5210_v29  ;;  %v4934_v49 = vadd.f32 %v18582_v43, %v18581_v24  ;;  %v5164_v22 = vsub.f32 %v5068_v58, %v7468_v27 }
 0x499   : > { %v5211_v28 = vsel %vm5182_vm15, %v5161_v35, 0.0  ;;  %v4935_v39 = vadd.f32 %v4931_v37, %v18583_v46  ;;  %v5213_v44 = vsel %vm5182_vm15, %v5163_v17, 0.0 }
 0x49a   : > { %v5212_v60 = vsel %vm5182_vm15, %v5162_v21, 0.0  ;;  %v5221_v18 = vadd.f32 %v5220_v26, %v5211_v28  ;;  %v5214_v40 = vsel %vm5182_vm15, %v5164_v22, 0.0  ;;  %v5235_v42 = vadd.f32 %v5234_v56, %v5213_v44 }
 0x49b   : > { %v5228_v14 = vadd.f32 %v5227_v9, %v5212_v60  ;;  %v5242_v4 = vadd.f32 %v5241_v8, %v5214_v40 }
 0x49c   : > { %v5243_v41 = vadd.f32 %v5221_v18, %v4932_v30  ;;  %v5245_v36 = vadd.f32 %v5235_v42, %v4934_v49 }
 0x49d   : > { %v5244_v2 = vadd.f32 %v5228_v14, %v4933_v19  ;;  %v5246_v15 = vadd.f32 %v5242_v4, %v4935_v39 }
 0x49e   : > { %v5251_v59 = vadd.f32 %v5247_v55, %v5243_v41  ;;  %v5253_v0 = vadd.f32 %v5249_v1, %v5245_v36 }
 0x49f   : > { %v5252_v58 = vadd.f32 %v5248_v51, %v5244_v2  ;;  %v5254_v52 = vadd.f32 %v5250_v3, %v5246_v15 }
 0x4a0   : > { %5255 = vst [vmem:[#allocation7] sm:$0xff] %v5251_v59  ;;  %5257 = vst [vmem:[#allocation7 + $0x10] sm:$0xff] %v5253_v0 }
 0x4a1   : > { %5256 = vst [vmem:[#allocation7 + $0x8] sm:$0xff] %v5252_v58  ;;  %5258 = vst [vmem:[#allocation7 + $0x18] sm:$0xff] %v5254_v52 }
 0x4a2   : > { %7538 = shalt.err (!%p7535_p4)
}
 0x4a3   : > { %s7539_s20 = scalar_lea.hbm %s16095_s2, 512 }
 0x4a4   : > { %p7540_p6 = scmp.ne.s32.totalorder %s16095_s2, %s7539_s20  ;;  %p7545_p9 = scmp.lt.u32.totalorder %s7539_s20, %s16095_s2 }
 0x4a6   : > { %p7541_p8 = pnand %p7540_p6, %p16049_p7 }
 0x4a8   : > { %p7542_p5 = pneg %p7541_p8 }
 0x4aa   : > { %p7547_p11 = pnand %p7545_p9, %p7542_p5 }
 0x4ac   : > { %7550 = shalt.err (!%p7547_p11)
}
 0x4ad   : > { %6386 = dma.vmem_to_hbm [thread:$0]  (%p16049_p7), %s5270_s5, 512, %s16095_s2, [#allocation4]  }
 0x4ae   : > { %7584 = dma.done.wait (%p16049_p7), [#allocation4], 512  }
 0x4af   : > { %7586 = vsyncadd (%p16049_p7), [#allocation4], 4294966784 }
 0x4b0 PF: > { %s19_s14 = sadd.s32 1, %s7609_s14   ;;  %s18585_s9 = smov %s7593_s10 }
 0x4b1   : > { %p16_p3 = scmp.ge.s32.totalorder %s19_s14, 5   ;;  %s18586_s10 = smov %s7597_s11 }
 0x4b2   : > { %s18587_s11 = smov %s7684_s21  ;;  %s18588_s12 = smov %s7605_s13 }
 0x4b3   : > { %s18589_s13 = smov %s18591_s16  ;;  %18 = sbr.rel (!%p16_p3) target bundleno = 7 (0x7), region = 115 }
 0x4ba   :  { %5282 = vsyncpa [#allocation3], 1 }
 0x4bb   :  { %5284 = vsyncpa [#allocation3 + $0x1], 1 }
 0x4bc   :  { %5285 = vsyncpa [#allocation6], 1 }
 0x4bd   :  { %5287 = vsyncpa [#allocation6 + $0x1], 1 }
 0x4be   :  { %5288 = vsyncpa [#allocation4], 1 }
 0x4bf   :  { %5290 = vsyncpa [#allocation4 + $0x1], 1 }

</bundles_post_ra>
